<compile_context>
chip_gen: v6e
topology: v6e:2x2x1
jax: 0.10.0
libtpu: 0.0.40
codegen_flags: <defaults>
</compile_context>

<pallas_src>
import jax
import jax.numpy as jnp
from jax import lax
from jax.experimental import pallas as pl
from jax.experimental.pallas import tpu as pltpu

# Small VGG-style feature config (conv channels / 'M' = maxpool 2x2), chosen so
# a 16x16 input ends at 1x1x512 -> classifier Linear(512, 10), matching the
# reference module's 512-dim classifier input.
CFG = [16, 'M', 32, 'M', 64, 'M', 128, 'M', 512]
NUM_CLASSES = 10
IN_CHANNELS = 3
_MAX_BATCH_BLOCK = 8   # tunable: larger -> better MXU M-utilization, more VMEM/spill


# --------------------------- static schedule ---------------------------------

def _layer_schedule(h, w, cin):
    """Static (H, W, Cin, Cout, pool_after) tuple per conv layer."""
    dims = []
    k = 0
    while k < len(CFG):
        v = CFG[k]
        assert v != 'M'
        pool = (k + 1 < len(CFG) and CFG[k + 1] == 'M')
        if pool:
            assert h % 2 == 0 and w % 2 == 0, "pooled layer requires even H, W"
        dims.append((h, w, cin, v, pool))
        cin = v
        if pool:
            h //= 2
            w //= 2
            k += 2
        else:
            k += 1
    # last conv must be 1x1 spatial: flatten == PyTorch .view, and the kernel's
    # centre-tap-only shortcut for that layer is exact.
    assert (not dims[-1][4]) and dims[-1][0] == 1 and dims[-1][1] == 1
    # the layer feeding the 1x1 conv must itself end at 1x1
    assert dims[-2][4] and dims[-2][0] // 2 == 1 and dims[-2][1] // 2 == 1
    return dims


def _pick_batch_block(n):
    """Largest batch block <= _MAX_BATCH_BLOCK dividing n, preferring >= 2 grid
    steps so the pipeline has work to overlap and v7x can use both cores."""
    for bn in range(min(_MAX_BATCH_BLOCK, n), 0, -1):
        if n % bn == 0 and n // bn >= 2:
            return bn
    for bn in range(min(_MAX_BATCH_BLOCK, n), 0, -1):
        if n % bn == 0:
            return bn
    return n


# --------------------------- fused Pallas kernel ------------------------------

def _make_kernel(dims, bn):
    n_conv = len(dims)

    def kernel(*refs):
        # ---- unpack: inputs..., output, scratch... -------------------------
        x_ref = refs[0]
        conv_refs = refs[1:1 + 2 * n_conv]              # (w, b) per conv layer
        fcw_ref = refs[1 + 2 * n_conv]
        fcb_ref = refs[2 + 2 * n_conv]
        o_ref = refs[3 + 2 * n_conv]
        pads = refs[4 + 2 * n_conv:]                    # one per 3x3 conv layer

        # Zero the padded input buffers.  With tight channel packing these are
        # a few KB total, so one unmasked full-buffer memset per layer beats
        # four masked edge stores; doing it every grid step (not just step 0)
        # keeps it correct when the 'parallel' axis is sharded across cores.
        for p in pads:
            p[...] = jnp.zeros(p.shape, p.dtype)

        # Stage this batch block's input into layer 0's padded buffer.
        H0, W0 = dims[0][0], dims[0][1]
        pads[0][:, 1:1 + H0, 1:1 + W0, :] = x_ref[...].astype(pads[0].dtype)

        feat_in = None      # (bn, Cin) input of the final 1x1 conv
        feat = None         # (bn, 512) classifier input
        for li, (H, W, Cin, Cout, pool) in enumerate(dims):
            w_ref = conv_refs[2 * li]
            b_ref = conv_refs[2 * li + 1]

            if li == n_conv - 1:
                # 1x1-spatial SAME conv: the 8 off-centre taps only read the
                # zero border, so this is a single centre-tap matmul.
                acc = jnp.dot(feat_in, w_ref[...],
                              preferred_element_type=jnp.float32)
                feat = jnp.maximum(acc + b_ref[...], 0.0)          # (bn, 512)
                continue

            pad_ref = pads[li]
            M = bn * H * W
            # 3x3 conv as 9 accumulating MXU matmuls over shifted views of the
            # padded buffer: no patch matrix, no zero-inflated K, tight weights.
            acc = None
            for t in range(9):
                dy, dx = t // 3, t % 3
                tap = pad_ref[:, dy:dy + H, dx:dx + W, :].reshape(M, Cin)
                part = jnp.dot(tap, w_ref[t], preferred_element_type=jnp.float32)
                acc = part if acc is None else acc + part
            acc = jnp.maximum(acc + b_ref[...], 0.0)               # (M, Cout) f32

            if pool:
                # Fused 2x2/2 maxpool, vectorized on the value.
                # Rows of acc are ordered (n, y, x).
                H2, W2 = H // 2, W // 2
                a = acc.reshape(bn, H2, 2, W2, 2, Cout)
                out4 = a.max(axis=2).max(axis=3)                   # (bn, H2, W2, Cout)
                Ht, Wt = H2, W2
            else:
                out4 = acc.reshape(bn, H, W, Cout)
                Ht, Wt = H, W

            if li + 1 == n_conv - 1:
                # Next layer is the 1x1 conv: keep its (bn, C) input as a value,
                # no pad buffer / VMEM round trip needed for it.
                feat_in = out4.reshape(bn, Ht * Wt * Cout).astype(jnp.bfloat16)
            else:
                nxt = pads[li + 1]
                nxt[:, 1:1 + Ht, 1:1 + Wt, :] = out4.astype(nxt.dtype)

        # ---- fused classifier: Linear(512, NUM_CLASSES) ---------------------
        logits = jnp.dot(feat.astype(jnp.bfloat16), fcw_ref[...],
                         preferred_element_type=jnp.float32) + fcb_ref[...]
        o_ref[...] = logits.reshape(o_ref.shape)

    return kernel


# --------------------------- forward pass (wrapper) ---------------------------

@jax.jit
def vgg_forward(x_nchw, params):
    """Pallas implementation of VGG.forward (features -> flatten -> classifier)."""
    x = jnp.transpose(x_nchw, (0, 2, 3, 1)).astype(jnp.bfloat16)   # NCHW -> NHWC
    N, H0, W0, C0 = x.shape
    dims = _layer_schedule(H0, W0, C0)
    n_conv = len(dims)
    bn = _pick_batch_block(N)

    inputs = [x]
    in_specs = [pl.BlockSpec((bn, H0, W0, C0), lambda i: (i, 0, 0, 0))]
    for li, (H, W, Cin, Cout, pool) in enumerate(dims):
        w, b = params["convs"][li]                          # HWIO (3,3,Cin,Cout)
        if li == n_conv - 1:
            # 1x1-spatial layer: ship only the centre tap (9x less weight DMA).
            wk = w[1, 1].astype(jnp.bfloat16)               # (Cin, Cout)
            in_specs.append(pl.BlockSpec(wk.shape, lambda i: (0, 0)))
        else:
            wk = w.reshape(9, Cin, Cout).astype(jnp.bfloat16)   # tight: no zero pad
            in_specs.append(pl.BlockSpec(wk.shape, lambda i: (0, 0, 0)))
        inputs.append(wk)
        bk = b.reshape(1, Cout).astype(jnp.float32)
        inputs.append(bk)
        in_specs.append(pl.BlockSpec(bk.shape, lambda i: (0, 0)))

    fcw = params["fc_w"].astype(jnp.bfloat16)               # (512, NUM_CLASSES)
    fcb = params["fc_b"].reshape(1, NUM_CLASSES).astype(jnp.float32)
    inputs += [fcw, fcb]
    in_specs += [pl.BlockSpec(fcw.shape, lambda i: (0, 0)),
                 pl.BlockSpec(fcb.shape, lambda i: (0, 0))]

    # One tightly packed padded-activation buffer per 3x3 conv layer (~10 KB
    # total at bn=1); the 1x1 last conv needs none.
    scratch = [pltpu.VMEM((bn, H + 2, W + 2, Cin), jnp.bfloat16)
               for (H, W, Cin, Cout, pool) in dims[:-1]]

    out = pl.pallas_call(
        _make_kernel(dims, bn),
        out_shape=jax.ShapeDtypeStruct((N, 1, NUM_CLASSES), jnp.float32),
        grid_spec=pltpu.PrefetchScalarGridSpec(
            num_scalar_prefetch=0,
            grid=(N // bn,),
            in_specs=in_specs,
            out_specs=pl.BlockSpec((bn, 1, NUM_CLASSES), lambda i: (i, 0, 0)),
            scratch_shapes=scratch),
        compiler_params=pltpu.CompilerParams(
            dimension_semantics=("parallel",),       # batch blocks independent
            vmem_limit_bytes=16 * 1024 * 1024),      # actual use is ~1-2 MiB
    )(*inputs)
    return out.reshape(N, NUM_CLASSES)


# --------------------------- parameters --------------------------------------

def init_params(key):
    """Matches VGG._initialize_weights: kaiming fan_out for convs (zero bias),
    N(0, 0.01) for the classifier weight, zero fc bias."""
    params = {"convs": []}
    cin = IN_CHANNELS
    for v in CFG:
        if v == 'M':
            continue
        key, k = jax.random.split(key)
        fan_out = v * 3 * 3
        std = (2.0 / fan_out) ** 0.5
        w = jax.random.normal(k, (3, 3, cin, v), jnp.float32) * std   # HWIO
        b = jnp.zeros((v,), jnp.float32)
        params["convs"].append((w, b))
        cin = v
    key, k = jax.random.split(key)
    params["fc_w"] = jax.random.normal(k, (512, NUM_CLASSES), jnp.float32) * 0.01
    params["fc_b"] = jnp.zeros((NUM_CLASSES,), jnp.float32)
    return params


# --------------------------- pure-JAX reference -------------------------------

def vgg_reference(x_nchw, params):
    """f32 reference (XLA) used only to validate the Pallas kernel."""
    h = jnp.transpose(x_nchw, (0, 2, 3, 1)).astype(jnp.float32)
    ci = 0
    for v in CFG:
        if v == 'M':
            N, H, W, C = h.shape
            h = h.reshape(N, H // 2, 2, W // 2, 2, C).max(axis=(2, 4))
        else:
            w, b = params["convs"][ci]
            ci += 1
            h = lax.conv_general_dilated(
                h, w, window_strides=(1, 1), padding='SAME',
                dimension_numbers=('NHWC', 'HWIO', 'NHWC')) + b
            h = jnp.maximum(h, 0.0)
    h = h.reshape(h.shape[0], -1)
    return h @ params["fc_w"] + params["fc_b"]


# --------------------------- main ---------------------------------------------

if __name__ == "__main__":
    key = jax.random.PRNGKey(0)
    key_x, key_p = jax.random.split(key)
    x = jax.random.normal(key_x, (2, IN_CHANNELS, 16, 16), jnp.float32)  # NCHW
    params = init_params(key_p)

    out = jax.block_until_ready(vgg_forward(x, params))
    ref = jax.block_until_ready(vgg_reference(x, params))

    assert out.shape == (2, NUM_CLASSES), out.shape
    # bf16 MXU operands (f32 accumulation) vs. an all-f32 reference: expected
    # |error| is O(1e-3) on logits of magnitude ~0.05; allow ~10x headroom.
    assert jnp.allclose(out, ref, atol=1e-2, rtol=5e-2), (out, ref)
    print("KERNEL_OK")
</pallas_src>

<mosaic_0001>
module attributes {stable_mosaic.version = 11 : i64} {
  func.func @kernel(%arg0: i32, %arg1: memref<1x16x16x3xbf16, #tpu.memory_space<vmem>>, %arg2: memref<9x3x16xbf16, #tpu.memory_space<vmem>>, %arg3: memref<1x16xf32, #tpu.memory_space<vmem>>, %arg4: memref<9x16x32xbf16, #tpu.memory_space<vmem>>, %arg5: memref<1x32xf32, #tpu.memory_space<vmem>>, %arg6: memref<9x32x64xbf16, #tpu.memory_space<vmem>>, %arg7: memref<1x64xf32, #tpu.memory_space<vmem>>, %arg8: memref<9x64x128xbf16, #tpu.memory_space<vmem>>, %arg9: memref<1x128xf32, #tpu.memory_space<vmem>>, %arg10: memref<128x512xbf16, #tpu.memory_space<vmem>>, %arg11: memref<1x512xf32, #tpu.memory_space<vmem>>, %arg12: memref<512x10xbf16, #tpu.memory_space<vmem>>, %arg13: memref<1x10xf32, #tpu.memory_space<vmem>>, %arg14: memref<1x1x10xf32, #tpu.memory_space<vmem>>, %arg15: memref<1x18x18x3xbf16, #tpu.memory_space<vmem>>, %arg16: memref<1x10x10x16xbf16, #tpu.memory_space<vmem>>, %arg17: memref<1x6x6x32xbf16, #tpu.memory_space<vmem>>, %arg18: memref<1x4x4x64xbf16, #tpu.memory_space<vmem>>) attributes {dimension_semantics = [#tpu.dimension_semantics<parallel>], iteration_bounds = array<i64: 2>, scalar_prefetch = 0 : i64, scratch_operands = 4 : i64, tpu.core_type = #tpu.core_type<tc>, window_params = [{transform_indices = @transform_0, window_bounds = array<i64: 1, 16, 16, 3>}, {pipeline_mode = #tpu.pipeline_mode<synchronous>, transform_indices = @transform_1, window_bounds = array<i64: 9, 3, 16>}, {pipeline_mode = #tpu.pipeline_mode<synchronous>, transform_indices = @transform_2, window_bounds = array<i64: 1, 16>}, {pipeline_mode = #tpu.pipeline_mode<synchronous>, transform_indices = @transform_3, window_bounds = array<i64: 9, 16, 32>}, {pipeline_mode = #tpu.pipeline_mode<synchronous>, transform_indices = @transform_4, window_bounds = array<i64: 1, 32>}, {pipeline_mode = #tpu.pipeline_mode<synchronous>, transform_indices = @transform_5, window_bounds = array<i64: 9, 32, 64>}, {pipeline_mode = #tpu.pipeline_mode<synchronous>, transform_indices = @transform_6, window_bounds = array<i64: 1, 64>}, {pipeline_mode = #tpu.pipeline_mode<synchronous>, transform_indices = @transform_7, window_bounds = array<i64: 9, 64, 128>}, {pipeline_mode = #tpu.pipeline_mode<synchronous>, transform_indices = @transform_8, window_bounds = array<i64: 1, 128>}, {pipeline_mode = #tpu.pipeline_mode<synchronous>, transform_indices = @transform_9, window_bounds = array<i64: 128, 512>}, {pipeline_mode = #tpu.pipeline_mode<synchronous>, transform_indices = @transform_10, window_bounds = array<i64: 1, 512>}, {pipeline_mode = #tpu.pipeline_mode<synchronous>, transform_indices = @transform_11, window_bounds = array<i64: 512, 10>}, {pipeline_mode = #tpu.pipeline_mode<synchronous>, transform_indices = @transform_12, window_bounds = array<i64: 1, 10>}, {transform_indices = @transform_13, window_bounds = array<i64: 1, 1, 10>}]} {
    %cst = arith.constant 0.000000e+00 : bf16
    %0 = vector.broadcast %cst : bf16 to vector<1x18x18x3xbf16>
    %c0 = arith.constant 0 : index
    %c0_0 = arith.constant 0 : index
    %c0_1 = arith.constant 0 : index
    %c0_2 = arith.constant 0 : index
    %1 = vector.load %arg15[%c0, %c0_0, %c0_1, %c0_2] : memref<1x18x18x3xbf16, #tpu.memory_space<vmem>>, vector<1x18x18x3xbf16>
    tpu.vector_store %arg15[%c0, %c0_0, %c0_1, %c0_2], %0 {strides = array<i32>} : memref<1x18x18x3xbf16, #tpu.memory_space<vmem>>, vector<1x18x18x3xbf16>,
    %cst_3 = arith.constant 0.000000e+00 : bf16
    %2 = vector.broadcast %cst_3 : bf16 to vector<1x10x10x16xbf16>
    %c0_4 = arith.constant 0 : index
    %c0_5 = arith.constant 0 : index
    %c0_6 = arith.constant 0 : index
    %c0_7 = arith.constant 0 : index
    %3 = vector.load %arg16[%c0_4, %c0_5, %c0_6, %c0_7] : memref<1x10x10x16xbf16, #tpu.memory_space<vmem>>, vector<1x10x10x16xbf16>
    tpu.vector_store %arg16[%c0_4, %c0_5, %c0_6, %c0_7], %2 {strides = array<i32>} : memref<1x10x10x16xbf16, #tpu.memory_space<vmem>>, vector<1x10x10x16xbf16>,
    %cst_8 = arith.constant 0.000000e+00 : bf16
    %4 = vector.broadcast %cst_8 : bf16 to vector<1x6x6x32xbf16>
    %c0_9 = arith.constant 0 : index
    %c0_10 = arith.constant 0 : index
    %c0_11 = arith.constant 0 : index
    %c0_12 = arith.constant 0 : index
    %5 = vector.load %arg17[%c0_9, %c0_10, %c0_11, %c0_12] : memref<1x6x6x32xbf16, #tpu.memory_space<vmem>>, vector<1x6x6x32xbf16>
    tpu.vector_store %arg17[%c0_9, %c0_10, %c0_11, %c0_12], %4 {strides = array<i32>} : memref<1x6x6x32xbf16, #tpu.memory_space<vmem>>, vector<1x6x6x32xbf16>,
    %cst_13 = arith.constant 0.000000e+00 : bf16
    %6 = vector.broadcast %cst_13 : bf16 to vector<1x4x4x64xbf16>
    %c0_14 = arith.constant 0 : index
    %c0_15 = arith.constant 0 : index
    %c0_16 = arith.constant 0 : index
    %c0_17 = arith.constant 0 : index
    %7 = vector.load %arg18[%c0_14, %c0_15, %c0_16, %c0_17] : memref<1x4x4x64xbf16, #tpu.memory_space<vmem>>, vector<1x4x4x64xbf16>
    tpu.vector_store %arg18[%c0_14, %c0_15, %c0_16, %c0_17], %6 {strides = array<i32>} : memref<1x4x4x64xbf16, #tpu.memory_space<vmem>>, vector<1x4x4x64xbf16>,
    %c0_18 = arith.constant 0 : index
    %c0_19 = arith.constant 0 : index
    %c0_20 = arith.constant 0 : index
    %c0_21 = arith.constant 0 : index
    %8 = vector.load %arg1[%c0_18, %c0_19, %c0_20, %c0_21] : memref<1x16x16x3xbf16, #tpu.memory_space<vmem>>, vector<1x16x16x3xbf16>
    %c0_22 = arith.constant 0 : index
    %c1 = arith.constant 1 : index
    %c1_23 = arith.constant 1 : index
    %c0_24 = arith.constant 0 : index
    %9 = vector.load %arg15[%c0_22, %c1, %c1_23, %c0_24] : memref<1x18x18x3xbf16, #tpu.memory_space<vmem>>, vector<1x16x16x3xbf16>
    tpu.vector_store %arg15[%c0_22, %c1, %c1_23, %c0_24], %8 {strides = array<i32>} : memref<1x18x18x3xbf16, #tpu.memory_space<vmem>>, vector<1x16x16x3xbf16>,
    %c0_25 = arith.constant 0 : index
    %c0_26 = arith.constant 0 : index
    %c0_27 = arith.constant 0 : index
    %c0_28 = arith.constant 0 : index
    %10 = vector.load %arg15[%c0_25, %c0_26, %c0_27, %c0_28] : memref<1x18x18x3xbf16, #tpu.memory_space<vmem>>, vector<1x16x16x3xbf16>
    %11 = vector.shape_cast %10 : vector<1x16x16x3xbf16> to vector<256x3xbf16>
    %c0_29 = arith.constant 0 : index
    %c0_30 = arith.constant 0 : index
    %c0_31 = arith.constant 0 : index
    %12 = vector.load %arg2[%c0_29, %c0_30, %c0_31] : memref<9x3x16xbf16, #tpu.memory_space<vmem>>, vector<1x3x16xbf16>
    %13 = vector.shape_cast %12 : vector<1x3x16xbf16> to vector<3x16xbf16>
    %cst_32 = arith.constant dense<0.000000e+00> : vector<256x16xf32>
    %14 = tpu.matmul %11, %13, %cst_32 {dimension_numbers = #tpu.dot_dimension_numbers<[1], [0], [0], [1], [0, 0, 1, 1], [], []>} : vector<256x3xbf16>, vector<3x16xbf16>, vector<256x16xf32> -> vector<256x16xf32>
    %c0_33 = arith.constant 0 : index
    %c0_34 = arith.constant 0 : index
    %c1_35 = arith.constant 1 : index
    %c0_36 = arith.constant 0 : index
    %15 = vector.load %arg15[%c0_33, %c0_34, %c1_35, %c0_36] : memref<1x18x18x3xbf16, #tpu.memory_space<vmem>>, vector<1x16x16x3xbf16>
    %16 = vector.shape_cast %15 : vector<1x16x16x3xbf16> to vector<256x3xbf16>
    %c1_37 = arith.constant 1 : index
    %c0_38 = arith.constant 0 : index
    %c0_39 = arith.constant 0 : index
    %17 = vector.load %arg2[%c1_37, %c0_38, %c0_39] : memref<9x3x16xbf16, #tpu.memory_space<vmem>>, vector<1x3x16xbf16>
    %18 = vector.shape_cast %17 : vector<1x3x16xbf16> to vector<3x16xbf16>
    %cst_40 = arith.constant dense<0.000000e+00> : vector<256x16xf32>
    %19 = tpu.matmul %16, %18, %cst_40 {dimension_numbers = #tpu.dot_dimension_numbers<[1], [0], [0], [1], [0, 0, 1, 1], [], []>} : vector<256x3xbf16>, vector<3x16xbf16>, vector<256x16xf32> -> vector<256x16xf32>
    %20 = arith.addf %14, %19 : vector<256x16xf32>
    %c0_41 = arith.constant 0 : index
    %c0_42 = arith.constant 0 : index
    %c2 = arith.constant 2 : index
    %c0_43 = arith.constant 0 : index
    %21 = vector.load %arg15[%c0_41, %c0_42, %c2, %c0_43] : memref<1x18x18x3xbf16, #tpu.memory_space<vmem>>, vector<1x16x16x3xbf16>
    %22 = vector.shape_cast %21 : vector<1x16x16x3xbf16> to vector<256x3xbf16>
    %c2_44 = arith.constant 2 : index
    %c0_45 = arith.constant 0 : index
    %c0_46 = arith.constant 0 : index
    %23 = vector.load %arg2[%c2_44, %c0_45, %c0_46] : memref<9x3x16xbf16, #tpu.memory_space<vmem>>, vector<1x3x16xbf16>
    %24 = vector.shape_cast %23 : vector<1x3x16xbf16> to vector<3x16xbf16>
    %cst_47 = arith.constant dense<0.000000e+00> : vector<256x16xf32>
    %25 = tpu.matmul %22, %24, %cst_47 {dimension_numbers = #tpu.dot_dimension_numbers<[1], [0], [0], [1], [0, 0, 1, 1], [], []>} : vector<256x3xbf16>, vector<3x16xbf16>, vector<256x16xf32> -> vector<256x16xf32>
    %26 = arith.addf %20, %25 : vector<256x16xf32>
    %c0_48 = arith.constant 0 : index
    %c1_49 = arith.constant 1 : index
    %c0_50 = arith.constant 0 : index
    %c0_51 = arith.constant 0 : index
    %27 = vector.load %arg15[%c0_48, %c1_49, %c0_50, %c0_51] : memref<1x18x18x3xbf16, #tpu.memory_space<vmem>>, vector<1x16x16x3xbf16>
    %28 = vector.shape_cast %27 : vector<1x16x16x3xbf16> to vector<256x3xbf16>
    %c3 = arith.constant 3 : index
    %c0_52 = arith.constant 0 : index
    %c0_53 = arith.constant 0 : index
    %29 = vector.load %arg2[%c3, %c0_52, %c0_53] : memref<9x3x16xbf16, #tpu.memory_space<vmem>>, vector<1x3x16xbf16>
    %30 = vector.shape_cast %29 : vector<1x3x16xbf16> to vector<3x16xbf16>
    %cst_54 = arith.constant dense<0.000000e+00> : vector<256x16xf32>
    %31 = tpu.matmul %28, %30, %cst_54 {dimension_numbers = #tpu.dot_dimension_numbers<[1], [0], [0], [1], [0, 0, 1, 1], [], []>} : vector<256x3xbf16>, vector<3x16xbf16>, vector<256x16xf32> -> vector<256x16xf32>
    %32 = arith.addf %26, %31 : vector<256x16xf32>
    %c0_55 = arith.constant 0 : index
    %c1_56 = arith.constant 1 : index
    %c1_57 = arith.constant 1 : index
    %c0_58 = arith.constant 0 : index
    %33 = vector.load %arg15[%c0_55, %c1_56, %c1_57, %c0_58] : memref<1x18x18x3xbf16, #tpu.memory_space<vmem>>, vector<1x16x16x3xbf16>
    %34 = vector.shape_cast %33 : vector<1x16x16x3xbf16> to vector<256x3xbf16>
    %c4 = arith.constant 4 : index
    %c0_59 = arith.constant 0 : index
    %c0_60 = arith.constant 0 : index
    %35 = vector.load %arg2[%c4, %c0_59, %c0_60] : memref<9x3x16xbf16, #tpu.memory_space<vmem>>, vector<1x3x16xbf16>
    %36 = vector.shape_cast %35 : vector<1x3x16xbf16> to vector<3x16xbf16>
    %cst_61 = arith.constant dense<0.000000e+00> : vector<256x16xf32>
    %37 = tpu.matmul %34, %36, %cst_61 {dimension_numbers = #tpu.dot_dimension_numbers<[1], [0], [0], [1], [0, 0, 1, 1], [], []>} : vector<256x3xbf16>, vector<3x16xbf16>, vector<256x16xf32> -> vector<256x16xf32>
    %38 = arith.addf %32, %37 : vector<256x16xf32>
    %c0_62 = arith.constant 0 : index
    %c1_63 = arith.constant 1 : index
    %c2_64 = arith.constant 2 : index
    %c0_65 = arith.constant 0 : index
    %39 = vector.load %arg15[%c0_62, %c1_63, %c2_64, %c0_65] : memref<1x18x18x3xbf16, #tpu.memory_space<vmem>>, vector<1x16x16x3xbf16>
    %40 = vector.shape_cast %39 : vector<1x16x16x3xbf16> to vector<256x3xbf16>
    %c5 = arith.constant 5 : index
    %c0_66 = arith.constant 0 : index
    %c0_67 = arith.constant 0 : index
    %41 = vector.load %arg2[%c5, %c0_66, %c0_67] : memref<9x3x16xbf16, #tpu.memory_space<vmem>>, vector<1x3x16xbf16>
    %42 = vector.shape_cast %41 : vector<1x3x16xbf16> to vector<3x16xbf16>
    %cst_68 = arith.constant dense<0.000000e+00> : vector<256x16xf32>
    %43 = tpu.matmul %40, %42, %cst_68 {dimension_numbers = #tpu.dot_dimension_numbers<[1], [0], [0], [1], [0, 0, 1, 1], [], []>} : vector<256x3xbf16>, vector<3x16xbf16>, vector<256x16xf32> -> vector<256x16xf32>
    %44 = arith.addf %38, %43 : vector<256x16xf32>
    %c0_69 = arith.constant 0 : index
    %c2_70 = arith.constant 2 : index
    %c0_71 = arith.constant 0 : index
    %c0_72 = arith.constant 0 : index
    %45 = vector.load %arg15[%c0_69, %c2_70, %c0_71, %c0_72] : memref<1x18x18x3xbf16, #tpu.memory_space<vmem>>, vector<1x16x16x3xbf16>
    %46 = vector.shape_cast %45 : vector<1x16x16x3xbf16> to vector<256x3xbf16>
    %c6 = arith.constant 6 : index
    %c0_73 = arith.constant 0 : index
    %c0_74 = arith.constant 0 : index
    %47 = vector.load %arg2[%c6, %c0_73, %c0_74] : memref<9x3x16xbf16, #tpu.memory_space<vmem>>, vector<1x3x16xbf16>
    %48 = vector.shape_cast %47 : vector<1x3x16xbf16> to vector<3x16xbf16>
    %cst_75 = arith.constant dense<0.000000e+00> : vector<256x16xf32>
    %49 = tpu.matmul %46, %48, %cst_75 {dimension_numbers = #tpu.dot_dimension_numbers<[1], [0], [0], [1], [0, 0, 1, 1], [], []>} : vector<256x3xbf16>, vector<3x16xbf16>, vector<256x16xf32> -> vector<256x16xf32>
    %50 = arith.addf %44, %49 : vector<256x16xf32>
    %c0_76 = arith.constant 0 : index
    %c2_77 = arith.constant 2 : index
    %c1_78 = arith.constant 1 : index
    %c0_79 = arith.constant 0 : index
    %51 = vector.load %arg15[%c0_76, %c2_77, %c1_78, %c0_79] : memref<1x18x18x3xbf16, #tpu.memory_space<vmem>>, vector<1x16x16x3xbf16>
    %52 = vector.shape_cast %51 : vector<1x16x16x3xbf16> to vector<256x3xbf16>
    %c7 = arith.constant 7 : index
    %c0_80 = arith.constant 0 : index
    %c0_81 = arith.constant 0 : index
    %53 = vector.load %arg2[%c7, %c0_80, %c0_81] : memref<9x3x16xbf16, #tpu.memory_space<vmem>>, vector<1x3x16xbf16>
    %54 = vector.shape_cast %53 : vector<1x3x16xbf16> to vector<3x16xbf16>
    %cst_82 = arith.constant dense<0.000000e+00> : vector<256x16xf32>
    %55 = tpu.matmul %52, %54, %cst_82 {dimension_numbers = #tpu.dot_dimension_numbers<[1], [0], [0], [1], [0, 0, 1, 1], [], []>} : vector<256x3xbf16>, vector<3x16xbf16>, vector<256x16xf32> -> vector<256x16xf32>
    %56 = arith.addf %50, %55 : vector<256x16xf32>
    %c0_83 = arith.constant 0 : index
    %c2_84 = arith.constant 2 : index
    %c2_85 = arith.constant 2 : index
    %c0_86 = arith.constant 0 : index
    %57 = vector.load %arg15[%c0_83, %c2_84, %c2_85, %c0_86] : memref<1x18x18x3xbf16, #tpu.memory_space<vmem>>, vector<1x16x16x3xbf16>
    %58 = vector.shape_cast %57 : vector<1x16x16x3xbf16> to vector<256x3xbf16>
    %c8 = arith.constant 8 : index
    %c0_87 = arith.constant 0 : index
    %c0_88 = arith.constant 0 : index
    %59 = vector.load %arg2[%c8, %c0_87, %c0_88] : memref<9x3x16xbf16, #tpu.memory_space<vmem>>, vector<1x3x16xbf16>
    %60 = vector.shape_cast %59 : vector<1x3x16xbf16> to vector<3x16xbf16>
    %cst_89 = arith.constant dense<0.000000e+00> : vector<256x16xf32>
    %61 = tpu.matmul %58, %60, %cst_89 {dimension_numbers = #tpu.dot_dimension_numbers<[1], [0], [0], [1], [0, 0, 1, 1], [], []>} : vector<256x3xbf16>, vector<3x16xbf16>, vector<256x16xf32> -> vector<256x16xf32>
    %62 = arith.addf %56, %61 : vector<256x16xf32>
    %c0_90 = arith.constant 0 : index
    %c0_91 = arith.constant 0 : index
    %63 = vector.load %arg3[%c0_90, %c0_91] : memref<1x16xf32, #tpu.memory_space<vmem>>, vector<1x16xf32>
    %64 = vector.broadcast %63 : vector<1x16xf32> to vector<256x16xf32>
    %65 = arith.addf %62, %64 : vector<256x16xf32>
    %cst_92 = arith.constant 0.000000e+00 : f32
    %66 = vector.broadcast %cst_92 : f32 to vector<256x16xf32>
    %67 = arith.maximumf %65, %66 : vector<256x16xf32>
    %68 = vector.shape_cast %67 : vector<256x16xf32> to vector<1x8x2x8x2x16xf32>
    %cst_93 = arith.constant dense<0xFF800000> : vector<1x8x8x2x16xf32>
    %69 = vector.multi_reduction <maximumf>, %68, %cst_93 [2] : vector<1x8x2x8x2x16xf32> to vector<1x8x8x2x16xf32>
    %cst_94 = arith.constant dense<0xFF800000> : vector<1x8x8x16xf32>
    %70 = vector.multi_reduction <maximumf>, %69, %cst_94 [3] : vector<1x8x8x2x16xf32> to vector<1x8x8x16xf32>
    %71 = arith.truncf %70 : vector<1x8x8x16xf32> to vector<1x8x8x16xbf16>
    %c0_95 = arith.constant 0 : index
    %c1_96 = arith.constant 1 : index
    %c1_97 = arith.constant 1 : index
    %c0_98 = arith.constant 0 : index
    %72 = vector.load %arg16[%c0_95, %c1_96, %c1_97, %c0_98] : memref<1x10x10x16xbf16, #tpu.memory_space<vmem>>, vector<1x8x8x16xbf16>
    tpu.vector_store %arg16[%c0_95, %c1_96, %c1_97, %c0_98], %71 {strides = array<i32>} : memref<1x10x10x16xbf16, #tpu.memory_space<vmem>>, vector<1x8x8x16xbf16>,
    %c0_99 = arith.constant 0 : index
    %c0_100 = arith.constant 0 : index
    %c0_101 = arith.constant 0 : index
    %c0_102 = arith.constant 0 : index
    %73 = vector.load %arg16[%c0_99, %c0_100, %c0_101, %c0_102] : memref<1x10x10x16xbf16, #tpu.memory_space<vmem>>, vector<1x8x8x16xbf16>
    %74 = vector.shape_cast %73 : vector<1x8x8x16xbf16> to vector<64x16xbf16>
    %c0_103 = arith.constant 0 : index
    %c0_104 = arith.constant 0 : index
    %c0_105 = arith.constant 0 : index
    %75 = vector.load %arg4[%c0_103, %c0_104, %c0_105] : memref<9x16x32xbf16, #tpu.memory_space<vmem>>, vector<1x16x32xbf16>
    %76 = vector.shape_cast %75 : vector<1x16x32xbf16> to vector<16x32xbf16>
    %cst_106 = arith.constant dense<0.000000e+00> : vector<64x32xf32>
    %77 = tpu.matmul %74, %76, %cst_106 {dimension_numbers = #tpu.dot_dimension_numbers<[1], [0], [0], [1], [0, 0, 1, 1], [], []>} : vector<64x16xbf16>, vector<16x32xbf16>, vector<64x32xf32> -> vector<64x32xf32>
    %c0_107 = arith.constant 0 : index
    %c0_108 = arith.constant 0 : index
    %c1_109 = arith.constant 1 : index
    %c0_110 = arith.constant 0 : index
    %78 = vector.load %arg16[%c0_107, %c0_108, %c1_109, %c0_110] : memref<1x10x10x16xbf16, #tpu.memory_space<vmem>>, vector<1x8x8x16xbf16>
    %79 = vector.shape_cast %78 : vector<1x8x8x16xbf16> to vector<64x16xbf16>
    %c1_111 = arith.constant 1 : index
    %c0_112 = arith.constant 0 : index
    %c0_113 = arith.constant 0 : index
    %80 = vector.load %arg4[%c1_111, %c0_112, %c0_113] : memref<9x16x32xbf16, #tpu.memory_space<vmem>>, vector<1x16x32xbf16>
    %81 = vector.shape_cast %80 : vector<1x16x32xbf16> to vector<16x32xbf16>
    %cst_114 = arith.constant dense<0.000000e+00> : vector<64x32xf32>
    %82 = tpu.matmul %79, %81, %cst_114 {dimension_numbers = #tpu.dot_dimension_numbers<[1], [0], [0], [1], [0, 0, 1, 1], [], []>} : vector<64x16xbf16>, vector<16x32xbf16>, vector<64x32xf32> -> vector<64x32xf32>
    %83 = arith.addf %77, %82 : vector<64x32xf32>
    %c0_115 = arith.constant 0 : index
    %c0_116 = arith.constant 0 : index
    %c2_117 = arith.constant 2 : index
    %c0_118 = arith.constant 0 : index
    %84 = vector.load %arg16[%c0_115, %c0_116, %c2_117, %c0_118] : memref<1x10x10x16xbf16, #tpu.memory_space<vmem>>, vector<1x8x8x16xbf16>
    %85 = vector.shape_cast %84 : vector<1x8x8x16xbf16> to vector<64x16xbf16>
    %c2_119 = arith.constant 2 : index
    %c0_120 = arith.constant 0 : index
    %c0_121 = arith.constant 0 : index
    %86 = vector.load %arg4[%c2_119, %c0_120, %c0_121] : memref<9x16x32xbf16, #tpu.memory_space<vmem>>, vector<1x16x32xbf16>
    %87 = vector.shape_cast %86 : vector<1x16x32xbf16> to vector<16x32xbf16>
    %cst_122 = arith.constant dense<0.000000e+00> : vector<64x32xf32>
    %88 = tpu.matmul %85, %87, %cst_122 {dimension_numbers = #tpu.dot_dimension_numbers<[1], [0], [0], [1], [0, 0, 1, 1], [], []>} : vector<64x16xbf16>, vector<16x32xbf16>, vector<64x32xf32> -> vector<64x32xf32>
    %89 = arith.addf %83, %88 : vector<64x32xf32>
    %c0_123 = arith.constant 0 : index
    %c1_124 = arith.constant 1 : index
    %c0_125 = arith.constant 0 : index
    %c0_126 = arith.constant 0 : index
    %90 = vector.load %arg16[%c0_123, %c1_124, %c0_125, %c0_126] : memref<1x10x10x16xbf16, #tpu.memory_space<vmem>>, vector<1x8x8x16xbf16>
    %91 = vector.shape_cast %90 : vector<1x8x8x16xbf16> to vector<64x16xbf16>
    %c3_127 = arith.constant 3 : index
    %c0_128 = arith.constant 0 : index
    %c0_129 = arith.constant 0 : index
    %92 = vector.load %arg4[%c3_127, %c0_128, %c0_129] : memref<9x16x32xbf16, #tpu.memory_space<vmem>>, vector<1x16x32xbf16>
    %93 = vector.shape_cast %92 : vector<1x16x32xbf16> to vector<16x32xbf16>
    %cst_130 = arith.constant dense<0.000000e+00> : vector<64x32xf32>
    %94 = tpu.matmul %91, %93, %cst_130 {dimension_numbers = #tpu.dot_dimension_numbers<[1], [0], [0], [1], [0, 0, 1, 1], [], []>} : vector<64x16xbf16>, vector<16x32xbf16>, vector<64x32xf32> -> vector<64x32xf32>
    %95 = arith.addf %89, %94 : vector<64x32xf32>
    %c0_131 = arith.constant 0 : index
    %c1_132 = arith.constant 1 : index
    %c1_133 = arith.constant 1 : index
    %c0_134 = arith.constant 0 : index
    %96 = vector.load %arg16[%c0_131, %c1_132, %c1_133, %c0_134] : memref<1x10x10x16xbf16, #tpu.memory_space<vmem>>, vector<1x8x8x16xbf16>
    %97 = vector.shape_cast %96 : vector<1x8x8x16xbf16> to vector<64x16xbf16>
    %c4_135 = arith.constant 4 : index
    %c0_136 = arith.constant 0 : index
    %c0_137 = arith.constant 0 : index
    %98 = vector.load %arg4[%c4_135, %c0_136, %c0_137] : memref<9x16x32xbf16, #tpu.memory_space<vmem>>, vector<1x16x32xbf16>
    %99 = vector.shape_cast %98 : vector<1x16x32xbf16> to vector<16x32xbf16>
    %cst_138 = arith.constant dense<0.000000e+00> : vector<64x32xf32>
    %100 = tpu.matmul %97, %99, %cst_138 {dimension_numbers = #tpu.dot_dimension_numbers<[1], [0], [0], [1], [0, 0, 1, 1], [], []>} : vector<64x16xbf16>, vector<16x32xbf16>, vector<64x32xf32> -> vector<64x32xf32>
    %101 = arith.addf %95, %100 : vector<64x32xf32>
    %c0_139 = arith.constant 0 : index
    %c1_140 = arith.constant 1 : index
    %c2_141 = arith.constant 2 : index
    %c0_142 = arith.constant 0 : index
    %102 = vector.load %arg16[%c0_139, %c1_140, %c2_141, %c0_142] : memref<1x10x10x16xbf16, #tpu.memory_space<vmem>>, vector<1x8x8x16xbf16>
    %103 = vector.shape_cast %102 : vector<1x8x8x16xbf16> to vector<64x16xbf16>
    %c5_143 = arith.constant 5 : index
    %c0_144 = arith.constant 0 : index
    %c0_145 = arith.constant 0 : index
    %104 = vector.load %arg4[%c5_143, %c0_144, %c0_145] : memref<9x16x32xbf16, #tpu.memory_space<vmem>>, vector<1x16x32xbf16>
    %105 = vector.shape_cast %104 : vector<1x16x32xbf16> to vector<16x32xbf16>
    %cst_146 = arith.constant dense<0.000000e+00> : vector<64x32xf32>
    %106 = tpu.matmul %103, %105, %cst_146 {dimension_numbers = #tpu.dot_dimension_numbers<[1], [0], [0], [1], [0, 0, 1, 1], [], []>} : vector<64x16xbf16>, vector<16x32xbf16>, vector<64x32xf32> -> vector<64x32xf32>
    %107 = arith.addf %101, %106 : vector<64x32xf32>
    %c0_147 = arith.constant 0 : index
    %c2_148 = arith.constant 2 : index
    %c0_149 = arith.constant 0 : index
    %c0_150 = arith.constant 0 : index
    %108 = vector.load %arg16[%c0_147, %c2_148, %c0_149, %c0_150] : memref<1x10x10x16xbf16, #tpu.memory_space<vmem>>, vector<1x8x8x16xbf16>
    %109 = vector.shape_cast %108 : vector<1x8x8x16xbf16> to vector<64x16xbf16>
    %c6_151 = arith.constant 6 : index
    %c0_152 = arith.constant 0 : index
    %c0_153 = arith.constant 0 : index
    %110 = vector.load %arg4[%c6_151, %c0_152, %c0_153] : memref<9x16x32xbf16, #tpu.memory_space<vmem>>, vector<1x16x32xbf16>
    %111 = vector.shape_cast %110 : vector<1x16x32xbf16> to vector<16x32xbf16>
    %cst_154 = arith.constant dense<0.000000e+00> : vector<64x32xf32>
    %112 = tpu.matmul %109, %111, %cst_154 {dimension_numbers = #tpu.dot_dimension_numbers<[1], [0], [0], [1], [0, 0, 1, 1], [], []>} : vector<64x16xbf16>, vector<16x32xbf16>, vector<64x32xf32> -> vector<64x32xf32>
    %113 = arith.addf %107, %112 : vector<64x32xf32>
    %c0_155 = arith.constant 0 : index
    %c2_156 = arith.constant 2 : index
    %c1_157 = arith.constant 1 : index
    %c0_158 = arith.constant 0 : index
    %114 = vector.load %arg16[%c0_155, %c2_156, %c1_157, %c0_158] : memref<1x10x10x16xbf16, #tpu.memory_space<vmem>>, vector<1x8x8x16xbf16>
    %115 = vector.shape_cast %114 : vector<1x8x8x16xbf16> to vector<64x16xbf16>
    %c7_159 = arith.constant 7 : index
    %c0_160 = arith.constant 0 : index
    %c0_161 = arith.constant 0 : index
    %116 = vector.load %arg4[%c7_159, %c0_160, %c0_161] : memref<9x16x32xbf16, #tpu.memory_space<vmem>>, vector<1x16x32xbf16>
    %117 = vector.shape_cast %116 : vector<1x16x32xbf16> to vector<16x32xbf16>
    %cst_162 = arith.constant dense<0.000000e+00> : vector<64x32xf32>
    %118 = tpu.matmul %115, %117, %cst_162 {dimension_numbers = #tpu.dot_dimension_numbers<[1], [0], [0], [1], [0, 0, 1, 1], [], []>} : vector<64x16xbf16>, vector<16x32xbf16>, vector<64x32xf32> -> vector<64x32xf32>
    %119 = arith.addf %113, %118 : vector<64x32xf32>
    %c0_163 = arith.constant 0 : index
    %c2_164 = arith.constant 2 : index
    %c2_165 = arith.constant 2 : index
    %c0_166 = arith.constant 0 : index
    %120 = vector.load %arg16[%c0_163, %c2_164, %c2_165, %c0_166] : memref<1x10x10x16xbf16, #tpu.memory_space<vmem>>, vector<1x8x8x16xbf16>
    %121 = vector.shape_cast %120 : vector<1x8x8x16xbf16> to vector<64x16xbf16>
    %c8_167 = arith.constant 8 : index
    %c0_168 = arith.constant 0 : index
    %c0_169 = arith.constant 0 : index
    %122 = vector.load %arg4[%c8_167, %c0_168, %c0_169] : memref<9x16x32xbf16, #tpu.memory_space<vmem>>, vector<1x16x32xbf16>
    %123 = vector.shape_cast %122 : vector<1x16x32xbf16> to vector<16x32xbf16>
    %cst_170 = arith.constant dense<0.000000e+00> : vector<64x32xf32>
    %124 = tpu.matmul %121, %123, %cst_170 {dimension_numbers = #tpu.dot_dimension_numbers<[1], [0], [0], [1], [0, 0, 1, 1], [], []>} : vector<64x16xbf16>, vector<16x32xbf16>, vector<64x32xf32> -> vector<64x32xf32>
    %125 = arith.addf %119, %124 : vector<64x32xf32>
    %c0_171 = arith.constant 0 : index
    %c0_172 = arith.constant 0 : index
    %126 = vector.load %arg5[%c0_171, %c0_172] : memref<1x32xf32, #tpu.memory_space<vmem>>, vector<1x32xf32>
    %127 = vector.broadcast %126 : vector<1x32xf32> to vector<64x32xf32>
    %128 = arith.addf %125, %127 : vector<64x32xf32>
    %cst_173 = arith.constant 0.000000e+00 : f32
    %129 = vector.broadcast %cst_173 : f32 to vector<64x32xf32>
    %130 = arith.maximumf %128, %129 : vector<64x32xf32>
    %131 = vector.shape_cast %130 : vector<64x32xf32> to vector<1x4x2x4x2x32xf32>
    %cst_174 = arith.constant dense<0xFF800000> : vector<1x4x4x2x32xf32>
    %132 = vector.multi_reduction <maximumf>, %131, %cst_174 [2] : vector<1x4x2x4x2x32xf32> to vector<1x4x4x2x32xf32>
    %cst_175 = arith.constant dense<0xFF800000> : vector<1x4x4x32xf32>
    %133 = vector.multi_reduction <maximumf>, %132, %cst_175 [3] : vector<1x4x4x2x32xf32> to vector<1x4x4x32xf32>
    %134 = arith.truncf %133 : vector<1x4x4x32xf32> to vector<1x4x4x32xbf16>
    %c0_176 = arith.constant 0 : index
    %c1_177 = arith.constant 1 : index
    %c1_178 = arith.constant 1 : index
    %c0_179 = arith.constant 0 : index
    %135 = vector.load %arg17[%c0_176, %c1_177, %c1_178, %c0_179] : memref<1x6x6x32xbf16, #tpu.memory_space<vmem>>, vector<1x4x4x32xbf16>
    tpu.vector_store %arg17[%c0_176, %c1_177, %c1_178, %c0_179], %134 {strides = array<i32>} : memref<1x6x6x32xbf16, #tpu.memory_space<vmem>>, vector<1x4x4x32xbf16>,
    %c0_180 = arith.constant 0 : index
    %c0_181 = arith.constant 0 : index
    %c0_182 = arith.constant 0 : index
    %c0_183 = arith.constant 0 : index
    %136 = vector.load %arg17[%c0_180, %c0_181, %c0_182, %c0_183] : memref<1x6x6x32xbf16, #tpu.memory_space<vmem>>, vector<1x4x4x32xbf16>
    %137 = vector.shape_cast %136 : vector<1x4x4x32xbf16> to vector<16x32xbf16>
    %c0_184 = arith.constant 0 : index
    %c0_185 = arith.constant 0 : index
    %c0_186 = arith.constant 0 : index
    %138 = vector.load %arg6[%c0_184, %c0_185, %c0_186] : memref<9x32x64xbf16, #tpu.memory_space<vmem>>, vector<1x32x64xbf16>
    %139 = vector.shape_cast %138 : vector<1x32x64xbf16> to vector<32x64xbf16>
    %cst_187 = arith.constant dense<0.000000e+00> : vector<16x64xf32>
    %140 = tpu.matmul %137, %139, %cst_187 {dimension_numbers = #tpu.dot_dimension_numbers<[1], [0], [0], [1], [0, 0, 1, 1], [], []>} : vector<16x32xbf16>, vector<32x64xbf16>, vector<16x64xf32> -> vector<16x64xf32>
    %c0_188 = arith.constant 0 : index
    %c0_189 = arith.constant 0 : index
    %c1_190 = arith.constant 1 : index
    %c0_191 = arith.constant 0 : index
    %141 = vector.load %arg17[%c0_188, %c0_189, %c1_190, %c0_191] : memref<1x6x6x32xbf16, #tpu.memory_space<vmem>>, vector<1x4x4x32xbf16>
    %142 = vector.shape_cast %141 : vector<1x4x4x32xbf16> to vector<16x32xbf16>
    %c1_192 = arith.constant 1 : index
    %c0_193 = arith.constant 0 : index
    %c0_194 = arith.constant 0 : index
    %143 = vector.load %arg6[%c1_192, %c0_193, %c0_194] : memref<9x32x64xbf16, #tpu.memory_space<vmem>>, vector<1x32x64xbf16>
    %144 = vector.shape_cast %143 : vector<1x32x64xbf16> to vector<32x64xbf16>
    %cst_195 = arith.constant dense<0.000000e+00> : vector<16x64xf32>
    %145 = tpu.matmul %142, %144, %cst_195 {dimension_numbers = #tpu.dot_dimension_numbers<[1], [0], [0], [1], [0, 0, 1, 1], [], []>} : vector<16x32xbf16>, vector<32x64xbf16>, vector<16x64xf32> -> vector<16x64xf32>
    %146 = arith.addf %140, %145 : vector<16x64xf32>
    %c0_196 = arith.constant 0 : index
    %c0_197 = arith.constant 0 : index
    %c2_198 = arith.constant 2 : index
    %c0_199 = arith.constant 0 : index
    %147 = vector.load %arg17[%c0_196, %c0_197, %c2_198, %c0_199] : memref<1x6x6x32xbf16, #tpu.memory_space<vmem>>, vector<1x4x4x32xbf16>
    %148 = vector.shape_cast %147 : vector<1x4x4x32xbf16> to vector<16x32xbf16>
    %c2_200 = arith.constant 2 : index
    %c0_201 = arith.constant 0 : index
    %c0_202 = arith.constant 0 : index
    %149 = vector.load %arg6[%c2_200, %c0_201, %c0_202] : memref<9x32x64xbf16, #tpu.memory_space<vmem>>, vector<1x32x64xbf16>
    %150 = vector.shape_cast %149 : vector<1x32x64xbf16> to vector<32x64xbf16>
    %cst_203 = arith.constant dense<0.000000e+00> : vector<16x64xf32>
    %151 = tpu.matmul %148, %150, %cst_203 {dimension_numbers = #tpu.dot_dimension_numbers<[1], [0], [0], [1], [0, 0, 1, 1], [], []>} : vector<16x32xbf16>, vector<32x64xbf16>, vector<16x64xf32> -> vector<16x64xf32>
    %152 = arith.addf %146, %151 : vector<16x64xf32>
    %c0_204 = arith.constant 0 : index
    %c1_205 = arith.constant 1 : index
    %c0_206 = arith.constant 0 : index
    %c0_207 = arith.constant 0 : index
    %153 = vector.load %arg17[%c0_204, %c1_205, %c0_206, %c0_207] : memref<1x6x6x32xbf16, #tpu.memory_space<vmem>>, vector<1x4x4x32xbf16>
    %154 = vector.shape_cast %153 : vector<1x4x4x32xbf16> to vector<16x32xbf16>
    %c3_208 = arith.constant 3 : index
    %c0_209 = arith.constant 0 : index
    %c0_210 = arith.constant 0 : index
    %155 = vector.load %arg6[%c3_208, %c0_209, %c0_210] : memref<9x32x64xbf16, #tpu.memory_space<vmem>>, vector<1x32x64xbf16>
    %156 = vector.shape_cast %155 : vector<1x32x64xbf16> to vector<32x64xbf16>
    %cst_211 = arith.constant dense<0.000000e+00> : vector<16x64xf32>
    %157 = tpu.matmul %154, %156, %cst_211 {dimension_numbers = #tpu.dot_dimension_numbers<[1], [0], [0], [1], [0, 0, 1, 1], [], []>} : vector<16x32xbf16>, vector<32x64xbf16>, vector<16x64xf32> -> vector<16x64xf32>
    %158 = arith.addf %152, %157 : vector<16x64xf32>
    %c0_212 = arith.constant 0 : index
    %c1_213 = arith.constant 1 : index
    %c1_214 = arith.constant 1 : index
    %c0_215 = arith.constant 0 : index
    %159 = vector.load %arg17[%c0_212, %c1_213, %c1_214, %c0_215] : memref<1x6x6x32xbf16, #tpu.memory_space<vmem>>, vector<1x4x4x32xbf16>
    %160 = vector.shape_cast %159 : vector<1x4x4x32xbf16> to vector<16x32xbf16>
    %c4_216 = arith.constant 4 : index
    %c0_217 = arith.constant 0 : index
    %c0_218 = arith.constant 0 : index
    %161 = vector.load %arg6[%c4_216, %c0_217, %c0_218] : memref<9x32x64xbf16, #tpu.memory_space<vmem>>, vector<1x32x64xbf16>
    %162 = vector.shape_cast %161 : vector<1x32x64xbf16> to vector<32x64xbf16>
    %cst_219 = arith.constant dense<0.000000e+00> : vector<16x64xf32>
    %163 = tpu.matmul %160, %162, %cst_219 {dimension_numbers = #tpu.dot_dimension_numbers<[1], [0], [0], [1], [0, 0, 1, 1], [], []>} : vector<16x32xbf16>, vector<32x64xbf16>, vector<16x64xf32> -> vector<16x64xf32>
    %164 = arith.addf %158, %163 : vector<16x64xf32>
    %c0_220 = arith.constant 0 : index
    %c1_221 = arith.constant 1 : index
    %c2_222 = arith.constant 2 : index
    %c0_223 = arith.constant 0 : index
    %165 = vector.load %arg17[%c0_220, %c1_221, %c2_222, %c0_223] : memref<1x6x6x32xbf16, #tpu.memory_space<vmem>>, vector<1x4x4x32xbf16>
    %166 = vector.shape_cast %165 : vector<1x4x4x32xbf16> to vector<16x32xbf16>
    %c5_224 = arith.constant 5 : index
    %c0_225 = arith.constant 0 : index
    %c0_226 = arith.constant 0 : index
    %167 = vector.load %arg6[%c5_224, %c0_225, %c0_226] : memref<9x32x64xbf16, #tpu.memory_space<vmem>>, vector<1x32x64xbf16>
    %168 = vector.shape_cast %167 : vector<1x32x64xbf16> to vector<32x64xbf16>
    %cst_227 = arith.constant dense<0.000000e+00> : vector<16x64xf32>
    %169 = tpu.matmul %166, %168, %cst_227 {dimension_numbers = #tpu.dot_dimension_numbers<[1], [0], [0], [1], [0, 0, 1, 1], [], []>} : vector<16x32xbf16>, vector<32x64xbf16>, vector<16x64xf32> -> vector<16x64xf32>
    %170 = arith.addf %164, %169 : vector<16x64xf32>
    %c0_228 = arith.constant 0 : index
    %c2_229 = arith.constant 2 : index
    %c0_230 = arith.constant 0 : index
    %c0_231 = arith.constant 0 : index
    %171 = vector.load %arg17[%c0_228, %c2_229, %c0_230, %c0_231] : memref<1x6x6x32xbf16, #tpu.memory_space<vmem>>, vector<1x4x4x32xbf16>
    %172 = vector.shape_cast %171 : vector<1x4x4x32xbf16> to vector<16x32xbf16>
    %c6_232 = arith.constant 6 : index
    %c0_233 = arith.constant 0 : index
    %c0_234 = arith.constant 0 : index
    %173 = vector.load %arg6[%c6_232, %c0_233, %c0_234] : memref<9x32x64xbf16, #tpu.memory_space<vmem>>, vector<1x32x64xbf16>
    %174 = vector.shape_cast %173 : vector<1x32x64xbf16> to vector<32x64xbf16>
    %cst_235 = arith.constant dense<0.000000e+00> : vector<16x64xf32>
    %175 = tpu.matmul %172, %174, %cst_235 {dimension_numbers = #tpu.dot_dimension_numbers<[1], [0], [0], [1], [0, 0, 1, 1], [], []>} : vector<16x32xbf16>, vector<32x64xbf16>, vector<16x64xf32> -> vector<16x64xf32>
    %176 = arith.addf %170, %175 : vector<16x64xf32>
    %c0_236 = arith.constant 0 : index
    %c2_237 = arith.constant 2 : index
    %c1_238 = arith.constant 1 : index
    %c0_239 = arith.constant 0 : index
    %177 = vector.load %arg17[%c0_236, %c2_237, %c1_238, %c0_239] : memref<1x6x6x32xbf16, #tpu.memory_space<vmem>>, vector<1x4x4x32xbf16>
    %178 = vector.shape_cast %177 : vector<1x4x4x32xbf16> to vector<16x32xbf16>
    %c7_240 = arith.constant 7 : index
    %c0_241 = arith.constant 0 : index
    %c0_242 = arith.constant 0 : index
    %179 = vector.load %arg6[%c7_240, %c0_241, %c0_242] : memref<9x32x64xbf16, #tpu.memory_space<vmem>>, vector<1x32x64xbf16>
    %180 = vector.shape_cast %179 : vector<1x32x64xbf16> to vector<32x64xbf16>
    %cst_243 = arith.constant dense<0.000000e+00> : vector<16x64xf32>
    %181 = tpu.matmul %178, %180, %cst_243 {dimension_numbers = #tpu.dot_dimension_numbers<[1], [0], [0], [1], [0, 0, 1, 1], [], []>} : vector<16x32xbf16>, vector<32x64xbf16>, vector<16x64xf32> -> vector<16x64xf32>
    %182 = arith.addf %176, %181 : vector<16x64xf32>
    %c0_244 = arith.constant 0 : index
    %c2_245 = arith.constant 2 : index
    %c2_246 = arith.constant 2 : index
    %c0_247 = arith.constant 0 : index
    %183 = vector.load %arg17[%c0_244, %c2_245, %c2_246, %c0_247] : memref<1x6x6x32xbf16, #tpu.memory_space<vmem>>, vector<1x4x4x32xbf16>
    %184 = vector.shape_cast %183 : vector<1x4x4x32xbf16> to vector<16x32xbf16>
    %c8_248 = arith.constant 8 : index
    %c0_249 = arith.constant 0 : index
    %c0_250 = arith.constant 0 : index
    %185 = vector.load %arg6[%c8_248, %c0_249, %c0_250] : memref<9x32x64xbf16, #tpu.memory_space<vmem>>, vector<1x32x64xbf16>
    %186 = vector.shape_cast %185 : vector<1x32x64xbf16> to vector<32x64xbf16>
    %cst_251 = arith.constant dense<0.000000e+00> : vector<16x64xf32>
    %187 = tpu.matmul %184, %186, %cst_251 {dimension_numbers = #tpu.dot_dimension_numbers<[1], [0], [0], [1], [0, 0, 1, 1], [], []>} : vector<16x32xbf16>, vector<32x64xbf16>, vector<16x64xf32> -> vector<16x64xf32>
    %188 = arith.addf %182, %187 : vector<16x64xf32>
    %c0_252 = arith.constant 0 : index
    %c0_253 = arith.constant 0 : index
    %189 = vector.load %arg7[%c0_252, %c0_253] : memref<1x64xf32, #tpu.memory_space<vmem>>, vector<1x64xf32>
    %190 = vector.broadcast %189 : vector<1x64xf32> to vector<16x64xf32>
    %191 = arith.addf %188, %190 : vector<16x64xf32>
    %cst_254 = arith.constant 0.000000e+00 : f32
    %192 = vector.broadcast %cst_254 : f32 to vector<16x64xf32>
    %193 = arith.maximumf %191, %192 : vector<16x64xf32>
    %194 = vector.shape_cast %193 : vector<16x64xf32> to vector<1x2x2x2x2x64xf32>
    %cst_255 = arith.constant dense<0xFF800000> : vector<1x2x2x2x64xf32>
    %195 = vector.multi_reduction <maximumf>, %194, %cst_255 [2] : vector<1x2x2x2x2x64xf32> to vector<1x2x2x2x64xf32>
    %cst_256 = arith.constant dense<0xFF800000> : vector<1x2x2x64xf32>
    %196 = vector.multi_reduction <maximumf>, %195, %cst_256 [3] : vector<1x2x2x2x64xf32> to vector<1x2x2x64xf32>
    %197 = arith.truncf %196 : vector<1x2x2x64xf32> to vector<1x2x2x64xbf16>
    %c0_257 = arith.constant 0 : index
    %c1_258 = arith.constant 1 : index
    %c1_259 = arith.constant 1 : index
    %c0_260 = arith.constant 0 : index
    %198 = vector.load %arg18[%c0_257, %c1_258, %c1_259, %c0_260] : memref<1x4x4x64xbf16, #tpu.memory_space<vmem>>, vector<1x2x2x64xbf16>
    tpu.vector_store %arg18[%c0_257, %c1_258, %c1_259, %c0_260], %197 {strides = array<i32>} : memref<1x4x4x64xbf16, #tpu.memory_space<vmem>>, vector<1x2x2x64xbf16>,
    %c0_261 = arith.constant 0 : index
    %c0_262 = arith.constant 0 : index
    %c0_263 = arith.constant 0 : index
    %c0_264 = arith.constant 0 : index
    %199 = vector.load %arg18[%c0_261, %c0_262, %c0_263, %c0_264] : memref<1x4x4x64xbf16, #tpu.memory_space<vmem>>, vector<1x2x2x64xbf16>
    %200 = vector.shape_cast %199 : vector<1x2x2x64xbf16> to vector<4x64xbf16>
    %c0_265 = arith.constant 0 : index
    %c0_266 = arith.constant 0 : index
    %c0_267 = arith.constant 0 : index
    %201 = vector.load %arg8[%c0_265, %c0_266, %c0_267] : memref<9x64x128xbf16, #tpu.memory_space<vmem>>, vector<1x64x128xbf16>
    %202 = vector.shape_cast %201 : vector<1x64x128xbf16> to vector<64x128xbf16>
    %cst_268 = arith.constant dense<0.000000e+00> : vector<4x128xf32>
    %203 = tpu.matmul %200, %202, %cst_268 {dimension_numbers = #tpu.dot_dimension_numbers<[1], [0], [0], [1], [0, 0, 1, 1], [], []>} : vector<4x64xbf16>, vector<64x128xbf16>, vector<4x128xf32> -> vector<4x128xf32>
    %c0_269 = arith.constant 0 : index
    %c0_270 = arith.constant 0 : index
    %c1_271 = arith.constant 1 : index
    %c0_272 = arith.constant 0 : index
    %204 = vector.load %arg18[%c0_269, %c0_270, %c1_271, %c0_272] : memref<1x4x4x64xbf16, #tpu.memory_space<vmem>>, vector<1x2x2x64xbf16>
    %205 = vector.shape_cast %204 : vector<1x2x2x64xbf16> to vector<4x64xbf16>
    %c1_273 = arith.constant 1 : index
    %c0_274 = arith.constant 0 : index
    %c0_275 = arith.constant 0 : index
    %206 = vector.load %arg8[%c1_273, %c0_274, %c0_275] : memref<9x64x128xbf16, #tpu.memory_space<vmem>>, vector<1x64x128xbf16>
    %207 = vector.shape_cast %206 : vector<1x64x128xbf16> to vector<64x128xbf16>
    %cst_276 = arith.constant dense<0.000000e+00> : vector<4x128xf32>
    %208 = tpu.matmul %205, %207, %cst_276 {dimension_numbers = #tpu.dot_dimension_numbers<[1], [0], [0], [1], [0, 0, 1, 1], [], []>} : vector<4x64xbf16>, vector<64x128xbf16>, vector<4x128xf32> -> vector<4x128xf32>
    %209 = arith.addf %203, %208 : vector<4x128xf32>
    %c0_277 = arith.constant 0 : index
    %c0_278 = arith.constant 0 : index
    %c2_279 = arith.constant 2 : index
    %c0_280 = arith.constant 0 : index
    %210 = vector.load %arg18[%c0_277, %c0_278, %c2_279, %c0_280] : memref<1x4x4x64xbf16, #tpu.memory_space<vmem>>, vector<1x2x2x64xbf16>
    %211 = vector.shape_cast %210 : vector<1x2x2x64xbf16> to vector<4x64xbf16>
    %c2_281 = arith.constant 2 : index
    %c0_282 = arith.constant 0 : index
    %c0_283 = arith.constant 0 : index
    %212 = vector.load %arg8[%c2_281, %c0_282, %c0_283] : memref<9x64x128xbf16, #tpu.memory_space<vmem>>, vector<1x64x128xbf16>
    %213 = vector.shape_cast %212 : vector<1x64x128xbf16> to vector<64x128xbf16>
    %cst_284 = arith.constant dense<0.000000e+00> : vector<4x128xf32>
    %214 = tpu.matmul %211, %213, %cst_284 {dimension_numbers = #tpu.dot_dimension_numbers<[1], [0], [0], [1], [0, 0, 1, 1], [], []>} : vector<4x64xbf16>, vector<64x128xbf16>, vector<4x128xf32> -> vector<4x128xf32>
    %215 = arith.addf %209, %214 : vector<4x128xf32>
    %c0_285 = arith.constant 0 : index
    %c1_286 = arith.constant 1 : index
    %c0_287 = arith.constant 0 : index
    %c0_288 = arith.constant 0 : index
    %216 = vector.load %arg18[%c0_285, %c1_286, %c0_287, %c0_288] : memref<1x4x4x64xbf16, #tpu.memory_space<vmem>>, vector<1x2x2x64xbf16>
    %217 = vector.shape_cast %216 : vector<1x2x2x64xbf16> to vector<4x64xbf16>
    %c3_289 = arith.constant 3 : index
    %c0_290 = arith.constant 0 : index
    %c0_291 = arith.constant 0 : index
    %218 = vector.load %arg8[%c3_289, %c0_290, %c0_291] : memref<9x64x128xbf16, #tpu.memory_space<vmem>>, vector<1x64x128xbf16>
    %219 = vector.shape_cast %218 : vector<1x64x128xbf16> to vector<64x128xbf16>
    %cst_292 = arith.constant dense<0.000000e+00> : vector<4x128xf32>
    %220 = tpu.matmul %217, %219, %cst_292 {dimension_numbers = #tpu.dot_dimension_numbers<[1], [0], [0], [1], [0, 0, 1, 1], [], []>} : vector<4x64xbf16>, vector<64x128xbf16>, vector<4x128xf32> -> vector<4x128xf32>
    %221 = arith.addf %215, %220 : vector<4x128xf32>
    %c0_293 = arith.constant 0 : index
    %c1_294 = arith.constant 1 : index
    %c1_295 = arith.constant 1 : index
    %c0_296 = arith.constant 0 : index
    %222 = vector.load %arg18[%c0_293, %c1_294, %c1_295, %c0_296] : memref<1x4x4x64xbf16, #tpu.memory_space<vmem>>, vector<1x2x2x64xbf16>
    %223 = vector.shape_cast %222 : vector<1x2x2x64xbf16> to vector<4x64xbf16>
    %c4_297 = arith.constant 4 : index
    %c0_298 = arith.constant 0 : index
    %c0_299 = arith.constant 0 : index
    %224 = vector.load %arg8[%c4_297, %c0_298, %c0_299] : memref<9x64x128xbf16, #tpu.memory_space<vmem>>, vector<1x64x128xbf16>
    %225 = vector.shape_cast %224 : vector<1x64x128xbf16> to vector<64x128xbf16>
    %cst_300 = arith.constant dense<0.000000e+00> : vector<4x128xf32>
    %226 = tpu.matmul %223, %225, %cst_300 {dimension_numbers = #tpu.dot_dimension_numbers<[1], [0], [0], [1], [0, 0, 1, 1], [], []>} : vector<4x64xbf16>, vector<64x128xbf16>, vector<4x128xf32> -> vector<4x128xf32>
    %227 = arith.addf %221, %226 : vector<4x128xf32>
    %c0_301 = arith.constant 0 : index
    %c1_302 = arith.constant 1 : index
    %c2_303 = arith.constant 2 : index
    %c0_304 = arith.constant 0 : index
    %228 = vector.load %arg18[%c0_301, %c1_302, %c2_303, %c0_304] : memref<1x4x4x64xbf16, #tpu.memory_space<vmem>>, vector<1x2x2x64xbf16>
    %229 = vector.shape_cast %228 : vector<1x2x2x64xbf16> to vector<4x64xbf16>
    %c5_305 = arith.constant 5 : index
    %c0_306 = arith.constant 0 : index
    %c0_307 = arith.constant 0 : index
    %230 = vector.load %arg8[%c5_305, %c0_306, %c0_307] : memref<9x64x128xbf16, #tpu.memory_space<vmem>>, vector<1x64x128xbf16>
    %231 = vector.shape_cast %230 : vector<1x64x128xbf16> to vector<64x128xbf16>
    %cst_308 = arith.constant dense<0.000000e+00> : vector<4x128xf32>
    %232 = tpu.matmul %229, %231, %cst_308 {dimension_numbers = #tpu.dot_dimension_numbers<[1], [0], [0], [1], [0, 0, 1, 1], [], []>} : vector<4x64xbf16>, vector<64x128xbf16>, vector<4x128xf32> -> vector<4x128xf32>
    %233 = arith.addf %227, %232 : vector<4x128xf32>
    %c0_309 = arith.constant 0 : index
    %c2_310 = arith.constant 2 : index
    %c0_311 = arith.constant 0 : index
    %c0_312 = arith.constant 0 : index
    %234 = vector.load %arg18[%c0_309, %c2_310, %c0_311, %c0_312] : memref<1x4x4x64xbf16, #tpu.memory_space<vmem>>, vector<1x2x2x64xbf16>
    %235 = vector.shape_cast %234 : vector<1x2x2x64xbf16> to vector<4x64xbf16>
    %c6_313 = arith.constant 6 : index
    %c0_314 = arith.constant 0 : index
    %c0_315 = arith.constant 0 : index
    %236 = vector.load %arg8[%c6_313, %c0_314, %c0_315] : memref<9x64x128xbf16, #tpu.memory_space<vmem>>, vector<1x64x128xbf16>
    %237 = vector.shape_cast %236 : vector<1x64x128xbf16> to vector<64x128xbf16>
    %cst_316 = arith.constant dense<0.000000e+00> : vector<4x128xf32>
    %238 = tpu.matmul %235, %237, %cst_316 {dimension_numbers = #tpu.dot_dimension_numbers<[1], [0], [0], [1], [0, 0, 1, 1], [], []>} : vector<4x64xbf16>, vector<64x128xbf16>, vector<4x128xf32> -> vector<4x128xf32>
    %239 = arith.addf %233, %238 : vector<4x128xf32>
    %c0_317 = arith.constant 0 : index
    %c2_318 = arith.constant 2 : index
    %c1_319 = arith.constant 1 : index
    %c0_320 = arith.constant 0 : index
    %240 = vector.load %arg18[%c0_317, %c2_318, %c1_319, %c0_320] : memref<1x4x4x64xbf16, #tpu.memory_space<vmem>>, vector<1x2x2x64xbf16>
    %241 = vector.shape_cast %240 : vector<1x2x2x64xbf16> to vector<4x64xbf16>
    %c7_321 = arith.constant 7 : index
    %c0_322 = arith.constant 0 : index
    %c0_323 = arith.constant 0 : index
    %242 = vector.load %arg8[%c7_321, %c0_322, %c0_323] : memref<9x64x128xbf16, #tpu.memory_space<vmem>>, vector<1x64x128xbf16>
    %243 = vector.shape_cast %242 : vector<1x64x128xbf16> to vector<64x128xbf16>
    %cst_324 = arith.constant dense<0.000000e+00> : vector<4x128xf32>
    %244 = tpu.matmul %241, %243, %cst_324 {dimension_numbers = #tpu.dot_dimension_numbers<[1], [0], [0], [1], [0, 0, 1, 1], [], []>} : vector<4x64xbf16>, vector<64x128xbf16>, vector<4x128xf32> -> vector<4x128xf32>
    %245 = arith.addf %239, %244 : vector<4x128xf32>
    %c0_325 = arith.constant 0 : index
    %c2_326 = arith.constant 2 : index
    %c2_327 = arith.constant 2 : index
    %c0_328 = arith.constant 0 : index
    %246 = vector.load %arg18[%c0_325, %c2_326, %c2_327, %c0_328] : memref<1x4x4x64xbf16, #tpu.memory_space<vmem>>, vector<1x2x2x64xbf16>
    %247 = vector.shape_cast %246 : vector<1x2x2x64xbf16> to vector<4x64xbf16>
    %c8_329 = arith.constant 8 : index
    %c0_330 = arith.constant 0 : index
    %c0_331 = arith.constant 0 : index
    %248 = vector.load %arg8[%c8_329, %c0_330, %c0_331] : memref<9x64x128xbf16, #tpu.memory_space<vmem>>, vector<1x64x128xbf16>
    %249 = vector.shape_cast %248 : vector<1x64x128xbf16> to vector<64x128xbf16>
    %cst_332 = arith.constant dense<0.000000e+00> : vector<4x128xf32>
    %250 = tpu.matmul %247, %249, %cst_332 {dimension_numbers = #tpu.dot_dimension_numbers<[1], [0], [0], [1], [0, 0, 1, 1], [], []>} : vector<4x64xbf16>, vector<64x128xbf16>, vector<4x128xf32> -> vector<4x128xf32>
    %251 = arith.addf %245, %250 : vector<4x128xf32>
    %c0_333 = arith.constant 0 : index
    %c0_334 = arith.constant 0 : index
    %252 = vector.load %arg9[%c0_333, %c0_334] : memref<1x128xf32, #tpu.memory_space<vmem>>, vector<1x128xf32>
    %253 = vector.broadcast %252 : vector<1x128xf32> to vector<4x128xf32>
    %254 = arith.addf %251, %253 : vector<4x128xf32>
    %cst_335 = arith.constant 0.000000e+00 : f32
    %255 = vector.broadcast %cst_335 : f32 to vector<4x128xf32>
    %256 = arith.maximumf %254, %255 : vector<4x128xf32>
    %257 = vector.shape_cast %256 : vector<4x128xf32> to vector<1x1x2x1x2x128xf32>
    %cst_336 = arith.constant dense<0xFF800000> : vector<1x1x1x2x128xf32>
    %258 = vector.multi_reduction <maximumf>, %257, %cst_336 [2] : vector<1x1x2x1x2x128xf32> to vector<1x1x1x2x128xf32>
    %cst_337 = arith.constant dense<0xFF800000> : vector<1x1x1x128xf32>
    %259 = vector.multi_reduction <maximumf>, %258, %cst_337 [3] : vector<1x1x1x2x128xf32> to vector<1x1x1x128xf32>
    %260 = vector.shape_cast %259 : vector<1x1x1x128xf32> to vector<1x128xf32>
    %261 = arith.truncf %260 : vector<1x128xf32> to vector<1x128xbf16>
    %c0_338 = arith.constant 0 : index
    %c0_339 = arith.constant 0 : index
    %262 = vector.load %arg10[%c0_338, %c0_339] : memref<128x512xbf16, #tpu.memory_space<vmem>>, vector<128x512xbf16>
    %cst_340 = arith.constant dense<0.000000e+00> : vector<1x512xf32>
    %263 = tpu.matmul %261, %262, %cst_340 {dimension_numbers = #tpu.dot_dimension_numbers<[1], [0], [0], [1], [0, 0, 1, 1], [], []>} : vector<1x128xbf16>, vector<128x512xbf16>, vector<1x512xf32> -> vector<1x512xf32>
    %c0_341 = arith.constant 0 : index
    %c0_342 = arith.constant 0 : index
    %264 = vector.load %arg11[%c0_341, %c0_342] : memref<1x512xf32, #tpu.memory_space<vmem>>, vector<1x512xf32>
    %265 = arith.addf %263, %264 : vector<1x512xf32>
    %cst_343 = arith.constant 0.000000e+00 : f32
    %266 = vector.broadcast %cst_343 : f32 to vector<1x512xf32>
    %267 = arith.maximumf %265, %266 : vector<1x512xf32>
    %268 = arith.truncf %267 : vector<1x512xf32> to vector<1x512xbf16>
    %c0_344 = arith.constant 0 : index
    %c0_345 = arith.constant 0 : index
    %269 = vector.load %arg12[%c0_344, %c0_345] : memref<512x10xbf16, #tpu.memory_space<vmem>>, vector<512x10xbf16>
    %cst_346 = arith.constant dense<0.000000e+00> : vector<1x10xf32>
    %270 = tpu.matmul %268, %269, %cst_346 {dimension_numbers = #tpu.dot_dimension_numbers<[1], [0], [0], [1], [0, 0, 1, 1], [], []>} : vector<1x512xbf16>, vector<512x10xbf16>, vector<1x10xf32> -> vector<1x10xf32>
    %c0_347 = arith.constant 0 : index
    %c0_348 = arith.constant 0 : index
    %271 = vector.load %arg13[%c0_347, %c0_348] : memref<1x10xf32, #tpu.memory_space<vmem>>, vector<1x10xf32>
    %272 = arith.addf %270, %271 : vector<1x10xf32>
    %273 = vector.shape_cast %272 : vector<1x10xf32> to vector<1x1x10xf32>
    %c0_349 = arith.constant 0 : index
    %c0_350 = arith.constant 0 : index
    %c0_351 = arith.constant 0 : index
    %274 = vector.load %arg14[%c0_349, %c0_350, %c0_351] : memref<1x1x10xf32, #tpu.memory_space<vmem>>, vector<1x1x10xf32>
    tpu.vector_store %arg14[%c0_349, %c0_350, %c0_351], %273 {strides = array<i32>} : memref<1x1x10xf32, #tpu.memory_space<vmem>>, vector<1x1x10xf32>,
    return
  }
  func.func @transform_0(%arg0: i32) -> (i32, i32, i32, i32) {
    %c0_i32 = arith.constant 0 : i32
    %c0_i32_0 = arith.constant 0 : i32
    %c0_i32_1 = arith.constant 0 : i32
    %c0_i32_2 = arith.constant 0 : i32
    return %arg0, %c0_i32, %c0_i32_0, %c0_i32_1 : i32, i32, i32, i32
  }
  func.func @transform_1(%arg0: i32) -> (i32, i32, i32) {
    %c0_i32 = arith.constant 0 : i32
    %c0_i32_0 = arith.constant 0 : i32
    %c0_i32_1 = arith.constant 0 : i32
    %c0_i32_2 = arith.constant 0 : i32
    return %c0_i32, %c0_i32_0, %c0_i32_1 : i32, i32, i32
  }
  func.func @transform_2(%arg0: i32) -> (i32, i32) {
    %c0_i32 = arith.constant 0 : i32
    %c0_i32_0 = arith.constant 0 : i32
    %c0_i32_1 = arith.constant 0 : i32
    return %c0_i32, %c0_i32_0 : i32, i32
  }
  func.func @transform_3(%arg0: i32) -> (i32, i32, i32) {
    %c0_i32 = arith.constant 0 : i32
    %c0_i32_0 = arith.constant 0 : i32
    %c0_i32_1 = arith.constant 0 : i32
    %c0_i32_2 = arith.constant 0 : i32
    return %c0_i32, %c0_i32_0, %c0_i32_1 : i32, i32, i32
  }
  func.func @transform_4(%arg0: i32) -> (i32, i32) {
    %c0_i32 = arith.constant 0 : i32
    %c0_i32_0 = arith.constant 0 : i32
    %c0_i32_1 = arith.constant 0 : i32
    return %c0_i32, %c0_i32_0 : i32, i32
  }
  func.func @transform_5(%arg0: i32) -> (i32, i32, i32) {
    %c0_i32 = arith.constant 0 : i32
    %c0_i32_0 = arith.constant 0 : i32
    %c0_i32_1 = arith.constant 0 : i32
    %c0_i32_2 = arith.constant 0 : i32
    return %c0_i32, %c0_i32_0, %c0_i32_1 : i32, i32, i32
  }
  func.func @transform_6(%arg0: i32) -> (i32, i32) {
    %c0_i32 = arith.constant 0 : i32
    %c0_i32_0 = arith.constant 0 : i32
    %c0_i32_1 = arith.constant 0 : i32
    return %c0_i32, %c0_i32_0 : i32, i32
  }
  func.func @transform_7(%arg0: i32) -> (i32, i32, i32) {
    %c0_i32 = arith.constant 0 : i32
    %c0_i32_0 = arith.constant 0 : i32
    %c0_i32_1 = arith.constant 0 : i32
    %c0_i32_2 = arith.constant 0 : i32
    return %c0_i32, %c0_i32_0, %c0_i32_1 : i32, i32, i32
  }
  func.func @transform_8(%arg0: i32) -> (i32, i32) {
    %c0_i32 = arith.constant 0 : i32
    %c0_i32_0 = arith.constant 0 : i32
    %c0_i32_1 = arith.constant 0 : i32
    return %c0_i32, %c0_i32_0 : i32, i32
  }
  func.func @transform_9(%arg0: i32) -> (i32, i32) {
    %c0_i32 = arith.constant 0 : i32
    %c0_i32_0 = arith.constant 0 : i32
    %c0_i32_1 = arith.constant 0 : i32
    return %c0_i32, %c0_i32_0 : i32, i32
  }
  func.func @transform_10(%arg0: i32) -> (i32, i32) {
    %c0_i32 = arith.constant 0 : i32
    %c0_i32_0 = arith.constant 0 : i32
    %c0_i32_1 = arith.constant 0 : i32
    return %c0_i32, %c0_i32_0 : i32, i32
  }
  func.func @transform_11(%arg0: i32) -> (i32, i32) {
    %c0_i32 = arith.constant 0 : i32
    %c0_i32_0 = arith.constant 0 : i32
    %c0_i32_1 = arith.constant 0 : i32
    return %c0_i32, %c0_i32_0 : i32, i32
  }
  func.func @transform_12(%arg0: i32) -> (i32, i32) {
    %c0_i32 = arith.constant 0 : i32
    %c0_i32_0 = arith.constant 0 : i32
    %c0_i32_1 = arith.constant 0 : i32
    return %c0_i32, %c0_i32_0 : i32, i32
  }
  func.func @transform_13(%arg0: i32) -> (i32, i32, i32) {
    %c0_i32 = arith.constant 0 : i32
    %c0_i32_0 = arith.constant 0 : i32
    %c0_i32_1 = arith.constant 0 : i32
    return %arg0, %c0_i32, %c0_i32_0 : i32, i32, i32
  }
}

</mosaic_0001>

<bundles_post_ra>
// kernel: vgg_forward.1
= control target key start
LH: loop header
LB: loop body
LE: loop exit
PB: predicated region body
PF: predicated region fallthrough
CT: control target
= control target key end

     0   :  { %s19386_s0 = inlined_call_operand.vmem [shape: bf16[2,16,16,3], index: 0, kind: input, shape index: {}]   ;;  %s19387_s1 = inlined_call_operand.vmem [shape: bf16[9,3,16], index: 1, kind: input, shape index: {}]   ;;  %s19388_s2 = inlined_call_operand.hbm [shape: f32[1,16], index: 2, kind: input, shape index: {}]   ;;  %s19389_s3 = inlined_call_operand.vmem [shape: bf16[9,16,32], index: 3, kind: input, shape index: {}]   ;;  %s19390_s4 = inlined_call_operand.hbm [shape: f32[1,32], index: 4, kind: input, shape index: {}]   ;;  %s19391_s5 = inlined_call_operand.vmem [shape: bf16[9,32,64], index: 5, kind: input, shape index: {}]   ;;  %s19392_s6 = inlined_call_operand.hbm [shape: f32[1,64], index: 6, kind: input, shape index: {}]   ;;  %s19393_s7 = inlined_call_operand.vmem [shape: bf16[9,64,128], index: 7, kind: input, shape index: {}]   ;;  %s19394_s8 = inlined_call_operand.hbm [shape: f32[1,128], index: 8, kind: input, shape index: {}]   ;;  %s19395_s9 = inlined_call_operand.vmem [shape: bf16[128,512], index: 9, kind: input, shape index: {}]   ;;  %s19396_s10 = inlined_call_operand.hbm [shape: f32[1,512], index: 10, kind: input, shape index: {}]   ;;  %s19397_s11 = inlined_call_operand.vmem [shape: bf16[512,10], index: 11, kind: input, shape index: {}]   ;;  %s19398_s12 = inlined_call_operand.hbm [shape: f32[1,10], index: 12, kind: input, shape index: {}]   ;;  %s19399_s13 = inlined_call_operand.hbm [shape: f32[2,1,10], index: 13, kind: output, shape index: {}]  }
   0x1   :  { %19424 = sst [smem:[#allocation68_spill]] %s19390_s4 }
   0x2   :  { %18 = vsyncpa [#allocation7], 0 }
   0x3   :  { %19 = vsyncpa [#allocation10], 0 }
   0x4   :  { %20 = vsyncpa [#allocation13], 0 }
   0x5   :  { %21 = vsyncpa [#allocation16], 0 }
   0x6   :  { %22 = vsyncpa [#allocation8], 0 }
   0x7   :  { %24 = vsyncpa [#allocation8 + $0x1], 0  ;;  %s15254_s25 = smov 0   ;;  %s15256_s26 = smov 0  }
   0x8   :  { %s15258_s27 = smov 0   ;;  %s15260_s28 = smov 0  }
   0x9 LB: > { %19425 = sst [smem:[#allocation23_spill]] %s15165_s27  ;;  %s15275_s29 = sadd.s32 4294967295, %s15169_s28   ;;  %s15169_s28 = sphi %s15260_s28, %s19615_s28   ;;  %s15165_s27 = sphi %s15258_s27, %s19617_s27   ;;  %s15161_s26 = sphi %s15256_s26, %s19619_s26   ;;  %s15157_s25 = sphi %s15254_s25, %s19618_s25  }
   0xa   : > { %s12757_s30 = sadd.s32 4294967294, %s15169_s28   ;;  %s15279_s14 = sadd.s32 1, %s15169_s28  }
   0xb   : > { %19426 = sst [smem:[#allocation24_spill]] %s15279_s14  ;;  %s315_s15 = sadd.s32 1, %s15165_s27 }
   0xc   : > { %s312_s16 = ssub.s32 %s15169_s28, %s15279_s14  ;;  %p325_p0 = scmp.ne.s32.totalorder %s15165_s27, %s15161_s26 }
   0xd   : > { %p313_p1 = scmp.eq.s32.totalorder %s312_s16, 0  ;;  %p326_p2 = scmp.eq.s32.totalorder %s15275_s29, 1 }
   0xe   : > { %p331_p3 = scmp.ne.s32.totalorder %s15161_s26, %s15157_s25  ;;  %p332_p4 = scmp.eq.s32.totalorder %s12757_s30, 1 }
   0xf   : > { %s15290_s17 = scalar_select %p313_p1, %s15165_s27, %s315_s15  }
  0x10   : > { %p15292_p5 = por %p326_p2, %p325_p0  ;;  %p15296_p6 = por %p332_p4, %p331_p3 }
  0x11   : > { %19427 = sst [smem:[#allocation25_spill]] %s15290_s17  ;;  %p12758_p7 = scmp.ge.s32.totalorder %s15169_s28, 1 }
  0x12   : > { %s19428_s18 = scalar_select %p15292_p5, 1, 0 }
  0x13   : > { %s19429_s19 = scalar_select %p15296_p6, 1, 0 }
  0x14   : > { %p339_p8 = scmp.lt.s32.totalorder %s15169_s28, 3  ;;  %p19403_p9 = scmp.eq.s32.totalorder %s15275_s29, 0 }
  0x15   : > { %19430 = sst [smem:[#allocation26_spill]] %s19429_s19  ;;  %s15171_s21 = smov [#allocation9]  }
  0x16   : > { %p15303_p10 = pnand %p12758_p7, %p339_p8  ;;  %s369_s22 = sshll.u32 %s15171_s21, 4  ;;  %s370_s22 = int_to_ptr.vmem [resolvable:$true] %s369_s22 }
  0x17   : > { %s15172_s23 = smov [#allocation12]   ;;  %s15173_s15 = smov [#allocation6]  }
  0x18   : > { %s19431_s20 = scalar_select %p15303_p10, 1, 0 }
  0x19   : > { %p14629_p11 = pneg %p15303_p10  ;;  %s397_s24 = sshll.u32 %s15172_s23, 4  ;;  %s398_s24 = int_to_ptr.vmem [resolvable:$true] %s397_s24 }
  0x1a   : > { %s355_s16 = sshll.u32 %s15173_s15, 4  ;;  %s14948_s21 = scalar_lea.vmem %s370_s22, 16  ;;  %s15315_s16 = int_to_ptr.vmem [resolvable:$true] %s355_s16 }
  0x1b   : > { %p15311_p12 = pnand %p19403_p9, %p14629_p11  ;;  %p14949_p0 = scmp.ne.s32.totalorder %s370_s22, %s14948_s21 }
  0x1c   : > { %s14955_s23 = scalar_lea.vmem %s370_s22, 32  ;;  %p14956_p3 = scmp.lt.s32.totalorder %s370_s22, %s370_s22 }
  0x1d   : > { %p15319_p13 = pneg %p15311_p12  ;;  %p14957_p4 = scmp.lt.s32.totalorder %s14955_s23, %s14948_s21 }
  0x1f   : > { %p14951_p1 = pnand %p14949_p0, %p15319_p13  ;;  %p14958_p7 = por %p14957_p4, %p14956_p3 }
  0x21   : > { %p14952_p2 = pneg %p14951_p1 }
  0x23   : > { %p14959_p8 = pnand %p14958_p7, %p14952_p2 }
  0x25   : > { %14962 = shalt.err (!%p14959_p8)
}
  0x26   : > { %s19434_s4 = sld [smem:[#allocation68_spill]]  ;;  %s14974_s14 = scalar_lea.vmem %s398_s24, 16 }
  0x27   : > { %p14975_p11 = scmp.ne.s32.totalorder %s398_s24, %s14974_s14  ;;  %s14981_s19 = scalar_lea.vmem %s398_s24, 32 }
  0x28   : > { %p14982_p0 = scmp.lt.s32.totalorder %s398_s24, %s398_s24  ;;  %p14983_p1 = scmp.lt.s32.totalorder %s14981_s19, %s14974_s14 }
  0x29   : > { %p14977_p9 = pnand %p14975_p11, %p15319_p13 }
  0x2a   : > { %p14984_p5 = por %p14983_p1, %p14982_p0 }
  0x2b   : > { %p14978_p6 = pneg %p14977_p9 }
  0x2c   : > { %14635 = dma.hbm_to_vmem [thread:$0]  (!%p15311_p12), %s19434_s4, 16, %s370_s22, [#allocation10]  }
  0x2d   : > { %p14985_p10 = pnand %p14984_p5, %p14978_p6 }
  0x2f   : > { %14988 = shalt.err (!%p14985_p10)
}
  0x30   : > { %14641 = dma.hbm_to_vmem [thread:$0]  (!%p15311_p12), %s19394_s8, 16, %s398_s24, [#allocation13]  }
  0x31   : > { %s15000_s27 = scalar_lea.vmem %s15315_s16, 16  ;;  %s15007_s14 = scalar_lea.vmem %s15315_s16, 32 }
  0x32   : > { %p15001_p2 = scmp.ne.s32.totalorder %s15315_s16, %s15000_s27  ;;  %p15008_p5 = scmp.lt.s32.totalorder %s15315_s16, %s15315_s16 }
  0x33   : > { %p15009_p6 = scmp.lt.s32.totalorder %s15007_s14, %s15000_s27 }
  0x34   : > { %p15003_p9 = pnand %p15001_p2, %p15319_p13 }
  0x35   : > { %p15010_p10 = por %p15009_p6, %p15008_p5 }
  0x36   : > { %p15004_p3 = pneg %p15003_p9 }
  0x38   : > { %p15011_p4 = pnand %p15010_p10, %p15004_p3 }
  0x3a   : > { %15014 = shalt.err (!%p15011_p4)
}
  0x3b   : > { %14632 = dma.hbm_to_vmem [thread:$0]  (!%p15311_p12), %s19388_s2, 16, %s15315_s16, [#allocation7]  }
  0x3c   : > { %s15174_s24 = smov [#allocation11]   ;;  %s15175_s21 = smov [#allocation14]  }
  0x3d   : > { %s383_s15 = sshll.u32 %s15174_s24, 4  ;;  %s411_s23 = sshll.u32 %s15175_s21, 4  ;;  %s384_s15 = int_to_ptr.vmem [resolvable:$true] %s383_s15  ;;  %s412_s23 = int_to_ptr.vmem [resolvable:$true] %s411_s23 }
  0x3e   : > { %s15026_s4 = scalar_lea.vmem %s384_s15, 16  ;;  %s15033_s27 = scalar_lea.vmem %s384_s15, 32 }
  0x3f   : > { %p15027_p7 = scmp.ne.s32.totalorder %s384_s15, %s15026_s4  ;;  %p15034_p0 = scmp.lt.s32.totalorder %s384_s15, %s384_s15 }
  0x40   : > { %p15035_p1 = scmp.lt.s32.totalorder %s15033_s27, %s15026_s4 }
  0x41   : > { %p15029_p8 = pnand %p15027_p7, %p15319_p13 }
  0x42   : > { %p15036_p2 = por %p15035_p1, %p15034_p0 }
  0x43   : > { %p15030_p11 = pneg %p15029_p8 }
  0x45   : > { %p15037_p9 = pnand %p15036_p2, %p15030_p11 }
  0x47   : > { %15040 = shalt.err (!%p15037_p9)
}
  0x48   : > { %14638 = dma.hbm_to_vmem [thread:$0]  (!%p15311_p12), %s19392_s6, 16, %s384_s15, [#allocation10]  }
  0x49   : > { %s15052_s19 = scalar_lea.vmem %s412_s23, 64  ;;  %p15060_p10 = scmp.lt.s32.totalorder %s412_s23, %s412_s23 }
  0x4a   : > { %p15053_p3 = scmp.ne.s32.totalorder %s412_s23, %s15052_s19  ;;  %p15061_p4 = scmp.lt.s32.totalorder %s15052_s19, %s15052_s19 }
  0x4c   : > { %p15055_p5 = pnand %p15053_p3, %p15319_p13  ;;  %p15062_p7 = por %p15061_p4, %p15060_p10 }
  0x4e   : > { %p15056_p6 = pneg %p15055_p5 }
  0x50   : > { %p15063_p8 = pnand %p15062_p7, %p15056_p6 }
  0x52   : > { %15066 = shalt.err (!%p15063_p8)
}
  0x53   : > { %14644 = dma.hbm_to_vmem [thread:$0]  (!%p15311_p12), %s19396_s10, 64, %s412_s23, [#allocation13]  }
  0x54   : > { %s15176_s24 = smov [#allocation15]  }
  0x55   : > { %s425_s15 = sshll.u32 %s15176_s24, 4  ;;  %s426_s15 = int_to_ptr.vmem [resolvable:$true] %s425_s15 }
  0x56   : > { %s15078_s21 = scalar_lea.vmem %s426_s15, 16  ;;  %s15085_s27 = scalar_lea.vmem %s426_s15, 32 }
  0x57   : > { %p15079_p11 = scmp.ne.s32.totalorder %s426_s15, %s15078_s21  ;;  %p15086_p2 = scmp.lt.s32.totalorder %s426_s15, %s426_s15 }
  0x58   : > { %p15087_p9 = scmp.lt.s32.totalorder %s15085_s27, %s15078_s21 }
  0x59   : > { %p15081_p0 = pnand %p15079_p11, %p15319_p13 }
  0x5a   : > { %p15088_p3 = por %p15087_p9, %p15086_p2 }
  0x5b   : > { %p15082_p1 = pneg %p15081_p0 }
  0x5d   : > { %p15089_p5 = pnand %p15088_p3, %p15082_p1 }
  0x5f   : > { %15092 = shalt.err (!%p15089_p5)
}
  0x60   : > { %14647 = dma.hbm_to_vmem [thread:$0]  (!%p15311_p12), %s19398_s12, 16, %s426_s15, [#allocation16]  }
  0x61   : > { %p19435_p6 = scmp.ne.s32.totalorder %s19431_s20, 0 }
  0x63   : > { %446 = sbr.rel (%p19435_p6) target bundleno = 2356 (0x934), region = 72 }
  0x68   : > { %p19436_p10 = scmp.eq.s32.totalorder %s15275_s29, 0 }
  0x6a   : > { %15136 = dma.done.wait (%p19436_p10), [#allocation7], 16   ;;  %p19437_p13 = pmov %p19436_p10 }
  0x6b   : > { %p19438_p4 = pmov %p19436_p10 }
  0x6c   : > { %15138 = vsyncadd (%p19437_p13), [#allocation7], 4294967280 }
  0x6d   : > { %15140 = dma.done.wait (%p19438_p4), [#allocation10], 32   ;;  %p19439_p7 = pmov %p19438_p4 }
  0x6e   : > { %p19440_p8 = pmov %p19438_p4 }
  0x6f   : > { %15142 = vsyncadd (%p19439_p7), [#allocation10], 4294967264 }
  0x70   : > { %15144 = dma.done.wait (%p19440_p8), [#allocation13], 80   ;;  %p19441_p12 = pmov %p19438_p4 }
  0x71   : > { %p19442_p11 = pmov %p19438_p4 }
  0x72   : > { %15146 = vsyncadd (%p19441_p12), [#allocation13], 4294967216 }
  0x73   : > { %15148 = dma.done.wait (%p19442_p11), [#allocation16], 16   ;;  %p19443_p0 = pmov %p19438_p4 }
  0x74   : > { %vm1613_vm0 = vcmask 1040384   ;;  %vm515_vm1 = vcmask 19456   ;;  %p509_p1 = scmp.lt.s32.totalorder %s15275_s29, 1  ;;  %vm19423_vm2 = vcmask 1041408   ;;  %v15177_v0 = vmov 65535   ;;  %s13621_s4 = sshll.u32 %s15275_s29, 4 }
  0x75   : > { %15150 = vsyncadd (%p19443_p0), [#allocation16], 4294967280  ;;  %v1615_v1 = vsel %vm1613_vm0, 4294967295, %v15177_v0  ;;  %vm518_vm3 = vcmask 16384   ;;  %v19407_v2 = vmov 0   ;;  %vm1564_vm6 = vcmask 23552   ;;  %s12640_s27 = scalar_lea.hbm %s19399_s13, %s13621_s4 }
  0x76   : > { %516 = vst.msk [vmem:[#allocation2] sm:$0xf] %vm515_vm1, %v19407_v2  ;;  %517 = vst.msk [vmem:[#allocation2 + $0x4] sm:$0xf] %vm515_vm1, %v19407_v2  ;;  %s510_s17 = scalar_select %p509_p1, %s15275_s29, 1  ;;  %v15503_v3 = vsel %vm19423_vm2, %v1615_v1, 0 }
  0x77   : > { %519 = vst.msk [vmem:[#allocation2 + $0x8] sm:$0x1] %vm518_vm3, %v19407_v2  ;;  %522 = vst.msk [vmem:[#allocation2 + $0x14] sm:$0x1] %vm518_vm3, %v19407_v2  ;;  %vm1127_vm4 = vsmask.f32 3328 }
  0x78   : > { %520 = vst.msk [vmem:[#allocation2 + $0xc] sm:$0xf] %vm515_vm1, %v19407_v2  ;;  %521 = vst.msk [vmem:[#allocation2 + $0x10] sm:$0xf] %vm515_vm1, %v19407_v2  ;;  %s13624_s20 = sshll.u32 %s510_s17, 7  ;;  %v19450_v46 = vmov 0 }
  0x79   : > { %523 = vst.msk [vmem:[#allocation2 + $0x18] sm:$0xf] %vm515_vm1, %v19407_v2  ;;  %524 = vst.msk [vmem:[#allocation2 + $0x1c] sm:$0xf] %vm515_vm1, %v19407_v2  ;;  %vm1128_vm5 = vsmask.f32 7440  ;;  %s15508_s19 = scalar_lea.vmem %s19386_s0, %s13624_s20 }
  0x7a   : > { %525 = vst.msk [vmem:[#allocation2 + $0x20] sm:$0x1] %vm518_vm3, %v19407_v2  ;;  %528 = vst.msk [vmem:[#allocation2 + $0x2c] sm:$0x1] %vm518_vm3, %v19407_v2  ;;  %vm637_vm7 = vsmask.f32 256 }
  0x7b   : > { %526 = vst.msk [vmem:[#allocation2 + $0x24] sm:$0xf] %vm515_vm1, %v19407_v2  ;;  %527 = vst.msk [vmem:[#allocation2 + $0x28] sm:$0xf] %vm515_vm1, %v19407_v2  ;;  %v12775_v4 = vld [vmem:[%s19387_s1 + $0x2] sm:$0x3] }
  0x7c   : > { %529 = vst.msk [vmem:[#allocation2 + $0x30] sm:$0xf] %vm515_vm1, %v19407_v2  ;;  %530 = vst.msk [vmem:[#allocation2 + $0x34] sm:$0xf] %vm515_vm1, %v19407_v2  ;;  %v1110_v5 = vld [vmem:[%s19387_s1] sm:$0x3]  ;;  %v1618_v7 = vand.u32 %v12775_v4, %v15503_v3 }
  0x7d   : > { %531 = vst.msk [vmem:[#allocation2 + $0x38] sm:$0x1] %vm518_vm3, %v19407_v2  ;;  %534 = vst.msk [vmem:[#allocation2 + $0x44] sm:$0x1] %vm518_vm3, %v19407_v2  ;;  %v12856_v6 = vld [vmem:[%s19387_s1 + $0x4] sm:$0x3]  ;;  %v1910_v8 = vand.u32 %v15503_v3, %v1110_v5 }
  0x7e   : > { %532 = vst.msk [vmem:[#allocation2 + $0x3c] sm:$0xf] %vm515_vm1, %v19407_v2  ;;  %533 = vst.msk [vmem:[#allocation2 + $0x40] sm:$0xf] %vm515_vm1, %v19407_v2  ;;  %v15522_v9 = vand.u32 %v12856_v6, %v15503_v3  ;;  %v605_v10 = vld [vmem:[%s15508_s19] sm:$0xf]  ;;  %14027 = vmatprep.subr.bf16.mxu0 %v1618_v7 }
  0x7f   : > { %535 = vst.msk [vmem:[#allocation2 + $0x48] sm:$0xf] %vm515_vm1, %v19407_v2  ;;  %536 = vst.msk [vmem:[#allocation2 + $0x4c] sm:$0xf] %vm515_vm1, %v19407_v2  ;;  %v606_v11 = vld [vmem:[%s15508_s19 + $0x4] sm:$0xf]  ;;  %14061 = vmatprep.subr.bf16.mxu1 %v1910_v8  ;;  %14028 = vmatpush3.bf16.msra.mxu0 %v1618_v7 }
  0x80   : > { %537 = vst.msk [vmem:[#allocation2 + $0x50] sm:$0x1] %vm518_vm3, %v19407_v2  ;;  %540 = vst.msk [vmem:[#allocation2 + $0x5c] sm:$0x1] %vm518_vm3, %v19407_v2  ;;  %vm638_vm8 = vsmask.f32 4368  ;;  %14062 = vmatpush3.bf16.msra.mxu1 %v1910_v8  ;;  %14095 = vmatprep.subr.bf16.mxu0 %v15522_v9 }
  0x81   : > { %538 = vst.msk [vmem:[#allocation2 + $0x54] sm:$0xf] %vm515_vm1, %v19407_v2  ;;  %539 = vst.msk [vmem:[#allocation2 + $0x58] sm:$0xf] %vm515_vm1, %v19407_v2  ;;  %v641_v12 = vshrl.u32 %v605_v10, 16  ;;  %v644_v13 = vshll.u32 %v605_v10, 16 }
  0x82   : > { %541 = vst.msk [vmem:[#allocation2 + $0x60] sm:$0xf] %vm515_vm1, %v19407_v2  ;;  %542 = vst.msk [vmem:[#allocation2 + $0x64] sm:$0xf] %vm515_vm1, %v19407_v2  ;;  %v649_v14 = vshrl.u32 %v606_v11, 16  ;;  %v652_v26 = vshll.u32 %v606_v11, 16 }
  0x83   : > { %543 = vst.msk [vmem:[#allocation2 + $0x68] sm:$0x1] %vm518_vm3, %v19407_v2  ;;  %546 = vst.msk [vmem:[#allocation2 + $0x74] sm:$0x1] %vm518_vm3, %v19407_v2  ;;  %vm962_vm9 = vsmask.f32 7938 }
  0x84   : > { %544 = vst.msk [vmem:[#allocation2 + $0x6c] sm:$0xf] %vm515_vm1, %v19407_v2  ;;  %545 = vst.msk [vmem:[#allocation2 + $0x70] sm:$0xf] %vm515_vm1, %v19407_v2  ;;  %v1078_v15 = vld [vmem:[#allocation2] sm:$0xf] }
  0x85   : > { %547 = vst.msk [vmem:[#allocation2 + $0x78] sm:$0xf] %vm515_vm1, %v19407_v2  ;;  %548 = vst.msk [vmem:[#allocation2 + $0x7c] sm:$0xf] %vm515_vm1, %v19407_v2  ;;  %v1079_v16 = vld [vmem:[#allocation2 + $0x4] sm:$0xf] }
  0x86   : > { %549 = vst.msk [vmem:[#allocation2 + $0x80] sm:$0x1] %vm518_vm3, %v19407_v2  ;;  %552 = vst.msk [vmem:[#allocation2 + $0x8c] sm:$0x1] %vm518_vm3, %v19407_v2  ;;  %v15526_v17 = vld [vmem:[#allocation2 + $0x8] sm:$0x1]  ;;  %v12808_v24 = vcombine.low %v1078_v15, %v1079_v16 }
  0x87   : > { %550 = vst.msk [vmem:[#allocation2 + $0x84] sm:$0xf] %vm515_vm1, %v19407_v2  ;;  %551 = vst.msk [vmem:[#allocation2 + $0x88] sm:$0xf] %vm515_vm1, %v19407_v2  ;;  %v1131_v18 = vshrl.u32 %v1078_v15, 16  ;;  %v1134_v19 = vshll.u32 %v1078_v15, 16 }
  0x88   : > { %553 = vst.msk [vmem:[#allocation2 + $0x90] sm:$0xf] %vm515_vm1, %v19407_v2  ;;  %554 = vst.msk [vmem:[#allocation2 + $0x94] sm:$0xf] %vm515_vm1, %v19407_v2  ;;  %v1140_v20 = vshll.u32 %v1079_v16, 16  ;;  %v1144_v21 = vshrl.u32 %v1079_v16, 16  ;;  %14063 = vmatprep.mubr.msk.bf16.mxu1 %vm1564_vm6, %v12808_v24 }
  0x89   : > { %555 = vst.msk [vmem:[#allocation2 + $0x98] sm:$0x1] %vm518_vm3, %v19407_v2  ;;  %558 = vst.msk [vmem:[#allocation2 + $0xa4] sm:$0x1] %vm518_vm3, %v19407_v2  ;;  %v607_v22 = vld [vmem:[%s15508_s19 + $0x8] sm:$0xf] }
  0x8a   : > { %556 = vst.msk [vmem:[#allocation2 + $0x9c] sm:$0xf] %vm515_vm1, %v19407_v2  ;;  %557 = vst.msk [vmem:[#allocation2 + $0xa0] sm:$0xf] %vm515_vm1, %v19407_v2  ;;  %v1150_v23 = vshll.u32 %v15526_v17, 16  ;;  %v643_v25 = vrot.slane %v641_v12, 7 }
  0x8b   : > { %559 = vst.msk [vmem:[#allocation2 + $0xa8] sm:$0xf] %vm515_vm1, %v19407_v2  ;;  %560 = vst.msk [vmem:[#allocation2 + $0xac] sm:$0xf] %vm515_vm1, %v19407_v2  ;;  %v964_v27 = vld [vmem:[#allocation2 + $0xc] sm:$0xf] }
  0x8c   : > { %561 = vst.msk [vmem:[#allocation2 + $0xb0] sm:$0x1] %vm518_vm3, %v19407_v2  ;;  %564 = vst.msk [vmem:[#allocation2 + $0xbc] sm:$0x1] %vm518_vm3, %v19407_v2  ;;  %v1133_v28 = vrot.slane %v1131_v18, 4  ;;  %v1136_v29 = vrot.slane %v1134_v19, 5  ;;  %v646_v36 = vor.u32 %v644_v13, %v643_v25 }
  0x8d   : > { %562 = vst.msk [vmem:[#allocation2 + $0xb4] sm:$0xf] %vm515_vm1, %v19407_v2  ;;  %563 = vst.msk [vmem:[#allocation2 + $0xb8] sm:$0xf] %vm515_vm1, %v19407_v2  ;;  %v1142_v30 = vrot.slane %v1140_v20, 5  ;;  %v1146_v31 = vrot.slane %v1144_v21, 4 }
  0x8e   : > { %565 = vst.msk [vmem:[#allocation2 + $0xc0] sm:$0xf] %vm515_vm1, %v19407_v2  ;;  %566 = vst.msk [vmem:[#allocation2 + $0xc4] sm:$0xf] %vm515_vm1, %v19407_v2  ;;  %v608_v33 = vld [vmem:[%s15508_s19 + $0xc] sm:$0xf]  ;;  %v1137_v39 = vor.u32 %v1136_v29, %v1133_v28 }
  0x8f   : > { %567 = vst.msk [vmem:[#allocation2 + $0xc8] sm:$0x1] %vm518_vm3, %v19407_v2  ;;  %570 = vst.msk [vmem:[#allocation2 + $0xd4] sm:$0x1] %vm518_vm3, %v19407_v2  ;;  %v1152_v34 = vrot.slane %v1150_v23, 5  ;;  %v647_v37 = vrot.slane %v643_v25, 4  ;;  %v1147_v40 = vor.u32 %v1146_v31, %v1142_v30 }
  0x90   : > { %568 = vst.msk [vmem:[#allocation2 + $0xcc] sm:$0xf] %vm515_vm1, %v19407_v2  ;;  %569 = vst.msk [vmem:[#allocation2 + $0xd0] sm:$0xf] %vm515_vm1, %v19407_v2  ;;  %v651_v38 = vrot.slane %v649_v14, 7  ;;  %v658_v43 = vshrl.u32 %v607_v22, 16 }
  0x91   : > { %vm15533_vm10 = vmand %vm515_vm1, %vm962_vm9  ;;  %v970_v42 = vld [vmem:[#allocation2 + $0x14] sm:$0x1]  ;;  %v661_v44 = vshll.u32 %v607_v22, 16  ;;  %v609_v45 = vld [vmem:[%s15508_s19 + $0x10] sm:$0xf]  ;;  %v666_v50 = vshrl.u32 %v608_v33, 16 }
  0x92   : > { %vm15541_vm11 = vmor %vm637_vm7, %vm638_vm8  ;;  %v654_v47 = vor.u32 %v652_v26, %v651_v38  ;;  %v656_v48 = vrot.slane %v651_v38, 4  ;;  %v965_v49 = vsel %vm15533_vm10, %v646_v36, %v964_v27  ;;  %v1138_v51 = vrot.slane %v1137_v39, 4  ;;  %v973_v58 = vld [vmem:[#allocation2 + $0x18] sm:$0xf]  ;;  %v610_v59 = vld [vmem:[%s15508_s19 + $0x14] sm:$0xf] }
  0x93   : > { %vm15547_vm12 = vmand %vm518_vm3, %vm637_vm7  ;;  %v1148_v52 = vrot.slane %v1147_v40, 4  ;;  %966 = vst [vmem:[#allocation2 + $0xc] sm:$0xf] %v965_v49  ;;  %v660_v53 = vrot.slane %v658_v43, 7  ;;  %v669_v54 = vshll.u32 %v608_v33, 16  ;;  %v668_v57 = vrot.slane %v666_v50, 7 }
  0x94   : > { %vm15554_vm13 = vmor %vm1127_vm4, %vm1128_vm5  ;;  %v655_v55 = vsel %vm15541_vm11, %v647_v37, %v654_v47  ;;  %v971_v56 = vsel %vm15547_vm12, %v656_v48, %v970_v42  ;;  %v675_v60 = vshrl.u32 %v609_v45, 16  ;;  %v977_v1 = vld [vmem:[#allocation2 + $0x20] sm:$0x1]  ;;  %v611_v4 = vld [vmem:[%s15508_s19 + $0x18] sm:$0xf]  ;;  %v678_v12 = vshll.u32 %v609_v45, 16 }
  0x95   : > { %v19451_v46 = vsel %vm15554_vm13, 4294967295, %v19450_v46  ;;  %v1143_v61 = vsel %vm15554_vm13, %v1138_v51, %v1142_v30  ;;  %v1153_v62 = vsel %vm15554_vm13, %v1148_v52, %v1152_v34  ;;  %967 = vst.msk [vmem:[#allocation2 + $0x10] sm:$0xf] %vm515_vm1, %v655_v55  ;;  %972 = vst [vmem:[#allocation2 + $0x14] sm:$0x1] %v971_v56  ;;  %v663_v63 = vor.u32 %v661_v44, %v660_v53  ;;  %p19612_p9 = scmp.ne.s32.totalorder %s19428_s18, 0 }
  0x96   : > { %19452 = vst [vmem:[#allocation27_spill] sm:$0xff] %v19451_v46  ;;  %v664_v0 = vrot.slane %v660_v53, 4  ;;  %v12776_v5 = vcombine.low %v1143_v61, %v1153_v62  ;;  %v671_v6 = vor.u32 %v669_v54, %v668_v57  ;;  %v673_v7 = vrot.slane %v668_v57, 4  ;;  %v612_v10 = vld [vmem:[%s15508_s19 + $0x1c] sm:$0xf]  ;;  %s15183_s29 = smov [#allocation17]  }
  0x97   : > { %v677_v8 = vrot.slane %v675_v60, 7  ;;  %v974_v11 = vsel %vm15533_vm10, %v663_v63, %v973_v58  ;;  %v683_v13 = vshrl.u32 %v610_v59, 16  ;;  %v686_v14 = vshll.u32 %v610_v59, 16  ;;  %v15575_v15 = vld [vmem:[%s15508_s19 + $0x20] sm:$0xf]  ;;  %s15097_s17 = sshll.u32 %s15183_s29, 4  ;;  %s15098_s17 = int_to_ptr.vmem [resolvable:$false] %s15097_s17 }
  0x98   : > { %14029 = vmatprep.mubr.msk.bf16.mxu0 %vm1564_vm6, %v12776_v5  ;;  %v2129_v16 = vrot.slane %v15526_v17, 5  ;;  %v672_v18 = vsel %vm15541_vm11, %v664_v0, %v671_v6  ;;  %975 = vst [vmem:[#allocation2 + $0x18] sm:$0xf] %v974_v11  ;;  %v978_v19 = vsel %vm15547_vm12, %v673_v7, %v977_v1  ;;  %v692_v20 = vshrl.u32 %v611_v4, 16  ;;  %v980_v23 = vld [vmem:[#allocation2 + $0x24] sm:$0xf] }
  0x99   : > { %976 = vst.msk [vmem:[#allocation2 + $0x1c] sm:$0xf] %vm515_vm1, %v672_v18  ;;  %979 = vst [vmem:[#allocation2 + $0x20] sm:$0x1] %v978_v19  ;;  %v680_v21 = vor.u32 %v678_v12, %v677_v8  ;;  %v685_v22 = vrot.slane %v683_v13, 7  ;;  %v695_v24 = vshll.u32 %v611_v4, 16 }
  0x9a   : > { %v700_v25 = vshrl.u32 %v612_v10, 16  ;;  %v1080_v26 = vld [vmem:[#allocation2 + $0xc] sm:$0xf]  ;;  %v681_v27 = vrot.slane %v677_v8, 4  ;;  %v694_v28 = vrot.slane %v692_v20, 7  ;;  %v703_v29 = vshll.u32 %v612_v10, 16 }
  0x9b   : > { %v709_v30 = vshrl.u32 %v15575_v15, 16  ;;  %v1155_v31 = vshrl.u32 %v1080_v26, 16  ;;  %v1158_v33 = vshll.u32 %v1080_v26, 16  ;;  %v688_v34 = vor.u32 %v686_v14, %v685_v22  ;;  %v984_v49 = vld [vmem:[#allocation2 + $0x2c] sm:$0x1]  ;;  %s15099_s20 = scalar_lea.vmem %s15098_s17, 32 }
  0x9c   : > { %v712_v36 = vshll.u32 %v15575_v15, 16  ;;  %v15586_v37 = vld [vmem:[#allocation2 + $0x10] sm:$0xf]  ;;  %v15588_v38 = vld [vmem:[#allocation2 + $0x14] sm:$0x1]  ;;  %v690_v39 = vrot.slane %v685_v22, 4  ;;  %v981_v40 = vsel %vm15533_vm10, %v680_v21, %v980_v23  ;;  %v697_v42 = vor.u32 %v695_v24, %v694_v28 }
  0x9d   : > { %v702_v43 = vrot.slane %v700_v25, 7  ;;  %v1157_v44 = vrot.slane %v1155_v31, 4  ;;  %v1160_v45 = vrot.slane %v1158_v33, 5  ;;  %v1164_v47 = vshll.u32 %v15586_v37, 16  ;;  %982 = vst [vmem:[#allocation2 + $0x24] sm:$0xf] %v981_v40 }
  0x9e   : > { %v1168_v48 = vshrl.u32 %v15586_v37, 16  ;;  %v1174_v50 = vshll.u32 %v15588_v38, 16  ;;  %v2133_v51 = vrot.slane %v15586_v37, 5  ;;  %v12809_v52 = vcombine.low %v1080_v26, %v15586_v37  ;;  %v987_v12 = vld [vmem:[#allocation2 + $0x30] sm:$0xf] }
  0x9f   : > { %v698_v53 = vrot.slane %v694_v28, 4  ;;  %v1161_v54 = vor.u32 %v1160_v45, %v1157_v44  ;;  %v1166_v55 = vrot.slane %v1164_v47, 5  ;;  %v1082_v57 = vld [vmem:[#allocation2 + $0x18] sm:$0xf]  ;;  %v689_v58 = vsel %vm15541_vm11, %v681_v27, %v688_v34  ;;  %v614_v40 = vld [vmem:[%s15508_s19 + $0x24] sm:$0xf] }
  0xa0   : > { %v1170_v56 = vrot.slane %v1168_v48, 4  ;;  %v1176_v59 = vrot.slane %v1174_v50, 5  ;;  %14064 = vmatmul.mubr.msk.bf16.vlgmr.msra.gmra.mxu1 %vm1564_vm6, %v12809_v52  ;;  %v1083_v60 = vld [vmem:[#allocation2 + $0x1c] sm:$0xf]  ;;  %v1113_v61 = vld [vmem:[#allocation2 + $0x20] sm:$0x1]  ;;  %v985_v63 = vsel %vm15547_vm12, %v690_v39, %v984_v49  ;;  %v705_v0 = vor.u32 %v703_v29, %v702_v43 }
  0xa1   : > { %v1179_v62 = vshrl.u32 %v1082_v57, 16  ;;  %983 = vst.msk [vmem:[#allocation2 + $0x28] sm:$0xf] %vm515_vm1, %v689_v58  ;;  %v1162_v1 = vrot.slane %v1161_v54, 4  ;;  %v1182_v5 = vshll.u32 %v1082_v57, 16  ;;  %v1188_v6 = vshll.u32 %v1083_v60, 16 }
  0xa2   : > { %v1171_v4 = vor.u32 %v1170_v56, %v1166_v55  ;;  %986 = vst [vmem:[#allocation2 + $0x2c] sm:$0x1] %v985_v63  ;;  %v1192_v8 = vshrl.u32 %v1083_v60, 16  ;;  %v1198_v10 = vshll.u32 %v1113_v61, 16  ;;  %v12810_v11 = vcombine.low %v1082_v57, %v1083_v60  ;;  %v991_v20 = vld [vmem:[#allocation2 + $0x38] sm:$0x1] }
  0xa3   : > { %v1181_v7 = vrot.slane %v1179_v62, 4  ;;  %v1167_v13 = vsel %vm15554_vm13, %v1162_v1, %v1166_v55  ;;  %v1184_v18 = vrot.slane %v1182_v5, 5  ;;  %v1190_v19 = vrot.slane %v1188_v6, 5  ;;  %v994_v58 = vld [vmem:[#allocation2 + $0x3c] sm:$0xf] }
  0xa4   : > { %v1172_v14 = vrot.slane %v1171_v4, 4  ;;  %v1194_v21 = vrot.slane %v1192_v8, 4  ;;  %v1200_v22 = vrot.slane %v1198_v10, 5  ;;  %14067 = vmatprep.mubr.msk.bf16.mxu1 %vm1564_vm6, %v12810_v11  ;;  %v1084_v23 = vld [vmem:[#allocation2 + $0x24] sm:$0xf]  ;;  %v706_v24 = vsel %vm15541_vm11, %v698_v53, %v705_v0 }
  0xa5   : > { %v707_v25 = vrot.slane %v702_v43, 4  ;;  %v1185_v27 = vor.u32 %v1184_v18, %v1181_v7  ;;  %v1203_v28 = vshrl.u32 %v1084_v23, 16  ;;  %v1206_v29 = vshll.u32 %v1084_v23, 16  ;;  %990 = vst.msk [vmem:[#allocation2 + $0x34] sm:$0xf] %vm515_vm1, %v706_v24 }
  0xa6   : > { %v1177_v26 = vsel %vm15554_vm13, %v1172_v14, %v1176_v59  ;;  %v1195_v33 = vor.u32 %v1194_v21, %v1190_v19  ;;  %v988_v34 = vsel %vm15533_vm10, %v697_v42, %v987_v12  ;;  %v711_v48 = vrot.slane %v709_v30, 7  ;;  %v615_v59 = vld [vmem:[%s15508_s19 + $0x28] sm:$0xf]  ;;  %v13037_v41 = vld [vmem:[%s19387_s1 + $0xe] sm:$0x3] }
  0xa7   : > { %v12777_v31 = vcombine.low %v1167_v13, %v1177_v26  ;;  %v992_v39 = vsel %vm15547_vm12, %v707_v25, %v991_v20  ;;  %v1186_v44 = vrot.slane %v1185_v27, 4  ;;  %v1205_v43 = vrot.slane %v1203_v28, 4  ;;  %989 = vst [vmem:[#allocation2 + $0x30] sm:$0xf] %v988_v34  ;;  %v616_v28 = vld [vmem:[%s15508_s19 + $0x2c] sm:$0xf] }
  0xa8   : > { %v1085_v45 = vld [vmem:[#allocation2 + $0x28] sm:$0xf]  ;;  %v1208_v47 = vrot.slane %v1206_v29, 5  ;;  %993 = vst [vmem:[#allocation2 + $0x38] sm:$0x1] %v992_v39  ;;  %v1196_v49 = vrot.slane %v1195_v33, 4  ;;  %v714_v57 = vor.u32 %v712_v36, %v711_v48 }
  0xa9   : > { %14030 = vmatmul.mubr.msk.bf16.vlgmr.msra.gmra.mxu0 %vm1564_vm6, %v12777_v31  ;;  %v1114_v50 = vld [vmem:[#allocation2 + $0x2c] sm:$0x1]  ;;  %v1212_v52 = vshll.u32 %v1085_v45, 16  ;;  %v1216_v42 = vshrl.u32 %v1085_v45, 16  ;;  %v12811_v53 = vcombine.low %v1084_v23, %v1085_v45  ;;  %v1191_v54 = vsel %vm15554_vm13, %v1186_v44, %v1190_v19  ;;  %v998_v39 = vld [vmem:[#allocation2 + $0x44] sm:$0x1] }
  0xaa   : > { %14096 = vmatpush3.bf16.msra.mxu0 %v15522_v9  ;;  %v1209_v55 = vor.u32 %v1208_v47, %v1205_v43  ;;  %v1222_v56 = vshll.u32 %v1114_v50, 16  ;;  %v2136_v30 = vrot.slane %v15588_v38, 5  ;;  %v1201_v60 = vsel %vm15554_vm13, %v1196_v49, %v1200_v22 }
  0xab   : > { %v1214_v61 = vrot.slane %v1212_v52, 5  ;;  %v1218_v62 = vrot.slane %v1216_v42, 4  ;;  %14068 = vmatmul.mubr.msk.bf16.gmra.mxu1 %vm1564_vm6, %v12811_v53  ;;  %v12778_v9 = vcombine.low %v1191_v54, %v1201_v60  ;;  %v717_v1 = vshrl.u32 %v614_v40, 16  ;;  %v1001_v42 = vld [vmem:[#allocation2 + $0x48] sm:$0xf] }
  0xac   : > { %v1210_v63 = vrot.slane %v1209_v55, 4  ;;  %v1224_v0 = vrot.slane %v1222_v56, 5  ;;  %v1087_v5 = vld [vmem:[#allocation2 + $0x34] sm:$0xf]  ;;  %v720_v6 = vshll.u32 %v614_v40, 16  ;;  %v995_v15 = vsel %vm15533_vm10, %v714_v57, %v994_v58 }
  0xad   : > { %v1219_v4 = vor.u32 %v1218_v62, %v1214_v61  ;;  %v726_v36 = vshrl.u32 %v615_v59, 16  ;;  %14033 = vmatprep.mubr.msk.bf16.mxu0 %vm1564_vm6, %v12778_v9  ;;  %v1236_v7 = vshll.u32 %v1087_v5, 16  ;;  %v1240_v8 = vshrl.u32 %v1087_v5, 16  ;;  %996 = vst [vmem:[#allocation2 + $0x3c] sm:$0xf] %v995_v15 }
  0xae   : > { %v715_v10 = vrot.slane %v711_v48, 4  ;;  %v719_v11 = vrot.slane %v717_v1, 7  ;;  %v1215_v12 = vsel %vm15554_vm13, %v1210_v63, %v1214_v61  ;;  %v1086_v14 = vld [vmem:[#allocation2 + $0x30] sm:$0xf]  ;;  %v729_v47 = vshll.u32 %v615_v59, 16 }
  0xaf   : > { %v1220_v13 = vrot.slane %v1219_v4, 4  ;;  %v1115_v18 = vld [vmem:[#allocation2 + $0x38] sm:$0x1]  ;;  %v15634_v19 = vrot.slane %v726_v36, 7  ;;  %v1227_v20 = vshrl.u32 %v1086_v14, 16  ;;  %v1230_v21 = vshll.u32 %v1086_v14, 16 }
  0xb0   : > { %v1238_v22 = vrot.slane %v1236_v7, 5  ;;  %v1242_v23 = vrot.slane %v1240_v8, 4  ;;  %v1246_v25 = vshll.u32 %v1115_v18, 16  ;;  %v12812_v26 = vcombine.low %v1086_v14, %v1087_v5  ;;  %v617_v40 = vld [vmem:[%s15508_s19 + $0x30] sm:$0xf] }
  0xb1   : > { %v1225_v24 = vsel %vm15554_vm13, %v1220_v13, %v1224_v0  ;;  %v722_v27 = vor.u32 %v720_v6, %v719_v11  ;;  %v1229_v31 = vrot.slane %v1227_v20, 4  ;;  %v1232_v33 = vrot.slane %v1230_v21, 5  ;;  %v618_v57 = vld [vmem:[%s15508_s19 + $0x34] sm:$0xf]  ;;  %v1005_v9 = vld [vmem:[#allocation2 + $0x50] sm:$0x1] }
  0xb2   : > { %v12779_v29 = vcombine.low %v1215_v12, %v1225_v24  ;;  %v1243_v34 = vor.u32 %v1242_v23, %v1238_v22  ;;  %v1248_v44 = vrot.slane %v1246_v25, 5  ;;  %14071 = vmatprep.mubr.msk.bf16.mxu1 %vm1564_vm6, %v12812_v26  ;;  %v724_v43 = vrot.slane %v719_v11, 4  ;;  %v1008_v5 = vld [vmem:[#allocation2 + $0x54] sm:$0xf]  ;;  %v619_v8 = vld [vmem:[%s15508_s19 + $0x38] sm:$0xf] }
  0xb3   : > { %v723_v45 = vsel %vm15541_vm11, %v715_v10, %v722_v27  ;;  %v1233_v48 = vor.u32 %v1232_v33, %v1229_v31  ;;  %v732_v50 = vrot.slane %v15634_v19, 4  ;;  %v734_v52 = vshrl.u32 %v616_v28, 16  ;;  %v620_v25 = vld [vmem:[%s15508_s19 + $0x3c] sm:$0xf]  ;;  %v2077_v38 = vld [vmem:[#allocation2 + $0x30] sm:$0xe] }
  0xb4   : > { %14034 = vmatmul.mubr.msk.bf16.gmra.mxu0 %vm1564_vm6, %v12779_v29  ;;  %v1244_v49 = vrot.slane %v1243_v34, 4  ;;  %997 = vst.msk [vmem:[#allocation2 + $0x40] sm:$0xf] %vm515_vm1, %v723_v45  ;;  %v999_v53 = vsel %vm15547_vm12, %v724_v43, %v998_v39  ;;  %v1088_v54 = vld [vmem:[#allocation2 + $0x3c] sm:$0xf]  ;;  %v731_v55 = vor.u32 %v729_v47, %v15634_v19  ;;  %v737_v56 = vshll.u32 %v616_v28, 16 }
  0xb5   : > { %v743_v58 = vshrl.u32 %v617_v40, 16  ;;  %v1234_v59 = vrot.slane %v1233_v48, 4  ;;  %1000 = vst [vmem:[#allocation2 + $0x44] sm:$0x1] %v999_v53  ;;  %v1251_v61 = vshrl.u32 %v1088_v54, 16  ;;  %v1254_v62 = vshll.u32 %v1088_v54, 16 }
  0xb6   : > { %v1249_v60 = vsel %vm15554_vm13, %v1244_v49, %v1248_v44  ;;  %v736_v63 = vrot.slane %v734_v52, 7  ;;  %v1002_v0 = vsel %vm15533_vm10, %v731_v55, %v1001_v42  ;;  %v746_v4 = vshll.u32 %v617_v40, 16  ;;  %v1012_v33 = vld [vmem:[#allocation2 + $0x5c] sm:$0x1] }
  0xb7   : > { %v745_v1 = vrot.slane %v743_v58, 7  ;;  %v1239_v6 = vsel %vm15554_vm13, %v1234_v59, %v1238_v22  ;;  %v1253_v15 = vrot.slane %v1251_v61, 4  ;;  %v1256_v36 = vrot.slane %v1254_v62, 5  ;;  %1003 = vst [vmem:[#allocation2 + $0x48] sm:$0xf] %v1002_v0 }
  0xb8   : > { %v751_v7 = vshrl.u32 %v618_v57, 16  ;;  %v12780_v10 = vcombine.low %v1239_v6, %v1249_v60  ;;  %v739_v11 = vor.u32 %v737_v56, %v736_v63  ;;  %v741_v12 = vrot.slane %v736_v63, 4  ;;  %v15680_v56 = vld [vmem:[%s15508_s19 + $0x40] sm:$0xf]  ;;  %v12889_v0 = vld [vmem:[%s19387_s1 + $0x6] sm:$0x3] }
  0xb9   : > { %v748_v13 = vor.u32 %v746_v4, %v745_v1  ;;  %v1257_v14 = vor.u32 %v1256_v36, %v1253_v15  ;;  %v749_v18 = vrot.slane %v745_v1, 4  ;;  %v754_v20 = vshll.u32 %v618_v57, 16 }
  0xba   : > { %v753_v19 = vrot.slane %v751_v7, 7  ;;  %14037 = vmatprep.mubr.msk.bf16.mxu0 %vm1564_vm6, %v12780_v10  ;;  %v740_v22 = vsel %vm15541_vm11, %v732_v50, %v739_v11  ;;  %v1006_v23 = vsel %vm15547_vm12, %v741_v12, %v1005_v9  ;;  %v760_v26 = vshrl.u32 %v619_v8, 16  ;;  %v1015_v50 = vld [vmem:[#allocation2 + $0x60] sm:$0xf] }
  0xbb   : > { %v15658_v21 = vld [vmem:[#allocation2 + $0x40] sm:$0xf]  ;;  %v1009_v24 = vsel %vm15533_vm10, %v748_v13, %v1008_v5  ;;  %v1258_v27 = vrot.slane %v1257_v14, 4  ;;  %1004 = vst.msk [vmem:[#allocation2 + $0x4c] sm:$0xf] %vm515_vm1, %v740_v22  ;;  %v763_v45 = vshll.u32 %v619_v8, 16  ;;  %v2693_v12 = vand.u32 %v12889_v0, %v15503_v3 }
  0xbc   : > { %v1260_v28 = vshll.u32 %v15658_v21, 16  ;;  %v1264_v29 = vshrl.u32 %v15658_v21, 16  ;;  %v12813_v31 = vcombine.low %v1088_v54, %v15658_v21  ;;  %1007 = vst [vmem:[#allocation2 + $0x50] sm:$0x1] %v1006_v23  ;;  %1010 = vst [vmem:[#allocation2 + $0x54] sm:$0xf] %v1009_v24  ;;  %v756_v39 = vor.u32 %v754_v20, %v753_v19 }
  0xbd   : > { %v15671_v34 = vld [vmem:[#allocation2 + $0x44] sm:$0x1]  ;;  %v758_v40 = vrot.slane %v753_v19, 4  ;;  %v762_v44 = vrot.slane %v760_v26, 7  ;;  %v768_v49 = vshrl.u32 %v620_v25, 16  ;;  %v771_v9 = vshll.u32 %v620_v25, 16  ;;  %14129 = vmatprep.subr.bf16.mxu1 %v2693_v12 }
  0xbe   : > { %v1262_v43 = vrot.slane %v1260_v28, 5  ;;  %v1266_v47 = vrot.slane %v1264_v29, 4  ;;  %v1270_v48 = vshll.u32 %v15671_v34, 16  ;;  %14072 = vmatmul.mubr.msk.bf16.gmra.mxu1 %vm1564_vm6, %v12813_v31  ;;  %v1090_v52 = vld [vmem:[#allocation2 + $0x48] sm:$0xf]  ;;  %v757_v42 = vsel %vm15541_vm11, %v749_v18, %v756_v39 }
  0xbf   : > { %v1013_v53 = vsel %vm15547_vm12, %v758_v40, %v1012_v33  ;;  %v765_v54 = vor.u32 %v763_v45, %v762_v44  ;;  %v766_v55 = vrot.slane %v762_v44, 4  ;;  %v1275_v60 = vshrl.u32 %v1090_v52, 16  ;;  %1011 = vst.msk [vmem:[#allocation2 + $0x58] sm:$0xf] %vm515_vm1, %v757_v42  ;;  %v1019_v5 = vld [vmem:[#allocation2 + $0x68] sm:$0x1]  ;;  %14130 = vmatpush3.bf16.msra.mxu1 %v2693_v12 }
  0xc0   : > { %v1263_v57 = vsel %vm15554_vm13, %v1258_v27, %v1262_v43  ;;  %v1267_v58 = vor.u32 %v1266_v47, %v1262_v43  ;;  %v1272_v59 = vrot.slane %v1270_v48, 5  ;;  %1014 = vst [vmem:[#allocation2 + $0x5c] sm:$0x1] %v1013_v53  ;;  %v1278_v61 = vshll.u32 %v1090_v52, 16  ;;  %v623_v0 = vld [vmem:[%s15508_s19 + $0x48] sm:$0xf] }
  0xc1   : > { %v770_v62 = vrot.slane %v768_v49, 7  ;;  %v1016_v63 = vsel %vm15533_vm10, %v765_v54, %v1015_v50  ;;  %v1277_v4 = vrot.slane %v1275_v60, 4  ;;  %v777_v6 = vshrl.u32 %v15680_v56, 16  ;;  %v622_v50 = vld [vmem:[%s15508_s19 + $0x44] sm:$0xf] }
  0xc2   : > { %v1268_v1 = vrot.slane %v1267_v58, 4  ;;  %1017 = vst [vmem:[#allocation2 + $0x60] sm:$0xf] %v1016_v63  ;;  %v780_v15 = vshll.u32 %v15680_v56, 16  ;;  %v15692_v36 = vld [vmem:[#allocation2 + $0x4c] sm:$0xf] }
  0xc3   : > { %v15694_v7 = vld [vmem:[#allocation2 + $0x50] sm:$0x1]  ;;  %v1280_v8 = vrot.slane %v1278_v61, 5  ;;  %v773_v10 = vor.u32 %v771_v9, %v770_v62  ;;  %v775_v11 = vrot.slane %v770_v62, 4  ;;  %v1284_v14 = vshll.u32 %v15692_v36, 16 }
  0xc4   : > { %v1273_v13 = vsel %vm15554_vm13, %v1268_v1, %v1272_v59  ;;  %v1288_v18 = vshrl.u32 %v15692_v36, 16  ;;  %v1294_v19 = vshll.u32 %v15694_v7, 16  ;;  %v1092_v20 = vld [vmem:[#allocation2 + $0x54] sm:$0xf]  ;;  %v12814_v24 = vcombine.low %v1090_v52, %v15692_v36  ;;  %v1022_v56 = vld [vmem:[#allocation2 + $0x6c] sm:$0xf] }
  0xc5   : > { %v12781_v22 = vcombine.low %v1263_v57, %v1273_v13  ;;  %v1281_v23 = vor.u32 %v1280_v8, %v1277_v4  ;;  %v1299_v25 = vshrl.u32 %v1092_v20, 16  ;;  %v1286_v26 = vrot.slane %v1284_v14, 5 }
  0xc6   : > { %v1290_v27 = vrot.slane %v1288_v18, 4  ;;  %v1296_v28 = vrot.slane %v1294_v19, 5  ;;  %v1302_v29 = vshll.u32 %v1092_v20, 16  ;;  %14075 = vmatprep.mubr.msk.bf16.mxu1 %vm1564_vm6, %v12814_v24  ;;  %v15705_v33 = vld [vmem:[#allocation2 + $0x58] sm:$0xf]  ;;  %v774_v44 = vsel %vm15541_vm11, %v766_v55, %v773_v10 }
  0xc7   : > { %14038 = vmatmul.mubr.msk.bf16.gmra.mxu0 %vm1564_vm6, %v12781_v22  ;;  %v1282_v31 = vrot.slane %v1281_v23, 4  ;;  %v15707_v39 = vld [vmem:[#allocation2 + $0x5c] sm:$0x1]  ;;  %v1301_v40 = vrot.slane %v1299_v25, 4  ;;  %v1020_v45 = vsel %vm15547_vm12, %v775_v11, %v1019_v5  ;;  %v1308_v48 = vshll.u32 %v15705_v33, 16 }
  0xc8   : > { %v1291_v43 = vor.u32 %v1290_v27, %v1286_v26  ;;  %v1304_v47 = vrot.slane %v1302_v29, 5  ;;  %v1312_v49 = vshrl.u32 %v15705_v33, 16  ;;  %1018 = vst.msk [vmem:[#allocation2 + $0x64] sm:$0xf] %vm515_vm1, %v774_v44  ;;  %1021 = vst [vmem:[#allocation2 + $0x68] sm:$0x1] %v1020_v45  ;;  %v12815_v53 = vcombine.low %v1092_v20, %v15705_v33 }
  0xc9   : > { %v1287_v52 = vsel %vm15554_vm13, %v1282_v31, %v1286_v26  ;;  %v1318_v42 = vshll.u32 %v15707_v39, 16  ;;  %v1094_v54 = vld [vmem:[#allocation2 + $0x60] sm:$0xf]  ;;  %v779_v55 = vrot.slane %v777_v6, 7  ;;  %v1310_v59 = vrot.slane %v1308_v48, 5 }
  0xca   : > { %v1292_v57 = vrot.slane %v1291_v43, 4  ;;  %v1305_v58 = vor.u32 %v1304_v47, %v1301_v40  ;;  %v1314_v60 = vrot.slane %v1312_v49, 4  ;;  %14076 = vmatmul.mubr.msk.bf16.gmra.mxu1 %vm1564_vm6, %v12815_v53  ;;  %v1323_v62 = vshrl.u32 %v1094_v54, 16  ;;  %v12922_v6 = vld [vmem:[%s19387_s1 + $0x8] sm:$0x3] }
  0xcb   : > { %v1320_v61 = vrot.slane %v1318_v42, 5  ;;  %v1326_v9 = vshll.u32 %v1094_v54, 16  ;;  %v782_v63 = vor.u32 %v780_v15, %v779_v55  ;;  %v783_v8 = vrot.slane %v779_v55, 4  ;;  %v624_v20 = vld [vmem:[%s15508_s19 + $0x4c] sm:$0xf] }
  0xcc   : > { %v1297_v1 = vsel %vm15554_vm13, %v1292_v57, %v1296_v28  ;;  %v1306_v4 = vrot.slane %v1305_v58, 4  ;;  %v1315_v5 = vor.u32 %v1314_v60, %v1310_v59  ;;  %v1325_v11 = vrot.slane %v1323_v62, 4  ;;  %v1026_v26 = vld [vmem:[#allocation2 + $0x74] sm:$0x1]  ;;  %v625_v45 = vld [vmem:[%s15508_s19 + $0x50] sm:$0xf] }
  0xcd   : > { %v12782_v10 = vcombine.low %v1287_v52, %v1297_v1  ;;  %v1328_v12 = vrot.slane %v1326_v9, 5  ;;  %v785_v13 = vshrl.u32 %v622_v50, 16  ;;  %v788_v15 = vshll.u32 %v622_v50, 16  ;;  %v626_v50 = vld [vmem:[%s15508_s19 + $0x54] sm:$0xf] }
  0xce   : > { %v1311_v14 = vsel %vm15554_vm13, %v1306_v4, %v1310_v59  ;;  %v1316_v18 = vrot.slane %v1315_v5, 4  ;;  %v1023_v19 = vsel %vm15533_vm10, %v782_v63, %v1022_v56  ;;  %v794_v27 = vshrl.u32 %v623_v0, 16  ;;  %v1029_v9 = vld [vmem:[#allocation2 + $0x78] sm:$0xf]  ;;  %v1033_v5 = vld [vmem:[#allocation2 + $0x80] sm:$0x1] }
  0xcf   : > { %14041 = vmatprep.mubr.msk.bf16.mxu0 %vm1564_vm6, %v12782_v10  ;;  %v15734_v22 = vld [vmem:[#allocation2 + $0x64] sm:$0xf]  ;;  %v15736_v23 = vld [vmem:[#allocation2 + $0x68] sm:$0x1]  ;;  %v1329_v24 = vor.u32 %v1328_v12, %v1325_v11  ;;  %v787_v25 = vrot.slane %v785_v13, 7  ;;  %v15739_v28 = vand.u32 %v12922_v6, %v15503_v3  ;;  %v797_v58 = vshll.u32 %v623_v0, 16 }
  0xd0   : > { %1024 = vst [vmem:[#allocation2 + $0x6c] sm:$0xf] %v1023_v19  ;;  %v1321_v29 = vsel %vm15554_vm13, %v1316_v18, %v1320_v61  ;;  %v1332_v31 = vshll.u32 %v15734_v22, 16  ;;  %v1336_v40 = vshrl.u32 %v15734_v22, 16  ;;  %v1342_v44 = vshll.u32 %v15736_v23, 16 }
  0xd1   : > { %v12783_v43 = vcombine.low %v1311_v14, %v1321_v29  ;;  %v1330_v47 = vrot.slane %v1329_v24, 4  ;;  %v12816_v48 = vcombine.low %v1094_v54, %v15734_v22  ;;  %v790_v49 = vor.u32 %v788_v15, %v787_v25  ;;  %14163 = vmatprep.subr.bf16.mxu0 %v15739_v28  ;;  %v627_v13 = vld [vmem:[%s15508_s19 + $0x58] sm:$0xf]  ;;  %v1040_v29 = vld [vmem:[#allocation2 + $0x8c] sm:$0x1] }
  0xd2   : > { %v1334_v52 = vrot.slane %v1332_v31, 5  ;;  %v1338_v42 = vrot.slane %v1336_v40, 4  ;;  %v1344_v53 = vrot.slane %v1342_v44, 5  ;;  %v792_v55 = vrot.slane %v787_v25, 4 }
  0xd3   : > { %14042 = vmatmul.mubr.msk.bf16.gmra.mxu0 %vm1564_vm6, %v12783_v43  ;;  %14079 = vmatprep.mubr.msk.bf16.mxu1 %vm1564_vm6, %v12816_v48  ;;  %v791_v56 = vsel %vm15541_vm11, %v783_v8, %v790_v49  ;;  %v796_v57 = vrot.slane %v794_v27, 7  ;;  %v802_v59 = vshrl.u32 %v624_v20, 16  ;;  %v805_v62 = vshll.u32 %v624_v20, 16  ;;  %v1036_v27 = vld [vmem:[#allocation2 + $0x84] sm:$0xf] }
  0xd4   : > { %v1335_v54 = vsel %vm15554_vm13, %v1330_v47, %v1334_v52  ;;  %v1339_v60 = vor.u32 %v1338_v42, %v1334_v52  ;;  %1025 = vst.msk [vmem:[#allocation2 + $0x70] sm:$0xf] %vm515_vm1, %v791_v56  ;;  %v1027_v61 = vsel %vm15547_vm12, %v792_v55, %v1026_v26  ;;  %v811_v8 = vshrl.u32 %v625_v45, 16  ;;  %v628_v43 = vld [vmem:[%s15508_s19 + $0x5c] sm:$0xf] }
  0xd5   : > { %1028 = vst [vmem:[#allocation2 + $0x74] sm:$0x1] %v1027_v61  ;;  %v799_v63 = vor.u32 %v797_v58, %v796_v57  ;;  %v800_v1 = vrot.slane %v796_v57, 4  ;;  %v804_v4 = vrot.slane %v802_v59, 7  ;;  %v814_v10 = vshll.u32 %v625_v45, 16 }
  0xd6   : > { %v1340_v0 = vrot.slane %v1339_v60, 4  ;;  %v819_v11 = vshrl.u32 %v626_v50, 16  ;;  %v822_v12 = vshll.u32 %v626_v50, 16  ;;  %v813_v25 = vrot.slane %v811_v8, 7  ;;  %v15771_v52 = vld [vmem:[%s15508_s19 + $0x60] sm:$0xf] }
  0xd7   : > { %v1096_v6 = vld [vmem:[#allocation2 + $0x6c] sm:$0xf]  ;;  %v807_v15 = vor.u32 %v805_v62, %v804_v4  ;;  %v809_v19 = vrot.slane %v804_v4, 4  ;;  %v1030_v24 = vsel %vm15533_vm10, %v799_v63, %v1029_v9  ;;  %v828_v56 = vshrl.u32 %v627_v13, 16 }
  0xd8   : > { %v1347_v14 = vshrl.u32 %v1096_v6, 16  ;;  %v1350_v18 = vshll.u32 %v1096_v6, 16  ;;  %v1345_v20 = vsel %vm15554_vm13, %v1340_v0, %v1344_v53  ;;  %v821_v26 = vrot.slane %v819_v11, 7  ;;  %1031 = vst [vmem:[#allocation2 + $0x78] sm:$0xf] %v1030_v24 }
  0xd9   : > { %v12784_v31 = vcombine.low %v1335_v54, %v1345_v20  ;;  %v808_v45 = vsel %vm15541_vm11, %v800_v1, %v807_v15  ;;  %v1034_v47 = vsel %vm15547_vm12, %v809_v19, %v1033_v5  ;;  %v816_v48 = vor.u32 %v814_v10, %v813_v25 }
  0xda   : > { %v1349_v40 = vrot.slane %v1347_v14, 4  ;;  %v1352_v44 = vrot.slane %v1350_v18, 5  ;;  %1032 = vst.msk [vmem:[#allocation2 + $0x7c] sm:$0xf] %vm515_vm1, %v808_v45  ;;  %v817_v49 = vrot.slane %v813_v25, 4  ;;  %v824_v50 = vor.u32 %v822_v12, %v821_v26 }
  0xdb   : > { %14045 = vmatprep.mubr.msk.bf16.mxu0 %vm1564_vm6, %v12784_v31  ;;  %v15774_v42 = vld [vmem:[#allocation2 + $0x70] sm:$0xf]  ;;  %1035 = vst [vmem:[#allocation2 + $0x80] sm:$0x1] %v1034_v47  ;;  %v826_v55 = vrot.slane %v821_v26, 4  ;;  %v831_v57 = vshll.u32 %v627_v13, 16  ;;  %v1037_v63 = vsel %vm15533_vm10, %v816_v48, %v1036_v27 }
  0xdc   : > { %v1353_v53 = vor.u32 %v1352_v44, %v1349_v40  ;;  %v15776_v58 = vld [vmem:[#allocation2 + $0x74] sm:$0x1]  ;;  %v1356_v59 = vshll.u32 %v15774_v42, 16  ;;  %v1360_v54 = vshrl.u32 %v15774_v42, 16  ;;  %v12817_v60 = vcombine.low %v1096_v6, %v15774_v42  ;;  %1038 = vst [vmem:[#allocation2 + $0x84] sm:$0xf] %v1037_v63 }
  0xdd   : > { %v825_v61 = vsel %vm15541_vm11, %v817_v49, %v824_v50  ;;  %v1366_v9 = vshll.u32 %v15776_v58, 16  ;;  %v1041_v1 = vsel %vm15547_vm12, %v826_v55, %v1040_v29  ;;  %v830_v8 = vrot.slane %v828_v56, 7 }
  0xde   : > { %v1354_v62 = vrot.slane %v1353_v53, 4  ;;  %1039 = vst.msk [vmem:[#allocation2 + $0x88] sm:$0xf] %vm515_vm1, %v825_v61  ;;  %v1358_v4 = vrot.slane %v1356_v59, 5  ;;  %v1362_v5 = vrot.slane %v1360_v54, 4  ;;  %14080 = vmatmul.mubr.msk.bf16.gmra.mxu1 %vm1564_vm6, %v12817_v60  ;;  %v836_v0 = vshrl.u32 %v628_v43, 16 }
  0xdf   : > { %1042 = vst [vmem:[#allocation2 + $0x8c] sm:$0x1] %v1041_v1  ;;  %v1368_v6 = vrot.slane %v1366_v9, 5  ;;  %v839_v10 = vshll.u32 %v628_v43, 16  ;;  %v845_v11 = vshrl.u32 %v15771_v52, 16  ;;  %v848_v12 = vshll.u32 %v15771_v52, 16 }
  0xe0   : > { %v1359_v13 = vsel %vm15554_vm13, %v1354_v62, %v1358_v4  ;;  %v1363_v14 = vor.u32 %v1362_v5, %v1358_v4  ;;  %v1098_v18 = vld [vmem:[#allocation2 + $0x78] sm:$0xf]  ;;  %v833_v15 = vor.u32 %v831_v57, %v830_v8  ;;  %v834_v19 = vrot.slane %v830_v8, 4  ;;  %v1043_v59 = vld [vmem:[#allocation2 + $0x90] sm:$0xf] }
  0xe1   : > { %v15794_v20 = vld [vmem:[#allocation2 + $0x7c] sm:$0xf]  ;;  %v1371_v24 = vshrl.u32 %v1098_v18, 16  ;;  %v1374_v25 = vshll.u32 %v1098_v18, 16  ;;  %v838_v26 = vrot.slane %v836_v0, 7  ;;  %v15796_v27 = vrot.slane %v845_v11, 7 }
  0xe2   : > { %v1364_v29 = vrot.slane %v1363_v14, 4  ;;  %v15798_v31 = vld [vmem:[#allocation2 + $0x80] sm:$0x1]  ;;  %v1380_v40 = vshll.u32 %v15794_v20, 16  ;;  %v1384_v44 = vshrl.u32 %v15794_v20, 16  ;;  %v12818_v45 = vcombine.low %v1098_v18, %v15794_v20 }
  0xe3   : > { %v1373_v43 = vrot.slane %v1371_v24, 4  ;;  %v1376_v47 = vrot.slane %v1374_v25, 5  ;;  %v1390_v48 = vshll.u32 %v15798_v31, 16  ;;  %v841_v49 = vor.u32 %v839_v10, %v838_v26  ;;  %v1100_v62 = vld [vmem:[#allocation2 + $0x84] sm:$0xf] }
  0xe4   : > { %v1369_v50 = vsel %vm15554_vm13, %v1364_v29, %v1368_v6  ;;  %v1382_v53 = vrot.slane %v1380_v40, 5  ;;  %v1386_v55 = vrot.slane %v1384_v44, 4  ;;  %14083 = vmatprep.mubr.msk.bf16.mxu1 %vm1564_vm6, %v12818_v45  ;;  %v843_v57 = vrot.slane %v838_v26, 4  ;;  %v1047_v0 = vld [vmem:[#allocation2 + $0x98] sm:$0x1] }
  0xe5   : > { %v15807_v56 = vld [vmem:[#allocation2 + $0x88] sm:$0xf]  ;;  %v12785_v54 = vcombine.low %v1359_v13, %v1369_v50  ;;  %v1377_v60 = vor.u32 %v1376_v47, %v1373_v43  ;;  %v1392_v61 = vrot.slane %v1390_v48, 5  ;;  %v1395_v4 = vshrl.u32 %v1100_v62, 16  ;;  %v630_v14 = vld [vmem:[%s15508_s19 + $0x64] sm:$0xf] }
  0xe6   : > { %v15809_v9 = vld [vmem:[#allocation2 + $0x8c] sm:$0x1]  ;;  %v1404_v63 = vshll.u32 %v15807_v56, 16  ;;  %v1387_v1 = vor.u32 %v1386_v55, %v1382_v53  ;;  %v1398_v5 = vshll.u32 %v1100_v62, 16  ;;  %v1408_v8 = vshrl.u32 %v15807_v56, 16 }
  0xe7   : > { %14046 = vmatmul.mubr.msk.bf16.gmra.mxu0 %vm1564_vm6, %v12785_v54  ;;  %v1378_v6 = vrot.slane %v1377_v60, 4  ;;  %v1414_v11 = vshll.u32 %v15809_v9, 16  ;;  %v12819_v13 = vcombine.low %v1100_v62, %v15807_v56  ;;  %v1397_v24 = vrot.slane %v1395_v4, 4  ;;  %v631_v43 = vld [vmem:[%s15508_s19 + $0x68] sm:$0xf] }
  0xe8   : > { %v1406_v10 = vrot.slane %v1404_v63, 5  ;;  %v1388_v18 = vrot.slane %v1387_v1, 4  ;;  %v1400_v25 = vrot.slane %v1398_v5, 5  ;;  %v1410_v26 = vrot.slane %v1408_v8, 4  ;;  %v1050_v55 = vld [vmem:[#allocation2 + $0x9c] sm:$0xf] }
  0xe9   : > { %v1383_v29 = vsel %vm15554_vm13, %v1378_v6, %v1382_v53  ;;  %v1416_v40 = vrot.slane %v1414_v11, 5  ;;  %14084 = vmatmul.mubr.msk.bf16.gmra.mxu1 %vm1564_vm6, %v12819_v13  ;;  %v842_v44 = vsel %vm15541_vm11, %v834_v19, %v841_v49  ;;  %v1044_v45 = vsel %vm15533_vm10, %v833_v15, %v1043_v59  ;;  %v632_v54 = vld [vmem:[%s15508_s19 + $0x6c] sm:$0xf]  ;;  %v633_v8 = vld [vmem:[%s15508_s19 + $0x70] sm:$0xf] }
  0xea   : > { %v1393_v47 = vsel %vm15554_vm13, %v1388_v18, %v1392_v61  ;;  %v1401_v48 = vor.u32 %v1400_v25, %v1397_v24  ;;  %v1411_v50 = vor.u32 %v1410_v26, %v1406_v10  ;;  %1045 = vst [vmem:[#allocation2 + $0x90] sm:$0xf] %v1044_v45  ;;  %1046 = vst.msk [vmem:[#allocation2 + $0x94] sm:$0xf] %vm515_vm1, %v842_v44  ;;  %v851_v19 = vrot.slane %v15796_v27, 4 }
  0xeb   : > { %v1048_v53 = vsel %vm15547_vm12, %v843_v57, %v1047_v0  ;;  %v12786_v60 = vcombine.low %v1383_v29, %v1393_v47  ;;  %v850_v15 = vor.u32 %v848_v12, %v15796_v27  ;;  %v853_v49 = vshrl.u32 %v630_v14, 16  ;;  %v1054_v27 = vld [vmem:[#allocation2 + $0xa4] sm:$0x1]  ;;  %v1057_v24 = vld [vmem:[#allocation2 + $0xa8] sm:$0xf] }
  0xec   : > { %1049 = vst [vmem:[#allocation2 + $0x98] sm:$0x1] %v1048_v53  ;;  %v1402_v59 = vrot.slane %v1401_v48, 4  ;;  %v1412_v61 = vrot.slane %v1411_v50, 4  ;;  %v856_v62 = vshll.u32 %v630_v14, 16  ;;  %v862_v63 = vshrl.u32 %v631_v43, 16 }
  0xed   : > { %14049 = vmatprep.mubr.msk.bf16.mxu0 %vm1564_vm6, %v12786_v60  ;;  %v855_v1 = vrot.slane %v853_v49, 7  ;;  %v1051_v57 = vsel %vm15533_vm10, %v850_v15, %v1050_v55  ;;  %v865_v4 = vshll.u32 %v631_v43, 16  ;;  %v870_v5 = vshrl.u32 %v632_v54, 16  ;;  %v1061_v29 = vld [vmem:[#allocation2 + $0xb0] sm:$0x1] }
  0xee   : > { %v1407_v52 = vsel %vm15554_vm13, %v1402_v59, %v1406_v10  ;;  %v1417_v12 = vsel %vm15554_vm13, %v1412_v61, %v1416_v40  ;;  %1052 = vst [vmem:[#allocation2 + $0x9c] sm:$0xf] %v1051_v57  ;;  %v864_v0 = vrot.slane %v862_v63, 7  ;;  %v873_v6 = vshll.u32 %v632_v54, 16  ;;  %v634_v44 = vld [vmem:[%s15508_s19 + $0x74] sm:$0xf] }
  0xef   : > { %v12787_v11 = vcombine.low %v1407_v52, %v1417_v12  ;;  %v858_v13 = vor.u32 %v856_v62, %v855_v1  ;;  %v860_v14 = vrot.slane %v855_v1, 4  ;;  %v872_v18 = vrot.slane %v870_v5, 7 }
  0xf0   : > { %v867_v25 = vor.u32 %v865_v4, %v864_v0  ;;  %v868_v26 = vrot.slane %v864_v0, 4  ;;  %v879_v45 = vshrl.u32 %v633_v8, 16  ;;  %v882_v43 = vshll.u32 %v633_v8, 16 }
  0xf1   : > { %14050 = vmatmul.mubr.msk.bf16.gmra.mxu0 %vm1564_vm6, %v12787_v11  ;;  %v1102_v10 = vld [vmem:[#allocation2 + $0x90] sm:$0xf]  ;;  %v15845_v47 = vld [vmem:[#allocation2 + $0x94] sm:$0xf]  ;;  %v859_v40 = vsel %vm15541_vm11, %v851_v19, %v858_v13  ;;  %v1055_v48 = vsel %vm15547_vm12, %v860_v14, %v1054_v27  ;;  %v875_v50 = vor.u32 %v873_v6, %v872_v18  ;;  %v877_v53 = vrot.slane %v872_v18, 4 }
  0xf2   : > { %v1419_v54 = vshrl.u32 %v1102_v10, 16  ;;  %v1422_v60 = vshll.u32 %v1102_v10, 16  ;;  %v1428_v15 = vshll.u32 %v15845_v47, 16  ;;  %v1432_v49 = vshrl.u32 %v15845_v47, 16  ;;  %1053 = vst.msk [vmem:[#allocation2 + $0xa0] sm:$0xf] %vm515_vm1, %v859_v40 }
  0xf3   : > { %v15851_v55 = vld [vmem:[#allocation2 + $0x98] sm:$0x1]  ;;  %1056 = vst [vmem:[#allocation2 + $0xa4] sm:$0x1] %v1055_v48  ;;  %v12820_v19 = vcombine.low %v1102_v10, %v15845_v47  ;;  %v876_v61 = vsel %vm15541_vm11, %v868_v26, %v875_v50  ;;  %v1058_v62 = vsel %vm15533_vm10, %v867_v25, %v1057_v24  ;;  %v1062_v52 = vsel %vm15547_vm12, %v877_v53, %v1061_v29  ;;  %v1064_v14 = vld [vmem:[#allocation2 + $0xb4] sm:$0xf] }
  0xf4   : > { %v1438_v59 = vshll.u32 %v15851_v55, 16  ;;  %v1421_v63 = vrot.slane %v1419_v54, 4  ;;  %v1424_v1 = vrot.slane %v1422_v60, 5  ;;  %v1430_v57 = vrot.slane %v1428_v15, 5  ;;  %1059 = vst [vmem:[#allocation2 + $0xa8] sm:$0xf] %v1058_v62 }
  0xf5   : > { %v1434_v4 = vrot.slane %v1432_v49, 4  ;;  %1060 = vst.msk [vmem:[#allocation2 + $0xac] sm:$0xf] %vm515_vm1, %v876_v61  ;;  %14087 = vmatprep.mubr.msk.bf16.mxu1 %vm1564_vm6, %v12820_v19  ;;  %v1104_v8 = vld [vmem:[#allocation2 + $0x9c] sm:$0xf]  ;;  %v881_v12 = vrot.slane %v879_v45, 7 }
  0xf6   : > { %v1440_v5 = vrot.slane %v1438_v59, 5  ;;  %v887_v27 = vshrl.u32 %v634_v44, 16  ;;  %v1425_v0 = vor.u32 %v1424_v1, %v1421_v63  ;;  %v1443_v11 = vshrl.u32 %v1104_v8, 16  ;;  %1063 = vst [vmem:[#allocation2 + $0xb0] sm:$0x1] %v1062_v52 }
  0xf7   : > { %v1435_v6 = vor.u32 %v1434_v4, %v1430_v57  ;;  %v1446_v13 = vshll.u32 %v1104_v8, 16  ;;  %v884_v18 = vor.u32 %v882_v43, %v881_v12  ;;  %v885_v24 = vrot.slane %v881_v12, 4  ;;  %v1068_v4 = vld [vmem:[#allocation2 + $0xbc] sm:$0x1] }
  0xf8   : > { %v889_v25 = vrot.slane %v887_v27, 7  ;;  %v890_v26 = vshll.u32 %v634_v44, 16  ;;  %v1426_v10 = vrot.slane %v1425_v0, 4  ;;  %v1445_v48 = vrot.slane %v1443_v11, 4 }
  0xf9   : > { %v1436_v40 = vrot.slane %v1435_v6, 4  ;;  %v1448_v50 = vrot.slane %v1446_v13, 5  ;;  %v15866_v54 = vld [vmem:[#allocation2 + $0xa0] sm:$0xf]  ;;  %v1065_v53 = vsel %vm15533_vm10, %v884_v18, %v1064_v14  ;;  %vm2121_vm14 = vcmask 1042432  }
  0xfa   : > { %v15868_v60 = vld [vmem:[#allocation2 + $0xa4] sm:$0x1]  ;;  %v892_v29 = vor.u32 %v890_v26, %v889_v25  ;;  %v894_v45 = vrot.slane %v889_v25, 4  ;;  %v1431_v43 = vsel %vm15554_vm13, %v1426_v10, %v1430_v57  ;;  %v1452_v49 = vshll.u32 %v15866_v54, 16  ;;  %1066 = vst [vmem:[#allocation2 + $0xb4] sm:$0xf] %v1065_v53 }
  0xfb   : > { %v1441_v44 = vsel %vm15554_vm13, %v1436_v40, %v1440_v5  ;;  %v1449_v15 = vor.u32 %v1448_v50, %v1445_v48  ;;  %v1456_v19 = vshrl.u32 %v15866_v54, 16  ;;  %v1462_v61 = vshll.u32 %v15868_v60, 16  ;;  %v1106_v63 = vld [vmem:[#allocation2 + $0xa8] sm:$0xf]  ;;  %v2073_v5 = vld [vmem:[#allocation2] sm:$0xe] }
  0xfc   : > { %v12788_v59 = vcombine.low %v1431_v43, %v1441_v44  ;;  %v12821_v62 = vcombine.low %v1104_v8, %v15866_v54  ;;  %v15880_v1 = vld [vmem:[#allocation2 + $0xac] sm:$0xf]  ;;  %v1454_v57 = vrot.slane %v1452_v49, 5  ;;  %v1467_v12 = vshrl.u32 %v1106_v63, 16 }
  0xfd   : > { %v1450_v52 = vrot.slane %v1449_v15, 4  ;;  %v1470_v27 = vshll.u32 %v1106_v63, 16  ;;  %v1458_v0 = vrot.slane %v1456_v19, 4  ;;  %v1464_v6 = vrot.slane %v1462_v61, 5  ;;  %v15884_v11 = vld [vmem:[#allocation2 + $0xb0] sm:$0x1] }
  0xfe   : > { %14053 = vmatprep.mubr.msk.bf16.mxu0 %vm1564_vm6, %v12788_v59  ;;  %14088 = vmatmul.mubr.msk.bf16.gmra.mxu1 %vm1564_vm6, %v12821_v62  ;;  %v1476_v13 = vshll.u32 %v15880_v1, 16  ;;  %v1480_v8 = vshrl.u32 %v15880_v1, 16  ;;  %v1469_v18 = vrot.slane %v1467_v12, 4  ;;  %v1486_v26 = vshll.u32 %v15884_v11, 16  ;;  %v2074_v49 = vld [vmem:[#allocation2 + $0xc] sm:$0xe] }
  0xff   : > { %v1455_v14 = vsel %vm15554_vm13, %v1450_v52, %v1454_v57  ;;  %v1472_v25 = vrot.slane %v1470_v27, 5  ;;  %v1459_v10 = vor.u32 %v1458_v0, %v1454_v57  ;;  %v12822_v50 = vcombine.low %v1106_v63, %v15880_v1 }
 0x100   : > { %v1478_v40 = vrot.slane %v1476_v13, 5  ;;  %v1482_v48 = vrot.slane %v1480_v8, 4  ;;  %v1488_v43 = vrot.slane %v1486_v26, 5  ;;  %v893_v44 = vsel %vm15541_vm11, %v885_v24, %v892_v29  ;;  %v14917_v29 = vld [vmem:[#allocation2 + $0x4] sm:$0xf] }
 0x101   : > { %v1473_v53 = vor.u32 %v1472_v25, %v1469_v18  ;;  %v1069_v15 = vsel %vm15547_vm12, %v894_v45, %v1068_v4  ;;  %v1460_v59 = vrot.slane %v1459_v10, 4  ;;  %14091 = vmatprep.mubr.msk.bf16.mxu1 %vm1564_vm6, %v12822_v50  ;;  %1067 = vst.msk [vmem:[#allocation2 + $0xb8] sm:$0xf] %vm515_vm1, %v893_v44  ;;  %v1108_v61 = vld [vmem:[#allocation2 + $0xb4] sm:$0xf]  ;;  %vm2122_vm15 = vcmask 1046532  }
 0x102   : > { %v1483_v19 = vor.u32 %v1482_v48, %v1478_v40  ;;  %1070 = vst [vmem:[#allocation2 + $0xbc] sm:$0x1] %v1069_v15  ;;  %v12840_v62 = vrot.slane %v2073_v5, 9  ;;  %v1491_v52 = vshrl.u32 %v1108_v61, 16  ;;  %v1494_v57 = vshll.u32 %v1108_v61, 16  ;;  %vm15899_vm3 = vmor %vm2121_vm14, %vm2122_vm15  ;;  %v14724_v15 = vld [vmem:[#allocation2 + $0xc] sm:$0xff]  }
 0x103   : > { %v1474_v63 = vrot.slane %v1473_v53, 4  ;;  %v19453_v24 = vmov 0  ;;  %v2126_v45 = vrot.slane %v14917_v29, 5  ;;  %v2075_v4 = vld [vmem:[#allocation2 + $0x18] sm:$0xe]  ;;  %v1465_v12 = vsel %vm15554_vm13, %v1460_v59, %v1464_v6 }
 0x104   : > { %v19454_v24 = vsel %vm15899_vm3, 4294967295, %v19453_v24  ;;  %v1484_v27 = vrot.slane %v1483_v19, 4  ;;  %v12841_v0 = vrot.slane %v2074_v49, 9  ;;  %v2135_v13 = vrot.slane %v2133_v51, 4  ;;  %v14918_v49 = vld [vmem:[#allocation2 + $0x1c] sm:$0xf] }
 0x105   : > { %19455 = vst [vmem:[#allocation28_spill] sm:$0xff] %v19454_v24  ;;  %v12789_v5 = vcombine.low %v1455_v14, %v1465_v12  ;;  %v1479_v8 = vsel %vm15554_vm13, %v1474_v63, %v1478_v40  ;;  %v1493_v18 = vrot.slane %v1491_v52, 4  ;;  %v1496_v25 = vrot.slane %v1494_v57, 5  ;;  %v2076_v14 = vld [vmem:[#allocation2 + $0x24] sm:$0xe] }
 0x106   : > { %v1489_v26 = vsel %vm15554_vm13, %v1484_v27, %v1488_v43  ;;  %v15913_v10 = vsel %vm15899_vm3, %v12840_v62, %v2126_v45  ;;  %v2128_v48 = vrot.slane %v2126_v45, 4  ;;  %v15919_v6 = vsel %vm15899_vm3, %v12841_v0, %v2133_v51  ;;  %v12971_v40 = vld [vmem:[%s19387_s1 + $0xa] sm:$0x3]  ;;  %v14919_v19 = vld [vmem:[#allocation2 + $0x20] sm:$0x1] }
 0x107   : > { %14054 = vmatmul.mubr.msk.bf16.gmra.mxu0 %vm1564_vm6, %v12789_v5  ;;  %v12790_v50 = vcombine.low %v1479_v8, %v1489_v26  ;;  %v1497_v53 = vor.u32 %v1496_v25, %v1493_v18  ;;  %v15929_v43 = vsel %vm15899_vm3, %v2135_v13, %v2136_v30  ;;  %v12842_v37 = vrot.slane %v2075_v4, 9  ;;  %v14920_v0 = vld [vmem:[#allocation2 + $0x28] sm:$0xf]  ;;  %v14921_v5 = vld [vmem:[#allocation2 + $0x2c] sm:$0x1] }
 0x108   : > { %v15935_v51 = vsel %vm15899_vm3, %v2128_v48, %v2129_v16  ;;  %v12858_v44 = vcombine.low %v15919_v6, %v15929_v43  ;;  %v2140_v59 = vrot.slane %v14918_v49, 5  ;;  %v2143_v62 = vrot.slane %v14919_v19, 5  ;;  %v15940_v30 = vld [vmem:[#allocation2 + $0xb8] sm:$0xf] }
 0x109   : > { %14057 = vmatprep.mubr.msk.bf16.mxu0 %vm1564_vm6, %v12790_v50  ;;  %v15942_v63 = vld [vmem:[#allocation2 + $0xbc] sm:$0x1]  ;;  %v1498_v17 = vrot.slane %v1497_v53, 4  ;;  %v12843_v52 = vrot.slane %v2076_v14, 9  ;;  %v15945_v16 = vand.u32 %v12971_v40, %v15503_v3  ;;  %v1500_v57 = vshll.u32 %v15940_v30, 16 }
 0x10a   : > { %v1504_v29 = vshrl.u32 %v15940_v30, 16  ;;  %v1510_v45 = vshll.u32 %v15942_v63, 16  ;;  %v12823_v4 = vcombine.low %v1108_v61, %v15940_v30  ;;  %v12857_v12 = vcombine.low %v15913_v10, %v15935_v51  ;;  %v2078_v61 = vld [vmem:[#allocation2 + $0x3c] sm:$0xe]  ;;  %v14922_v50 = vld [vmem:[#allocation2 + $0x34] sm:$0xf] }
 0x10b   : > { %v2142_v27 = vrot.slane %v2140_v59, 4  ;;  %v2147_v13 = vrot.slane %v14920_v0, 5  ;;  %v2150_v8 = vrot.slane %v14921_v5, 5  ;;  %14197 = vmatprep.subr.bf16.mxu1 %v15945_v16  ;;  %v1502_v18 = vrot.slane %v1500_v57, 5  ;;  %v2080_v0 = vld [vmem:[#allocation2 + $0x54] sm:$0xe] }
 0x10c   : > { %v1506_v25 = vrot.slane %v1504_v29, 4  ;;  %14092 = vmatmul.mubr.msk.bf16.gmra.mxu1 %vm1564_vm6, %v12823_v4  ;;  %v15957_v26 = vsel %vm15899_vm3, %v12842_v37, %v2140_v59  ;;  %v12844_v48 = vrot.slane %v2077_v38, 9  ;;  %v1512_v14 = vrot.slane %v1510_v45, 5  ;;  %v14923_v59 = vld [vmem:[#allocation2 + $0x38] sm:$0x1] }
 0x10d   : > { %14131 = vmatprep.mubr.msk.bf16.mxu1 %vm1564_vm6, %v14724_v15  ;;  %v15962_v10 = vsel %vm15899_vm3, %v2142_v27, %v2143_v62  ;;  %v2149_v40 = vrot.slane %v2147_v13, 4  ;;  %v2154_v53 = vrot.slane %v14922_v50, 5  ;;  %v1503_v51 = vsel %vm15554_vm13, %v1498_v17, %v1502_v18  ;;  %v2079_v38 = vld [vmem:[#allocation2 + $0x48] sm:$0xe]  ;;  %v14725_v4 = vld [vmem:[#allocation2 + $0x18] sm:$0xff]  }
 0x10e   : > { %v1507_v49 = vor.u32 %v1506_v25, %v1502_v18  ;;  %v15968_v37 = vsel %vm15899_vm3, %v12843_v52, %v2147_v13  ;;  %v2157_v19 = vrot.slane %v14923_v59, 5  ;;  %v12859_v15 = vcombine.low %v15957_v26, %v15962_v10  ;;  %v14726_v13 = vld [vmem:[#allocation2 + $0x24] sm:$0xff]   ;;  %v2082_v59 = vld [vmem:[#allocation2 + $0x6c] sm:$0xe] }
 0x10f   : > { %v15974_v62 = vsel %vm15899_vm3, %v2149_v40, %v2150_v8  ;;  %v2156_v57 = vrot.slane %v2154_v53, 4  ;;  %v12845_v29 = vrot.slane %v2078_v61, 9  ;;  %v15978_v17 = vsel %vm15899_vm3, %v12844_v48, %v2154_v53  ;;  %v2081_v40 = vld [vmem:[#allocation2 + $0x60] sm:$0xe] }
 0x110   : > { %v1508_v45 = vrot.slane %v1507_v49, 4  ;;  %v2161_v52 = vrot.slane %v15658_v21, 5  ;;  %v2164_v27 = vrot.slane %v15671_v34, 5  ;;  %v12846_v8 = vrot.slane %v2079_v38, 9 }
 0x111   : > { %v15984_v5 = vsel %vm15899_vm3, %v2156_v57, %v2157_v19  ;;  %v2168_v18 = vrot.slane %v15692_v36, 5  ;;  %v2171_v25 = vrot.slane %v15694_v7, 5  ;;  %v12860_v48 = vcombine.low %v15968_v37, %v15974_v62 }
 0x112   : > { %v1513_v61 = vsel %vm15554_vm13, %v1508_v45, %v1512_v14  ;;  %v15994_v21 = vsel %vm15899_vm3, %v12845_v29, %v2161_v52  ;;  %v2163_v34 = vrot.slane %v2161_v52, 4  ;;  %v12861_v53 = vcombine.low %v15978_v17, %v15984_v5 }
 0x113   : > { %v12791_v50 = vcombine.low %v1503_v51, %v1513_v61  ;;  %v2170_v49 = vrot.slane %v2168_v18, 4  ;;  %v12847_v36 = vrot.slane %v2080_v0, 9  ;;  %v16005_v14 = vsel %vm15899_vm3, %v12846_v8, %v2168_v18  ;;  %v2084_v18 = vld [vmem:[#allocation2 + $0x84] sm:$0xe] }
 0x114   : > { %14132 = vmatmul.mubr.msk.bf16.vlgmr.msra.gmra.mxu1 %vm1564_vm6, %v14725_v4  ;;  %v16001_v7 = vsel %vm15899_vm3, %v2163_v34, %v2164_v27  ;;  %v2175_v19 = vrot.slane %v15705_v33, 5  ;;  %v2178_v51 = vrot.slane %v15707_v39, 5  ;;  %v12848_v29 = vrot.slane %v2081_v40, 9  ;;  %v2083_v4 = vld [vmem:[#allocation2 + $0x78] sm:$0xe]  ;;  %v14728_v40 = vld [vmem:[#allocation2 + $0x3c] sm:$0xff]  }
 0x115   : > { %14058 = vmatmul.mubr.msk.bf16.gmra.mxu0 %vm1564_vm6, %v12791_v50  ;;  %14135 = vmatprep.mubr.msk.bf16.mxu1 %vm1564_vm6, %v14726_v13  ;;  %v12862_v38 = vcombine.low %v15994_v21, %v16001_v7  ;;  %v16015_v57 = vsel %vm15899_vm3, %v2170_v49, %v2171_v25  ;;  %v2182_v45 = vrot.slane %v15734_v22, 5  ;;  %v2185_v52 = vrot.slane %v15736_v23, 5  ;;  %v2894_v7 = vld [vmem:[#allocation2 + $0x24] sm:$0xf] }
 0x116   : > { %14097 = vmatprep.mubr.msk.bf16.mxu0 %vm1564_vm6, %v12857_v12  ;;  %v16021_v33 = vsel %vm15899_vm3, %v12847_v36, %v2175_v19  ;;  %v2177_v39 = vrot.slane %v2175_v19, 4  ;;  %v12849_v27 = vrot.slane %v2082_v59, 9  ;;  %14198 = vmatpush3.bf16.msra.mxu1 %v15945_v16  ;;  %v12863_v0 = vcombine.low %v16005_v14, %v16015_v57  ;;  %v14727_v12 = vld [vmem:[#allocation2 + $0x30] sm:$0xff]   ;;  %v2086_v19 = vld [vmem:[#allocation2 + $0x9c] sm:$0xe] }
 0x117   : > { %v2184_v13 = vrot.slane %v2182_v45, 4  ;;  %v2189_v8 = vrot.slane %v15774_v42, 5  ;;  %v2192_v22 = vrot.slane %v15776_v58, 5  ;;  %v12850_v61 = vrot.slane %v2083_v4, 9  ;;  %v2085_v16 = vld [vmem:[#allocation2 + $0x90] sm:$0xe] }
 0x118   : > { %v16031_v25 = vsel %vm15899_vm3, %v2177_v39, %v2178_v51  ;;  %v2196_v23 = vrot.slane %v15794_v20, 5  ;;  %v2199_v34 = vrot.slane %v15798_v31, 5  ;;  %v16039_v42 = vsel %vm15899_vm3, %v12848_v29, %v2182_v45  ;;  %v16200_v14 = vld [vmem:[#allocation2 + $0x2c] sm:$0x1]  ;;  %v14733_v57 = vld [vmem:[#allocation2 + $0x78] sm:$0xff]  }
 0x119   : > { %v12864_v50 = vcombine.low %v16021_v33, %v16031_v25  ;;  %v16043_v58 = vsel %vm15899_vm3, %v12849_v27, %v2189_v8  ;;  %v2191_v49 = vrot.slane %v2189_v8, 4  ;;  %v16047_v36 = vsel %vm15899_vm3, %v2184_v13, %v2185_v52  ;;  %v2087_v8 = vld [vmem:[#allocation2 + $0xa8] sm:$0xe] }
 0x11a   : > { %v16051_v20 = vsel %vm15899_vm3, %v12850_v61, %v2196_v23  ;;  %v2198_v31 = vrot.slane %v2196_v23, 4  ;;  %v12851_v59 = vrot.slane %v2084_v18, 9  ;;  %v2203_v29 = vrot.slane %v15807_v56, 5  ;;  %v2088_v18 = vld [vmem:[#allocation2 + $0xb4] sm:$0xe]  ;;  %v14729_v61 = vld [vmem:[#allocation2 + $0x48] sm:$0xff]  }
 0x11b   : > { %v16055_v51 = vsel %vm15899_vm3, %v2191_v49, %v2192_v22  ;;  %v2206_v45 = vrot.slane %v15809_v9, 5  ;;  %v12852_v4 = vrot.slane %v2085_v16, 9  ;;  %v2210_v27 = vrot.slane %v15845_v47, 5  ;;  %v636_v16 = vld [vmem:[%s15508_s19 + $0x7c] sm:$0xf] }
 0x11c   : > { %14136 = vmatmul.mubr.msk.bf16.gmra.mxu1 %vm1564_vm6, %v14727_v12  ;;  %v12866_v39 = vcombine.low %v16043_v58, %v16055_v51  ;;  %v16064_v52 = vsel %vm15899_vm3, %v2198_v31, %v2199_v34  ;;  %v2213_v13 = vrot.slane %v15851_v55, 5  ;;  %v16077_v9 = vsel %vm15899_vm3, %v12851_v59, %v2203_v29  ;;  %v2888_v59 = vld [vmem:[#allocation2 + $0xc] sm:$0xf] }
 0x11d   : > { %14098 = vmatmul.mubr.msk.bf16.vlgmr.msra.gmra.mxu0 %vm1564_vm6, %v12858_v44  ;;  %14139 = vmatprep.mubr.msk.bf16.mxu1 %vm1564_vm6, %v14728_v40  ;;  %v12867_v56 = vcombine.low %v16051_v20, %v16064_v52  ;;  %v2205_v22 = vrot.slane %v2203_v29, 4  ;;  %v12853_v47 = vrot.slane %v2086_v19, 9  ;;  %v16086_v55 = vsel %vm15899_vm3, %v12852_v4, %v2210_v27  ;;  %v14730_v40 = vld [vmem:[#allocation2 + $0x54] sm:$0xff]   ;;  %v16289_v20 = vld [vmem:[#allocation2 + $0x4c] sm:$0xf] }
 0x11e   : > { %14164 = vmatpush3.bf16.msra.mxu0 %v15739_v28  ;;  %14101 = vmatprep.mubr.msk.bf16.mxu0 %vm1564_vm6, %v12859_v15  ;;  %v2212_v6 = vrot.slane %v2210_v27, 4  ;;  %v2217_v43 = vrot.slane %v15866_v54, 5  ;;  %v2220_v44 = vrot.slane %v15868_v60, 5  ;;  %v12854_v28 = vrot.slane %v2087_v8, 9  ;;  %v635_v15 = vld [vmem:[%s15508_s19 + $0x78] sm:$0xf] }
 0x11f   : > { %v16092_v12 = vsel %vm15899_vm3, %v2205_v22, %v2206_v45  ;;  %v2224_v26 = vrot.slane %v15880_v1, 5  ;;  %v2227_v10 = vrot.slane %v15884_v11, 5  ;;  %v12855_v31 = vrot.slane %v2088_v18, 9  ;;  %v14737_v52 = vld [vmem:[#allocation2 + $0xa8] sm:$0xff]   ;;  %s507_s19 = sand.u32 1, %s15161_s26  }
 0x120   : > { %v12868_v23 = vcombine.low %v16077_v9, %v16092_v12  ;;  %v16101_v54 = vsel %vm15899_vm3, %v2212_v6, %v2213_v13  ;;  %v16105_v60 = vsel %vm15899_vm3, %v12853_v47, %v2217_v43  ;;  %v2219_v34 = vrot.slane %v2217_v43, 4  ;;  %v1071_v47 = vld [vmem:[#allocation2 + $0xc0] sm:$0xf]  ;;  %v16126_v6 = vld [vmem:[#allocation2 + $0x10] sm:$0xf]  ;;  %s508_s22 = scalar_lea.vmem [#allocation17], %s507_s19 }
 0x121   : > { %v12869_v1 = vcombine.low %v16086_v55, %v16101_v54  ;;  %v16112_v11 = vsel %vm15899_vm3, %v12854_v28, %v2224_v26  ;;  %v2226_v49 = vrot.slane %v2224_v26, 4  ;;  %v2231_v29 = vrot.slane %v15940_v30, 5  ;;  %v16142_v26 = vld [vmem:[#allocation2 + $0x14] sm:$0x1]  ;;  %s12642_s24 = sshll.u32 %s508_s22, 4  ;;  %s12630_s14 = scalar_lea.sflag [#allocation8], %s507_s19  ;;  %s12643_s24 = int_to_ptr.vmem [resolvable:$true] %s12642_s24 }
 0x122   : > { %v16116_v19 = vsel %vm15899_vm3, %v2219_v34, %v2220_v44  ;;  %v2234_v45 = vrot.slane %v15942_v63, 5  ;;  %v896_v4 = vshrl.u32 %v635_v15, 16  ;;  %v899_v8 = vshll.u32 %v635_v15, 16  ;;  %v13004_v34 = vld [vmem:[%s19387_s1 + $0xc] sm:$0x3]  ;;  %s15093_s16 = scalar_lea.vmem %s12643_s24, 16  ;;  %p15100_p6 = scmp.lt.s32.totalorder %s12643_s24, %s15098_s17 }
 0x123   : > { %v12870_v27 = vcombine.low %v16105_v60, %v16116_v19  ;;  %v16124_v13 = vsel %vm15899_vm3, %v2226_v49, %v2227_v10  ;;  %v904_v22 = vshrl.u32 %v636_v16, 16  ;;  %v16133_v63 = vsel %vm15899_vm3, %v12855_v31, %v2231_v29  ;;  %v16161_v31 = vld [vmem:[#allocation2 + $0x1c] sm:$0xf]  ;;  %p15094_p2 = scmp.ne.s32.totalorder %s12643_s24, %s15093_s16  ;;  %p15101_p10 = scmp.lt.s32.totalorder %s15099_s20, %s15093_s16 }
 0x124   : > { %14140 = vmatmul.mubr.msk.bf16.gmra.mxu1 %vm1564_vm6, %v14729_v61  ;;  %v2233_v43 = vrot.slane %v2231_v29, 4  ;;  %v898_v44 = vrot.slane %v896_v4, 7  ;;  %v907_v28 = vshll.u32 %v636_v16, 16  ;;  %v2937_v10 = vshrl.u32 %v2888_v59, 16  ;;  %v2891_v16 = vld [vmem:[#allocation2 + $0x18] sm:$0xf] }
 0x125   : > { %14102 = vmatmul.mubr.msk.bf16.gmra.mxu0 %vm1564_vm6, %v12860_v48  ;;  %14143 = vmatprep.mubr.msk.bf16.mxu1 %vm1564_vm6, %v14730_v40  ;;  %v16140_v18 = vrot.slane %v904_v22, 7  ;;  %v2940_v15 = vshll.u32 %v2888_v59, 16  ;;  %v2946_v48 = vshll.u32 %v16126_v6, 16  ;;  %v14731_v40 = vld [vmem:[#allocation2 + $0x60] sm:$0xff]   ;;  %v12865_v49 = vcombine.low %v16039_v42, %v16047_v36  ;;  %v14732_v29 = vld [vmem:[#allocation2 + $0x6c] sm:$0xff]   ;;  %p15095_p3 = pnand %p15094_p2, %p19612_p9  ;;  %p15102_p13 = por %p15101_p10, %p15100_p6 }
 0x126   : > { %14105 = vmatprep.mubr.msk.bf16.mxu0 %vm1564_vm6, %v12861_v53  ;;  %v16150_v61 = vsel %vm15899_vm3, %v2233_v43, %v2234_v45  ;;  %v901_v37 = vor.u32 %v899_v8, %v898_v44  ;;  %v902_v62 = vrot.slane %v898_v44, 4  ;;  %v2939_v53 = vrot.slane %v2937_v10, 4  ;;  %v16163_v59 = vld [vmem:[#allocation2 + $0x20] sm:$0x1]  ;;  %v3614_v43 = vld [vmem:[#allocation2 + $0xc] sm:$0xe] }
 0x127   : > { %v909_v5 = vor.u32 %v907_v28, %v16140_v18  ;;  %v2942_v4 = vrot.slane %v2940_v15, 5  ;;  %v2948_v8 = vrot.slane %v2946_v48, 5  ;;  %v2950_v22 = vshrl.u32 %v16126_v6, 16  ;;  %v14736_v42 = vld [vmem:[#allocation2 + $0x9c] sm:$0xff]   ;;  %p15096_p5 = pneg %p15095_p3 }
 0x128   : > { %v1072_v45 = vsel %vm15533_vm10, %v901_v37, %v1071_v47  ;;  %v2956_v28 = vshll.u32 %v16142_v26, 16  ;;  %v16172_v10 = vand.u32 %v13004_v34, %v15503_v3  ;;  %v2961_v2 = vshrl.u32 %v2891_v16, 16 }
 0x129   : > { %v910_v44 = vsel %vm15541_vm11, %v902_v62, %v909_v5  ;;  %1073 = vst [vmem:[#allocation2 + $0xc0] sm:$0xf] %v1072_v45  ;;  %v2943_v17 = vor.u32 %v2942_v4, %v2939_v53  ;;  %v2952_v32 = vrot.slane %v2950_v22, 4  ;;  %v2964_v47 = vshll.u32 %v2891_v16, 16  ;;  %v3615_v22 = vld [vmem:[#allocation2 + $0x18] sm:$0xe]  ;;  %p15103_p4 = pnand %p15102_p13, %p15096_p5 }
 0x12a   : > { %1074 = vst.msk [vmem:[#allocation2 + $0xc4] sm:$0xf] %vm515_vm1, %v910_v44  ;;  %v2970_v15 = vshll.u32 %v16161_v31, 16  ;;  %v2958_v37 = vrot.slane %v2956_v28, 5  ;;  %14231 = vmatprep.subr.bf16.mxu0 %v16172_v10  ;;  %v2963_v48 = vrot.slane %v2961_v2, 4  ;;  %v2974_v35 = vshrl.u32 %v16161_v31, 16 }
 0x12b   : > { %v2980_v62 = vshll.u32 %v16163_v59, 16  ;;  %v2944_v34 = vrot.slane %v2943_v17, 4  ;;  %v2953_v5 = vor.u32 %v2952_v32, %v2948_v8  ;;  %v2966_v45 = vrot.slane %v2964_v47, 5  ;;  %v16198_v28 = vld [vmem:[#allocation2 + $0x28] sm:$0xf] }
 0x12c   : > { %14144 = vmatmul.mubr.msk.bf16.gmra.mxu1 %vm1564_vm6, %v14731_v40  ;;  %v2972_v30 = vrot.slane %v2970_v15, 5  ;;  %v2976_v2 = vrot.slane %v2974_v35, 4  ;;  %v12955_v53 = vrot.slane %v3614_v43, 9  ;;  %v3680_v4 = vrot.slane %v16126_v6, 5  ;;  %v2897_v15 = vld [vmem:[#allocation2 + $0x30] sm:$0xf] }
 0x12d   : > { %14106 = vmatmul.mubr.msk.bf16.gmra.mxu0 %vm1564_vm6, %v12862_v38  ;;  %14147 = vmatprep.mubr.msk.bf16.mxu1 %vm1564_vm6, %v14732_v29  ;;  %v2954_v40 = vrot.slane %v2953_v5, 4  ;;  %v2967_v17 = vor.u32 %v2966_v45, %v2963_v48  ;;  %v2982_v44 = vrot.slane %v2980_v62, 5  ;;  %v3683_v21 = vrot.slane %v16142_v26, 5 }
 0x12e   : > { %14109 = vmatprep.mubr.msk.bf16.mxu0 %vm1564_vm6, %v12863_v0  ;;  %v2949_v38 = vsel %vm15554_vm13, %v2944_v34, %v2948_v8  ;;  %v2977_v29 = vor.u32 %v2976_v2, %v2972_v30  ;;  %v16196_v43 = vsel %vm15899_vm3, %v12955_v53, %v3680_v4  ;;  %v3682_v6 = vrot.slane %v3680_v4, 4  ;;  %v14734_v8 = vld [vmem:[#allocation2 + $0x84] sm:$0xff]   ;;  %v16218_v53 = vld [vmem:[#allocation2 + $0x38] sm:$0x1] }
 0x12f   : > { %v2959_v0 = vsel %vm15554_vm13, %v2954_v40, %v2958_v37  ;;  %v2968_v32 = vrot.slane %v2967_v17, 4  ;;  %v12956_v26 = vrot.slane %v3615_v22, 9  ;;  %v3687_v47 = vrot.slane %v16161_v31, 5  ;;  %v16216_v31 = vld [vmem:[#allocation2 + $0x34] sm:$0xf] }
 0x130   : > { %v2978_v48 = vrot.slane %v2977_v29, 4  ;;  %v16207_v35 = vsel %vm15899_vm3, %v3682_v6, %v3683_v21  ;;  %v3690_v62 = vrot.slane %v16163_v59, 5  ;;  %v2985_v34 = vshrl.u32 %v2894_v7, 16  ;;  %v3616_v17 = vld [vmem:[#allocation2 + $0x24] sm:$0xe] }
 0x131   : > { %v16210_v5 = vcombine.low %v2949_v38, %v2959_v0  ;;  %v2973_v45 = vsel %vm15554_vm13, %v2968_v32, %v2972_v30  ;;  %v12972_v37 = vcombine.low %v16196_v43, %v16207_v35  ;;  %v3689_v2 = vrot.slane %v3687_v47, 4  ;;  %v14739_v55 = vld [vmem:[#allocation2 + $0xc0] sm:$0xff]  }
 0x132   : > { %v2983_v4 = vsel %vm15554_vm13, %v2978_v48, %v2982_v44  ;;  %v2987_v22 = vrot.slane %v2985_v34, 4  ;;  %v2988_v40 = vshll.u32 %v2894_v7, 16  ;;  %v2994_v59 = vshll.u32 %v16198_v28, 16  ;;  %v3617_v48 = vld [vmem:[#allocation2 + $0x30] sm:$0xe] }
 0x133   : > { %v16224_v21 = vcombine.low %v2973_v45, %v2983_v4  ;;  %v16228_v30 = vsel %vm15899_vm3, %v12956_v26, %v3687_v47  ;;  %v2998_v38 = vshrl.u32 %v16198_v28, 16  ;;  %v3004_v29 = vshll.u32 %v16200_v14, 16 }
 0x134   : > { %14148 = vmatmul.mubr.msk.bf16.gmra.mxu1 %vm1564_vm6, %v14733_v57  ;;  %v16239_v44 = vsel %vm15899_vm3, %v3689_v2, %v3690_v62  ;;  %v2990_v7 = vrot.slane %v2988_v40, 5  ;;  %v2996_v6 = vrot.slane %v2994_v59, 5  ;;  %v3009_v57 = vshrl.u32 %v2897_v15, 16  ;;  %v14735_v62 = vld [vmem:[#allocation2 + $0x90] sm:$0xff]  }
 0x135   : > { %14110 = vmatmul.mubr.msk.bf16.gmra.mxu0 %vm1564_vm6, %v12864_v50  ;;  %14151 = vmatprep.mubr.msk.bf16.mxu1 %vm1564_vm6, %v14734_v8  ;;  %v3000_v0 = vrot.slane %v2998_v38, 4  ;;  %v3006_v32 = vrot.slane %v3004_v29, 5  ;;  %v3012_v26 = vshll.u32 %v2897_v15, 16  ;;  %v3018_v33 = vshll.u32 %v16216_v31, 16 }
 0x136   : > { %14113 = vmatprep.mubr.msk.bf16.mxu0 %vm1564_vm6, %v12865_v49  ;;  %v2991_v25 = vor.u32 %v2990_v7, %v2987_v22  ;;  %v3011_v50 = vrot.slane %v3009_v57, 4  ;;  %v3022_v47 = vshrl.u32 %v16216_v31, 16  ;;  %v3028_v8 = vshll.u32 %v16218_v53, 16  ;;  %v2900_v7 = vld [vmem:[#allocation2 + $0x3c] sm:$0xf] }
 0x137   : > { %v3001_v34 = vor.u32 %v3000_v0, %v2996_v6  ;;  %v3014_v45 = vrot.slane %v3012_v26, 5  ;;  %v3020_v2 = vrot.slane %v3018_v33, 5  ;;  %v12957_v4 = vrot.slane %v3616_v17, 9  ;;  %v16256_v26 = vld [vmem:[#allocation2 + $0x40] sm:$0xf] }
 0x138   : > { %v2992_v36 = vrot.slane %v2991_v25, 4  ;;  %v3024_v49 = vrot.slane %v3022_v47, 4  ;;  %v3030_v40 = vrot.slane %v3028_v8, 5  ;;  %v3694_v15 = vrot.slane %v16198_v28, 5  ;;  %v16258_v33 = vld [vmem:[#allocation2 + $0x44] sm:$0x1] }
 0x139   : > { %v3002_v59 = vrot.slane %v3001_v34, 4  ;;  %v3015_v38 = vor.u32 %v3014_v45, %v3011_v50  ;;  %v3697_v22 = vrot.slane %v16200_v14, 5  ;;  %v12958_v29 = vrot.slane %v3617_v48, 9 }
 0x13a   : > { %v2997_v57 = vsel %vm15554_vm13, %v2992_v36, %v2996_v6  ;;  %v3025_v16 = vor.u32 %v3024_v49, %v3020_v2  ;;  %v16254_v0 = vsel %vm15899_vm3, %v12957_v4, %v3694_v15  ;;  %v3696_v17 = vrot.slane %v3694_v15, 4  ;;  %v14738_v36 = vld [vmem:[#allocation2 + $0xb4] sm:$0xff]  }
 0x13b   : > { %v3007_v28 = vsel %vm15554_vm13, %v3002_v59, %v3006_v32  ;;  %v3016_v14 = vrot.slane %v3015_v38, 4  ;;  %v3701_v25 = vrot.slane %v16216_v31, 5  ;;  %v3704_v6 = vrot.slane %v16218_v53, 5  ;;  %v3618_v38 = vld [vmem:[#allocation2 + $0x3c] sm:$0xe] }
 0x13c   : > { %14152 = vmatmul.mubr.msk.bf16.gmra.mxu1 %vm1564_vm6, %v14735_v62  ;;  %v12973_v50 = vcombine.low %v16228_v30, %v16239_v44  ;;  %v3026_v47 = vrot.slane %v3025_v16, 4  ;;  %v16274_v8 = vsel %vm15899_vm3, %v3696_v17, %v3697_v22  ;;  %v3033_v32 = vshrl.u32 %v2900_v7, 16  ;;  %v2903_v16 = vld [vmem:[#allocation2 + $0x48] sm:$0xf] }
 0x13d   : > { %14114 = vmatmul.mubr.msk.bf16.gmra.mxu0 %vm1564_vm6, %v12866_v39  ;;  %14155 = vmatprep.mubr.msk.bf16.mxu1 %vm1564_vm6, %v14736_v42  ;;  %v16280_v31 = vcombine.low %v2997_v57, %v3007_v28  ;;  %v3021_v58 = vsel %vm15554_vm13, %v3016_v14, %v3020_v2  ;;  %v12974_v51 = vcombine.low %v16254_v0, %v16274_v8  ;;  %v3703_v39 = vrot.slane %v3701_v25, 4  ;;  %v16299_v42 = vld [vmem:[#allocation2 + $0x50] sm:$0x1]  ;;  %v2915_v8 = vld [vmem:[#allocation2 + $0x78] sm:$0xf] }
 0x13e   : > { %14117 = vmatprep.mubr.msk.bf16.mxu0 %vm1564_vm6, %v12867_v56  ;;  %v3031_v53 = vsel %vm15554_vm13, %v3026_v47, %v3030_v40  ;;  %v3035_v48 = vrot.slane %v3033_v32, 4  ;;  %v3036_v62 = vshll.u32 %v2900_v7, 16  ;;  %v3042_v34 = vshll.u32 %v16256_v26, 16  ;;  %v3619_v47 = vld [vmem:[#allocation2 + $0x48] sm:$0xe] }
 0x13f   : > { %v16291_v56 = vcombine.low %v3021_v58, %v3031_v53  ;;  %v16295_v45 = vsel %vm15899_vm3, %v12958_v29, %v3701_v25  ;;  %v3046_v2 = vshrl.u32 %v16256_v26, 16  ;;  %v3052_v4 = vshll.u32 %v16258_v33, 16  ;;  %v2906_v53 = vld [vmem:[#allocation2 + $0x54] sm:$0xf] }
 0x140   : > { %v16303_v49 = vsel %vm15899_vm3, %v3703_v39, %v3704_v6  ;;  %v3038_v40 = vrot.slane %v3036_v62, 5  ;;  %v3044_v15 = vrot.slane %v3042_v34, 5  ;;  %v3057_v59 = vshrl.u32 %v2903_v16, 16 }
 0x141   : > { %v3048_v22 = vrot.slane %v3046_v2, 4  ;;  %v3054_v7 = vrot.slane %v3052_v4, 5  ;;  %v3060_v57 = vshll.u32 %v2903_v16, 16  ;;  %v3066_v29 = vshll.u32 %v16289_v20, 16 }
 0x142   : > { %v3039_v17 = vor.u32 %v3038_v40, %v3035_v48  ;;  %v3059_v28 = vrot.slane %v3057_v59, 4  ;;  %v3070_v14 = vshrl.u32 %v16289_v20, 16  ;;  %v3076_v25 = vshll.u32 %v16299_v42, 16  ;;  %v16328_v59 = vld [vmem:[#allocation2 + $0x5c] sm:$0x1] }
 0x143   : > { %v3049_v6 = vor.u32 %v3048_v22, %v3044_v15  ;;  %v3062_v32 = vrot.slane %v3060_v57, 5  ;;  %v3068_v58 = vrot.slane %v3066_v29, 5  ;;  %v12959_v39 = vrot.slane %v3618_v38, 9  ;;  %v2909_v22 = vld [vmem:[#allocation2 + $0x60] sm:$0xf] }
 0x144   : > { %14156 = vmatmul.mubr.msk.bf16.gmra.mxu1 %vm1564_vm6, %v14737_v52  ;;  %v12975_v16 = vcombine.low %v16295_v45, %v16303_v49  ;;  %v3040_v48 = vrot.slane %v3039_v17, 4  ;;  %v3072_v62 = vrot.slane %v3070_v14, 4  ;;  %v3708_v34 = vrot.slane %v16256_v26, 5  ;;  %v2907_v26 = vld [vmem:[#allocation2 + $0x58] sm:$0xf] }
 0x145   : > { %14118 = vmatmul.mubr.msk.bf16.gmra.mxu0 %vm1564_vm6, %v12868_v23  ;;  %14159 = vmatprep.mubr.msk.bf16.mxu1 %vm1564_vm6, %v14738_v36  ;;  %v3050_v52 = vrot.slane %v3049_v6, 4  ;;  %v3063_v2 = vor.u32 %v3062_v32, %v3059_v28  ;;  %v3078_v4 = vrot.slane %v3076_v25, 5  ;;  %v3711_v9 = vrot.slane %v16258_v33, 5  ;;  %v16338_v28 = vld [vmem:[#allocation2 + $0x64] sm:$0xf] }
 0x146   : > { %14121 = vmatprep.mubr.msk.bf16.mxu0 %vm1564_vm6, %v12869_v1  ;;  %v3045_v12 = vsel %vm15554_vm13, %v3040_v48, %v3044_v15  ;;  %v3073_v23 = vor.u32 %v3072_v62, %v3068_v58  ;;  %v16326_v36 = vsel %vm15899_vm3, %v12959_v39, %v3708_v34  ;;  %v3710_v40 = vrot.slane %v3708_v34, 4  ;;  %v3623_v49 = vld [vmem:[#allocation2 + $0x78] sm:$0xe] }
 0x147   : > { %v3055_v54 = vsel %vm15554_vm13, %v3050_v52, %v3054_v7  ;;  %v3064_v1 = vrot.slane %v3063_v2, 4  ;;  %v12960_v38 = vrot.slane %v3619_v47, 9  ;;  %v3715_v33 = vrot.slane %v16289_v20, 5  ;;  %v16346_v47 = vld [vmem:[#allocation2 + $0x68] sm:$0x1] }
 0x148   : > { %v3074_v57 = vrot.slane %v3073_v23, 4  ;;  %v16335_v15 = vsel %vm15899_vm3, %v3710_v40, %v3711_v9  ;;  %v3718_v29 = vrot.slane %v16299_v42, 5  ;;  %v3081_v17 = vshrl.u32 %v2906_v53, 16  ;;  %v3620_v9 = vld [vmem:[#allocation2 + $0x54] sm:$0xe] }
 0x149   : > { %v16340_v14 = vcombine.low %v3045_v12, %v3055_v54  ;;  %v3069_v7 = vsel %vm15554_vm13, %v3064_v1, %v3068_v58  ;;  %v12976_v25 = vcombine.low %v16326_v36, %v16335_v15  ;;  %v3717_v20 = vrot.slane %v3715_v33, 4  ;;  %v2918_v15 = vld [vmem:[#allocation2 + $0x84] sm:$0xf] }
 0x14a   : > { %v3079_v6 = vsel %vm15554_vm13, %v3074_v57, %v3078_v4  ;;  %v3083_v32 = vrot.slane %v3081_v17, 4  ;;  %v3084_v39 = vshll.u32 %v2906_v53, 16  ;;  %v3090_v42 = vshll.u32 %v2907_v26, 16 }
 0x14b   : > { %v16351_v48 = vcombine.low %v3069_v7, %v3079_v6  ;;  %v16355_v62 = vsel %vm15899_vm3, %v12960_v38, %v3715_v33  ;;  %v3094_v58 = vshrl.u32 %v2907_v26, 16  ;;  %v3100_v34 = vshll.u32 %v16328_v59, 16  ;;  %v3621_v33 = vld [vmem:[#allocation2 + $0x60] sm:$0xe] }
 0x14c   : > { %14160 = vmatmul.mubr.msk.bf16.gmra.mxu1 %vm1564_vm6, %v14739_v55  ;;  %v16368_v53 = vsel %vm15899_vm3, %v3717_v20, %v3718_v29  ;;  %v3086_v52 = vrot.slane %v3084_v39, 5  ;;  %v3092_v2 = vrot.slane %v3090_v42, 5  ;;  %v3105_v4 = vshrl.u32 %v2909_v22, 16 }
 0x14d   : > { %14122 = vmatmul.mubr.msk.bf16.gmra.mxu0 %vm1564_vm6, %v12870_v27  ;;  %14199 = vmatprep.mubr.msk.bf16.mxu1 %vm1564_vm6, %v12972_v37  ;;  %v19456_v12 = vcombine.low %v16112_v11, %v16124_v13  ;;  %v3096_v60 = vrot.slane %v3094_v58, 4  ;;  %v3102_v19 = vrot.slane %v3100_v34, 5  ;;  %v3108_v27 = vshll.u32 %v2909_v22, 16  ;;  %v2912_v22 = vld [vmem:[#allocation2 + $0x6c] sm:$0xf] }
 0x14e   : > { %v3114_v43 = vshll.u32 %v16338_v28, 16  ;;  %v3087_v35 = vor.u32 %v3086_v52, %v3083_v32  ;;  %v3107_v37 = vrot.slane %v3105_v4, 4  ;;  %v3118_v23 = vshrl.u32 %v16338_v28, 16  ;;  %v16380_v32 = vld [vmem:[#allocation2 + $0x70] sm:$0xf] }
 0x14f   : > { %14125 = vmatprep.mubr.msk.bf16.mxu0 %vm1564_vm6, %v19456_v12  ;;  %v3124_v40 = vshll.u32 %v16346_v47, 16  ;;  %v3097_v55 = vor.u32 %v3096_v60, %v3092_v2  ;;  %v3110_v54 = vrot.slane %v3108_v27, 5  ;;  %v12961_v38 = vrot.slane %v3620_v9, 9  ;;  %v16388_v52 = vld [vmem:[#allocation2 + $0x74] sm:$0x1] }
 0x150   : > { %v3116_v1 = vrot.slane %v3114_v43, 5  ;;  %v12977_v11 = vcombine.low %v16355_v62, %v16368_v53  ;;  %v3088_v13 = vrot.slane %v3087_v35, 4  ;;  %v3120_v57 = vrot.slane %v3118_v23, 4  ;;  %v16421_v27 = vld [vmem:[#allocation2 + $0x7c] sm:$0xf] }
 0x151   : > { %v3722_v29 = vrot.slane %v2907_v26, 5  ;;  %v3098_v17 = vrot.slane %v3097_v55, 4  ;;  %v3111_v7 = vor.u32 %v3110_v54, %v3107_v37  ;;  %v3126_v20 = vrot.slane %v3124_v40, 5  ;;  %v16431_v23 = vld [vmem:[#allocation2 + $0x80] sm:$0x1] }
 0x152   : > { %v3725_v6 = vrot.slane %v16328_v59, 5  ;;  %v3093_v39 = vsel %vm15554_vm13, %v3088_v13, %v3092_v2  ;;  %v3121_v42 = vor.u32 %v3120_v57, %v3116_v1  ;;  %v12962_v4 = vrot.slane %v3621_v33, 9  ;;  %v3622_v40 = vld [vmem:[#allocation2 + $0x6c] sm:$0xe] }
 0x153   : > { %v16386_v58 = vsel %vm15899_vm3, %v12961_v38, %v3722_v29  ;;  %v3724_v34 = vrot.slane %v3722_v29, 4  ;;  %v3103_v26 = vsel %vm15554_vm13, %v3098_v17, %v3102_v19  ;;  %v3112_v59 = vrot.slane %v3111_v7, 4 }
 0x154   : > { %14200 = vmatmul.mubr.msk.bf16.vlgmr.msra.gmra.mxu1 %vm1564_vm6, %v12973_v50  ;;  %v3729_v2 = vrot.slane %v16338_v28, 5  ;;  %v19457_v9 = vcombine.low %v16133_v63, %v16150_v61  ;;  %v3122_v30 = vrot.slane %v3121_v42, 4  ;;  %v3732_v50 = vrot.slane %v16346_v47, 5 }
 0x155   : > { %14203 = vmatprep.mubr.msk.bf16.mxu1 %vm1564_vm6, %v12974_v51  ;;  %v16407_v44 = vsel %vm15899_vm3, %v3724_v34, %v3725_v6  ;;  %v3129_v12 = vshrl.u32 %v2912_v22, 16  ;;  %v16412_v28 = vcombine.low %v3093_v39, %v3103_v26  ;;  %v3117_v63 = vsel %vm15554_vm13, %v3112_v59, %v3116_v1 }
 0x156   : > { %14126 = vmatmul.mubr.msk.bf16.gmra.mxu0 %vm1564_vm6, %v19457_v9  ;;  %v12978_v61 = vcombine.low %v16386_v58, %v16407_v44  ;;  %v3731_v0 = vrot.slane %v3729_v2, 4  ;;  %v3127_v51 = vsel %vm15554_vm13, %v3122_v30, %v3126_v20  ;;  %v3132_v19 = vshll.u32 %v2912_v22, 16 }
 0x157   : > { %14165 = vmatprep.mubr.msk.bf16.mxu0 %vm1564_vm6, %v16210_v5  ;;  %v3131_v60 = vrot.slane %v3129_v12, 4  ;;  %v3138_v47 = vshll.u32 %v16380_v32, 16  ;;  %v16423_v5 = vcombine.low %v3117_v63, %v3127_v51  ;;  %v16427_v43 = vsel %vm15899_vm3, %v12962_v4, %v3729_v2 }
 0x158   : > { %v3142_v35 = vshrl.u32 %v16380_v32, 16  ;;  %v3148_v37 = vshll.u32 %v16388_v52, 16  ;;  %v16435_v55 = vsel %vm15899_vm3, %v3731_v0, %v3732_v50  ;;  %v3134_v54 = vrot.slane %v3132_v19, 5  ;;  %v16463_v50 = vld [vmem:[#allocation2 + $0x88] sm:$0xf] }
 0x159   : > { %v3140_v1 = vrot.slane %v3138_v47, 5  ;;  %v3153_v38 = vshrl.u32 %v2915_v8, 16  ;;  %v3156_v57 = vshll.u32 %v2915_v8, 16  ;;  %v3162_v29 = vshll.u32 %v16421_v27, 16  ;;  %v2921_v0 = vld [vmem:[#allocation2 + $0x90] sm:$0xf] }
 0x15a   : > { %v3144_v33 = vrot.slane %v3142_v35, 4  ;;  %v3150_v13 = vrot.slane %v3148_v37, 5  ;;  %v3135_v22 = vor.u32 %v3134_v54, %v3131_v60  ;;  %v3166_v7 = vshrl.u32 %v16421_v27, 16  ;;  %v16475_v47 = vld [vmem:[#allocation2 + $0x94] sm:$0xf] }
 0x15b   : > { %v3155_v17 = vrot.slane %v3153_v38, 4  ;;  %v3172_v20 = vshll.u32 %v16431_v23, 16  ;;  %v3158_v39 = vrot.slane %v3156_v57, 5  ;;  %v3164_v42 = vrot.slane %v3162_v29, 5  ;;  %v16483_v54 = vld [vmem:[#allocation2 + $0x98] sm:$0x1] }
 0x15c   : > { %14204 = vmatmul.mubr.msk.bf16.gmra.mxu1 %vm1564_vm6, %v12975_v16  ;;  %v3145_v6 = vor.u32 %v3144_v33, %v3140_v1  ;;  %v12963_v34 = vrot.slane %v3622_v40, 9  ;;  %v12979_v26 = vcombine.low %v16427_v43, %v16435_v55  ;;  %v3136_v59 = vrot.slane %v3135_v22, 4  ;;  %v3624_v57 = vld [vmem:[#allocation2 + $0x84] sm:$0xe] }
 0x15d   : > { %14207 = vmatprep.mubr.msk.bf16.mxu1 %vm1564_vm6, %v12976_v25  ;;  %v3168_v4 = vrot.slane %v3166_v7, 4  ;;  %v3736_v45 = vrot.slane %v16380_v32, 5  ;;  %v3174_v2 = vrot.slane %v3172_v20, 5  ;;  %v3739_v36 = vrot.slane %v16388_v52, 5 }
 0x15e   : > { %14166 = vmatmul.mubr.msk.bf16.vlgmr.msra.gmra.mxu0 %vm1564_vm6, %v16224_v21  ;;  %v3146_v16 = vrot.slane %v3145_v6, 4  ;;  %v3159_v21 = vor.u32 %v3158_v39, %v3155_v17  ;;  %v3141_v25 = vsel %vm15554_vm13, %v3136_v59, %v3140_v1  ;;  %v12964_v63 = vrot.slane %v3623_v49, 9  ;;  %v3625_v39 = vld [vmem:[#allocation2 + $0x90] sm:$0xe] }
 0x15f   : > { %14232 = vmatpush3.bf16.msra.mxu0 %v16172_v10  ;;  %14169 = vmatprep.mubr.msk.bf16.mxu0 %vm1564_vm6, %v16280_v31  ;;  %v3169_v9 = vor.u32 %v3168_v4, %v3164_v42  ;;  %v16461_v30 = vsel %vm15899_vm3, %v12963_v34, %v3736_v45  ;;  %v3738_v32 = vrot.slane %v3736_v45, 4  ;;  %v16465_v10 = vld [vmem:[#allocation2 + $0x8c] sm:$0x1]  ;;  %v3743_v52 = vrot.slane %v16421_v27, 5 }
 0x160   : > { %v3151_v31 = vsel %vm15554_vm13, %v3146_v16, %v3150_v13  ;;  %v3160_v12 = vrot.slane %v3159_v21, 4  ;;  %v3746_v60 = vrot.slane %v16431_v23, 5  ;;  %v3177_v19 = vshrl.u32 %v2918_v15, 16  ;;  %v16485_v1 = vpop.f32.mrf.mxu1 }
 0x161   : > { %v3170_v8 = vrot.slane %v3169_v9, 4  ;;  %v16472_v51 = vsel %vm15899_vm3, %v3738_v32, %v3739_v36  ;;  %v16477_v35 = vcombine.low %v3141_v25, %v3151_v31  ;;  %v3745_v27 = vrot.slane %v3743_v52, 4  ;;  %v2924_v36 = vld [vmem:[#allocation2 + $0x9c] sm:$0xf] }
 0x162   : > { %v3165_v37 = vsel %vm15554_vm13, %v3160_v12, %v3164_v42  ;;  %v12980_v40 = vcombine.low %v16461_v30, %v16472_v51  ;;  %v3179_v23 = vrot.slane %v3177_v19, 4  ;;  %v3180_v33 = vshll.u32 %v2918_v15, 16  ;;  %v16502_v20 = vpop.f32.mrf.mxu1  ;;  %v16536_v19 = vld [vmem:[#allocation2 + $0xa4] sm:$0x1] }
 0x163   : > { %v3175_v38 = vsel %vm15554_vm13, %v3170_v8, %v3174_v2  ;;  %v3186_v13 = vshll.u32 %v16463_v50, 16  ;;  %v16498_v22 = vsel %vm15899_vm3, %v12964_v63, %v3743_v52  ;;  %v3190_v17 = vshrl.u32 %v16463_v50, 16  ;;  %v16527_v63 = vld [vmem:[#allocation2 + $0xa0] sm:$0xf] }
 0x164   : > { %14208 = vmatmul.mubr.msk.bf16.gmra.mxu1 %vm1564_vm6, %v12977_v11  ;;  %v16494_v29 = vcombine.low %v3165_v37, %v3175_v38  ;;  %v3196_v7 = vshll.u32 %v16465_v10, 16  ;;  %v16512_v62 = vsel %vm15899_vm3, %v3745_v27, %v3746_v60  ;;  %v3182_v53 = vrot.slane %v3180_v33, 5  ;;  %v16519_v45 = vpop.f32.mrf.mxu1 }
 0x165   : > { %14211 = vmatprep.mubr.msk.bf16.mxu1 %vm1564_vm6, %v12978_v61  ;;  %v3188_v11 = vrot.slane %v3186_v13, 5  ;;  %v3201_v6 = vshrl.u32 %v2921_v0, 16  ;;  %v3192_v42 = vrot.slane %v3190_v17, 4  ;;  %v3204_v59 = vshll.u32 %v2921_v0, 16 }
 0x166   : > { %14170 = vmatmul.mubr.msk.bf16.gmra.mxu0 %vm1564_vm6, %v16291_v56  ;;  %v3198_v34 = vrot.slane %v3196_v7, 5  ;;  %v3210_v56 = vshll.u32 %v16475_v47, 16  ;;  %v3183_v4 = vor.u32 %v3182_v53, %v3179_v23  ;;  %v3214_v44 = vshrl.u32 %v16475_v47, 16  ;;  %v2927_v23 = vld [vmem:[#allocation2 + $0xa8] sm:$0xf] }
 0x167   : > { %14173 = vmatprep.mubr.msk.bf16.mxu0 %vm1564_vm6, %v16340_v14  ;;  %v3203_v58 = vrot.slane %v3201_v6, 4  ;;  %v3220_v61 = vshll.u32 %v16483_v54, 16  ;;  %v3193_v49 = vor.u32 %v3192_v42, %v3188_v11  ;;  %v3206_v16 = vrot.slane %v3204_v59, 5 }
 0x168   : > { %v16521_v21 = vrot.slane %v3210_v56, 5  ;;  %v12965_v2 = vrot.slane %v3624_v57, 9  ;;  %v3184_v14 = vrot.slane %v3183_v4, 4  ;;  %v3216_v15 = vrot.slane %v3214_v44, 4 }
 0x169   : > { %v16523_v25 = vrot.slane %v3220_v61, 5  ;;  %v3750_v9 = vrot.slane %v16463_v50, 5  ;;  %v3194_v30 = vrot.slane %v3193_v49, 4  ;;  %v3207_v32 = vor.u32 %v3206_v16, %v3203_v58  ;;  %v16529_v52 = vpop.f32.mrf.mxu0  ;;  %v16538_v50 = vpop.f32.mrf.mxu1 }
 0x16a   : > { %v3753_v31 = vrot.slane %v16465_v10, 5  ;;  %v12966_v12 = vrot.slane %v3625_v39, 9  ;;  %v3189_v0 = vsel %vm15554_vm13, %v3184_v14, %v3188_v11  ;;  %v3217_v8 = vor.u32 %v3216_v15, %v16521_v21  ;;  %19458 = vst [vmem:[#allocation29_spill] sm:$0xff] %v16538_v50 }
 0x16b   : > { %v3751_v51 = vsel %vm15899_vm3, %v12965_v2, %v3750_v9  ;;  %v3752_v60 = vrot.slane %v3750_v9, 4  ;;  %v3199_v10 = vsel %vm15554_vm13, %v3194_v30, %v3198_v34  ;;  %v16546_v37 = vrot.slane %v3207_v32, 4  ;;  %v16550_v33 = vpop.f32.mrf.mxu0  ;;  %v16578_v11 = vpop.f32.mrf.mxu1 }
 0x16c   : > { %14212 = vmatmul.mubr.msk.bf16.gmra.mxu1 %vm1564_vm6, %v12979_v26  ;;  %v3757_v27 = vrot.slane %v16475_v47, 5  ;;  %v3760_v38 = vrot.slane %v16483_v54, 5  ;;  %v12981_v43 = vcombine.low %v16498_v22, %v16512_v62  ;;  %v16557_v55 = vrot.slane %v3217_v8, 4  ;;  %v16561_v47 = vld [vmem:[#allocation2 + $0xac] sm:$0xf] }
 0x16d   : > { %14215 = vmatprep.mubr.msk.bf16.mxu1 %vm1564_vm6, %v12980_v40  ;;  %v3754_v26 = vsel %vm15899_vm3, %v3752_v60, %v3753_v31  ;;  %v3225_v13 = vshrl.u32 %v2924_v36, 16  ;;  %v16565_v54 = vcombine.low %v3189_v0, %v3199_v10  ;;  %v16575_v22 = vld [vmem:[#allocation2 + $0xb0] sm:$0x1]  ;;  %v3228_v62 = vshll.u32 %v2924_v36, 16  ;;  %v16590_v59 = vpop.f32.mrf.mxu0  ;;  %v16597_v9 = vpop.f32.mrf.mxu1  ;;  %v2930_v0 = vld [vmem:[#allocation2 + $0xb4] sm:$0xf] }
 0x16e   : > { %14174 = vmatmul.mubr.msk.bf16.gmra.mxu0 %vm1564_vm6, %v16351_v48  ;;  %v3213_v48 = vsel %vm15554_vm13, %v16546_v37, %v16521_v21  ;;  %v16573_v40 = vsel %vm15899_vm3, %v12966_v12, %v3757_v27  ;;  %v3759_v57 = vrot.slane %v3757_v27, 4  ;;  %v12982_v17 = vcombine.low %v3751_v51, %v3754_v26 }
 0x16f   : > { %14177 = vmatprep.mubr.msk.bf16.mxu0 %vm1564_vm6, %v16412_v28  ;;  %v3227_v7 = vrot.slane %v3225_v13, 4  ;;  %v3234_v53 = vshll.u32 %v16527_v63, 16  ;;  %v3626_v28 = vld [vmem:[#allocation2 + $0x9c] sm:$0xe]  ;;  %v3223_v6 = vsel %vm15554_vm13, %v16557_v55, %v16523_v25  ;;  %v3238_v42 = vshrl.u32 %v16527_v63, 16  ;;  %v16602_v8 = vpop.f32.mrf.mxu0 }
 0x170   : > { %v16586_v39 = vsel %vm15899_vm3, %v3759_v57, %v3760_v38  ;;  %v3244_v34 = vshll.u32 %v16536_v19, 16  ;;  %v3230_v4 = vrot.slane %v3228_v62, 5  ;;  %v3249_v44 = vshrl.u32 %v2927_v23, 16  ;;  %v3627_v25 = vld [vmem:[#allocation2 + $0xa8] sm:$0xe]  ;;  %19459 = vst [vmem:[#allocation30_spill] sm:$0xff] %v16602_v8  ;;  %v16622_v57 = vpop.f32.mrf.mxu1 }
 0x171   : > { %v12983_v56 = vcombine.low %v16573_v40, %v16586_v39  ;;  %v3236_v58 = vrot.slane %v3234_v53, 5  ;;  %v3240_v61 = vrot.slane %v3238_v42, 4  ;;  %v3252_v16 = vshll.u32 %v2927_v23, 16  ;;  %v16613_v55 = vld [vmem:[#allocation2 + $0xb8] sm:$0xf] }
 0x172   : > { %v3246_v49 = vrot.slane %v3244_v34, 5  ;;  %v3258_v21 = vshll.u32 %v16561_v47, 16  ;;  %v3231_v2 = vor.u32 %v3230_v4, %v3227_v7  ;;  %v3251_v36 = vrot.slane %v3249_v44, 4  ;;  %v1075_v62 = vld [vmem:[#allocation2 + $0xc8] sm:$0x1] }
 0x173   : > { %v3262_v14 = vshrl.u32 %v16561_v47, 16  ;;  %v3268_v15 = vshll.u32 %v16575_v22, 16  ;;  %v3241_v30 = vor.u32 %v3240_v61, %v3236_v58  ;;  %v3254_v32 = vrot.slane %v3252_v16, 5 }
 0x174   : > { %14216 = vmatmul.mubr.msk.bf16.gmra.mxu1 %vm1564_vm6, %v12981_v43  ;;  %v16600_v31 = vrot.slane %v3258_v21, 5  ;;  %v12967_v12 = vrot.slane %v3626_v28, 9  ;;  %v3232_v51 = vrot.slane %v3231_v2, 4  ;;  %v3764_v37 = vrot.slane %v16527_v63, 5  ;;  %v16620_v63 = vld [vmem:[#allocation2 + $0xbc] sm:$0x1]  ;;  %v16630_v53 = vpop.f32.mrf.mxu0  ;;  %v16647_v2 = vpop.f32.mrf.mxu1 }
 0x175   : > { %14219 = vmatprep.mubr.msk.bf16.mxu1 %vm1564_vm6, %v12982_v17  ;;  %v3264_v60 = vrot.slane %v3262_v14, 4  ;;  %v16607_v10 = vrot.slane %v3268_v15, 5  ;;  %v3242_v27 = vrot.slane %v3241_v30, 4  ;;  %v3255_v38 = vor.u32 %v3254_v32, %v3251_v36  ;;  %v16645_v21 = vld [vmem:[#allocation2 + $0xc4] sm:$0xf] }
 0x176   : > { %14178 = vmatmul.mubr.msk.bf16.gmra.mxu0 %vm1564_vm6, %v16423_v5  ;;  %v3767_v23 = vrot.slane %v16536_v19, 5  ;;  %v12968_v43 = vrot.slane %v3627_v25, 9  ;;  %v3237_v5 = vsel %vm15554_vm13, %v3232_v51, %v3236_v58  ;;  %v3765_v13 = vsel %vm15899_vm3, %v12967_v12, %v3764_v37  ;;  %v16657_v30 = vpop.f32.mrf.mxu0 }
 0x177   : > { %14181 = vmatprep.mubr.msk.bf16.mxu0 %vm1564_vm6, %v16477_v35  ;;  %v3265_v26 = vor.u32 %v3264_v60, %v16600_v31  ;;  %v3766_v40 = vrot.slane %v3764_v37, 4  ;;  %v3247_v35 = vsel %vm15554_vm13, %v3242_v27, %v3246_v49  ;;  %v16626_v19 = vrot.slane %v3255_v38, 4  ;;  %v3628_v49 = vld [vmem:[#allocation2 + $0xb4] sm:$0xe]  ;;  %v3629_v37 = vld [vmem:[#allocation2 + $0xc0] sm:$0xe] }
 0x178   : > { %v3771_v17 = vrot.slane %v16561_v47, 5  ;;  %v3774_v7 = vrot.slane %v16575_v22, 5  ;;  %v16632_v28 = vcombine.low %v3213_v48, %v3223_v6  ;;  %v3273_v34 = vshrl.u32 %v2930_v0, 16  ;;  %v2933_v47 = vld [vmem:[#allocation2 + $0xc0] sm:$0xf] }
 0x179   : > { %v3266_v39 = vrot.slane %v3265_v26, 4  ;;  %v3768_v42 = vsel %vm15899_vm3, %v3766_v40, %v3767_v23  ;;  %v16636_v4 = vcombine.low %v3237_v5, %v3247_v35  ;;  %v3261_v48 = vsel %vm15554_vm13, %v16626_v19, %v16600_v31  ;;  %v16681_v40 = vpop.f32.mrf.mxu0 }
 0x17a   : > { %v12984_v58 = vcombine.low %v3765_v13, %v3768_v42  ;;  %v3772_v44 = vsel %vm15899_vm3, %v12968_v43, %v3771_v17  ;;  %v3773_v61 = vrot.slane %v3771_v17, 4  ;;  %v3275_v22 = vrot.slane %v3273_v34, 4 }
 0x17b   : > { %v3276_v6 = vshll.u32 %v2930_v0, 16  ;;  %v3282_v16 = vshll.u32 %v16613_v55, 16  ;;  %v3271_v36 = vsel %vm15554_vm13, %v3266_v39, %v16607_v10  ;;  %v3286_v15 = vshrl.u32 %v16613_v55, 16 }
 0x17c   : > { %14220 = vmatmul.mubr.msk.bf16.gmra.mxu1 %vm1564_vm6, %v12983_v56  ;;  %v3775_v14 = vsel %vm15899_vm3, %v3773_v61, %v3774_v7  ;;  %v3292_v25 = vshll.u32 %v16620_v63, 16  ;;  %v19460_v12 = vrot.slane %v16140_v18, 4  ;;  %v3297_v10 = vshrl.u32 %v2933_v47, 16 }
 0x17d   : > { %14223 = vmatprep.mubr.msk.bf16.mxu1 %vm1564_vm6, %v12984_v58  ;;  %v12985_v32 = vcombine.low %v3772_v44, %v3775_v14  ;;  %v3278_v56 = vrot.slane %v3276_v6, 5  ;;  %v16662_v31 = vrot.slane %v3282_v16, 5  ;;  %v3288_v51 = vrot.slane %v3286_v15, 4  ;;  %v13086_v58 = vld [vmem:[%s19387_s1 + $0x10] sm:$0x3]  ;;  %v16702_v15 = vpop.f32.mrf.mxu0 }
 0x17e   : > { %14182 = vmatmul.mubr.msk.bf16.gmra.mxu0 %vm1564_vm6, %v16494_v29  ;;  %v1076_v0 = vsel %vm15547_vm12, %v19460_v12, %v1075_v62  ;;  %v16670_v60 = vrot.slane %v3292_v25, 5  ;;  %v3300_v29 = vshll.u32 %v2933_v47, 16  ;;  %v3306_v38 = vshll.u32 %v16645_v21, 16  ;;  %v16677_v18 = vpop.f32.mrf.mxu1  ;;  %v4443_v47 = vld [vmem:[#allocation2 + $0x18] sm:$0xf] }
 0x17f   : > { %14185 = vmatprep.mubr.msk.bf16.mxu0 %vm1564_vm6, %v16565_v54  ;;  %1077 = vst [vmem:[#allocation2 + $0xc8] sm:$0x1] %v1076_v0  ;;  %v3279_v27 = vor.u32 %v3278_v56, %v3275_v22  ;;  %v3310_v23 = vshrl.u32 %v16645_v21, 16  ;;  %v12969_v43 = vrot.slane %v3628_v49, 9  ;;  %v3289_v54 = vor.u32 %v3288_v51, %v16662_v31  ;;  %v4444_v14 = vld [vmem:[#allocation2 + $0x1c] sm:$0xf] }
 0x180   : > { %v3299_v5 = vrot.slane %v3297_v10, 4  ;;  %v3302_v26 = vrot.slane %v3300_v29, 5  ;;  %v3778_v13 = vrot.slane %v16613_v55, 5  ;;  %v16683_v19 = vrot.slane %v3306_v38, 5  ;;  %v16693_v49 = vpop.f32.mrf.mxu1  ;;  %v4445_v56 = vld [vmem:[#allocation2 + $0x20] sm:$0x1] }
 0x181   : > { %v3280_v35 = vrot.slane %v3279_v27, 4  ;;  %v3312_v17 = vrot.slane %v3310_v23, 4  ;;  %v3781_v7 = vrot.slane %v16620_v63, 5  ;;  %v3290_v62 = vrot.slane %v3289_v54, 4 }
 0x182   : > { %v3303_v39 = vor.u32 %v3302_v26, %v3299_v5  ;;  %v3779_v42 = vsel %vm15899_vm3, %v12969_v43, %v3778_v13  ;;  %v3780_v34 = vrot.slane %v3778_v13, 4  ;;  %v12970_v44 = vrot.slane %v3629_v37, 9  ;;  %v16723_v37 = vld [vmem:[#allocation2 + $0x28] sm:$0xf]  ;;  %v16725_v27 = vpop.f32.mrf.mxu1 }
 0x183   : > { %v3313_v55 = vor.u32 %v3312_v17, %v16683_v19  ;;  %v3785_v61 = vrot.slane %v16645_v21, 5  ;;  %v12936_v22 = vcombine.low %v3261_v48, %v3271_v36  ;;  %v3285_v63 = vsel %vm15554_vm13, %v3280_v35, %v16662_v31 }
 0x184   : > { %14224 = vmatmul.mubr.msk.bf16.gmra.mxu1 %vm1564_vm6, %v12985_v32  ;;  %v3782_v6 = vsel %vm15899_vm3, %v3780_v34, %v3781_v7  ;;  %v4974_v16 = vand.u32 %v13037_v41, %v15503_v3  ;;  %v3295_v48 = vsel %vm15554_vm13, %v3290_v62, %v16670_v60  ;;  %v16709_v36 = vrot.slane %v3303_v39, 4  ;;  %v16736_v7 = vld [vmem:[#allocation2 + $0x2c] sm:$0x1] }
 0x185   : > { %v3314_v25 = vrot.slane %v3313_v55, 4  ;;  %v12986_v32 = vcombine.low %v3779_v42, %v3782_v6  ;;  %v3786_v12 = vsel %vm15899_vm3, %v12970_v44, %v3785_v61  ;;  %v3787_v0 = vrot.slane %v3785_v61, 4 }
 0x186   : > { %14186 = vmatmul.mubr.msk.bf16.gmra.mxu0 %vm1564_vm6, %v16632_v28  ;;  %v2935_v21 = vld [vmem:[#allocation2 + $0xc8] sm:$0x1]  ;;  %14265 = vmatprep.subr.bf16.mxu1 %v4974_v16  ;;  %v4446_v28 = vld [vmem:[#allocation2 + $0x24] sm:$0xf]  ;;  %v16717_v60 = vand.u32 %v13086_v58, %v15503_v3  ;;  %v16721_v10 = vadd.f32 %v16485_v1, %v16529_v52  ;;  %v4492_v29 = vshrl.u32 %v4443_v47, 16  ;;  %v4501_v43 = vshll.u32 %v4444_v14, 16  ;;  %v16742_v58 = vpop.f32.mrf.mxu1 }
 0x187   : > { %14189 = vmatprep.mubr.msk.bf16.mxu0 %vm1564_vm6, %v16636_v4  ;;  %v3316_v31 = vshll.u32 %v2935_v21, 16  ;;  %v3788_v51 = vrot.slane %v2935_v21, 5  ;;  %14227 = vmatprep.mubr.msk.bf16.mxu1 %vm1564_vm6, %v12986_v32  ;;  %v4495_v4 = vshll.u32 %v4443_v47, 16  ;;  %v4505_v41 = vshrl.u32 %v4444_v14, 16  ;;  %v16729_v54 = vpop.f32.mrf.mxu0  ;;  %v4450_v14 = vld [vmem:[#allocation2 + $0x34] sm:$0xf] }
 0x188   : > { %14266 = vmatpush3.bf16.msra.mxu1 %v4974_v16  ;;  %14299 = vmatprep.subr.bf16.mxu0 %v16717_v60  ;;  %v4494_v5 = vrot.slane %v4492_v29, 4  ;;  %v4511_v52 = vshll.u32 %v4445_v56, 16  ;;  %v12937_v26 = vcombine.low %v3285_v63, %v3295_v48  ;;  %v4503_v13 = vrot.slane %v4501_v43, 5  ;;  %v4451_v56 = vld [vmem:[#allocation2 + $0x38] sm:$0x1] }
 0x189   : > { %v3318_v38 = vrot.slane %v3316_v31, 5  ;;  %v3789_v23 = vsel %vm15899_vm3, %v3787_v0, %v3788_v51  ;;  %v4497_v1 = vrot.slane %v4495_v4, 5  ;;  %v4507_v35 = vrot.slane %v4505_v41, 4  ;;  %v16747_v47 = vpop.f32.mrf.mxu0  ;;  %v14740_v51 = vld [vmem:[#allocation2 + $0x18] sm:$0xff]  }
 0x18a   : > { %v12987_v3 = vcombine.low %v3786_v12, %v3789_v23  ;;  %v16734_v17 = vadd.f32 %v16502_v20, %v16550_v33  ;;  %v3309_v62 = vsel %vm15554_vm13, %v16709_v36, %v16683_v19  ;;  %v4513_v42 = vrot.slane %v4511_v52, 5  ;;  %v4449_v33 = vld [vmem:[#allocation2 + $0x30] sm:$0xf] }
 0x18b   : > { %v4498_v39 = vor.u32 %v4497_v1, %v4494_v5  ;;  %v4516_v34 = vshrl.u32 %v4446_v28, 16  ;;  %v4508_v55 = vor.u32 %v4507_v35, %v4503_v13  ;;  %v4519_v44 = vshll.u32 %v4446_v28, 16  ;;  %v16764_v23 = vpop.f32.mrf.mxu0 }
 0x18c   : > { %14228 = vmatmul.mubr.msk.bf16.gmra.mxu1 %vm1564_vm6, %v12987_v3  ;;  %v4525_v61 = vshll.u32 %v16723_v37, 16  ;;  %v4529_v20 = vshrl.u32 %v16723_v37, 16  ;;  %v3319_v19 = vsel %vm15554_vm13, %v3314_v25, %v3318_v38  ;;  %v4535_v16 = vshll.u32 %v16736_v7, 16  ;;  %v16760_v25 = vpop.f32.mrf.mxu1  ;;  %v4452_v38 = vld [vmem:[#allocation2 + $0x3c] sm:$0xf] }
 0x18d   : > { %v4499_v63 = vrot.slane %v4498_v39, 4  ;;  %v4518_v6 = vrot.slane %v4516_v34, 4  ;;  %v4509_v48 = vrot.slane %v4508_v55, 4  ;;  %v4521_v21 = vrot.slane %v4519_v44, 5 }
 0x18e   : > { %14190 = vmatmul.mubr.msk.bf16.gmra.mxu0 %vm1564_vm6, %v12936_v22  ;;  %v4527_v36 = vrot.slane %v4525_v61, 5  ;;  %v4531_v32 = vrot.slane %v4529_v20, 4  ;;  %v4537_v12 = vrot.slane %v4535_v16, 5  ;;  %v16758_v22 = vadd.f32 %v16519_v45, %v16590_v59  ;;  %v16783_v61 = vpop.f32.mrf.mxu0 }
 0x18f   : > { %14193 = vmatprep.mubr.msk.bf16.mxu0 %vm1564_vm6, %v12937_v26  ;;  %v4504_v31 = vsel %vm15554_vm13, %v4499_v63, %v4503_v13  ;;  %v12938_v0 = vcombine.low %v3309_v62, %v3319_v19  ;;  %v4514_v28 = vsel %vm15554_vm13, %v4509_v48, %v4513_v42  ;;  %v4522_v29 = vor.u32 %v4521_v21, %v4518_v6  ;;  %v4453_v26 = vld [vmem:[#allocation2 + $0x40] sm:$0xf]  ;;  %v16775_v42 = vld [vmem:[#allocation2 + $0x44] sm:$0x1]  ;;  %v16787_v48 = vld [vmem:[#allocation2 + $0x4c] sm:$0xf] }
 0x190   : > { %v4532_v4 = vor.u32 %v4531_v32, %v4527_v36  ;;  %v13038_v43 = vcombine.low %v4504_v31, %v4514_v28  ;;  %v16768_v41 = vadd.f32 %v16578_v11, %v16630_v53  ;;  %v4540_v3 = vshrl.u32 %v4449_v33, 16  ;;  %v16777_v11 = vpop.f32.mrf.mxu1  ;;  %v14741_v21 = vld [vmem:[#allocation2 + $0x24] sm:$0xff]   ;;  %v16791_v31 = vld [vmem:[#allocation2 + $0x50] sm:$0x1] }
 0x191   : > { %v4543_v45 = vshll.u32 %v4449_v33, 16  ;;  %v4523_v59 = vrot.slane %v4522_v29, 4  ;;  %v4549_v1 = vshll.u32 %v4450_v14, 16  ;;  %v4553_v52 = vshrl.u32 %v4450_v14, 16  ;;  %v4455_v14 = vld [vmem:[#allocation2 + $0x48] sm:$0xf] }
 0x192   : > { %v4533_v5 = vrot.slane %v4532_v4, 4  ;;  %14267 = vmatprep.mubr.msk.bf16.mxu1 %vm1564_vm6, %v13038_v43  ;;  %v4542_v13 = vrot.slane %v4540_v3, 4  ;;  %v4559_v62 = vshll.u32 %v4451_v56, 16  ;;  %v16773_v39 = vadd.f32 %v16597_v9, %v16657_v30 }
 0x193   : > { %v4545_v35 = vrot.slane %v4543_v45, 5  ;;  %v4528_v53 = vsel %vm15554_vm13, %v4523_v59, %v4527_v36  ;;  %v4551_v55 = vrot.slane %v4549_v1, 5  ;;  %v4555_v44 = vrot.slane %v4553_v52, 4  ;;  %v16795_v4 = vpop.f32.mrf.mxu0 }
 0x194   : > { %v4538_v34 = vsel %vm15554_vm13, %v4533_v5, %v4537_v12  ;;  %v4561_v9 = vrot.slane %v4559_v62, 5  ;;  %v4564_v30 = vshrl.u32 %v4452_v38, 16  ;;  %v4567_v63 = vshll.u32 %v4452_v38, 16  ;;  %v16793_v12 = vpop.f32.mrf.mxu1  ;;  %v14742_v38 = vld [vmem:[#allocation2 + $0x30] sm:$0xff]  }
 0x195   : > { %v13039_v20 = vcombine.low %v4528_v53, %v4538_v34  ;;  %v4546_v33 = vor.u32 %v4545_v35, %v4542_v13  ;;  %v4556_v19 = vor.u32 %v4555_v44, %v4551_v55  ;;  %v4573_v6 = vshll.u32 %v4453_v26, 16  ;;  %v16810_v34 = vld [vmem:[#allocation2 + $0x58] sm:$0xf] }
 0x196   : > { %14194 = vmatmul.mubr.msk.bf16.gmra.mxu0 %vm1564_vm6, %v12938_v0  ;;  %v4577_v16 = vshrl.u32 %v4453_v26, 16  ;;  %v4566_v32 = vrot.slane %v4564_v30, 4  ;;  %v4583_v56 = vshll.u32 %v16775_v42, 16  ;;  %v16801_v45 = vadd.f32 %v16622_v57, %v16681_v40  ;;  %v4458_v26 = vld [vmem:[#allocation2 + $0x54] sm:$0xf]  ;;  %v16814_v57 = vpop.f32.mrf.mxu1 }
 0x197   : > { %14233 = vmatprep.mubr.msk.bf16.mxu0 %vm1564_vm6, %v14740_v51  ;;  %14268 = vmatmul.mubr.msk.bf16.vlgmr.msra.gmra.mxu1 %vm1564_vm6, %v13039_v20  ;;  %v4547_v36 = vrot.slane %v4546_v33, 4  ;;  %v4557_v0 = vrot.slane %v4556_v19, 4  ;;  %v4569_v51 = vrot.slane %v4567_v63, 5  ;;  %v4575_v28 = vrot.slane %v4573_v6, 5 }
 0x198   : > { %v4579_v29 = vrot.slane %v4577_v16, 4  ;;  %v4585_v3 = vrot.slane %v4583_v56, 5  ;;  %v16807_v52 = vadd.f32 %v16677_v18, %v16729_v54  ;;  %v4588_v35 = vshrl.u32 %v4455_v14, 16  ;;  %v16818_v18 = vpop.f32.mrf.mxu0 }
 0x199   : > { %v4552_v43 = vsel %vm15554_vm13, %v4547_v36, %v4551_v55  ;;  %v4562_v59 = vsel %vm15554_vm13, %v4557_v0, %v4561_v9  ;;  %v4570_v5 = vor.u32 %v4569_v51, %v4566_v32  ;;  %v4591_v62 = vshll.u32 %v4455_v14, 16  ;;  %v16812_v55 = vld [vmem:[#allocation2 + $0x5c] sm:$0x1]  ;;  %v4461_v51 = vld [vmem:[#allocation2 + $0x60] sm:$0xf] }
 0x19a   : > { %v4580_v1 = vor.u32 %v4579_v29, %v4575_v28  ;;  %v13040_v13 = vcombine.low %v4552_v43, %v4562_v59  ;;  %v4597_v53 = vshll.u32 %v16787_v48, 16  ;;  %v4601_v20 = vshrl.u32 %v16787_v48, 16  ;;  %v16837_v43 = vld [vmem:[#allocation2 + $0x64] sm:$0xf] }
 0x19b   : > { %v4571_v40 = vrot.slane %v4570_v5, 4  ;;  %v4607_v33 = vshll.u32 %v16791_v31, 16  ;;  %v4590_v54 = vrot.slane %v4588_v35, 4  ;;  %v4593_v9 = vrot.slane %v4591_v62, 5 }
 0x19c   : > { %v4581_v44 = vrot.slane %v4580_v1, 4  ;;  %14271 = vmatprep.mubr.msk.bf16.mxu1 %vm1564_vm6, %v13040_v13  ;;  %v4599_v30 = vrot.slane %v4597_v53, 5  ;;  %v16824_v19 = vadd.f32 %v16693_v49, %v16747_v47  ;;  %v4603_v16 = vrot.slane %v4601_v20, 4  ;;  %v14744_v47 = vld [vmem:[#allocation2 + $0x48] sm:$0xff]  }
 0x19d   : > { %v4576_v63 = vsel %vm15554_vm13, %v4571_v40, %v4575_v28  ;;  %v4609_v14 = vrot.slane %v4607_v33, 5  ;;  %v4594_v32 = vor.u32 %v4593_v9, %v4590_v54  ;;  %v4612_v56 = vshrl.u32 %v4458_v26, 16  ;;  %v16843_v13 = vld [vmem:[#allocation2 + $0x68] sm:$0x1]  ;;  %v4464_v9 = vld [vmem:[#allocation2 + $0x6c] sm:$0xf] }
 0x19e   : > { %14234 = vmatmul.mubr.msk.bf16.vlgmr.msra.gmra.mxu0 %vm1564_vm6, %v14741_v21  ;;  %v4586_v6 = vsel %vm15554_vm13, %v4581_v44, %v4585_v3  ;;  %v14743_v21 = vld [vmem:[#allocation2 + $0x3c] sm:$0xff]   ;;  %v4615_v0 = vshll.u32 %v4458_v26, 16  ;;  %v16832_v49 = vpop.f32.mrf.mxu1  ;;  %v4621_v29 = vshll.u32 %v16810_v34, 16  ;;  %v4631_v28 = vshll.u32 %v16812_v55, 16  ;;  %v16839_v3 = vpop.f32.mrf.mxu0 }
 0x19f   : > { %14300 = vmatpush3.bf16.msra.mxu0 %v16717_v60  ;;  %14237 = vmatprep.mubr.msk.bf16.mxu0 %vm1564_vm6, %v14742_v38  ;;  %v13041_v36 = vcombine.low %v4576_v63, %v4586_v6  ;;  %v4604_v60 = vor.u32 %v4603_v16, %v4599_v30  ;;  %v4625_v38 = vshrl.u32 %v16810_v34, 16  ;;  %v4595_v5 = vrot.slane %v4594_v32, 4  ;;  %v16859_v32 = vld [vmem:[#allocation2 + $0x70] sm:$0xf] }
 0x1a0   : > { %v4614_v1 = vrot.slane %v4612_v56, 4  ;;  %v4617_v26 = vrot.slane %v4615_v0, 5  ;;  %v4623_v62 = vrot.slane %v4621_v29, 5  ;;  %v4633_v40 = vrot.slane %v4631_v28, 5  ;;  %v16845_v44 = vpop.f32.mrf.mxu1  ;;  %v1705_v56 = vpop.f32.mrf.mxu0 }
 0x1a1   : > { %14272 = vmatmul.mubr.msk.bf16.gmra.mxu1 %vm1564_vm6, %v13041_v36  ;;  %v4605_v35 = vrot.slane %v4604_v60, 4  ;;  %v4627_v53 = vrot.slane %v4625_v38, 4  ;;  %v4600_v20 = vsel %vm15554_vm13, %v4595_v5, %v4599_v30  ;;  %v16851_v54 = vadd.f32 %v16725_v27, %v16764_v23  ;;  %v16863_v23 = vld [vmem:[#allocation2 + $0x74] sm:$0x1] }
 0x1a2   : > { %v4618_v33 = vor.u32 %v4617_v26, %v4614_v1  ;;  %v16857_v16 = vadd.f32 %v16760_v25, %v16795_v4  ;;  %v4636_v36 = vshrl.u32 %v4461_v51, 16  ;;  %v4639_v60 = vshll.u32 %v4461_v51, 16  ;;  %v16868_v38 = vpop.f32.mrf.mxu1 }
 0x1a3   : > { %v4610_v63 = vsel %vm15554_vm13, %v4605_v35, %v4609_v14  ;;  %v4628_v6 = vor.u32 %v4627_v53, %v4623_v62  ;;  %v4645_v27 = vshll.u32 %v16837_v43, 16  ;;  %v4649_v25 = vshrl.u32 %v16837_v43, 16 }
 0x1a4   : > { %v13042_v30 = vcombine.low %v4600_v20, %v4610_v63  ;;  %v4619_v0 = vrot.slane %v4618_v33, 4  ;;  %v4638_v29 = vrot.slane %v4636_v36, 4  ;;  %v4655_v4 = vshll.u32 %v16843_v13, 16 }
 0x1a5   : > { %v4629_v14 = vrot.slane %v4628_v6, 4  ;;  %v4641_v51 = vrot.slane %v4639_v60, 5  ;;  %v4647_v28 = vrot.slane %v4645_v27, 5  ;;  %v16875_v5 = vadd.f32 %v16777_v11, %v16818_v18  ;;  %v16882_v27 = vld [vmem:[#allocation2 + $0x7c] sm:$0xf] }
 0x1a6   : > { %14238 = vmatmul.mubr.msk.bf16.gmra.mxu0 %vm1564_vm6, %v14743_v21  ;;  %14275 = vmatprep.mubr.msk.bf16.mxu1 %vm1564_vm6, %v13042_v30  ;;  %v4624_v21 = vsel %vm15554_vm13, %v4619_v0, %v4623_v62  ;;  %v4651_v26 = vrot.slane %v4649_v25, 4  ;;  %v4657_v35 = vrot.slane %v4655_v4, 5  ;;  %v4660_v53 = vshrl.u32 %v4464_v9, 16  ;;  %v4467_v62 = vld [vmem:[#allocation2 + $0x78] sm:$0xf]  ;;  %v14746_v30 = vld [vmem:[#allocation2 + $0x60] sm:$0xff]  }
 0x1a7   : > { %14241 = vmatprep.mubr.msk.bf16.mxu0 %vm1564_vm6, %v14744_v47  ;;  %19461 = vst [vmem:[#allocation31_spill] sm:$0xff] %v16875_v5  ;;  %v14745_v47 = vld [vmem:[#allocation2 + $0x54] sm:$0xff]   ;;  %v4634_v1 = vsel %vm15554_vm13, %v4629_v14, %v4633_v40  ;;  %v14047_v20 = vpop.f32.mrf.mxu0  ;;  %v4642_v63 = vor.u32 %v4641_v51, %v4638_v29  ;;  %v4663_v6 = vshll.u32 %v4464_v9, 16  ;;  %v4669_v36 = vshll.u32 %v16859_v32, 16  ;;  %v16884_v14 = vpop.f32.mrf.mxu1 }
 0x1a8   : > { %v13043_v33 = vcombine.low %v4624_v21, %v4634_v1  ;;  %v4652_v0 = vor.u32 %v4651_v26, %v4647_v28  ;;  %v4662_v60 = vrot.slane %v4660_v53, 4  ;;  %v4673_v11 = vshrl.u32 %v16859_v32, 16  ;;  %19462 = vst [vmem:[#allocation32_spill] sm:$0xff] %v16884_v14  ;;  %v16888_v21 = vld [vmem:[#allocation2 + $0x80] sm:$0x1] }
 0x1a9   : > { %v4679_v18 = vshll.u32 %v16863_v23, 16  ;;  %v1718_v40 = vpop.f32.mrf.mxu0  ;;  %v4643_v9 = vrot.slane %v4642_v63, 4  ;;  %v4665_v29 = vrot.slane %v4663_v6, 5  ;;  %v4671_v4 = vrot.slane %v4669_v36, 5  ;;  %v4470_v6 = vld [vmem:[#allocation2 + $0x84] sm:$0xf] }
 0x1aa   : > { %14276 = vmatmul.mubr.msk.bf16.gmra.mxu1 %vm1564_vm6, %v13043_v33  ;;  %v4653_v51 = vrot.slane %v4652_v0, 4  ;;  %v4675_v1 = vrot.slane %v4673_v11, 4  ;;  %v16892_v53 = vadd.f32 %v16793_v12, %v16839_v3  ;;  %v16898_v33 = vadd.f32 %v16814_v57, %v1705_v56  ;;  %v14085_v11 = vpop.f32.mrf.mxu1  ;;  %v16910_v56 = vld [vmem:[#allocation2 + $0x8c] sm:$0x1] }
 0x1ab   : > { %v4681_v26 = vrot.slane %v4679_v18, 5  ;;  %v14048_v59 = vpop.f32.mrf.mxu0  ;;  %v4648_v25 = vsel %vm15554_vm13, %v4643_v9, %v4647_v28  ;;  %v4666_v50 = vor.u32 %v4665_v29, %v4662_v60  ;;  %v16901_v63 = vadd.f32 %v16832_v49, %v14047_v20  ;;  %v14747_v28 = vld [vmem:[#allocation2 + $0x6c] sm:$0xff]   ;;  %v14748_v9 = vld [vmem:[#allocation2 + $0x78] sm:$0xff]  }
 0x1ac   : > { %19463 = vst [vmem:[#allocation33_spill] sm:$0xff] %v16892_v53  ;;  %19464 = vst [vmem:[#allocation34_spill] sm:$0xff] %v16898_v33  ;;  %v4658_v12 = vsel %vm15554_vm13, %v4653_v51, %v4657_v35  ;;  %v4676_v3 = vor.u32 %v4675_v1, %v4671_v4  ;;  %v4684_v36 = vshrl.u32 %v4467_v62, 16  ;;  %v4687_v0 = vshll.u32 %v4467_v62, 16 }
 0x1ad   : > { %19465 = vst [vmem:[#allocation35_spill] sm:$0xff] %v16901_v63  ;;  %v13044_v60 = vcombine.low %v4648_v25, %v4658_v12  ;;  %v4667_v18 = vrot.slane %v4666_v50, 4  ;;  %v4693_v57 = vshll.u32 %v16882_v27, 16  ;;  %v4697_v49 = vshrl.u32 %v16882_v27, 16  ;;  %v16912_v20 = vpop.f32.mrf.mxu0 }
 0x1ae   : > { %14242 = vmatmul.mubr.msk.bf16.gmra.mxu0 %vm1564_vm6, %v14745_v47  ;;  %v16906_v47 = vld [vmem:[#allocation2 + $0x88] sm:$0xf]  ;;  %19466 = vst [vmem:[#allocation36_spill] sm:$0xff] %v16912_v20  ;;  %v4686_v35 = vrot.slane %v4684_v36, 4  ;;  %v4689_v29 = vrot.slane %v4687_v0, 5  ;;  %v4703_v62 = vshll.u32 %v16888_v21, 16  ;;  %v16919_v1 = vadd.f32 %v16845_v44, %v1718_v40  ;;  %v2026_v0 = vpop.f32.mrf.mxu1 }
 0x1af   : > { %14245 = vmatprep.mubr.msk.bf16.mxu0 %vm1564_vm6, %v14746_v30  ;;  %v4677_v30 = vrot.slane %v4676_v3, 4  ;;  %14279 = vmatprep.mubr.msk.bf16.mxu1 %vm1564_vm6, %v13044_v60  ;;  %v4672_v25 = vsel %vm15554_vm13, %v4667_v18, %v4671_v4  ;;  %v4695_v50 = vrot.slane %v4693_v57, 5  ;;  %v4699_v51 = vrot.slane %v4697_v49, 4  ;;  %v4473_v36 = vld [vmem:[#allocation2 + $0x90] sm:$0xf] }
 0x1b0   : > { %19467 = vst [vmem:[#allocation37_spill] sm:$0xff] %v16919_v1  ;;  %v4690_v8 = vor.u32 %v4689_v29, %v4686_v35  ;;  %v4705_v3 = vrot.slane %v4703_v62, 5  ;;  %v4708_v14 = vshrl.u32 %v4470_v6, 16  ;;  %v4711_v33 = vshll.u32 %v4470_v6, 16  ;;  %v16924_v4 = vld [vmem:[#allocation2 + $0x94] sm:$0xf] }
 0x1b1   : > { %v4682_v12 = vsel %vm15554_vm13, %v4677_v30, %v4681_v26  ;;  %v4700_v63 = vor.u32 %v4699_v51, %v4695_v50  ;;  %v4717_v60 = vshll.u32 %v16906_v47, 16  ;;  %v14051_v53 = vpop.f32.mrf.mxu0  ;;  %v4721_v44 = vshrl.u32 %v16906_v47, 16  ;;  %v16928_v26 = vld [vmem:[#allocation2 + $0x98] sm:$0x1]  ;;  %v4476_v62 = vld [vmem:[#allocation2 + $0x9c] sm:$0xf] }
 0x1b2   : > { %v13045_v20 = vcombine.low %v4672_v25, %v4682_v12  ;;  %v4691_v18 = vrot.slane %v4690_v8, 4  ;;  %v4710_v57 = vrot.slane %v4708_v14, 4  ;;  %v4727_v40 = vshll.u32 %v16910_v56, 16  ;;  %v14086_v25 = vpop.f32.mrf.mxu1  ;;  %v14749_v51 = vld [vmem:[#allocation2 + $0x84] sm:$0xff]  }
 0x1b3   : > { %v4701_v49 = vrot.slane %v4700_v63, 4  ;;  %v4713_v30 = vrot.slane %v4711_v33, 5  ;;  %v4719_v6 = vrot.slane %v4717_v60, 5  ;;  %v16933_v35 = vadd.f32 %v16868_v38, %v14048_v59  ;;  %v1734_v12 = vpop.f32.mrf.mxu0  ;;  %v16942_v59 = vld [vmem:[#allocation2 + $0xa0] sm:$0xf] }
 0x1b4   : > { %14280 = vmatmul.mubr.msk.bf16.gmra.mxu1 %vm1564_vm6, %v13045_v20  ;;  %v4696_v8 = vsel %vm15554_vm13, %v4691_v18, %v4695_v50  ;;  %v4723_v14 = vrot.slane %v4721_v44, 4  ;;  %v4729_v29 = vrot.slane %v4727_v40, 5  ;;  %v16940_v63 = vadd.f32 %v14085_v11, %v14051_v53  ;;  %19470 = vst [vmem:[#allocation40_spill] sm:$0xff] %v16942_v59  ;;  %v16947_v1 = vld [vmem:[#allocation2 + $0xa4] sm:$0x1]  ;;  %v14750_v11 = vld [vmem:[#allocation2 + $0x90] sm:$0xff]  }
 0x1b5   : > { %19468 = vst [vmem:[#allocation38_spill] sm:$0xff] %v16933_v35  ;;  %v4714_v20 = vor.u32 %v4713_v30, %v4710_v57  ;;  %v4732_v33 = vshrl.u32 %v4473_v36, 16  ;;  %v4735_v60 = vshll.u32 %v4473_v36, 16  ;;  %v4741_v50 = vshll.u32 %v16924_v4, 16  ;;  %19471 = vst [vmem:[#allocation41_spill] sm:$0xff] %v16947_v1  ;;  %v16952_v30 = vpop.f32.mrf.mxu1 }
 0x1b6   : > { %14246 = vmatmul.mubr.msk.bf16.gmra.mxu0 %vm1564_vm6, %v14747_v28  ;;  %v4706_v28 = vsel %vm15554_vm13, %v4701_v49, %v4705_v3  ;;  %19469 = vst [vmem:[#allocation39_spill] sm:$0xff] %v16940_v63  ;;  %v4745_v40 = vshrl.u32 %v16924_v4, 16  ;;  %v4751_v35 = vshll.u32 %v16928_v26, 16  ;;  %v16950_v49 = vadd.f32 %v2026_v0, %v1734_v12  ;;  %19473 = vst [vmem:[#allocation43_spill] sm:$0xff] %v16952_v30 }
 0x1b7   : > { %14249 = vmatprep.mubr.msk.bf16.mxu0 %vm1564_vm6, %v14748_v9  ;;  %v13046_v38 = vcombine.low %v4696_v8, %v4706_v28  ;;  %v4724_v9 = vor.u32 %v4723_v14, %v4719_v6  ;;  %v4715_v18 = vrot.slane %v4714_v20, 4  ;;  %v4734_v44 = vrot.slane %v4732_v33, 4  ;;  %v4479_v20 = vld [vmem:[#allocation2 + $0xa8] sm:$0xf] }
 0x1b8   : > { %v4737_v3 = vrot.slane %v4735_v60, 5  ;;  %v4743_v57 = vrot.slane %v4741_v50, 5  ;;  %19472 = vst [vmem:[#allocation42_spill] sm:$0xff] %v16950_v49  ;;  %v4747_v8 = vrot.slane %v4745_v40, 4  ;;  %v4753_v14 = vrot.slane %v4751_v35, 5  ;;  %v14052_v60 = vpop.f32.mrf.mxu0 }
 0x1b9   : > { %14283 = vmatprep.mubr.msk.bf16.mxu1 %vm1564_vm6, %v13046_v38  ;;  %v4725_v53 = vrot.slane %v4724_v9, 4  ;;  %v4720_v36 = vsel %vm15554_vm13, %v4715_v18, %v4719_v6  ;;  %v4756_v28 = vshrl.u32 %v4476_v62, 16  ;;  %v4759_v38 = vshll.u32 %v4476_v62, 16  ;;  %v16959_v50 = vld [vmem:[#allocation2 + $0xac] sm:$0xf] }
 0x1ba   : > { %v4738_v63 = vor.u32 %v4737_v3, %v4734_v44  ;;  %v4765_v9 = vshll.u32 %v16942_v59, 16  ;;  %19474 = vst [vmem:[#allocation44_spill] sm:$0xff] %v16959_v50  ;;  %v4748_v12 = vor.u32 %v4747_v8, %v4743_v57  ;;  %v4769_v6 = vshrl.u32 %v16942_v59, 16  ;;  %v16965_v44 = vld [vmem:[#allocation2 + $0xb0] sm:$0x1] }
 0x1bb   : > { %v4730_v33 = vsel %vm15554_vm13, %v4725_v53, %v4729_v29  ;;  %v4758_v30 = vrot.slane %v4756_v28, 4  ;;  %v4761_v18 = vrot.slane %v4759_v38, 5  ;;  %v4775_v29 = vshll.u32 %v16947_v1, 16  ;;  %19475 = vst [vmem:[#allocation45_spill] sm:$0xff] %v16965_v44  ;;  %v14751_v53 = vld [vmem:[#allocation2 + $0x9c] sm:$0xff]  }
 0x1bc   : > { %v13047_v0 = vcombine.low %v4720_v36, %v4730_v33  ;;  %v4739_v35 = vrot.slane %v4738_v63, 4  ;;  %v4767_v40 = vrot.slane %v4765_v9, 5  ;;  %v4749_v3 = vrot.slane %v4748_v12, 4  ;;  %v4482_v8 = vld [vmem:[#allocation2 + $0xb4] sm:$0xf] }
 0x1bd   : > { %v16968_v36 = vadd.f32 %v14086_v25, %v14052_v60  ;;  %v4777_v63 = vrot.slane %v4775_v29, 5  ;;  %v4780_v33 = vshrl.u32 %v4479_v20, 16  ;;  %v16972_v9 = vld [vmem:[#allocation2 + $0xb8] sm:$0xf]  ;;  %v4789_v12 = vshll.u32 %v16959_v50, 16  ;;  %v14752_v60 = vld [vmem:[#allocation2 + $0xa8] sm:$0xff]  }
 0x1be   : > { %14250 = vmatmul.mubr.msk.bf16.gmra.mxu0 %vm1564_vm6, %v14749_v51  ;;  %v14089_v62 = vpop.f32.mrf.mxu1  ;;  %14284 = vmatmul.mubr.msk.bf16.gmra.mxu1 %vm1564_vm6, %v13047_v0  ;;  %v4771_v51 = vrot.slane %v4769_v6, 4  ;;  %v4744_v28 = vsel %vm15554_vm13, %v4739_v35, %v4743_v57  ;;  %19477 = vst [vmem:[#allocation47_spill] sm:$0xff] %v16972_v9  ;;  %v4754_v49 = vsel %vm15554_vm13, %v4749_v3, %v4753_v14  ;;  %v4783_v0 = vshll.u32 %v4479_v20, 16  ;;  %v16978_v57 = vld [vmem:[#allocation2 + $0xbc] sm:$0x1]  ;;  %v16980_v35 = vpop.f32.mrf.mxu0 }
 0x1bf   : > { %14253 = vmatprep.mubr.msk.bf16.mxu0 %vm1564_vm6, %v14750_v11  ;;  %19476 = vst [vmem:[#allocation46_spill] sm:$0xff] %v16968_v36  ;;  %v4762_v11 = vor.u32 %v4761_v18, %v4758_v30  ;;  %v13048_v6 = vcombine.low %v4744_v28, %v4754_v49  ;;  %v4782_v36 = vrot.slane %v4780_v33, 4  ;;  %v4793_v5 = vshrl.u32 %v16959_v50, 16  ;;  %19478 = vst [vmem:[#allocation48_spill] sm:$0xff] %v16978_v57  ;;  %v4485_v14 = vld [vmem:[#allocation2 + $0xc0] sm:$0xf] }
 0x1c0   : > { %v2042_v38 = vpop.f32.mrf.mxu1  ;;  %v4772_v1 = vor.u32 %v4771_v51, %v4767_v40  ;;  %19479 = vst [vmem:[#allocation49_spill] sm:$0xff] %v16980_v35  ;;  %v4785_v18 = vrot.slane %v4783_v0, 5  ;;  %v4791_v29 = vrot.slane %v4789_v12, 5  ;;  %v4799_v59 = vshll.u32 %v16965_v44, 16 }
 0x1c1   : > { %v4763_v25 = vrot.slane %v4762_v11, 4  ;;  %14287 = vmatprep.mubr.msk.bf16.mxu1 %vm1564_vm6, %v13048_v6  ;;  %v4795_v20 = vrot.slane %v4793_v5, 4  ;;  %v4804_v3 = vshrl.u32 %v4482_v8, 16  ;;  %v4807_v51 = vshll.u32 %v4482_v8, 16  ;;  %v14753_v8 = vld [vmem:[#allocation2 + $0xb4] sm:$0xff]  }
 0x1c2   : > { %v4773_v30 = vrot.slane %v4772_v1, 4  ;;  %v14090_v28 = vpop.f32.mrf.mxu1  ;;  %v4786_v11 = vor.u32 %v4785_v18, %v4782_v36  ;;  %v4801_v33 = vrot.slane %v4799_v59, 5  ;;  %v4813_v0 = vshll.u32 %v16972_v9, 16  ;;  %v16995_v36 = vld [vmem:[#allocation2 + $0xc8] sm:$0x1] }
 0x1c3   : > { %v4768_v49 = vsel %vm15554_vm13, %v4763_v25, %v4767_v40  ;;  %v4796_v6 = vor.u32 %v4795_v20, %v4791_v29  ;;  %v4806_v35 = vrot.slane %v4804_v3, 4  ;;  %v4809_v44 = vrot.slane %v4807_v51, 5  ;;  %v16991_v40 = vld [vmem:[#allocation2 + $0xc4] sm:$0xf]  ;;  %19481 = vst [vmem:[#allocation51_spill] sm:$0xff] %v16995_v36 }
 0x1c4   : > { %v4778_v1 = vsel %vm15554_vm13, %v4773_v30, %v4777_v63  ;;  %19480 = vst [vmem:[#allocation50_spill] sm:$0xff] %v16991_v40  ;;  %v4787_v25 = vrot.slane %v4786_v11, 4  ;;  %v4815_v50 = vrot.slane %v4813_v0, 5  ;;  %v4823_v63 = vshll.u32 %v16978_v57, 16  ;;  %v17000_v18 = vpop.f32.mrf.mxu1  ;;  %v4488_v20 = vld [vmem:[#allocation2 + $0xcc] sm:$0xf] }
 0x1c5   : > { %v13049_v12 = vcombine.low %v4768_v49, %v4778_v1  ;;  %v4810_v30 = vor.u32 %v4809_v44, %v4806_v35  ;;  %19483 = vst [vmem:[#allocation53_spill] sm:$0xff] %v17000_v18  ;;  %v4828_v49 = vshrl.u32 %v4485_v14, 16  ;;  %v14754_v0 = vld [vmem:[#allocation2 + $0xc0] sm:$0xff]   ;;  %v4831_v57 = vshll.u32 %v4485_v14, 16  ;;  %v17008_v44 = vld [vmem:[#allocation2 + $0xd0] sm:$0xf] }
 0x1c6   : > { %14254 = vmatmul.mubr.msk.bf16.gmra.mxu0 %vm1564_vm6, %v14751_v53  ;;  %v4817_v53 = vshrl.u32 %v16972_v9, 16  ;;  %v4792_v3 = vsel %vm15554_vm13, %v4787_v25, %v4791_v29  ;;  %v4825_v11 = vrot.slane %v4823_v63, 5  ;;  %19485 = vst [vmem:[#allocation55_spill] sm:$0xff] %v17008_v44  ;;  %v4837_v29 = vshll.u32 %v16991_v40, 16  ;;  %v17017_v63 = vld [vmem:[#allocation2 + $0xd4] sm:$0x1] }
 0x1c7   : > { %14257 = vmatprep.mubr.msk.bf16.mxu0 %vm1564_vm6, %v14752_v60  ;;  %v14055_v5 = vpop.f32.mrf.mxu0  ;;  %14288 = vmatmul.mubr.msk.bf16.gmra.mxu1 %vm1564_vm6, %v13049_v12  ;;  %v4797_v60 = vrot.slane %v4796_v6, 4  ;;  %v4830_v6 = vrot.slane %v4828_v49, 4  ;;  %v4852_v49 = vshrl.u32 %v4488_v20, 16  ;;  %vm573_vm1 = vcmask 122880  }
 0x1c8   : > { %v16998_v59 = vadd.f32 %v14089_v62, %v14055_v5  ;;  %v4819_v1 = vrot.slane %v4817_v53, 4  ;;  %v4811_v62 = vrot.slane %v4810_v30, 4  ;;  %v4839_v30 = vrot.slane %v4837_v29, 5  ;;  %vm17801_vm2 = vmand %vm573_vm1, %vm637_vm7 }
 0x1c9   : > { %v1750_v51 = vpop.f32.mrf.mxu0  ;;  %v4802_v9 = vsel %vm15554_vm13, %v4797_v60, %v4801_v33  ;;  %v4841_v33 = vshrl.u32 %v16991_v40, 16  ;;  %v5169_v60 = vld [vmem:[#allocation2 + $0x18] sm:$0xe]  ;;  %v4865_v29 = vshrl.u32 %v17008_v44, 16  ;;  %vm571_vm4 = vcmask 125952  }
 0x1ca   : > { %19482 = vst [vmem:[#allocation52_spill] sm:$0xff] %v16998_v59  ;;  %v17006_v12 = vadd.f32 %v2042_v38, %v1750_v51  ;;  %v13050_v35 = vcombine.low %v4792_v3, %v4802_v9  ;;  %v4820_v5 = vor.u32 %v4819_v1, %v4815_v50  ;;  %v4833_v59 = vrot.slane %v4831_v57, 5  ;;  %v5170_v1 = vld [vmem:[#allocation2 + $0x24] sm:$0xe] }
 0x1cb   : > { %v14056_v18 = vpop.f32.mrf.mxu0  ;;  %v4816_v25 = vsel %vm15554_vm13, %v4811_v62, %v4815_v50  ;;  %v4847_v38 = vshll.u32 %v16995_v36, 16  ;;  %v4855_v51 = vshll.u32 %v4488_v20, 16  ;;  %v13071_v40 = vrot.slane %v5170_v1, 9 }
 0x1cc   : > { %19484 = vst [vmem:[#allocation54_spill] sm:$0xff] %v17006_v12  ;;  %v17013_v53 = vadd.f32 %v14090_v28, %v14056_v18  ;;  %v14093_v14 = vpop.f32.mrf.mxu1  ;;  %14291 = vmatprep.mubr.msk.bf16.mxu1 %vm1564_vm6, %v13050_v35  ;;  %v4821_v9 = vrot.slane %v4820_v5, 4  ;;  %v4834_v57 = vor.u32 %v4833_v59, %v4830_v6  ;;  %v4843_v28 = vrot.slane %v4841_v33, 4 }
 0x1cd   : > { %v4849_v18 = vrot.slane %v4847_v38, 5  ;;  %v4861_v35 = vshll.u32 %v17008_v44, 16  ;;  %v4857_v6 = vrot.slane %v4855_v51, 5  ;;  %v17027_v12 = vpop.f32.mrf.mxu0  ;;  %v4871_v38 = vshll.u32 %v17017_v63, 16 }
 0x1ce   : > { %19486 = vst [vmem:[#allocation56_spill] sm:$0xff] %v17013_v53  ;;  %14258 = vmatmul.mubr.msk.bf16.gmra.mxu0 %vm1564_vm6, %v14753_v8  ;;  %v2058_v3 = vpop.f32.mrf.mxu1  ;;  %v4826_v62 = vsel %vm15554_vm13, %v4821_v9, %v4825_v11  ;;  %v4835_v53 = vrot.slane %v4834_v57, 4  ;;  %v4854_v8 = vrot.slane %v4852_v49, 4  ;;  %v4844_v59 = vor.u32 %v4843_v28, %v4839_v30  ;;  %19487 = vst [vmem:[#allocation57_spill] sm:$0xff] %v17027_v12  ;;  %v14924_v28 = vld [vmem:[#allocation2 + $0x1c] sm:$0xf] }
 0x1cf   : > { %14261 = vmatprep.mubr.msk.bf16.mxu0 %vm1564_vm6, %v14754_v0  ;;  %v13051_v5 = vcombine.low %v4816_v25, %v4826_v62  ;;  %v14755_v0 = vld [vmem:[#allocation2 + $0xcc] sm:$0xff]   ;;  %v4863_v33 = vrot.slane %v4861_v35, 5  ;;  %v13070_v11 = vrot.slane %v5169_v60, 9  ;;  %v4867_v25 = vrot.slane %v4865_v29, 4  ;;  %v14925_v12 = vld [vmem:[#allocation2 + $0x20] sm:$0x1] }
 0x1d0   : > { %v14094_v50 = vpop.f32.mrf.mxu1  ;;  %v4840_v20 = vsel %vm15554_vm13, %v4835_v53, %v4839_v30  ;;  %v4845_v9 = vrot.slane %v4844_v59, 4  ;;  %v4858_v57 = vor.u32 %v4857_v6, %v4854_v8  ;;  %v5235_v51 = vrot.slane %v14924_v28, 5  ;;  %v5171_v62 = vld [vmem:[#allocation2 + $0x30] sm:$0xe]  ;;  %v17037_v35 = vld [vmem:[#allocation2 + $0x3c] sm:$0xe] }
 0x1d1   : > { %14292 = vmatmul.mubr.msk.bf16.gmra.mxu1 %vm1564_vm6, %v13051_v5  ;;  %v4873_v44 = vrot.slane %v4871_v38, 5  ;;  %v5238_v36 = vrot.slane %v14925_v12, 5  ;;  %v19488_v53 = vrot.slane %v16723_v37, 5  ;;  %v4868_v8 = vor.u32 %v4867_v25, %v4863_v33 }
 0x1d2   : > { %v17033_v49 = vpop.f32.mrf.mxu1  ;;  %v4850_v60 = vsel %vm15554_vm13, %v4845_v9, %v4849_v18  ;;  %v4859_v5 = vrot.slane %v4858_v57, 4  ;;  %v5236_v59 = vsel %vm15899_vm3, %v13070_v11, %v5235_v51  ;;  %v5237_v1 = vrot.slane %v5235_v51, 4  ;;  %v5173_v9 = vld [vmem:[#allocation2 + $0x48] sm:$0xe]  ;;  %v5174_v51 = vld [vmem:[#allocation2 + $0x54] sm:$0xe] }
 0x1d3   : > { %v5244_v30 = vrot.slane %v19488_v53, 4  ;;  %v13052_v12 = vcombine.low %v4840_v20, %v4850_v60  ;;  %v19489_v38 = vmov %v19488_v53  ;;  %v19490_v53 = vrot.slane %v16736_v7, 5  ;;  %v14926_v60 = vld [vmem:[#allocation2 + $0x34] sm:$0xf] }
 0x1d4   : > { %v17043_v6 = vpop.f32.mrf.mxu1  ;;  %v5243_v28 = vsel %vm15899_vm3, %v13071_v40, %v19489_v38  ;;  %v4864_v11 = vsel %vm15554_vm13, %v4859_v5, %v4863_v33  ;;  %v4869_v25 = vrot.slane %v4868_v8, 4  ;;  %v5239_v7 = vsel %vm15899_vm3, %v5237_v1, %v5238_v36  ;;  %v14927_v38 = vld [vmem:[#allocation2 + $0x38] sm:$0x1] }
 0x1d5   : > { %v14059_v29 = vpop.f32.mrf.mxu0  ;;  %v5246_v18 = vsel %vm15899_vm3, %v5244_v30, %v19490_v53  ;;  %14295 = vmatprep.mubr.msk.bf16.mxu1 %vm1564_vm6, %v13052_v12  ;;  %v13072_v40 = vrot.slane %v5171_v62, 9  ;;  %v5249_v30 = vrot.slane %v14926_v60, 5  ;;  %v13087_v5 = vcombine.low %v5236_v59, %v5239_v7  ;;  %v14928_v62 = vld [vmem:[#allocation2 + $0x40] sm:$0xf] }
 0x1d6   : > { %14262 = vmatmul.mubr.msk.bf16.gmra.mxu0 %vm1564_vm6, %v14755_v0  ;;  %v17054_v57 = vadd.f32 %v14093_v14, %v14059_v29  ;;  %v13088_v0 = vcombine.low %v5243_v28, %v5246_v18  ;;  %v17058_v20 = vpop.f32.mrf.mxu1  ;;  %v5252_v14 = vrot.slane %v14927_v38, 5  ;;  %v4874_v33 = vsel %vm15554_vm13, %v4869_v25, %v4873_v44 }
 0x1d7   : > { %v1766_v37 = vpop.f32.mrf.mxu0  ;;  %v13073_v28 = vrot.slane %v17037_v35, 9  ;;  %v13053_v53 = vcombine.low %v4864_v11, %v4874_v33  ;;  %v5250_v18 = vsel %vm15899_vm3, %v13072_v40, %v5249_v30  ;;  %v5251_v36 = vrot.slane %v5249_v30, 4  ;;  %14301 = vmatprep.mubr.msk.bf16.mxu0 %vm1564_vm6, %v13087_v5  ;;  %v5176_v40 = vld [vmem:[#allocation2 + $0x6c] sm:$0xe] }
 0x1d8   : > { %v17063_v29 = vadd.f32 %v2058_v3, %v1766_v37  ;;  %v14134_v8 = vpop.f32.mrf.mxu1  ;;  %v5256_v1 = vrot.slane %v14928_v62, 5  ;;  %v13074_v37 = vrot.slane %v5173_v9, 9  ;;  %v5263_v44 = vrot.slane %v16787_v48, 5 }
 0x1d9   : > { %v14060_v12 = vpop.f32.mrf.mxu0  ;;  %v5266_v59 = vrot.slane %v16791_v31, 5  ;;  %14296 = vmatmul.mubr.msk.bf16.gmra.mxu1 %vm1564_vm6, %v13053_v53  ;;  %v5253_v11 = vsel %vm15899_vm3, %v5251_v36, %v5252_v14  ;;  %v13075_v7 = vrot.slane %v5174_v51, 9  ;;  %v5273_v48 = vrot.slane %v16812_v55, 5 }
 0x1da   : > { %v17070_v60 = vadd.f32 %v14094_v50, %v14060_v12  ;;  %v17073_v3 = vpop.f32.mrf.mxu1  ;;  %v5258_v25 = vrot.slane %v5256_v1, 4  ;;  %v5175_v50 = vld [vmem:[#allocation2 + $0x60] sm:$0xe]  ;;  %v13089_v30 = vcombine.low %v5250_v18, %v5253_v11  ;;  %v5264_v9 = vsel %vm15899_vm3, %v13074_v37, %v5263_v44 }
 0x1db   : > { %v17078_v35 = vpop.f32.mrf.mxu0  ;;  %v5265_v33 = vrot.slane %v5263_v44, 4  ;;  %v5287_v31 = vrot.slane %v16863_v23, 5  ;;  %v5270_v53 = vrot.slane %v16810_v34, 5  ;;  %v5257_v51 = vsel %vm15899_vm3, %v13073_v28, %v5256_v1 }
 0x1dc   : > { %v14137_v38 = vpop.f32.mrf.mxu1  ;;  %v19491_v12 = vrot.slane %v16775_v42, 5  ;;  %v5277_v62 = vrot.slane %v16837_v43, 5  ;;  %v13076_v1 = vrot.slane %v5175_v50, 9  ;;  %v13077_v44 = vrot.slane %v5176_v40, 9 }
 0x1dd   : > { %v14099_v5 = vpop.f32.mrf.mxu0  ;;  %v5267_v23 = vsel %vm15899_vm3, %v5265_v33, %v5266_v59  ;;  %v5271_v34 = vsel %vm15899_vm3, %v13075_v7, %v5270_v53  ;;  %v5284_v7 = vrot.slane %v16859_v32, 5  ;;  %vm6414_vm5 = vcmask 123904  }
 0x1de   : > { %14302 = vmatmul.mubr.msk.bf16.vlgmr.msra.gmra.mxu0 %vm1564_vm6, %v13088_v0  ;;  %v2500_v14 = vadd.f32 %v14099_v5, %v16721_v10  ;;  %v5260_v18 = vsel %vm15899_vm3, %v5258_v25, %v19491_v12  ;;  %v2745_v55 = vpop.f32.mrf.mxu1  ;;  %v13091_v0 = vcombine.low %v5264_v9, %v5267_v23  ;;  %v5272_v10 = vrot.slane %v5270_v53, 4  ;;  %v5178_v9 = vld [vmem:[#allocation2 + $0x84] sm:$0xe] }
 0x1df   : > { %14305 = vmatprep.mubr.msk.bf16.mxu0 %vm1564_vm6, %v13089_v30  ;;  %v2371_v36 = vpop.f32.mrf.mxu0  ;;  %v13090_v25 = vcombine.low %v5257_v51, %v5260_v18  ;;  %v5280_v30 = vrot.slane %v16843_v13, 5  ;;  %v5279_v40 = vrot.slane %v5277_v62, 4  ;;  %v17119_v5 = vsel %vm15899_vm3, %v13077_v44, %v5284_v7 }
 0x1e0   : > { %v2498_v37 = vadd.f32 %v2371_v36, %v16734_v17  ;;  %v17103_v28 = vadd.f32 %v17043_v6, %v2500_v14  ;;  %v14138_v42 = vpop.f32.mrf.mxu1  ;;  %v5274_v59 = vsel %vm15899_vm3, %v5272_v10, %v5273_v48  ;;  %v5286_v48 = vrot.slane %v5284_v7, 4 }
 0x1e1   : > { %v14100_v11 = vpop.f32.mrf.mxu0  ;;  %v13092_v33 = vcombine.low %v5271_v34, %v5274_v59  ;;  %v5298_v14 = vrot.slane %v16906_v47, 5  ;;  %v5301_v51 = vrot.slane %v16910_v56, 5  ;;  %v5281_v34 = vsel %vm15899_vm3, %v5279_v40, %v5280_v30 }
 0x1e2   : > { %v2501_v43 = vadd.f32 %v14100_v11, %v16758_v22  ;;  %v17111_v17 = vadd.f32 %v17058_v20, %v2498_v37  ;;  %v17113_v6 = vpop.f32.mrf.mxu1  ;;  %v5288_v22 = vsel %vm15899_vm3, %v5286_v48, %v5287_v31  ;;  %v13079_v20 = vrot.slane %v5178_v9, 9  ;;  %v5177_v37 = vld [vmem:[#allocation2 + $0x78] sm:$0xe] }
 0x1e3   : > { %v17115_v50 = vpop.f32.mrf.mxu0  ;;  %v13094_v23 = vcombine.low %v17119_v5, %v5288_v22  ;;  %v5291_v31 = vrot.slane %v16882_v27, 5  ;;  %v5300_v56 = vrot.slane %v5298_v14, 4  ;;  %v13078_v30 = vrot.slane %v5177_v37, 9 }
 0x1e4   : > { %v17121_v13 = vadd.f32 %v14134_v8, %v2501_v43  ;;  %v14141_v32 = vpop.f32.mrf.mxu1  ;;  %v5278_v8 = vsel %vm15899_vm3, %v13076_v1, %v5277_v62  ;;  %v17138_v47 = vsel %vm15899_vm3, %v13079_v20, %v5298_v14  ;;  %v1966_v62 = vadd.f32 %v16647_v2, %v16702_v15 }
 0x1e5   : > { %v14103_v53 = vpop.f32.mrf.mxu0  ;;  %v17147_v44 = vsel %vm15899_vm3, %v5300_v56, %v5301_v51  ;;  %v5293_v7 = vrot.slane %v5291_v31, 4  ;;  %v5294_v2 = vrot.slane %v16888_v21, 5  ;;  %v5292_v48 = vsel %vm15899_vm3, %v13078_v30, %v5291_v31 }
 0x1e6   : > { %14306 = vmatmul.mubr.msk.bf16.gmra.mxu0 %vm1564_vm6, %v13090_v25  ;;  %v2504_v12 = vadd.f32 %v14103_v53, %v16768_v41  ;;  %v2761_v18 = vpop.f32.mrf.mxu1  ;;  %v13093_v25 = vcombine.low %v5278_v8, %v5281_v34  ;;  %v5305_v53 = vrot.slane %v16924_v4, 5  ;;  %vm7377_vm10 = vcmask 1043459  }
 0x1e7   : > { %14309 = vmatprep.mubr.msk.bf16.mxu0 %vm1564_vm6, %v13091_v0  ;;  %v2387_v36 = vpop.f32.mrf.mxu0  ;;  %v5295_v21 = vsel %vm15899_vm3, %v5293_v7, %v5294_v2  ;;  %v5181_v7 = vld [vmem:[#allocation2 + $0xa8] sm:$0xe]  ;;  %vm7379_vm11 = vcmask 1044484   ;;  %vm7381_vm12 = vcmask 1045509   ;;  %vm7383_vm14 = vcmask 1046534  }
 0x1e8   : > { %v2502_v41 = vadd.f32 %v2387_v36, %v16773_v39  ;;  %v17141_v0 = vadd.f32 %v14137_v38, %v2504_v12  ;;  %v14142_v10 = vpop.f32.mrf.mxu1  ;;  %v13096_v39 = vcombine.low %v17138_v47, %v17147_v44  ;;  %v13095_v8 = vcombine.low %v5292_v48, %v5295_v21  ;;  %v19496_v48 = vld [vmem:[#allocation33_spill] sm:$0xff] }
 0x1e9   : > { %v14104_v1 = vpop.f32.mrf.mxu0  ;;  %v5307_v4 = vrot.slane %v5305_v53, 4  ;;  %vm7385_vm15 = vcmask 1047559  }
 0x1ea   : > { %v2505_v27 = vadd.f32 %v14104_v1, %v16801_v45  ;;  %v17150_v11 = vadd.f32 %v2745_v55, %v2502_v41  ;;  %v17152_v59 = vpop.f32.mrf.mxu1 }
 0x1eb   : > { %v2390_v38 = vpop.f32.mrf.mxu0 }
 0x1ec   : > { %v17157_v15 = vadd.f32 %v2390_v38, %v1966_v62  ;;  %v17159_v9 = vadd.f32 %v14138_v42, %v2505_v27  ;;  %v14145_v43 = vpop.f32.mrf.mxu1  ;;  %v19493_v27 = vld [vmem:[#allocation44_spill] sm:$0xff]  ;;  %v19494_v38 = vld [vmem:[#allocation31_spill] sm:$0xff] }
 0x1ed   : > { %v14107_v40 = vpop.f32.mrf.mxu0 }
 0x1ee   : > { %14310 = vmatmul.mubr.msk.bf16.gmra.mxu0 %vm1564_vm6, %v13092_v33  ;;  %v2508_v45 = vadd.f32 %v14107_v40, %v16807_v52  ;;  %v2777_v55 = vpop.f32.mrf.mxu1  ;;  %v5179_v33 = vld [vmem:[#allocation2 + $0x90] sm:$0xe]  ;;  %v1982_v52 = vadd.f32 %v16742_v58, %v16783_v61 }
 0x1ef   : > { %14313 = vmatprep.mubr.msk.bf16.mxu0 %vm1564_vm6, %v13093_v25  ;;  %v2403_v5 = vpop.f32.mrf.mxu0  ;;  %v13080_v31 = vrot.slane %v5179_v33, 9  ;;  %v5319_v25 = vrot.slane %v19493_v27, 5  ;;  %v5182_v27 = vld [vmem:[#allocation2 + $0xb4] sm:$0xe] }
 0x1f0   : > { %v2506_v42 = vadd.f32 %v2403_v5, %v16824_v19  ;;  %v17170_v22 = vadd.f32 %v14141_v32, %v2508_v45  ;;  %v14146_v20 = vpop.f32.mrf.mxu1  ;;  %v5308_v19 = vrot.slane %v16928_v26, 5  ;;  %v19495_v45 = vld [vmem:[#allocation41_spill] sm:$0xff] }
 0x1f1   : > { %v14108_v14 = vpop.f32.mrf.mxu0  ;;  %v5306_v26 = vsel %vm15899_vm3, %v13080_v31, %v5305_v53  ;;  %v5315_v5 = vrot.slane %v19495_v45, 5  ;;  %v19498_v31 = vld [vmem:[#allocation34_spill] sm:$0xff] }
 0x1f2   : > { %v2509_v51 = vadd.f32 %v14108_v14, %v16851_v54  ;;  %v17175_v12 = vadd.f32 %v2761_v18, %v2506_v42  ;;  %v17177_v36 = vpop.f32.mrf.mxu1  ;;  %v5180_v54 = vld [vmem:[#allocation2 + $0x9c] sm:$0xe]  ;;  %v19492_v18 = vld [vmem:[#allocation40_spill] sm:$0xff] }
 0x1f3   : > { %v2406_v34 = vpop.f32.mrf.mxu0  ;;  %v5312_v62 = vrot.slane %v19492_v18, 5  ;;  %v13081_v40 = vrot.slane %v5180_v54, 9  ;;  %v19500_v18 = vld [vmem:[#allocation35_spill] sm:$0xff] }
 0x1f4   : > { %v17180_v32 = vadd.f32 %v2406_v34, %v1982_v52  ;;  %v17182_v56 = vadd.f32 %v14142_v10, %v2509_v51  ;;  %v14149_v41 = vpop.f32.mrf.mxu1  ;;  %v5309_v10 = vsel %vm15899_vm3, %v5307_v4, %v5308_v19  ;;  %v13082_v51 = vrot.slane %v5181_v7, 9  ;;  %v19497_v34 = vld [vmem:[#allocation45_spill] sm:$0xff] }
 0x1f5   : > { %v14111_v37 = vpop.f32.mrf.mxu0  ;;  %v13097_v53 = vcombine.low %v5306_v26, %v5309_v10  ;;  %v5314_v14 = vrot.slane %v5312_v62, 4  ;;  %v5313_v26 = vsel %vm15899_vm3, %v13081_v40, %v5312_v62  ;;  %v19502_v7 = vld [vmem:[#allocation37_spill] sm:$0xff]  ;;  %v5183_v62 = vld [vmem:[#allocation2 + $0xc0] sm:$0xe] }
 0x1f6   : > { %14314 = vmatmul.mubr.msk.bf16.gmra.mxu0 %vm1564_vm6, %v13094_v23  ;;  %v2512_v58 = vadd.f32 %v14111_v37, %v16857_v16  ;;  %v2793_v61 = vpop.f32.mrf.mxu1  ;;  %v5320_v47 = vsel %vm15899_vm3, %v13082_v51, %v5319_v25 }
 0x1f7   : > { %14317 = vmatprep.mubr.msk.bf16.mxu0 %vm1564_vm6, %v13095_v8  ;;  %v2419_v1 = vpop.f32.mrf.mxu0  ;;  %v5321_v8 = vrot.slane %v5319_v25, 4 }
 0x1f8   : > { %v2510_v30 = vadd.f32 %v2419_v1, %v19494_v38  ;;  %v17194_v23 = vadd.f32 %v14145_v43, %v2512_v58  ;;  %v14150_v16 = vpop.f32.mrf.mxu1  ;;  %v5322_v43 = vrot.slane %v19497_v34, 5 }
 0x1f9   : > { %v14112_v2 = vpop.f32.mrf.mxu0 }
 0x1fa   : > { %v2513_v21 = vadd.f32 %v14112_v2, %v19496_v48  ;;  %v17198_v42 = vadd.f32 %v2777_v55, %v2510_v30  ;;  %v17200_v33 = vpop.f32.mrf.mxu1  ;;  %v19499_v55 = vld [vmem:[#allocation47_spill] sm:$0xff]  ;;  %v5323_v44 = vsel %vm15899_vm3, %v5321_v8, %v5322_v43  ;;  %v19504_v8 = vld [vmem:[#allocation48_spill] sm:$0xff] }
 0x1fb   : > { %v2422_v52 = vpop.f32.mrf.mxu0  ;;  %v5326_v54 = vrot.slane %v19499_v55, 5  ;;  %v13099_v25 = vcombine.low %v5320_v47, %v5323_v44  ;;  %v5329_v43 = vrot.slane %v19504_v8, 5  ;;  %v19505_v55 = vld [vmem:[#allocation51_spill] sm:$0xff] }
 0x1fc   : > { %v17204_v4 = vadd.f32 %v2422_v52, %v19498_v31  ;;  %v17206_v19 = vadd.f32 %v14146_v20, %v2513_v21  ;;  %v14153_v37 = vpop.f32.mrf.mxu1  ;;  %v5316_v20 = vsel %vm15899_vm3, %v5314_v14, %v5315_v5  ;;  %v13083_v5 = vrot.slane %v5182_v27, 9  ;;  %v19503_v14 = vld [vmem:[#allocation38_spill] sm:$0xff]  ;;  %v19506_v27 = vld [vmem:[#allocation39_spill] sm:$0xff] }
 0x1fd   : > { %v14115_v58 = vpop.f32.mrf.mxu0  ;;  %v13098_v21 = vcombine.low %v5313_v26, %v5316_v20 }
 0x1fe   : > { %14318 = vmatmul.mubr.msk.bf16.gmra.mxu0 %vm1564_vm6, %v13096_v39  ;;  %v2516_v1 = vadd.f32 %v14115_v58, %v19500_v18  ;;  %v2809_v10 = vpop.f32.mrf.mxu1  ;;  %v19501_v39 = vld [vmem:[#allocation50_spill] sm:$0xff]  ;;  %v13084_v58 = vrot.slane %v5183_v62, 9  ;;  %v5336_v18 = vrot.slane %v19505_v55, 5 }
 0x1ff   : > { %14321 = vmatprep.mubr.msk.bf16.mxu0 %vm1564_vm6, %v13097_v53  ;;  %v2435_v38 = vpop.f32.mrf.mxu0  ;;  %v5333_v30 = vrot.slane %v19501_v39, 5  ;;  %v5328_v53 = vrot.slane %v5326_v54, 4  ;;  %v5184_v39 = vld [vmem:[#allocation2 + $0xcc] sm:$0xe] }
 0x200   : > { %v2514_v2 = vadd.f32 %v2435_v38, %v19502_v7  ;;  %v17225_v45 = vadd.f32 %v14149_v41, %v2516_v1  ;;  %v14154_v48 = vpop.f32.mrf.mxu1  ;;  %v5327_v38 = vsel %vm15899_vm3, %v13083_v5, %v5326_v54  ;;  %v19507_v7 = vld [vmem:[#allocation55_spill] sm:$0xff]  ;;  %v13085_v8 = vrot.slane %v5184_v39, 9 }
 0x201   : > { %v14116_v40 = vpop.f32.mrf.mxu0  ;;  %v5335_v41 = vrot.slane %v5333_v30, 4  ;;  %v5330_v47 = vsel %vm15899_vm3, %v5328_v53, %v5329_v43  ;;  %v5334_v62 = vsel %vm15899_vm3, %v13084_v58, %v5333_v30  ;;  %v5343_v53 = vrot.slane %v17017_v63, 5  ;;  %v19509_v43 = vld [vmem:[#allocation46_spill] sm:$0xff] }
 0x202   : > { %v2517_v52 = vadd.f32 %v14116_v40, %v19503_v14  ;;  %v17228_v34 = vadd.f32 %v2793_v61, %v2514_v2  ;;  %v17230_v51 = vpop.f32.mrf.mxu1  ;;  %v5340_v2 = vrot.slane %v19507_v7, 5  ;;  %v13100_v5 = vcombine.low %v5327_v38, %v5330_v47 }
 0x203   : > { %v17233_v31 = vpop.f32.mrf.mxu0  ;;  %v5337_v40 = vsel %vm15899_vm3, %v5335_v41, %v5336_v18 }
 0x204   : > { %v17236_v1 = vadd.f32 %v14150_v16, %v2517_v52  ;;  %v14157_v26 = vpop.f32.mrf.mxu1  ;;  %v5342_v30 = vrot.slane %v5340_v2, 4  ;;  %v5341_v63 = vsel %vm15899_vm3, %v13085_v8, %v5340_v2 }
 0x205   : > { %v14119_v20 = vpop.f32.mrf.mxu0 }
 0x206   : > { %14322 = vmatmul.mubr.msk.bf16.gmra.mxu0 %vm1564_vm6, %v13098_v21  ;;  %v2520_v61 = vadd.f32 %v14119_v20, %v19506_v27  ;;  %v2825_v44 = vpop.f32.mrf.mxu1  ;;  %v19508_v21 = vld [vmem:[#allocation42_spill] sm:$0xff]  ;;  %v13101_v27 = vcombine.low %v5334_v62, %v5337_v40 }
 0x207   : > { %14325 = vmatprep.mubr.msk.bf16.mxu0 %vm1564_vm6, %v13099_v25  ;;  %v2451_v16 = vpop.f32.mrf.mxu0 }
 0x208   : > { %v2518_v14 = vadd.f32 %v2451_v16, %v19508_v21  ;;  %v17251_v52 = vadd.f32 %v14153_v37, %v2520_v61  ;;  %v14158_v25 = vpop.f32.mrf.mxu1  ;;  %v19510_v61 = vld [vmem:[#allocation52_spill] sm:$0xff]  ;;  %v19511_v16 = vld [vmem:[#allocation54_spill] sm:$0xff] }
 0x209   : > { %v14120_v54 = vpop.f32.mrf.mxu0 }
 0x20a   : > { %v2521_v55 = vadd.f32 %v14120_v54, %v19509_v43  ;;  %v17255_v20 = vadd.f32 %v2809_v10, %v2518_v14  ;;  %v17257_v7 = vpop.f32.mrf.mxu1  ;;  %v5344_v10 = vsel %vm15899_vm3, %v5342_v30, %v5343_v53  ;;  %v19512_v54 = vld [vmem:[#allocation56_spill] sm:$0xff] }
 0x20b   : > { %v17259_v58 = vpop.f32.mrf.mxu0  ;;  %v13102_v14 = vcombine.low %v5341_v63, %v5344_v10 }
 0x20c   : > { %v17261_v41 = vadd.f32 %v14154_v48, %v2521_v55  ;;  %v14161_v37 = vpop.f32.mrf.mxu1 }
 0x20d   : > { %v14123_v18 = vpop.f32.mrf.mxu0 }
 0x20e   : > { %14326 = vmatmul.mubr.msk.bf16.gmra.mxu0 %vm1564_vm6, %v13100_v5  ;;  %v2524_v38 = vadd.f32 %v14123_v18, %v19510_v61  ;;  %v2841_v47 = vpop.f32.mrf.mxu1 }
 0x20f   : > { %14329 = vmatprep.mubr.msk.bf16.mxu0 %vm1564_vm6, %v13101_v27  ;;  %v2467_v39 = vpop.f32.mrf.mxu0 }
 0x210   : > { %v2522_v62 = vadd.f32 %v2467_v39, %v19511_v16  ;;  %v17271_v48 = vadd.f32 %v14157_v26, %v2524_v38  ;;  %v14162_v40 = vpop.f32.mrf.mxu1 }
 0x211   : > { %v14124_v21 = vpop.f32.mrf.mxu0 }
 0x212   : > { %v2525_v5 = vadd.f32 %v14124_v21, %v19512_v54  ;;  %v17274_v43 = vadd.f32 %v2825_v44, %v2522_v62  ;;  %v17276_v55 = vpop.f32.mrf.mxu1 }
 0x213   : > { %v17278_v27 = vpop.f32.mrf.mxu0 }
 0x214   : > { %v17280_v2 = vadd.f32 %v14158_v25, %v2525_v5  ;;  %v17282_v8 = vpop.f32.mrf.mxu1 }
 0x215   : > { %19513 = vst [vmem:[#allocation40_spill] sm:$0xff] %v17282_v8 }
 0x216   : > { %v14127_v53 = vpop.f32.mrf.mxu0  ;;  %14330 = vmatmul.mubr.msk.bf16.gmra.mxu0 %vm1564_vm6, %v13102_v14  ;;  %v17286_v30 = vpop.f32.mrf.mxu1  ;;  %vm7375_vm6 = vcmask 1042434  }
 0x217   : > { %v2528_v26 = vadd.f32 %v14127_v53, %v17054_v57  ;;  %19514 = vst [vmem:[#allocation44_spill] sm:$0xff] %v17286_v30 }
 0x218   : > { %v2483_v18 = vpop.f32.mrf.mxu0  ;;  %v17291_v38 = vpop.f32.mrf.mxu1 }
 0x219   : > { %v2526_v61 = vadd.f32 %v2483_v18, %v17063_v29  ;;  %v17289_v44 = vadd.f32 %v14161_v37, %v2528_v26  ;;  %19515 = vst [vmem:[#allocation31_spill] sm:$0xff] %v17291_v38 }
 0x21a   : > { %v14128_v63 = vpop.f32.mrf.mxu0  ;;  %v17296_v39 = vpop.f32.mrf.mxu1 }
 0x21b   : > { %v2529_v25 = vadd.f32 %v14128_v63, %v17070_v60  ;;  %v17294_v10 = vadd.f32 %v2841_v47, %v2526_v61  ;;  %19516 = vst [vmem:[#allocation41_spill] sm:$0xff] %v17296_v39 }
 0x21c   : > { %v17298_v16 = vpop.f32.mrf.mxu0  ;;  %v14205_v57 = vpop.f32.mrf.mxu1 }
 0x21d   : > { %v17300_v62 = vadd.f32 %v14162_v40, %v2529_v25 }
 0x21e   : > { %v14167_v21 = vpop.f32.mrf.mxu0  ;;  %v3941_v29 = vpop.f32.mrf.mxu1 }
 0x21f   : > { %v17303_v14 = vadd.f32 %v14167_v21, %v17103_v28 }
 0x220   : > { %v3455_v37 = vpop.f32.mrf.mxu0  ;;  %v14206_v5 = vpop.f32.mrf.mxu1 }
 0x221   : > { %19517 = vst [vmem:[#allocation33_spill] sm:$0xff] %v17303_v14  ;;  %v17306_v54 = vadd.f32 %v3455_v37, %v17111_v17 }
 0x222   : > { %v14168_v60 = vpop.f32.mrf.mxu0  ;;  %v17311_v53 = vpop.f32.mrf.mxu1 }
 0x223   : > { %19518 = vst [vmem:[#allocation45_spill] sm:$0xff] %v17306_v54  ;;  %v17309_v47 = vadd.f32 %v14168_v60, %v17121_v13  ;;  %19520 = vst [vmem:[#allocation47_spill] sm:$0xff] %v17311_v53 }
 0x224   : > { %v17313_v26 = vpop.f32.mrf.mxu0  ;;  %v14209_v40 = vpop.f32.mrf.mxu1 }
 0x225   : > { %19519 = vst [vmem:[#allocation34_spill] sm:$0xff] %v17309_v47 }
 0x226   : > { %v14171_v18 = vpop.f32.mrf.mxu0  ;;  %v3957_v28 = vpop.f32.mrf.mxu1 }
 0x227   : > { %v3588_v61 = vadd.f32 %v14171_v18, %v17141_v0 }
 0x228   : > { %v3471_v63 = vpop.f32.mrf.mxu0  ;;  %v14210_v17 = vpop.f32.mrf.mxu1 }
 0x229   : > { %v3586_v25 = vadd.f32 %v3471_v63, %v17150_v11  ;;  %v17317_v21 = vadd.f32 %v14205_v57, %v3588_v61 }
 0x22a   : > { %v14172_v37 = vpop.f32.mrf.mxu0  ;;  %v17322_v60 = vpop.f32.mrf.mxu1 }
 0x22b   : > { %v3589_v24 = vadd.f32 %v14172_v37, %v17159_v9  ;;  %v17320_v13 = vadd.f32 %v3941_v29, %v3586_v25  ;;  %19521 = vst [vmem:[#allocation35_spill] sm:$0xff] %v17322_v60 }
 0x22c   : > { %v17324_v46 = vpop.f32.mrf.mxu0  ;;  %v14213_v39 = vpop.f32.mrf.mxu1 }
 0x22d   : > { %19522 = vst [vmem:[#allocation50_spill] sm:$0xff] %v17324_v46  ;;  %v17326_v53 = vadd.f32 %v14206_v5, %v3589_v24 }
 0x22e   : > { %v14175_v0 = vpop.f32.mrf.mxu0  ;;  %v3973_v38 = vpop.f32.mrf.mxu1 }
 0x22f   : > { %v3592_v18 = vadd.f32 %v14175_v0, %v17170_v22 }
 0x230   : > { %v3487_v11 = vpop.f32.mrf.mxu0  ;;  %v14214_v63 = vpop.f32.mrf.mxu1 }
 0x231   : > { %v3590_v57 = vadd.f32 %v3487_v11, %v17175_v12  ;;  %v17330_v61 = vadd.f32 %v14209_v40, %v3592_v18 }
 0x232   : > { %v14176_v9 = vpop.f32.mrf.mxu0  ;;  %v17335_v37 = vpop.f32.mrf.mxu1 }
 0x233   : > { %v3593_v29 = vadd.f32 %v14176_v9, %v17182_v56  ;;  %v17333_v25 = vadd.f32 %v3957_v28, %v3590_v57  ;;  %19523 = vst [vmem:[#allocation37_spill] sm:$0xff] %v17335_v37 }
 0x234   : > { %v17337_v24 = vpop.f32.mrf.mxu0  ;;  %v14217_v60 = vpop.f32.mrf.mxu1 }
 0x235   : > { %19524 = vst [vmem:[#allocation38_spill] sm:$0xff] %v17337_v24  ;;  %v17339_v5 = vadd.f32 %v14210_v17, %v3593_v29 }
 0x236   : > { %v14179_v22 = vpop.f32.mrf.mxu0  ;;  %v3989_v47 = vpop.f32.mrf.mxu1 }
 0x237   : > { %v3596_v0 = vadd.f32 %v14179_v22, %v17194_v23 }
 0x238   : > { %v3503_v12 = vpop.f32.mrf.mxu0  ;;  %v14218_v11 = vpop.f32.mrf.mxu1 }
 0x239   : > { %v3594_v40 = vadd.f32 %v3503_v12, %v17198_v42  ;;  %v17343_v18 = vadd.f32 %v14213_v39, %v3596_v0  ;;  %v19526_v39 = vmov 0  }
 0x23a   : > { %v14180_v56 = vpop.f32.mrf.mxu0  ;;  %v17348_v9 = vpop.f32.mrf.mxu1  ;;  %576 = vst.msk [vmem:[#allocation3 + $0xc] sm:$0x1] %vm573_vm1, %v19526_v39  ;;  %574 = vst.msk [vmem:[#allocation3 + $0x4] sm:$0x1] %vm573_vm1, %v19526_v39 }
 0x23b   : > { %v3597_v28 = vadd.f32 %v14180_v56, %v17206_v19  ;;  %v17346_v57 = vadd.f32 %v3973_v38, %v3594_v40  ;;  %578 = vst.msk [vmem:[#allocation3 + $0x14] sm:$0x1] %vm573_vm1, %v19526_v39  ;;  %580 = vst.msk [vmem:[#allocation3 + $0x1c] sm:$0x1] %vm573_vm1, %v19526_v39 }
 0x23c   : > { %v17350_v17 = vpop.f32.mrf.mxu0  ;;  %v14221_v37 = vpop.f32.mrf.mxu1  ;;  %582 = vst.msk [vmem:[#allocation3 + $0x24] sm:$0x1] %vm573_vm1, %v19526_v39  ;;  %584 = vst.msk [vmem:[#allocation3 + $0x2c] sm:$0x1] %vm573_vm1, %v19526_v39 }
 0x23d   : > { %19525 = vst [vmem:[#allocation48_spill] sm:$0xff] %v17350_v17  ;;  %v17352_v29 = vadd.f32 %v14214_v63, %v3597_v28  ;;  %586 = vst.msk [vmem:[#allocation3 + $0x34] sm:$0x1] %vm573_vm1, %v19526_v39 }
 0x23e   : > { %v14183_v23 = vpop.f32.mrf.mxu0  ;;  %v4005_v42 = vpop.f32.mrf.mxu1  ;;  %588 = vst.msk [vmem:[#allocation3 + $0x3c] sm:$0x1] %vm573_vm1, %v19526_v39  ;;  %590 = vst.msk [vmem:[#allocation3 + $0x44] sm:$0x1] %vm573_vm1, %v19526_v39 }
 0x23f   : > { %v3600_v22 = vadd.f32 %v14183_v23, %v17225_v45  ;;  %592 = vst.msk [vmem:[#allocation3 + $0x4c] sm:$0x1] %vm573_vm1, %v19526_v39  ;;  %vm17816_vm1 = vmand %vm571_vm4, %vm962_vm9  ;;  %vm7665_vm9 = vcmask 130048  }
 0x240   : > { %v3519_v19 = vpop.f32.mrf.mxu0  ;;  %v14222_v63 = vpop.f32.mrf.mxu1  ;;  %575 = vst.msk [vmem:[#allocation3 + $0x8] sm:$0xf] %vm571_vm4, %v19526_v39  ;;  %572 = vst.msk [vmem:[#allocation3] sm:$0xf] %vm571_vm4, %v19526_v39 }
 0x241   : > { %v3598_v45 = vadd.f32 %v3519_v19, %v17228_v34  ;;  %v17376_v38 = vadd.f32 %v14217_v60, %v3600_v22  ;;  %577 = vst.msk [vmem:[#allocation3 + $0x10] sm:$0xf] %vm571_vm4, %v19526_v39  ;;  %579 = vst.msk [vmem:[#allocation3 + $0x18] sm:$0xf] %vm571_vm4, %v19526_v39 }
 0x242   : > { %v14184_v0 = vpop.f32.mrf.mxu0  ;;  %581 = vst.msk [vmem:[#allocation3 + $0x20] sm:$0xf] %vm571_vm4, %v19526_v39  ;;  %583 = vst.msk [vmem:[#allocation3 + $0x28] sm:$0xf] %vm571_vm4, %v19526_v39  ;;  %v17401_v12 = vpop.f32.mrf.mxu1 }
 0x243   : > { %585 = vst.msk [vmem:[#allocation3 + $0x30] sm:$0xf] %vm571_vm4, %v19526_v39  ;;  %587 = vst.msk [vmem:[#allocation3 + $0x38] sm:$0xf] %vm571_vm4, %v19526_v39  ;;  %v3601_v34 = vadd.f32 %v14184_v0, %v17236_v1  ;;  %v17399_v60 = vadd.f32 %v3989_v47, %v3598_v45 }
 0x244   : > { %589 = vst.msk [vmem:[#allocation3 + $0x40] sm:$0xf] %vm571_vm4, %v19526_v39  ;;  %591 = vst.msk [vmem:[#allocation3 + $0x48] sm:$0xf] %vm571_vm4, %v19526_v39  ;;  %v17403_v40 = vpop.f32.mrf.mxu0  ;;  %v14225_v28 = vpop.f32.mrf.mxu1  ;;  %vm9507_vm4 = vsmask.f32 2306 }
 0x245   : > { %v17405_v56 = vadd.f32 %v14218_v11, %v3601_v34 }
 0x246   : > { %v14187_v23 = vpop.f32.mrf.mxu0  ;;  %v4021_v19 = vpop.f32.mrf.mxu1 }
 0x247   : > { %v3604_v22 = vadd.f32 %v14187_v23, %v17251_v52 }
 0x248   : > { %v3535_v17 = vpop.f32.mrf.mxu0  ;;  %v14226_v39 = vpop.f32.mrf.mxu1 }
 0x249   : > { %v3602_v24 = vadd.f32 %v3535_v17, %v17255_v20  ;;  %v17409_v30 = vadd.f32 %v14221_v37, %v3604_v22 }
 0x24a   : > { %v14188_v1 = vpop.f32.mrf.mxu0  ;;  %v17414_v0 = vpop.f32.mrf.mxu1 }
 0x24b   : > { %v3605_v47 = vadd.f32 %v14188_v1, %v17261_v41  ;;  %v17412_v45 = vadd.f32 %v4005_v42, %v3602_v24 }
 0x24c   : > { %v17416_v11 = vpop.f32.mrf.mxu0  ;;  %v14229_v54 = vpop.f32.mrf.mxu1 }
 0x24d   : > { %v17418_v34 = vadd.f32 %v14222_v63, %v3605_v47 }
 0x24e   : > { %v14191_v52 = vpop.f32.mrf.mxu0  ;;  %v4037_v46 = vpop.f32.mrf.mxu1 }
 0x24f   : > { %v3608_v23 = vadd.f32 %v14191_v52, %v17271_v48 }
 0x250   : > { %v3551_v20 = vpop.f32.mrf.mxu0  ;;  %v14230_v22 = vpop.f32.mrf.mxu1 }
 0x251   : > { %v3606_v37 = vadd.f32 %v3551_v20, %v17274_v43  ;;  %v17422_v17 = vadd.f32 %v14225_v28, %v3608_v23 }
 0x252   : > { %v14192_v41 = vpop.f32.mrf.mxu0  ;;  %v17429_v63 = vpop.f32.mrf.mxu1 }
 0x253   : > { %v3609_v24 = vadd.f32 %v14192_v41, %v17280_v2  ;;  %v17425_v42 = vadd.f32 %v4021_v19, %v3606_v37 }
 0x254   : > { %v17427_v1 = vpop.f32.mrf.mxu0 }
 0x255   : > { %v17431_v47 = vadd.f32 %v14226_v39, %v3609_v24 }
 0x256   : > { %v14195_v8 = vpop.f32.mrf.mxu0 }
 0x257   : > { %v3612_v48 = vadd.f32 %v14195_v8, %v17289_v44  ;;  %v17434_v14 = vpop.f32.mrf.mxu1 }
 0x258   : > { %v3567_v52 = vpop.f32.mrf.mxu0 }
 0x259   : > { %v3610_v43 = vadd.f32 %v3567_v52, %v17294_v10  ;;  %v17437_v28 = vadd.f32 %v14229_v54, %v3612_v48  ;;  %v17439_v2 = vpop.f32.mrf.mxu1 }
 0x25a   : > { %v14196_v23 = vpop.f32.mrf.mxu0  ;;  %19527 = vst [vmem:[#allocation51_spill] sm:$0xff] %v17439_v2 }
 0x25b   : > { %v3613_v19 = vadd.f32 %v14196_v23, %v17300_v62  ;;  %v17442_v20 = vadd.f32 %v4037_v46, %v3610_v43  ;;  %v17446_v39 = vpop.f32.mrf.mxu1 }
 0x25c   : > { %v17444_v37 = vpop.f32.mrf.mxu0  ;;  %19528 = vst [vmem:[#allocation39_spill] sm:$0xff] %v17446_v39 }
 0x25d   : > { %v17448_v41 = vadd.f32 %v14230_v22, %v3613_v19  ;;  %v17452_v44 = vpop.f32.mrf.mxu1 }
 0x25e   : > { %v17450_v8 = vpop.f32.mrf.mxu0  ;;  %19530 = vst [vmem:[#allocation42_spill] sm:$0xff] %v17452_v44 }
 0x25f   : > { %19529 = vst [vmem:[#allocation55_spill] sm:$0xff] %v17448_v41 }
 0x260   : > { %v17454_v10 = vpop.f32.mrf.mxu0 }
 0x261   : > { %v17458_v24 = vpop.f32.mrf.mxu1 }
 0x262   : > { %v17456_v54 = vpop.f32.mrf.mxu0  ;;  %19531 = vst [vmem:[#allocation46_spill] sm:$0xff] %v17458_v24 }
 0x263   : > { %v17462_v46 = vpop.f32.mrf.mxu1 }
 0x264   : > { %v17460_v48 = vpop.f32.mrf.mxu0  ;;  %19532 = vst [vmem:[#allocation52_spill] sm:$0xff] %v17462_v46 }
 0x265   : > { %v17464_v52 = vpop.f32.mrf.mxu1 }
 0x266   : > { %v14239_v62 = vpop.f32.mrf.mxu0  ;;  %19533 = vst [vmem:[#allocation54_spill] sm:$0xff] %v17464_v52 }
 0x267   : > { %v17467_v22 = vadd.f32 %v14239_v62, %v17317_v21  ;;  %v17469_v23 = vpop.f32.mrf.mxu1 }
 0x268   : > { %v4300_v43 = vpop.f32.mrf.mxu0  ;;  %19534 = vst [vmem:[#allocation56_spill] sm:$0xff] %v17469_v23 }
 0x269   : > { %v17472_v19 = vadd.f32 %v4300_v43, %v17320_v13 }
 0x26a   : > { %v14240_v44 = vpop.f32.mrf.mxu0  ;;  %v17479_v2 = vpop.f32.mrf.mxu1 }
 0x26b   : > { %v17475_v39 = vadd.f32 %v14240_v44, %v17326_v53  ;;  %19536 = vst [vmem:[#allocation59_spill] sm:$0xff] %v17479_v2 }
 0x26c   : > { %v17477_v24 = vpop.f32.mrf.mxu0  ;;  %v17481_v41 = vpop.f32.mrf.mxu1 }
 0x26d   : > { %19535 = vst [vmem:[#allocation58_spill] sm:$0xff] %v17475_v39  ;;  %19537 = vst [vmem:[#allocation60_spill] sm:$0xff] %v17481_v41  ;;  %v19543_v41 = vld [vmem:[#allocation36_spill] sm:$0xff] }
 0x26e   : > { %v14243_v46 = vpop.f32.mrf.mxu0  ;;  %v17486_v52 = vpop.f32.mrf.mxu1 }
 0x26f   : > { %v17484_v21 = vadd.f32 %v14243_v46, %v17330_v61  ;;  %19539 = vst [vmem:[#allocation62_spill] sm:$0xff] %v17486_v52  ;;  %v19544_v61 = vld [vmem:[#allocation32_spill] sm:$0xff] }
 0x270   : > { %v4316_v62 = vpop.f32.mrf.mxu0  ;;  %v17491_v23 = vpop.f32.mrf.mxu1  ;;  %v2014_v46 = vadd.f32 %v19544_v61, %v19543_v41  ;;  %v19549_v61 = vld [vmem:[#allocation49_spill] sm:$0xff] }
 0x271   : > { %19538 = vst [vmem:[#allocation61_spill] sm:$0xff] %v17484_v21  ;;  %v17489_v13 = vadd.f32 %v4316_v62, %v17333_v25  ;;  %19540 = vst [vmem:[#allocation63_spill] sm:$0xff] %v17491_v23 }
 0x272   : > { %v14244_v43 = vpop.f32.mrf.mxu0  ;;  %v2515_v62 = vadd.f32 %v17233_v31, %v2014_v46 }
 0x273   : > { %v17494_v53 = vadd.f32 %v14244_v43, %v17339_v5 }
 0x274   : > { %v17496_v44 = vpop.f32.mrf.mxu0  ;;  %v17498_v39 = vpop.f32.mrf.mxu1 }
 0x275   : > { %19541 = vst [vmem:[#allocation64_spill] sm:$0xff] %v17494_v53  ;;  %19542 = vst [vmem:[#allocation65_spill] sm:$0xff] %v17498_v39 }
 0x276   : > { %v14247_v2 = vpop.f32.mrf.mxu0  ;;  %v17505_v25 = vpop.f32.mrf.mxu1 }
 0x277   : > { %v17503_v21 = vadd.f32 %v14247_v2, %v17343_v18  ;;  %19546 = vst [vmem:[#allocation32_spill] sm:$0xff] %v17505_v25  ;;  %v2873_v18 = vadd.f32 %v17200_v33, %v2515_v62  ;;  %v19550_v25 = vld [vmem:[#allocation43_spill] sm:$0xff] }
 0x278   : > { %v4332_v52 = vpop.f32.mrf.mxu0  ;;  %v17511_v43 = vpop.f32.mrf.mxu1 }
 0x279   : > { %19545 = vst [vmem:[#allocation36_spill] sm:$0xff] %v17503_v21  ;;  %v17509_v23 = vadd.f32 %v4332_v52, %v17346_v57  ;;  %19547 = vst [vmem:[#allocation66_spill] sm:$0xff] %v17511_v43  ;;  %v2030_v21 = vadd.f32 %v19550_v25, %v19549_v61  ;;  %v3599_v31 = vadd.f32 %v17403_v40, %v2873_v18 }
 0x27a   : > { %v14248_v5 = vpop.f32.mrf.mxu0  ;;  %v17518_v41 = vpop.f32.mrf.mxu1 }
 0x27b   : > { %v17514_v53 = vadd.f32 %v14248_v5, %v17352_v29  ;;  %19548 = vst [vmem:[#allocation67_spill] sm:$0xff] %v17518_v41  ;;  %v2519_v29 = vadd.f32 %v17259_v58, %v2030_v21  ;;  %v4069_v33 = vadd.f32 %v17348_v9, %v3599_v31  ;;  %v19554_v21 = vld [vmem:[#allocation53_spill] sm:$0xff] }
 0x27c   : > { %v17516_v39 = vpop.f32.mrf.mxu0 }
 0x27e   : > { %v14251_v2 = vpop.f32.mrf.mxu0  ;;  %v17527_v46 = vpop.f32.mrf.mxu1 }
 0x27f   : > { %v17525_v57 = vadd.f32 %v14251_v2, %v17376_v38  ;;  %v2877_v38 = vadd.f32 %v17230_v51, %v2519_v29  ;;  %v19555_v29 = vld [vmem:[#allocation30_spill] sm:$0xff] }
 0x280   : > { %v4348_v52 = vpop.f32.mrf.mxu0  ;;  %v17533_v43 = vpop.f32.mrf.mxu1 }
 0x281   : > { %v17531_v5 = vadd.f32 %v4348_v52, %v17399_v60  ;;  %v19553_v60 = vld [vmem:[#allocation57_spill] sm:$0xff]  ;;  %v3603_v52 = vadd.f32 %v17416_v11, %v2877_v38 }
 0x282   : > { %v14252_v41 = vpop.f32.mrf.mxu0  ;;  %v17539_v62 = vpop.f32.mrf.mxu1  ;;  %v2046_v61 = vadd.f32 %v19554_v21, %v19553_v60  ;;  %v2062_v21 = vadd.f32 %v17033_v49, %v17078_v35 }
 0x283   : > { %v17537_v25 = vadd.f32 %v14252_v41, %v17405_v56 }
 0x284   : > { %v4351_v40 = vpop.f32.mrf.mxu0  ;;  %v17544_v58 = vpop.f32.mrf.mxu1  ;;  %v2523_v41 = vadd.f32 %v17278_v27, %v2046_v61 }
 0x285   : > { %v17542_v18 = vadd.f32 %v4351_v40, %v4069_v33  ;;  %19552 = vst [vmem:[#allocation43_spill] sm:$0xff] %v17544_v58  ;;  %v19556_v33 = vld [vmem:[#allocation29_spill] sm:$0xff] }
 0x286   : > { %v14255_v2 = vpop.f32.mrf.mxu0  ;;  %v1950_v40 = vadd.f32 %v19556_v33, %v19555_v29  ;;  %v2881_v27 = vadd.f32 %v17257_v7, %v2523_v41  ;;  %v2865_v29 = vadd.f32 %v17152_v59, %v17180_v32  ;;  %v19561_v59 = vld [vmem:[#allocation44_spill] sm:$0xff] }
 0x287   : > { %19551 = vst [vmem:[#allocation49_spill] sm:$0xff] %v17542_v18  ;;  %v17550_v9 = vadd.f32 %v14255_v2, %v17409_v30  ;;  %v17556_v51 = vpop.f32.mrf.mxu1  ;;  %v4073_v18 = vadd.f32 %v17401_v12, %v3603_v52  ;;  %v2527_v52 = vadd.f32 %v17298_v16, %v2062_v21  ;;  %v19560_v21 = vld [vmem:[#allocation45_spill] sm:$0xff] }
 0x288   : > { %v4364_v56 = vpop.f32.mrf.mxu0  ;;  %v2499_v30 = vadd.f32 %v17115_v50, %v1950_v40  ;;  %v3607_v12 = vadd.f32 %v17427_v1, %v2881_v27  ;;  %v15179_v1 = vmov 1983009808   ;;  %v4052_v32 = vadd.f32 %v19561_v59, %v19560_v21 }
 0x289   : > { %v17554_v31 = vadd.f32 %v4364_v56, %v17412_v45  ;;  %v17564_v11 = vpop.f32.mrf.mxu1  ;;  %v2861_v56 = vadd.f32 %v17113_v6, %v17157_v15  ;;  %v5744_v41 = vunpack.c.l.s4 %v15179_v1  ;;  %v2885_v6 = vadd.f32 %v17276_v55, %v2527_v52  ;;  %v19557_v15 = vld [vmem:[#allocation33_spill] sm:$0xff]  ;;  %v19566_v55 = vld [vmem:[#allocation48_spill] sm:$0xff] }
 0x28a   : > { %v14256_v58 = vpop.f32.mrf.mxu0  ;;  %v2857_v50 = vadd.f32 %v17073_v3, %v2499_v30  ;;  %v4077_v3 = vadd.f32 %v17414_v0, %v3607_v12  ;;  %v19559_v30 = vld [vmem:[#allocation50_spill] sm:$0xff] }
 0x28b   : > { %v17562_v60 = vadd.f32 %v14256_v58, %v17418_v34  ;;  %v17570_v2 = vpop.f32.mrf.mxu1  ;;  %v19562_v0 = vld [vmem:[#allocation34_spill] sm:$0xff] }
 0x28c   : > { %v4367_v38 = vpop.f32.mrf.mxu0  ;;  %v3583_v49 = vadd.f32 %v17313_v26, %v2857_v50  ;;  %v19558_v26 = vld [vmem:[#allocation40_spill] sm:$0xff]  ;;  %v19564_v50 = vld [vmem:[#allocation38_spill] sm:$0xff] }
 0x28d   : > { %v17568_v45 = vadd.f32 %v4367_v38, %v4073_v18  ;;  %v17578_v58 = vpop.f32.mrf.mxu1  ;;  %v4054_v40 = vadd.f32 %v19558_v26, %v19557_v15  ;;  %v3587_v38 = vadd.f32 %v19559_v30, %v2861_v56  ;;  %v5745_v15 = vunpack.c.0.s8 %v5744_v41 }
 0x28e   : > { %v14259_v61 = vpop.f32.mrf.mxu0  ;;  %v3611_v26 = vadd.f32 %v17444_v37, %v2885_v6  ;;  %v19569_v37 = vld [vmem:[#allocation37_spill] sm:$0xff] }
 0x28f   : > { %v17576_v34 = vadd.f32 %v14259_v61, %v17422_v17  ;;  %v5746_v17 = vlaneseq  ;;  %v19563_v61 = vld [vmem:[#allocation31_spill] sm:$0xff]  ;;  %v4413_v30 = vadd.f32 %v17450_v8, %v4054_v40 }
 0x290   : > { %v4380_v7 = vpop.f32.mrf.mxu0  ;;  %v4055_v12 = vadd.f32 %v19563_v61, %v19562_v0  ;;  %v19568_v61 = vld [vmem:[#allocation35_spill] sm:$0xff] }
 0x291   : > { %v17583_v18 = vadd.f32 %v4380_v7, %v17425_v42  ;;  %v17591_v33 = vpop.f32.mrf.mxu1  ;;  %v2869_v42 = vadd.f32 %v17177_v36, %v17204_v4  ;;  %v19565_v36 = vld [vmem:[#allocation41_spill] sm:$0xff]  ;;  %v17613_v56 = vshrl.u32 %v5746_v17, 7 }
 0x292   : > { %v14260_v35 = vpop.f32.mrf.mxu0  ;;  %v4053_v4 = vadd.f32 %v19565_v36, %v3583_v49  ;;  %v19572_v36 = vld [vmem:[#allocation39_spill] sm:$0xff] }
 0x293   : > { %v17594_v16 = vadd.f32 %v14260_v35, %v17431_v47  ;;  %v3591_v47 = vadd.f32 %v19564_v50, %v2865_v29  ;;  %v17607_v7 = vpop.f32.mrf.mxu1  ;;  %v3595_v52 = vadd.f32 %v19566_v55, %v2869_v42  ;;  %v19567_v29 = vld [vmem:[#allocation47_spill] sm:$0xff] }
 0x294   : > { %v4383_v27 = vpop.f32.mrf.mxu0  ;;  %v4057_v0 = vadd.f32 %v19567_v29, %v3587_v38  ;;  %v4412_v49 = vadd.f32 %v17460_v48, %v4053_v4  ;;  %v19570_v38 = vld [vmem:[#allocation55_spill] sm:$0xff]  ;;  %v19573_v4 = vld [vmem:[#allocation42_spill] sm:$0xff] }
 0x295   : > { %v17609_v35 = vadd.f32 %v4383_v27, %v4077_v3  ;;  %v14294_v21 = vpop.f32.mrf.mxu1  ;;  %v4411_v3 = vadd.f32 %v17454_v10, %v4052_v32  ;;  %v4414_v27 = vadd.f32 %v17456_v54, %v4055_v12  ;;  %v4061_v41 = vadd.f32 %v19568_v61, %v3591_v47  ;;  %v19571_v12 = vld [vmem:[#allocation51_spill] sm:$0xff]  ;;  %v19581_v61 = vld [vmem:[#allocation60_spill] sm:$0xff] }
 0x296   : > { %v14263_v1 = vpop.f32.mrf.mxu0  ;;  %v4065_v6 = vadd.f32 %v19569_v37, %v3595_v52  ;;  %v4416_v8 = vadd.f32 %v17477_v24, %v4057_v0  ;;  %v4081_v10 = vadd.f32 %v17429_v63, %v3611_v26  ;;  %v5139_v54 = vadd.f32 %v17434_v14, %v4413_v30  ;;  %v19575_v14 = vld [vmem:[#allocation52_spill] sm:$0xff]  ;;  %v19577_v30 = vld [vmem:[#allocation54_spill] sm:$0xff] }
 0x297   : > { %v4441_v59 = vadd.f32 %v14263_v1, %v17437_v28  ;;  %v5109_v17 = vpop.f32.mrf.mxu1  ;;  %v17627_v28 = vsub.s32 %v5745_v15, %v17613_v56  ;;  %v4420_v48 = vadd.f32 %v17496_v44, %v4061_v41  ;;  %v5137_v47 = vadd.f32 %v19571_v12, %v4411_v3  ;;  %v19574_v15 = vld [vmem:[#allocation46_spill] sm:$0xff]  ;;  %v19578_v3 = vld [vmem:[#allocation56_spill] sm:$0xff] }
 0x298   : > { %v4396_v42 = vpop.f32.mrf.mxu0  ;;  %v5138_v55 = vadd.f32 %v19573_v4, %v4412_v49  ;;  %v4424_v24 = vadd.f32 %v17516_v39, %v4065_v6  ;;  %v5143_v63 = vadd.f32 %v19574_v15, %v17467_v22  ;;  %v17641_v26 = vadd.f32 %v19575_v14, %v17472_v19  ;;  %v19576_v44 = vld [vmem:[#allocation58_spill] sm:$0xff]  ;;  %v19579_v49 = vld [vmem:[#allocation61_spill] sm:$0xff]  ;;  %v19580_v39 = vld [vmem:[#allocation59_spill] sm:$0xff] }
 0x299   : > { %v4439_v50 = vadd.f32 %v4396_v42, %v17442_v20  ;;  %v5140_v20 = vadd.f32 %v19572_v36, %v4414_v27  ;;  %v14297_v52 = vpop.f32.mrf.mxu1  ;;  %v17645_v29 = vadd.f32 %v19577_v30, %v19576_v44  ;;  %v17648_v27 = vadd.f32 %v19578_v3, %v4416_v8  ;;  %v19582_v22 = vld [vmem:[#allocation64_spill] sm:$0xff]  ;;  %v19583_v37 = vld [vmem:[#allocation62_spill] sm:$0xff]  ;;  %v19586_v36 = vld [vmem:[#allocation65_spill] sm:$0xff] }
 0x29a   : > { %v14264_v40 = vpop.f32.mrf.mxu0  ;;  %v17652_v42 = vadd.f32 %v19580_v39, %v19579_v49  ;;  %v17656_v41 = vadd.f32 %v19581_v61, %v17489_v13  ;;  %v17660_v19 = vadd.f32 %v19583_v37, %v19582_v22  ;;  %v19585_v8 = vld [vmem:[#allocation36_spill] sm:$0xff]  ;;  %v19588_v14 = vld [vmem:[#allocation66_spill] sm:$0xff]  ;;  %v19589_v30 = vld [vmem:[#allocation67_spill] sm:$0xff]  ;;  %v17688_v49 = vadd.f32 %v17533_v43, %v17531_v5 }
 0x29b   : > { %v4442_v32 = vadd.f32 %v14264_v40, %v19570_v38  ;;  %v5122_v6 = vpop.f32.mrf.mxu1  ;;  %v17662_v38 = vld [vmem:[#allocation6] ss:$0 sm:$0xff]  ;;  %v17669_v4 = vadd.f32 %v19586_v36, %v19585_v8  ;;  %v17677_v44 = vadd.f32 %v19588_v14, %v17514_v53  ;;  %v17680_v3 = vadd.f32 %v19589_v30, %v4424_v24  ;;  %v19591_v53 = vld [vmem:[#allocation43_spill] sm:$0xff] }
 0x29c   : > { %v4399_v1 = vpop.f32.mrf.mxu0  ;;  %v17705_v43 = vadd.f32 %v17564_v11, %v17554_v31  ;;  %v17713_v5 = vadd.f32 %v17578_v58, %v17568_v45  ;;  %v17722_v31 = vadd.f32 %v17607_v7, %v17583_v18  ;;  %v17728_v11 = vadd.f32 %v5109_v17, %v17609_v35 }
 0x29d   : > { %v4440_v0 = vadd.f32 %v4399_v1, %v4081_v10  ;;  %v19584_v10 = vld [vmem:[#allocation63_spill] sm:$0xff]  ;;  %v19587_v1 = vld [vmem:[#allocation32_spill] sm:$0xff]  ;;  %v14298_v39 = vpop.f32.mrf.mxu1  ;;  %v17730_v45 = vadd.f32 %v14297_v52, %v4441_v59 }
 0x29e   : > { %v14303_v40 = vpop.f32.mrf.mxu0  ;;  %v17665_v12 = vadd.f32 %v19584_v10, %v4420_v48  ;;  %v17673_v15 = vadd.f32 %v19587_v1, %v17509_v23  ;;  %v17684_v48 = vadd.f32 %v17527_v46, %v17525_v57  ;;  %v17692_v23 = vadd.f32 %v17539_v62, %v17537_v25 }
 0x29f   : > { %v5609_v13 = vadd.f32 %v14303_v40, %v5139_v54  ;;  %v19590_v54 = vld [vmem:[#allocation49_spill] sm:$0xff]  ;;  %v17701_v57 = vadd.f32 %v17556_v51, %v17550_v9  ;;  %v17709_v46 = vadd.f32 %v17570_v2, %v17562_v60  ;;  %v17717_v62 = vadd.f32 %v17591_v33, %v17576_v34 }
 0x2a0   : > { %v5480_v61 = vpop.f32.mrf.mxu0  ;;  %v17696_v22 = vadd.f32 %v19591_v53, %v19590_v54  ;;  %v17725_v60 = vadd.f32 %v14294_v21, %v17594_v16  ;;  %v17736_v8 = vadd.f32 %v14298_v39, %v4442_v32 }
 0x2a1   : > { %v5648_v24 = vadd.f32 %v17662_v38, %v5609_v13  ;;  %v5607_v37 = vadd.f32 %v5480_v61, %v5137_v47  ;;  %v5125_v47 = vpop.f32.mrf.mxu1 }
 0x2a2   : > { %v14304_v25 = vpop.f32.mrf.mxu0  ;;  %v17738_v18 = vadd.f32 %v5125_v47, %v4440_v0 }
 0x2a3   : > { %v5680_v9 = vmax.f32 %v5648_v24, 0.0  ;;  %v5646_v51 = vadd.f32 %v17662_v38, %v5607_v37  ;;  %v5610_v40 = vadd.f32 %v14304_v25, %v5140_v20  ;;  %v17734_v20 = vadd.f32 %v5122_v6, %v4439_v50 }
 0x2a4   : > { %v5483_v2 = vpop.f32.mrf.mxu0 }
 0x2a5   : > { %v5776_v34 = vcombine.high %v5680_v9, %v5680_v9  ;;  %v5783_v58 = vrot.slane %v5680_v9, %v17627_v28  ;;  %v5678_v33 = vmax.f32 %v5646_v51, 0.0  ;;  %v5649_v10 = vadd.f32 %v17662_v38, %v5610_v40 }
 0x2a6   : > { %v5608_v16 = vadd.f32 %v5483_v2, %v5138_v55  ;;  %v14307_v7 = vpop.f32.mrf.mxu0 }
 0x2a7   : > { %v5790_v35 = vrot.slane %v5776_v34, %v17627_v28  ;;  %v5791_v21 = vcombine.high %v5783_v58, %v5783_v58  ;;  %v6416_v59 = vsel %vm6414_vm5, %v5783_v58, -inf  ;;  %v5742_v17 = vcombine.high %v5678_v33, %v5678_v33 }
 0x2a8   : > { %v5749_v52 = vrot.slane %v5678_v33, %v17627_v28  ;;  %v5681_v36 = vmax.f32 %v5649_v10, 0.0  ;;  %v5647_v1 = vadd.f32 %v17662_v38, %v5608_v16  ;;  %v5613_v13 = vadd.f32 %v14307_v7, %v5143_v63  ;;  %v5496_v63 = vpop.f32.mrf.mxu0 }
 0x2a9   : > { %v5792_v50 = vcombine.high %v5790_v35, %v5790_v35  ;;  %v6419_v32 = vsel %vm6414_vm5, %v5791_v21, -inf  ;;  %v6422_v0 = vsel %vm6414_vm5, %v5790_v35, -inf  ;;  %v5756_v55 = vrot.slane %v5742_v17, %v17627_v28 }
 0x2aa   : > { %v5757_v6 = vcombine.high %v5749_v52, %v5749_v52  ;;  %v6415_v14 = vsel %vm6414_vm5, %v5749_v52, -inf  ;;  %v5793_v30 = vcombine.high %v5681_v36, %v5681_v36  ;;  %v5800_v39 = vrot.slane %v5681_v36, %v17627_v28  ;;  %v14308_v17 = vpop.f32.mrf.mxu0 }
 0x2ab   : > { %v6425_v61 = vsel %vm6414_vm5, %v5792_v50, -inf  ;;  %v5758_v54 = vcombine.high %v5756_v55, %v5756_v55  ;;  %v6417_v53 = vmax.f32 %v6415_v14, %v6416_v59  ;;  %v6421_v24 = vsel %vm6414_vm5, %v5756_v55, -inf }
 0x2ac   : > { %v6418_v37 = vsel %vm6414_vm5, %v5757_v6, -inf  ;;  %v6423_v25 = vmax.f32 %v6421_v24, %v6422_v0  ;;  %v5807_v47 = vrot.slane %v5793_v30, %v17627_v28  ;;  %v5808_v9 = vcombine.high %v5800_v39, %v5800_v39 }
 0x2ad   : > { %v6420_v51 = vmax.f32 %v6418_v37, %v6419_v32  ;;  %v6424_v40 = vsel %vm6414_vm5, %v5758_v54, -inf  ;;  %v6607_v2 = vsel %vm6414_vm5, %v6417_v53, -inf  ;;  %v6428_v34 = vsel %vm6414_vm5, %v5800_v39, -inf }
 0x2ae   : > { %v6426_v58 = vmax.f32 %v6424_v40, %v6425_v61  ;;  %v6608_v33 = vrot.slane %v6607_v2, 4  ;;  %v6621_v10 = vsel %vm6414_vm5, %v6423_v25, -inf  ;;  %v5809_v16 = vcombine.high %v5807_v47, %v5807_v47 }
 0x2af   : > { %v6614_v7 = vsel %vm6414_vm5, %v6420_v51, -inf  ;;  %v6622_v35 = vrot.slane %v6621_v10, 4  ;;  %v6431_v21 = vsel %vm6414_vm5, %v5808_v9, -inf  ;;  %v6434_v59 = vsel %vm6414_vm5, %v5807_v47, -inf }
 0x2b0   : > { %v6609_v52 = vmax.f32 %v6607_v2, %v6608_v33  ;;  %v6615_v36 = vrot.slane %v6614_v7, 4  ;;  %v6628_v50 = vsel %vm6414_vm5, %v6426_v58, -inf  ;;  %v6437_v32 = vsel %vm6414_vm5, %v5809_v16, -inf }
 0x2b1   : > { %v6623_v0 = vmax.f32 %v6621_v10, %v6622_v35  ;;  %v6629_v55 = vrot.slane %v6628_v50, 4  ;;  %v5679_v6 = vmax.f32 %v5647_v1, 0.0  ;;  %v5652_v14 = vadd.f32 %v17662_v38, %v5613_v13 }
 0x2b2   : > { %v6610_v30 = vrot.slane %v6609_v52, 2  ;;  %v6616_v39 = vmax.f32 %v6614_v7, %v6615_v36  ;;  %v5611_v61 = vadd.f32 %v5496_v63, %v17641_v26  ;;  %v17765_v54 = vadd.f32 %v14308_v17, %v17645_v29 }
 0x2b3   : > { %v6624_v53 = vrot.slane %v6623_v0, 2  ;;  %v6630_v24 = vmax.f32 %v6628_v50, %v6629_v55  ;;  %v5759_v37 = vcombine.high %v5679_v6, %v5679_v6  ;;  %v5766_v25 = vrot.slane %v5679_v6, %v17627_v28 }
 0x2b4   : > { %v6611_v47 = vmax.f32 %v6609_v52, %v6610_v30  ;;  %v6617_v9 = vrot.slane %v6616_v39, 2  ;;  %v5684_v51 = vmax.f32 %v5652_v14, 0.0  ;;  %v17769_v40 = vadd.f32 %v17662_v38, %v5611_v61 }
 0x2b5   : > { %v6625_v1 = vmax.f32 %v6623_v0, %v6624_v53  ;;  %v6631_v13 = vrot.slane %v6630_v24, 2  ;;  %v5773_v2 = vrot.slane %v5759_v37, %v17627_v28  ;;  %v5774_v26 = vcombine.high %v5766_v25, %v5766_v25 }
 0x2b6   : > { %v6612_v63 = vrot.slane %v6611_v47, 1  ;;  %v6618_v29 = vmax.f32 %v6616_v39, %v6617_v9  ;;  %v6427_v58 = vsel %vm6414_vm5, %v5766_v25, -inf  ;;  %v5844_v33 = vcombine.high %v5684_v51, %v5684_v51 }
 0x2b7   : > { %v6626_v10 = vrot.slane %v6625_v1, 1  ;;  %v6632_v16 = vmax.f32 %v6630_v24, %v6631_v13  ;;  %v5775_v7 = vcombine.high %v5773_v2, %v5773_v2  ;;  %v6429_v35 = vmax.f32 %v6427_v58, %v6428_v34 }
 0x2b8   : > { %v6613_v17 = vmax.f32 %v6611_v47, %v6612_v63  ;;  %v6619_v52 = vrot.slane %v6618_v29, 1  ;;  %v6430_v36 = vsel %vm6414_vm5, %v5774_v26, -inf  ;;  %v6433_v50 = vsel %vm6414_vm5, %v5773_v2, -inf }
 0x2b9   : > { %v6627_v0 = vmax.f32 %v6625_v1, %v6626_v10  ;;  %v6633_v55 = vrot.slane %v6632_v16, 1  ;;  %v6432_v6 = vmax.f32 %v6430_v36, %v6431_v21  ;;  %v6435_v14 = vmax.f32 %v6433_v50, %v6434_v59 }
 0x2ba   : > { %v6620_v30 = vmax.f32 %v6618_v29, %v6619_v52  ;;  %v13625_v39 = vpack.c.bf16 %v6613_v17, %v6613_v17  ;;  %v6436_v61 = vsel %vm6414_vm5, %v5775_v7, -inf  ;;  %v6635_v53 = vsel %vm6414_vm5, %v6429_v35, -inf }
 0x2bb   : > { %v6634_v37 = vmax.f32 %v6632_v16, %v6633_v55  ;;  %v13627_v24 = vpack.c.bf16 %v6627_v0, %v6627_v0  ;;  %v6438_v25 = vmax.f32 %v6436_v61, %v6437_v32  ;;  %v6636_v34 = vrot.slane %v6635_v53, 4 }
 0x2bc   : > { %v13626_v47 = vpack.c.bf16 %v6620_v30, %v6620_v30  ;;  %v7311_v9 = vunpack.c.l.b16 %v13625_v39  ;;  %v6642_v13 = vsel %vm6414_vm5, %v6432_v6, -inf  ;;  %v6649_v2 = vsel %vm6414_vm5, %v6435_v14, -inf }
 0x2bd   : > { %v13628_v1 = vpack.c.bf16 %v6634_v37, %v6634_v37  ;;  %v7313_v26 = vunpack.c.l.b16 %v13627_v24  ;;  %v6637_v21 = vmax.f32 %v6635_v53, %v6636_v34  ;;  %v6643_v59 = vrot.slane %v6642_v13, 4 }
 0x2be   : > { %v7312_v63 = vunpack.c.l.b16 %v13626_v47  ;;  %v6650_v29 = vrot.slane %v6649_v2, 4  ;;  %v6656_v58 = vsel %vm6414_vm5, %v6438_v25, -inf  ;;  %v5851_v10 = vrot.slane %v5684_v51, %v17627_v28 }
 0x2bf   : > { %v7314_v16 = vunpack.c.l.b16 %v13628_v1  ;;  %v6638_v7 = vrot.slane %v6637_v21, 2  ;;  %v6644_v32 = vmax.f32 %v6642_v13, %v6643_v59  ;;  %v6657_v35 = vrot.slane %v6656_v58, 4 }
 0x2c0   : > { %v7376_v17 = vsel %vm7375_vm6, %v7312_v63, %v7311_v9  ;;  %v6651_v52 = vmax.f32 %v6649_v2, %v6650_v29  ;;  %v5858_v36 = vrot.slane %v5844_v33, %v17627_v28  ;;  %v5859_v50 = vcombine.high %v5851_v10, %v5851_v10  ;;  %v5499_v33 = vpop.f32.mrf.mxu0 }
 0x2c1   : > { %v7378_v0 = vsel %vm7377_vm10, %v7313_v26, %v7376_v17  ;;  %v6639_v55 = vmax.f32 %v6637_v21, %v6638_v7  ;;  %v6645_v6 = vrot.slane %v6644_v32, 2  ;;  %v6658_v14 = vmax.f32 %v6656_v58, %v6657_v35 }
 0x2c2   : > { %v6652_v30 = vrot.slane %v6651_v52, 2  ;;  %v7380_v51 = vsel %vm7379_vm11, %v7314_v16, %v7378_v0  ;;  %v5860_v39 = vcombine.high %v5858_v36, %v5858_v36  ;;  %v6440_v61 = vsel %vm6414_vm5, %v5851_v10, -inf  ;;  %v14756_v10 = vld [vmem:[%s19389_s3 + $0x8] sm:$0xff]  }
 0x2c3   : > { %v6640_v53 = vrot.slane %v6639_v55, 1  ;;  %v6646_v37 = vmax.f32 %v6644_v32, %v6645_v6  ;;  %v6659_v24 = vrot.slane %v6658_v14, 2  ;;  %v6443_v25 = vsel %vm6414_vm5, %v5859_v50, -inf  ;;  %14333 = vmatprep.subr.bf16.mxu1 %v14756_v10 }
 0x2c4   : > { %v6653_v34 = vmax.f32 %v6651_v52, %v6652_v30  ;;  %v6446_v47 = vsel %vm6414_vm5, %v5858_v36, -inf  ;;  %v6449_v9 = vsel %vm6414_vm5, %v5860_v39, -inf  ;;  %v5682_v13 = vmax.f32 %v17769_v40, 0.0  ;;  %14334 = vmatpush3.bf16.msra.mxu1 %v14756_v10 }
 0x2c5   : > { %v6641_v2 = vmax.f32 %v6639_v55, %v6640_v53  ;;  %v6647_v1 = vrot.slane %v6646_v37, 1  ;;  %v6660_v26 = vmax.f32 %v6658_v14, %v6659_v24  ;;  %v5653_v21 = vadd.f32 %v17662_v38, %v17765_v54  ;;  %v7469_v14 = vld [vmem:[#allocation3 + $0xc] sm:$0x1] }
 0x2c6   : > { %v6654_v59 = vrot.slane %v6653_v34, 1  ;;  %v5810_v63 = vcombine.high %v5682_v13, %v5682_v13  ;;  %v5817_v29 = vrot.slane %v5682_v13, %v17627_v28  ;;  %v5612_v58 = vadd.f32 %v5499_v33, %v17648_v27 }
 0x2c7   : > { %v6648_v16 = vmax.f32 %v6646_v37, %v6647_v1  ;;  %v6661_v7 = vrot.slane %v6660_v26, 1  ;;  %v13629_v32 = vpack.c.bf16 %v6641_v2, %v6641_v2  ;;  %v5685_v40 = vmax.f32 %v5653_v21, 0.0 }
 0x2c8   : > { %v6655_v35 = vmax.f32 %v6653_v34, %v6654_v59  ;;  %v5824_v17 = vrot.slane %v5810_v63, %v17627_v28  ;;  %v5825_v52 = vcombine.high %v5817_v29, %v5817_v29  ;;  %v6439_v54 = vsel %vm6414_vm5, %v5817_v29, -inf }
 0x2c9   : > { %v6662_v36 = vmax.f32 %v6660_v26, %v6661_v7  ;;  %v13630_v50 = vpack.c.bf16 %v6648_v16, %v6648_v16  ;;  %v7315_v0 = vunpack.c.l.b16 %v13629_v32  ;;  %v6441_v55 = vmax.f32 %v6439_v54, %v6440_v61 }
 0x2ca   : > { %v13631_v27 = vpack.c.bf16 %v6655_v35, %v6655_v35  ;;  %v5826_v30 = vcombine.high %v5824_v17, %v5824_v17  ;;  %v6442_v39 = vsel %vm6414_vm5, %v5825_v52, -inf  ;;  %v6445_v53 = vsel %vm6414_vm5, %v5824_v17, -inf  ;;  %v14311_v17 = vpop.f32.mrf.mxu0 }
 0x2cb   : > { %v7316_v37 = vunpack.c.l.b16 %v13630_v50  ;;  %v7382_v24 = vsel %vm7381_vm12, %v7315_v0, %v7380_v51  ;;  %v13689_v33 = vpack.c.bf16 %v6662_v36, %v6662_v36  ;;  %v6444_v34 = vmax.f32 %v6442_v39, %v6443_v25  ;;  %v7464_v25 = vld [vmem:[#allocation3 + $0x8] sm:$0xf] }
 0x2cc   : > { %v7317_v61 = vunpack.c.l.b16 %v13631_v27  ;;  %v6447_v13 = vmax.f32 %v6445_v53, %v6446_v47  ;;  %v6448_v2 = vsel %vm6414_vm5, %v5826_v30, -inf  ;;  %v6663_v1 = vsel %vm6414_vm5, %v6441_v55, -inf }
 0x2cd   : > { %v7384_v26 = vsel %vm7383_vm14, %v7316_v37, %v7382_v24  ;;  %v7470_v21 = vsel %vm17801_vm2, %v13689_v33, %v7469_v14  ;;  %v6450_v59 = vmax.f32 %v6448_v2, %v6449_v9  ;;  %v6664_v63 = vrot.slane %v6663_v1, 4 }
 0x2ce   : > { %v7386_v29 = vsel %vm7385_vm15, %v7317_v61, %v7384_v26  ;;  %7471 = vst [vmem:[#allocation3 + $0xc] sm:$0x1] %v7470_v21  ;;  %v6670_v47 = vsel %vm6414_vm5, %v6444_v34, -inf  ;;  %v6677_v10 = vsel %vm6414_vm5, %v6447_v13, -inf  ;;  %v5861_v16 = vcombine.high %v5685_v40, %v5685_v40  ;;  %v5512_v61 = vpop.f32.mrf.mxu0 }
 0x2cf   : > { %v7429_v7 = vpack.c.b16 %v7386_v29, %v7386_v29  ;;  %v6665_v32 = vmax.f32 %v6663_v1, %v6664_v63  ;;  %v6671_v35 = vrot.slane %v6670_v47, 4  ;;  %v6678_v9 = vrot.slane %v6677_v10, 4 }
 0x2d0   : > { %v6684_v52 = vsel %vm6414_vm5, %v6450_v59, -inf  ;;  %v5868_v54 = vrot.slane %v5685_v40, %v17627_v28  ;;  %v5875_v36 = vrot.slane %v5861_v16, %v17627_v28  ;;  %v5651_v50 = vadd.f32 %v17662_v38, %v5612_v58 }
 0x2d1   : > { %v7465_v0 = vsel %vm17816_vm1, %v7429_v7, %v7464_v25  ;;  %v6666_v55 = vrot.slane %v6665_v32, 2  ;;  %v6672_v27 = vmax.f32 %v6670_v47, %v6671_v35  ;;  %v6679_v14 = vmax.f32 %v6677_v10, %v6678_v9 }
 0x2d2   : > { %7466 = vst [vmem:[#allocation3 + $0x8] sm:$0xf] %v7465_v0  ;;  %v6685_v30 = vrot.slane %v6684_v52, 4  ;;  %v5876_v39 = vcombine.high %v5868_v54, %v5868_v54  ;;  %v5877_v53 = vcombine.high %v5875_v36, %v5875_v36  ;;  %v6452_v37 = vsel %vm6414_vm5, %v5868_v54, -inf }
 0x2d3   : > { %v6667_v24 = vmax.f32 %v6665_v32, %v6666_v55  ;;  %v6673_v33 = vrot.slane %v6672_v27, 2  ;;  %v6680_v34 = vrot.slane %v6679_v14, 2  ;;  %v6458_v40 = vsel %vm6414_vm5, %v5875_v36, -inf }
 0x2d4   : > { %v6686_v13 = vmax.f32 %v6684_v52, %v6685_v30  ;;  %v6455_v58 = vsel %vm6414_vm5, %v5876_v39, -inf  ;;  %v6461_v2 = vsel %vm6414_vm5, %v5877_v53, -inf  ;;  %v5683_v1 = vmax.f32 %v5651_v50, 0.0 }
 0x2d5   : > { %v6668_v26 = vrot.slane %v6667_v24, 1  ;;  %v6674_v21 = vmax.f32 %v6672_v27, %v6673_v33  ;;  %v6681_v59 = vmax.f32 %v6679_v14, %v6680_v34  ;;  %v5617_v63 = vadd.f32 %v14311_v17, %v17652_v42 }
 0x2d6   : > { %v6687_v29 = vrot.slane %v6686_v13, 2  ;;  %v5827_v25 = vcombine.high %v5683_v1, %v5683_v1  ;;  %v5834_v47 = vrot.slane %v5683_v1, %v17627_v28  ;;  %v5615_v10 = vadd.f32 %v5512_v61, %v17656_v41 }
 0x2d7   : > { %v6669_v16 = vmax.f32 %v6667_v24, %v6668_v26  ;;  %v6675_v7 = vrot.slane %v6674_v21, 1  ;;  %v6682_v32 = vrot.slane %v6681_v59, 1  ;;  %v5656_v35 = vadd.f32 %v17662_v38, %v5617_v63 }
 0x2d8   : > { %v6688_v9 = vmax.f32 %v6686_v13, %v6687_v29  ;;  %v5841_v52 = vrot.slane %v5827_v25, %v17627_v28  ;;  %v5842_v54 = vcombine.high %v5834_v47, %v5834_v47  ;;  %v6451_v36 = vsel %vm6414_vm5, %v5834_v47, -inf }
 0x2d9   : > { %v6676_v50 = vmax.f32 %v6674_v21, %v6675_v7  ;;  %v6683_v0 = vmax.f32 %v6681_v59, %v6682_v32  ;;  %v13633_v42 = vpack.c.bf16 %v6669_v16, %v6669_v16  ;;  %v6453_v17 = vmax.f32 %v6451_v36, %v6452_v37 }
 0x2da   : > { %v6689_v55 = vrot.slane %v6688_v9, 1  ;;  %v5843_v27 = vcombine.high %v5841_v52, %v5841_v52  ;;  %v6454_v14 = vsel %vm6414_vm5, %v5842_v54, -inf  ;;  %v6457_v41 = vsel %vm6414_vm5, %v5841_v52, -inf }
 0x2db   : > { %v13634_v30 = vpack.c.bf16 %v6676_v50, %v6676_v50  ;;  %v13635_v39 = vpack.c.bf16 %v6683_v0, %v6683_v0  ;;  %v7319_v53 = vunpack.c.l.b16 %v13633_v42  ;;  %v6456_v24 = vmax.f32 %v6454_v14, %v6455_v58  ;;  %v14312_v0 = vpop.f32.mrf.mxu0 }
 0x2dc   : > { %v6690_v33 = vmax.f32 %v6688_v9, %v6689_v55  ;;  %v6459_v34 = vmax.f32 %v6457_v41, %v6458_v40  ;;  %v6460_v61 = vsel %vm6414_vm5, %v5843_v27, -inf  ;;  %v6691_v13 = vsel %vm6414_vm5, %v6453_v17, -inf }
 0x2dd   : > { %v7320_v1 = vunpack.c.l.b16 %v13634_v30  ;;  %v7321_v26 = vunpack.c.l.b16 %v13635_v39  ;;  %v6462_v21 = vmax.f32 %v6460_v61, %v6461_v2  ;;  %v6692_v37 = vrot.slane %v6691_v13, 4 }
 0x2de   : > { %v13636_v59 = vpack.c.bf16 %v6690_v33, %v6690_v33  ;;  %v6698_v63 = vsel %vm6414_vm5, %v6456_v24, -inf  ;;  %v6705_v29 = vsel %vm6414_vm5, %v6459_v34, -inf  ;;  %v5688_v25 = vmax.f32 %v5656_v35, 0.0 }
 0x2df   : > { %v7387_v47 = vsel %vm7375_vm6, %v7320_v1, %v7319_v53  ;;  %v6693_v16 = vmax.f32 %v6691_v13, %v6692_v37  ;;  %v6699_v58 = vrot.slane %v6698_v63, 4  ;;  %v6706_v7 = vrot.slane %v6705_v29, 4 }
 0x2e0   : > { %v7322_v40 = vunpack.c.l.b16 %v13636_v59  ;;  %v7388_v32 = vsel %vm7377_vm10, %v7321_v26, %v7387_v47  ;;  %v6712_v9 = vsel %vm6414_vm5, %v6462_v21, -inf  ;;  %v5912_v52 = vcombine.high %v5688_v25, %v5688_v25  ;;  %v5515_v26 = vpop.f32.mrf.mxu0 }
 0x2e1   : > { %v6694_v54 = vrot.slane %v6693_v16, 2  ;;  %v6700_v2 = vmax.f32 %v6698_v63, %v6699_v58  ;;  %v6707_v36 = vmax.f32 %v6705_v29, %v6706_v7  ;;  %v6713_v50 = vrot.slane %v6712_v9, 4 }
 0x2e2   : > { %v7389_v42 = vsel %vm7379_vm11, %v7322_v40, %v7388_v32  ;;  %v5919_v35 = vrot.slane %v5688_v25, %v17627_v28  ;;  %v5926_v17 = vrot.slane %v5912_v52, %v17627_v28  ;;  %v5654_v55 = vadd.f32 %v17662_v38, %v5615_v10 }
 0x2e3   : > { %v6695_v27 = vmax.f32 %v6693_v16, %v6694_v54  ;;  %v6701_v14 = vrot.slane %v6700_v2, 2  ;;  %v6708_v41 = vrot.slane %v6707_v36, 2  ;;  %v6714_v30 = vmax.f32 %v6712_v9, %v6713_v50 }
 0x2e4   : > { %v5927_v39 = vcombine.high %v5919_v35, %v5919_v35  ;;  %v5928_v53 = vcombine.high %v5926_v17, %v5926_v17  ;;  %v6464_v24 = vsel %vm6414_vm5, %v5919_v35, -inf  ;;  %v6470_v33 = vsel %vm6414_vm5, %v5926_v17, -inf }
 0x2e5   : > { %v6696_v34 = vrot.slane %v6695_v27, 1  ;;  %v6702_v61 = vmax.f32 %v6700_v2, %v6701_v14  ;;  %v6709_v13 = vmax.f32 %v6707_v36, %v6708_v41  ;;  %v6715_v1 = vrot.slane %v6714_v30, 2 }
 0x2e6   : > { %v6467_v21 = vsel %vm6414_vm5, %v5927_v39, -inf  ;;  %v6473_v37 = vsel %vm6414_vm5, %v5928_v53, -inf  ;;  %v5686_v10 = vmax.f32 %v5654_v55, 0.0  ;;  %v5618_v59 = vadd.f32 %v14312_v0, %v17660_v19 }
 0x2e7   : > { %v6697_v63 = vmax.f32 %v6695_v27, %v6696_v34  ;;  %v6703_v29 = vrot.slane %v6702_v61, 1  ;;  %v6710_v25 = vrot.slane %v6709_v13, 1  ;;  %v6716_v47 = vmax.f32 %v6714_v30, %v6715_v1  ;;  %v7475_v27 = vld [vmem:[#allocation3 + $0x14] sm:$0x1] }
 0x2e8   : > { %v5878_v16 = vcombine.high %v5686_v10, %v5686_v10  ;;  %v5885_v58 = vrot.slane %v5686_v10, %v17627_v28  ;;  %v5657_v7 = vadd.f32 %v17662_v38, %v5618_v59  ;;  %v5616_v40 = vadd.f32 %v5515_v26, %v17665_v12 }
 0x2e9   : > { %v6704_v32 = vmax.f32 %v6702_v61, %v6703_v29  ;;  %v6711_v9 = vmax.f32 %v6709_v13, %v6710_v25  ;;  %v6717_v52 = vrot.slane %v6716_v47, 1  ;;  %v13637_v54 = vpack.c.bf16 %v6697_v63, %v6697_v63 }
 0x2ea   : > { %v5892_v2 = vrot.slane %v5878_v16, %v17627_v28  ;;  %v5893_v36 = vcombine.high %v5885_v58, %v5885_v58  ;;  %v6463_v19 = vsel %vm6414_vm5, %v5885_v58, -inf  ;;  %v5689_v50 = vmax.f32 %v5657_v7, 0.0 }
 0x2eb   : > { %v6718_v0 = vmax.f32 %v6716_v47, %v6717_v52  ;;  %v13638_v35 = vpack.c.bf16 %v6704_v32, %v6704_v32  ;;  %v13639_v17 = vpack.c.bf16 %v6711_v9, %v6711_v9  ;;  %v7323_v55 = vunpack.c.l.b16 %v13637_v54  ;;  %v7472_v47 = vld [vmem:[#allocation3 + $0x10] sm:$0xf]  ;;  %v14315_v9 = vpop.f32.mrf.mxu0 }
 0x2ec   : > { %v5894_v14 = vcombine.high %v5892_v2, %v5892_v2  ;;  %v6465_v41 = vmax.f32 %v6463_v19, %v6464_v24  ;;  %v6466_v30 = vsel %vm6414_vm5, %v5893_v36, -inf  ;;  %v6469_v12 = vsel %vm6414_vm5, %v5892_v2, -inf }
 0x2ed   : > { %v7324_v39 = vunpack.c.l.b16 %v13638_v35  ;;  %v7325_v53 = vunpack.c.l.b16 %v13639_v17  ;;  %v7390_v34 = vsel %vm7381_vm12, %v7323_v55, %v7389_v42  ;;  %v13690_v61 = vpack.c.bf16 %v6718_v0, %v6718_v0 }
 0x2ee   : > { %v6468_v13 = vmax.f32 %v6466_v30, %v6467_v21  ;;  %v6471_v1 = vmax.f32 %v6469_v12, %v6470_v33  ;;  %v6472_v26 = vsel %vm6414_vm5, %v5894_v14, -inf  ;;  %v6719_v10 = vsel %vm6414_vm5, %v6465_v41, -inf }
 0x2ef   : > { %v7391_v59 = vsel %vm7383_vm14, %v7324_v39, %v7390_v34  ;;  %v7476_v24 = vsel %vm17801_vm2, %v13690_v61, %v7475_v27  ;;  %v6474_v63 = vmax.f32 %v6472_v26, %v6473_v37  ;;  %v6720_v29 = vrot.slane %v6719_v10, 4  ;;  %v5528_v39 = vpop.f32.mrf.mxu0 }
 0x2f0   : > { %v7392_v25 = vsel %vm7385_vm15, %v7325_v53, %v7391_v59  ;;  %7477 = vst [vmem:[#allocation3 + $0x14] sm:$0x1] %v7476_v24  ;;  %v6726_v42 = vsel %vm6414_vm5, %v6468_v13, -inf  ;;  %v6733_v21 = vsel %vm6414_vm5, %v6471_v1, -inf  ;;  %v5929_v33 = vcombine.high %v5689_v50, %v5689_v50 }
 0x2f1   : > { %v7431_v16 = vpack.c.b16 %v7392_v25, %v7392_v25  ;;  %v6721_v58 = vmax.f32 %v6719_v10, %v6720_v29  ;;  %v6727_v7 = vrot.slane %v6726_v42, 4  ;;  %v6734_v32 = vrot.slane %v6733_v21, 4 }
 0x2f2   : > { %v6740_v52 = vsel %vm6414_vm5, %v6474_v63, -inf  ;;  %v5936_v54 = vrot.slane %v5689_v50, %v17627_v28  ;;  %v5943_v37 = vrot.slane %v5929_v33, %v17627_v28  ;;  %v5655_v2 = vadd.f32 %v17662_v38, %v5616_v40 }
 0x2f3   : > { %v7473_v36 = vsel %vm17816_vm1, %v7431_v16, %v7472_v47  ;;  %v6722_v19 = vrot.slane %v6721_v58, 2  ;;  %v6728_v0 = vmax.f32 %v6726_v42, %v6727_v7  ;;  %v6735_v35 = vmax.f32 %v6733_v21, %v6734_v32 }
 0x2f4   : > { %7474 = vst [vmem:[#allocation3 + $0x10] sm:$0xf] %v7473_v36  ;;  %v6741_v17 = vrot.slane %v6740_v52, 4  ;;  %v5944_v55 = vcombine.high %v5936_v54, %v5936_v54  ;;  %v5945_v27 = vcombine.high %v5943_v37, %v5943_v37  ;;  %v6476_v14 = vsel %vm6414_vm5, %v5936_v54, -inf }
 0x2f5   : > { %v6723_v41 = vmax.f32 %v6721_v58, %v6722_v19  ;;  %v6729_v30 = vrot.slane %v6728_v0, 2  ;;  %v6736_v12 = vrot.slane %v6735_v35, 2  ;;  %v6482_v50 = vsel %vm6414_vm5, %v5943_v37, -inf }
 0x2f6   : > { %v6742_v53 = vmax.f32 %v6740_v52, %v6741_v17  ;;  %v6479_v40 = vsel %vm6414_vm5, %v5944_v55, -inf  ;;  %v6485_v34 = vsel %vm6414_vm5, %v5945_v27, -inf  ;;  %v5687_v61 = vmax.f32 %v5655_v2, 0.0 }
 0x2f7   : > { %v6724_v13 = vrot.slane %v6723_v41, 1  ;;  %v6730_v1 = vmax.f32 %v6728_v0, %v6729_v30  ;;  %v6737_v26 = vmax.f32 %v6735_v35, %v6736_v12  ;;  %v5621_v10 = vadd.f32 %v14315_v9, %v17669_v4 }
 0x2f8   : > { %v6743_v59 = vrot.slane %v6742_v53, 2  ;;  %v5895_v24 = vcombine.high %v5687_v61, %v5687_v61  ;;  %v5902_v63 = vrot.slane %v5687_v61, %v17627_v28  ;;  %v5619_v29 = vadd.f32 %v5528_v39, %v17673_v15 }
 0x2f9   : > { %v6725_v25 = vmax.f32 %v6723_v41, %v6724_v13  ;;  %v6731_v47 = vrot.slane %v6730_v1, 1  ;;  %v6738_v42 = vrot.slane %v6737_v26, 1  ;;  %v5660_v21 = vadd.f32 %v17662_v38, %v5621_v10 }
 0x2fa   : > { %v6744_v33 = vmax.f32 %v6742_v53, %v6743_v59  ;;  %v5909_v16 = vrot.slane %v5895_v24, %v17627_v28  ;;  %v5910_v58 = vcombine.high %v5902_v63, %v5902_v63  ;;  %v6475_v7 = vsel %vm6414_vm5, %v5902_v63, -inf }
 0x2fb   : > { %v6732_v32 = vmax.f32 %v6730_v1, %v6731_v47  ;;  %v6739_v52 = vmax.f32 %v6737_v26, %v6738_v42  ;;  %v13641_v4 = vpack.c.bf16 %v6725_v25, %v6725_v25  ;;  %v6477_v9 = vmax.f32 %v6475_v7, %v6476_v14 }
 0x2fc   : > { %v6745_v54 = vrot.slane %v6744_v33, 1  ;;  %v5911_v37 = vcombine.high %v5909_v16, %v5909_v16  ;;  %v6478_v2 = vsel %vm6414_vm5, %v5910_v58, -inf  ;;  %v6481_v15 = vsel %vm6414_vm5, %v5909_v16, -inf  ;;  %v14316_v16 = vpop.f32.mrf.mxu0 }
 0x2fd   : > { %v13642_v36 = vpack.c.bf16 %v6732_v32, %v6732_v32  ;;  %v13643_v19 = vpack.c.bf16 %v6739_v52, %v6739_v52  ;;  %v7327_v0 = vunpack.c.l.b16 %v13641_v4  ;;  %v6480_v35 = vmax.f32 %v6478_v2, %v6479_v40 }
 0x2fe   : > { %v6746_v17 = vmax.f32 %v6744_v33, %v6745_v54  ;;  %v6483_v55 = vmax.f32 %v6481_v15, %v6482_v50  ;;  %v6484_v27 = vsel %vm6414_vm5, %v5911_v37, -inf  ;;  %v6747_v41 = vsel %vm6414_vm5, %v6477_v9, -inf }
 0x2ff   : > { %v7328_v30 = vunpack.c.l.b16 %v13642_v36  ;;  %v7329_v12 = vunpack.c.l.b16 %v13643_v19  ;;  %v6486_v39 = vmax.f32 %v6484_v27, %v6485_v34  ;;  %v6748_v14 = vrot.slane %v6747_v41, 4 }
 0x300   : > { %v13644_v53 = vpack.c.bf16 %v6746_v17, %v6746_v17  ;;  %v6754_v61 = vsel %vm6414_vm5, %v6480_v35, -inf  ;;  %v6761_v13 = vsel %vm6414_vm5, %v6483_v55, -inf  ;;  %v5692_v1 = vmax.f32 %v5660_v21, 0.0  ;;  %v5531_v55 = vpop.f32.mrf.mxu0 }
 0x301   : > { %v7393_v26 = vsel %vm7375_vm6, %v7328_v30, %v7327_v0  ;;  %v6749_v10 = vmax.f32 %v6747_v41, %v6748_v14  ;;  %v6755_v40 = vrot.slane %v6754_v61, 4  ;;  %v6762_v59 = vrot.slane %v6761_v13, 4 }
 0x302   : > { %v7330_v50 = vunpack.c.l.b16 %v13644_v53  ;;  %v7394_v24 = vsel %vm7377_vm10, %v7329_v12, %v7393_v26  ;;  %v6768_v63 = vsel %vm6414_vm5, %v6486_v39, -inf  ;;  %v5980_v25 = vcombine.high %v5692_v1, %v5692_v1 }
 0x303   : > { %v6750_v47 = vrot.slane %v6749_v10, 2  ;;  %v6756_v34 = vmax.f32 %v6754_v61, %v6755_v40  ;;  %v6763_v42 = vmax.f32 %v6761_v13, %v6762_v59  ;;  %v6769_v33 = vrot.slane %v6768_v63, 4 }
 0x304   : > { %v7395_v58 = vsel %vm7379_vm11, %v7330_v50, %v7394_v24  ;;  %v5987_v21 = vrot.slane %v5692_v1, %v17627_v28  ;;  %v5994_v7 = vrot.slane %v5980_v25, %v17627_v28  ;;  %v5658_v32 = vadd.f32 %v17662_v38, %v5619_v29 }
 0x305   : > { %v6751_v52 = vmax.f32 %v6749_v10, %v6750_v47  ;;  %v6757_v4 = vrot.slane %v6756_v34, 2  ;;  %v6764_v9 = vrot.slane %v6763_v42, 2  ;;  %v6770_v54 = vmax.f32 %v6768_v63, %v6769_v33 }
 0x306   : > { %v5995_v37 = vcombine.high %v5987_v21, %v5987_v21  ;;  %v5996_v2 = vcombine.high %v5994_v7, %v5994_v7  ;;  %v6488_v15 = vsel %vm6414_vm5, %v5987_v21, -inf  ;;  %v6494_v36 = vsel %vm6414_vm5, %v5994_v7, -inf }
 0x307   : > { %v6752_v19 = vrot.slane %v6751_v52, 1  ;;  %v6758_v0 = vmax.f32 %v6756_v34, %v6757_v4  ;;  %v6765_v35 = vmax.f32 %v6763_v42, %v6764_v9  ;;  %v6771_v17 = vrot.slane %v6770_v54, 2 }
 0x308   : > { %v6491_v27 = vsel %vm6414_vm5, %v5995_v37, -inf  ;;  %v6497_v41 = vsel %vm6414_vm5, %v5996_v2, -inf  ;;  %v5690_v29 = vmax.f32 %v5658_v32, 0.0  ;;  %v5622_v30 = vadd.f32 %v14316_v16, %v17677_v44  ;;  %v7481_v16 = vld [vmem:[#allocation3 + $0x1c] sm:$0x1] }
 0x309   : > { %v6753_v12 = vmax.f32 %v6751_v52, %v6752_v19  ;;  %v6759_v39 = vrot.slane %v6758_v0, 1  ;;  %v6766_v14 = vrot.slane %v6765_v35, 1  ;;  %v6772_v53 = vmax.f32 %v6770_v54, %v6771_v17 }
 0x30a   : > { %v5946_v61 = vcombine.high %v5690_v29, %v5690_v29  ;;  %v5953_v13 = vrot.slane %v5690_v29, %v17627_v28  ;;  %v5661_v1 = vadd.f32 %v17662_v38, %v5622_v30  ;;  %v5620_v26 = vadd.f32 %v5531_v55, %v17680_v3  ;;  %v7478_v29 = vld [vmem:[#allocation3 + $0x18] sm:$0xf] }
 0x30b   : > { %v6760_v10 = vmax.f32 %v6758_v0, %v6759_v39  ;;  %v6767_v40 = vmax.f32 %v6765_v35, %v6766_v14  ;;  %v6773_v59 = vrot.slane %v6772_v53, 1  ;;  %v13645_v50 = vpack.c.bf16 %v6753_v12, %v6753_v12 }
 0x30c   : > { %v5960_v24 = vrot.slane %v5946_v61, %v17627_v28  ;;  %v5961_v63 = vcombine.high %v5953_v13, %v5953_v13  ;;  %v6487_v44 = vsel %vm6414_vm5, %v5953_v13, -inf  ;;  %v5693_v25 = vmax.f32 %v5661_v1, 0.0  ;;  %v17925_v1 = vld [vmem:[#allocation6] ss:$0 sm:$0xff] }
 0x30d   : > { %v6774_v47 = vmax.f32 %v6772_v53, %v6773_v59  ;;  %v13646_v34 = vpack.c.bf16 %v6760_v10, %v6760_v10  ;;  %v13647_v42 = vpack.c.bf16 %v6767_v40, %v6767_v40  ;;  %v7331_v33 = vunpack.c.l.b16 %v13645_v50  ;;  %v14319_v53 = vpop.f32.mrf.mxu0 }
 0x30e   : > { %v5962_v21 = vcombine.high %v5960_v24, %v5960_v24  ;;  %v6489_v7 = vmax.f32 %v6487_v44, %v6488_v15  ;;  %v6490_v38 = vsel %vm6414_vm5, %v5961_v63, -inf  ;;  %v6493_v3 = vsel %vm6414_vm5, %v5960_v24, -inf }
 0x30f   : > { %v7332_v32 = vunpack.c.l.b16 %v13646_v34  ;;  %v7333_v52 = vunpack.c.l.b16 %v13647_v42  ;;  %v7396_v4 = vsel %vm7381_vm12, %v7331_v33, %v7395_v58  ;;  %v13691_v9 = vpack.c.bf16 %v6774_v47, %v6774_v47 }
 0x310   : > { %v6492_v54 = vmax.f32 %v6490_v38, %v6491_v27  ;;  %v6495_v37 = vmax.f32 %v6493_v3, %v6494_v36  ;;  %v6496_v2 = vsel %vm6414_vm5, %v5962_v21, -inf  ;;  %v6775_v19 = vsel %vm6414_vm5, %v6489_v7, -inf  ;;  %v5544_v21 = vpop.f32.mrf.mxu0 }
 0x311   : > { %v7397_v0 = vsel %vm7383_vm14, %v7332_v32, %v7396_v4  ;;  %v7482_v15 = vsel %vm17801_vm2, %v13691_v9, %v7481_v16  ;;  %v6498_v35 = vmax.f32 %v6496_v2, %v6497_v41  ;;  %v6776_v17 = vrot.slane %v6775_v19, 4 }
 0x312   : > { %v7398_v55 = vsel %vm7385_vm15, %v7333_v52, %v7397_v0  ;;  %7483 = vst [vmem:[#allocation3 + $0x1c] sm:$0x1] %v7482_v15  ;;  %v6782_v58 = vsel %vm6414_vm5, %v6492_v54, -inf  ;;  %v6789_v27 = vsel %vm6414_vm5, %v6495_v37, -inf  ;;  %v5997_v36 = vcombine.high %v5693_v25, %v5693_v25 }
 0x313   : > { %v7433_v30 = vpack.c.b16 %v7398_v55, %v7398_v55  ;;  %v6777_v12 = vmax.f32 %v6775_v19, %v6776_v17  ;;  %v6783_v39 = vrot.slane %v6782_v58, 4  ;;  %v6790_v14 = vrot.slane %v6789_v27, 4 }
 0x314   : > { %v6796_v61 = vsel %vm6414_vm5, %v6498_v35, -inf  ;;  %v6004_v13 = vrot.slane %v5693_v25, %v17627_v28  ;;  %v6011_v41 = vrot.slane %v5997_v36, %v17627_v28  ;;  %v5659_v10 = vadd.f32 %v17925_v1, %v5620_v26 }
 0x315   : > { %v7479_v40 = vsel %vm17816_vm1, %v7433_v30, %v7478_v29  ;;  %v6778_v59 = vrot.slane %v6777_v12, 2  ;;  %v6784_v50 = vmax.f32 %v6782_v58, %v6783_v39  ;;  %v6791_v24 = vmax.f32 %v6789_v27, %v6790_v14 }
 0x316   : > { %7480 = vst [vmem:[#allocation3 + $0x18] sm:$0xf] %v7479_v40  ;;  %v6797_v63 = vrot.slane %v6796_v61, 4  ;;  %v6012_v44 = vcombine.high %v6004_v13, %v6004_v13  ;;  %v6013_v47 = vcombine.high %v6011_v41, %v6011_v41  ;;  %v6500_v34 = vsel %vm6414_vm5, %v6004_v13, -inf }
 0x317   : > { %v6779_v42 = vmax.f32 %v6777_v12, %v6778_v59  ;;  %v6785_v25 = vrot.slane %v6784_v50, 2  ;;  %v6792_v33 = vrot.slane %v6791_v24, 2  ;;  %v6506_v16 = vsel %vm6414_vm5, %v6011_v41, -inf }
 0x318   : > { %v6798_v7 = vmax.f32 %v6796_v61, %v6797_v63  ;;  %v6503_v26 = vsel %vm6414_vm5, %v6012_v44, -inf  ;;  %v6509_v38 = vsel %vm6414_vm5, %v6013_v47, -inf  ;;  %v5691_v3 = vmax.f32 %v5659_v10, 0.0 }
 0x319   : > { %v6780_v32 = vrot.slane %v6779_v42, 1  ;;  %v6786_v52 = vmax.f32 %v6784_v50, %v6785_v25  ;;  %v6793_v4 = vmax.f32 %v6791_v24, %v6792_v33  ;;  %v5625_v9 = vadd.f32 %v14319_v53, %v17684_v48 }
 0x31a   : > { %v6799_v54 = vrot.slane %v6798_v7, 2  ;;  %v5963_v37 = vcombine.high %v5691_v3, %v5691_v3  ;;  %v5970_v2 = vrot.slane %v5691_v3, %v17627_v28  ;;  %v5623_v19 = vadd.f32 %v5544_v21, %v17688_v49 }
 0x31b   : > { %v6781_v0 = vmax.f32 %v6779_v42, %v6780_v32  ;;  %v6787_v15 = vrot.slane %v6786_v52, 1  ;;  %v6794_v35 = vrot.slane %v6793_v4, 1  ;;  %v5664_v17 = vadd.f32 %v17925_v1, %v5625_v9 }
 0x31c   : > { %v6800_v55 = vmax.f32 %v6798_v7, %v6799_v54  ;;  %v5977_v29 = vrot.slane %v5963_v37, %v17627_v28  ;;  %v5978_v58 = vcombine.high %v5970_v2, %v5970_v2  ;;  %v6499_v27 = vsel %vm6414_vm5, %v5970_v2, -inf }
 0x31d   : > { %v6788_v36 = vmax.f32 %v6786_v52, %v6787_v15  ;;  %v6795_v30 = vmax.f32 %v6793_v4, %v6794_v35  ;;  %v13649_v48 = vpack.c.bf16 %v6781_v0, %v6781_v0  ;;  %v6501_v12 = vmax.f32 %v6499_v27, %v6500_v34  ;;  %v14320_v0 = vpop.f32.mrf.mxu0 }
 0x31e   : > { %v6801_v39 = vrot.slane %v6800_v55, 1  ;;  %v5979_v14 = vcombine.high %v5977_v29, %v5977_v29  ;;  %v6502_v53 = vsel %vm6414_vm5, %v5978_v58, -inf  ;;  %v6505_v49 = vsel %vm6414_vm5, %v5977_v29, -inf }
 0x31f   : > { %v13650_v61 = vpack.c.bf16 %v6788_v36, %v6788_v36  ;;  %v13651_v13 = vpack.c.bf16 %v6795_v30, %v6795_v30  ;;  %v7335_v41 = vunpack.c.l.b16 %v13649_v48  ;;  %v6504_v10 = vmax.f32 %v6502_v53, %v6503_v26 }
 0x320   : > { %v6802_v40 = vmax.f32 %v6800_v55, %v6801_v39  ;;  %v6507_v59 = vmax.f32 %v6505_v49, %v6506_v16  ;;  %v6508_v50 = vsel %vm6414_vm5, %v5979_v14, -inf  ;;  %v6803_v24 = vsel %vm6414_vm5, %v6501_v12, -inf }
 0x321   : > { %v7336_v63 = vunpack.c.l.b16 %v13650_v61  ;;  %v7337_v44 = vunpack.c.l.b16 %v13651_v13  ;;  %v6510_v47 = vmax.f32 %v6508_v50, %v6509_v38  ;;  %v6804_v34 = vrot.slane %v6803_v24, 4  ;;  %v5547_v13 = vpop.f32.mrf.mxu0 }
 0x322   : > { %v13652_v42 = vpack.c.bf16 %v6802_v40, %v6802_v40  ;;  %v6810_v25 = vsel %vm6414_vm5, %v6504_v10, -inf  ;;  %v6817_v33 = vsel %vm6414_vm5, %v6507_v59, -inf  ;;  %v5696_v21 = vmax.f32 %v5664_v17, 0.0 }
 0x323   : > { %v7399_v7 = vsel %vm7375_vm6, %v7336_v63, %v7335_v41  ;;  %v6805_v3 = vmax.f32 %v6803_v24, %v6804_v34  ;;  %v6811_v26 = vrot.slane %v6810_v25, 4  ;;  %v6818_v32 = vrot.slane %v6817_v33, 4 }
 0x324   : > { %v7338_v16 = vunpack.c.l.b16 %v13652_v42  ;;  %v7400_v52 = vsel %vm7377_vm10, %v7337_v44, %v7399_v7  ;;  %v6824_v4 = vsel %vm6414_vm5, %v6510_v47, -inf  ;;  %v6048_v9 = vcombine.high %v5696_v21, %v5696_v21 }
 0x325   : > { %v6806_v54 = vrot.slane %v6805_v3, 2  ;;  %v6812_v38 = vmax.f32 %v6810_v25, %v6811_v26  ;;  %v6819_v37 = vmax.f32 %v6817_v33, %v6818_v32  ;;  %v6825_v2 = vrot.slane %v6824_v4, 4 }
 0x326   : > { %v7401_v15 = vsel %vm7379_vm11, %v7338_v16, %v7400_v52  ;;  %v6055_v35 = vrot.slane %v5696_v21, %v17627_v28  ;;  %v6062_v17 = vrot.slane %v6048_v9, %v17627_v28  ;;  %v5662_v55 = vadd.f32 %v17925_v1, %v5623_v19 }
 0x327   : > { %v6807_v29 = vmax.f32 %v6805_v3, %v6806_v54  ;;  %v6813_v58 = vrot.slane %v6812_v38, 2  ;;  %v6820_v27 = vrot.slane %v6819_v37, 2  ;;  %v6826_v36 = vmax.f32 %v6824_v4, %v6825_v2  ;;  %v7487_v54 = vld [vmem:[#allocation3 + $0x24] sm:$0x1] }
 0x328   : > { %v6063_v30 = vcombine.high %v6055_v35, %v6055_v35  ;;  %v6064_v48 = vcombine.high %v6062_v17, %v6062_v17  ;;  %v6512_v12 = vsel %vm6414_vm5, %v6055_v35, -inf  ;;  %v6518_v39 = vsel %vm6414_vm5, %v6062_v17, -inf }
 0x329   : > { %v6808_v14 = vrot.slane %v6807_v29, 1  ;;  %v6814_v53 = vmax.f32 %v6812_v38, %v6813_v58  ;;  %v6821_v49 = vmax.f32 %v6819_v37, %v6820_v27  ;;  %v6827_v61 = vrot.slane %v6826_v36, 2 }
 0x32a   : > { %v6515_v41 = vsel %vm6414_vm5, %v6063_v30, -inf  ;;  %v6521_v10 = vsel %vm6414_vm5, %v6064_v48, -inf  ;;  %v5694_v19 = vmax.f32 %v5662_v55, 0.0  ;;  %v5626_v40 = vadd.f32 %v14320_v0, %v17692_v23 }
 0x32b   : > { %v6809_v59 = vmax.f32 %v6807_v29, %v6808_v14  ;;  %v6815_v50 = vrot.slane %v6814_v53, 1  ;;  %v6822_v24 = vrot.slane %v6821_v49, 1  ;;  %v6828_v63 = vmax.f32 %v6826_v36, %v6827_v61 }
 0x32c   : > { %v6014_v44 = vcombine.high %v5694_v19, %v5694_v19  ;;  %v6021_v47 = vrot.slane %v5694_v19, %v17627_v28  ;;  %v5665_v34 = vadd.f32 %v17925_v1, %v5626_v40  ;;  %v5624_v42 = vadd.f32 %v5547_v13, %v17696_v22 }
 0x32d   : > { %v6816_v25 = vmax.f32 %v6814_v53, %v6815_v50  ;;  %v6823_v33 = vmax.f32 %v6821_v49, %v6822_v24  ;;  %v6829_v21 = vrot.slane %v6828_v63, 1  ;;  %v13653_v7 = vpack.c.bf16 %v6809_v59, %v6809_v59  ;;  %v7484_v49 = vld [vmem:[#allocation3 + $0x20] sm:$0xf]  ;;  %v14323_v59 = vpop.f32.mrf.mxu0 }
 0x32e   : > { %v6028_v3 = vrot.slane %v6014_v44, %v17627_v28  ;;  %v6029_v26 = vcombine.high %v6021_v47, %v6021_v47  ;;  %v6511_v23 = vsel %vm6414_vm5, %v6021_v47, -inf  ;;  %v5697_v32 = vmax.f32 %v5665_v34, 0.0 }
 0x32f   : > { %v6830_v16 = vmax.f32 %v6828_v63, %v6829_v21  ;;  %v13654_v52 = vpack.c.bf16 %v6816_v25, %v6816_v25  ;;  %v13655_v4 = vpack.c.bf16 %v6823_v33, %v6823_v33  ;;  %v7339_v9 = vunpack.c.l.b16 %v13653_v7 }
 0x330   : > { %v6030_v38 = vcombine.high %v6028_v3, %v6028_v3  ;;  %v6513_v37 = vmax.f32 %v6511_v23, %v6512_v12  ;;  %v6514_v2 = vsel %vm6414_vm5, %v6029_v26, -inf  ;;  %v6517_v22 = vsel %vm6414_vm5, %v6028_v3, -inf }
 0x331   : > { %v7340_v0 = vunpack.c.l.b16 %v13654_v52  ;;  %v7341_v35 = vunpack.c.l.b16 %v13655_v4  ;;  %v7402_v17 = vsel %vm7381_vm12, %v7339_v9, %v7401_v15  ;;  %v13692_v55 = vpack.c.bf16 %v6830_v16, %v6830_v16  ;;  %v5560_v52 = vpop.f32.mrf.mxu0 }
 0x332   : > { %v6516_v29 = vmax.f32 %v6514_v2, %v6515_v41  ;;  %v6519_v58 = vmax.f32 %v6517_v22, %v6518_v39  ;;  %v6520_v27 = vsel %vm6414_vm5, %v6030_v38, -inf  ;;  %v6831_v36 = vsel %vm6414_vm5, %v6513_v37, -inf }
 0x333   : > { %v7403_v30 = vsel %vm7383_vm14, %v7340_v0, %v7402_v17  ;;  %v7488_v48 = vsel %vm17801_vm2, %v13692_v55, %v7487_v54  ;;  %v6522_v12 = vmax.f32 %v6520_v27, %v6521_v10  ;;  %v6832_v14 = vrot.slane %v6831_v36, 4 }
 0x334   : > { %v7404_v53 = vsel %vm7385_vm15, %v7341_v35, %v7403_v30  ;;  %7489 = vst [vmem:[#allocation3 + $0x24] sm:$0x1] %v7488_v48  ;;  %v6838_v15 = vsel %vm6414_vm5, %v6516_v29, -inf  ;;  %v6845_v61 = vsel %vm6414_vm5, %v6519_v58, -inf  ;;  %v6065_v39 = vcombine.high %v5697_v32, %v5697_v32 }
 0x335   : > { %v7435_v13 = vpack.c.b16 %v7404_v53, %v7404_v53  ;;  %v6833_v41 = vmax.f32 %v6831_v36, %v6832_v14  ;;  %v6839_v19 = vrot.slane %v6838_v15, 4  ;;  %v6846_v40 = vrot.slane %v6845_v61, 4 }
 0x336   : > { %v6852_v50 = vsel %vm6414_vm5, %v6522_v12, -inf  ;;  %v6072_v24 = vrot.slane %v5697_v32, %v17627_v28  ;;  %v6079_v10 = vrot.slane %v6065_v39, %v17627_v28  ;;  %v5663_v63 = vadd.f32 %v17925_v1, %v5624_v42 }
 0x337   : > { %v7485_v44 = vsel %vm17816_vm1, %v7435_v13, %v7484_v49  ;;  %v6834_v47 = vrot.slane %v6833_v41, 2  ;;  %v6840_v34 = vmax.f32 %v6838_v15, %v6839_v19  ;;  %v6847_v25 = vmax.f32 %v6845_v61, %v6846_v40 }
 0x338   : > { %7486 = vst [vmem:[#allocation3 + $0x20] sm:$0xf] %v7485_v44  ;;  %v6853_v33 = vrot.slane %v6852_v50, 4  ;;  %v6080_v21 = vcombine.high %v6072_v24, %v6072_v24  ;;  %v6081_v7 = vcombine.high %v6079_v10, %v6079_v10  ;;  %v6524_v3 = vsel %vm6414_vm5, %v6072_v24, -inf }
 0x339   : > { %v6835_v26 = vmax.f32 %v6833_v41, %v6834_v47  ;;  %v6841_v23 = vrot.slane %v6840_v34, 2  ;;  %v6848_v16 = vrot.slane %v6847_v25, 2  ;;  %v6530_v32 = vsel %vm6414_vm5, %v6079_v10, -inf }
 0x33a   : > { %v6854_v4 = vmax.f32 %v6852_v50, %v6853_v33  ;;  %v6527_v42 = vsel %vm6414_vm5, %v6080_v21, -inf  ;;  %v6533_v9 = vsel %vm6414_vm5, %v6081_v7, -inf  ;;  %v5695_v54 = vmax.f32 %v5663_v63, 0.0 }
 0x33b   : > { %v6836_v38 = vrot.slane %v6835_v26, 1  ;;  %v6842_v37 = vmax.f32 %v6840_v34, %v6841_v23  ;;  %v6849_v2 = vmax.f32 %v6847_v25, %v6848_v16  ;;  %v5629_v22 = vadd.f32 %v14323_v59, %v17701_v57 }
 0x33c   : > { %v6855_v0 = vrot.slane %v6854_v4, 2  ;;  %v6031_v35 = vcombine.high %v5695_v54, %v5695_v54  ;;  %v6038_v17 = vrot.slane %v5695_v54, %v17627_v28  ;;  %v5627_v55 = vadd.f32 %v5560_v52, %v17705_v43 }
 0x33d   : > { %v6837_v29 = vmax.f32 %v6835_v26, %v6836_v38  ;;  %v6843_v58 = vrot.slane %v6842_v37, 1  ;;  %v6850_v27 = vrot.slane %v6849_v2, 1  ;;  %v5668_v36 = vadd.f32 %v17925_v1, %v5629_v22  ;;  %v14324_v22 = vpop.f32.mrf.mxu0 }
 0x33e   : > { %v6856_v30 = vmax.f32 %v6854_v4, %v6855_v0  ;;  %v6045_v48 = vrot.slane %v6031_v35, %v17627_v28  ;;  %v6046_v12 = vcombine.high %v6038_v17, %v6038_v17  ;;  %v6523_v14 = vsel %vm6414_vm5, %v6038_v17, -inf }
 0x33f   : > { %v6844_v53 = vmax.f32 %v6842_v37, %v6843_v58  ;;  %v6851_v49 = vmax.f32 %v6849_v2, %v6850_v27  ;;  %v13657_v57 = vpack.c.bf16 %v6837_v29, %v6837_v29  ;;  %v6525_v15 = vmax.f32 %v6523_v14, %v6524_v3 }
 0x340   : > { %v6857_v61 = vrot.slane %v6856_v30, 1  ;;  %v6047_v39 = vcombine.high %v6045_v48, %v6045_v48  ;;  %v6526_v13 = vsel %vm6414_vm5, %v6046_v12, -inf  ;;  %v6529_v43 = vsel %vm6414_vm5, %v6045_v48, -inf }
 0x341   : > { %v13658_v41 = vpack.c.bf16 %v6844_v53, %v6844_v53  ;;  %v13659_v19 = vpack.c.bf16 %v6851_v49, %v6851_v49  ;;  %v7343_v40 = vunpack.c.l.b16 %v13657_v57  ;;  %v6528_v59 = vmax.f32 %v6526_v13, %v6527_v42  ;;  %v14757_v13 = vld [vmem:[%s19389_s3 + $0x20] sm:$0xff]  }
 0x342   : > { %v6858_v50 = vmax.f32 %v6856_v30, %v6857_v61  ;;  %v6531_v24 = vmax.f32 %v6529_v43, %v6530_v32  ;;  %v6532_v10 = vsel %vm6414_vm5, %v6047_v39, -inf  ;;  %v6859_v63 = vsel %vm6414_vm5, %v6525_v15, -inf  ;;  %v5563_v39 = vpop.f32.mrf.mxu0  ;;  %14373 = vmatprep.subr.bf16.mxu0 %v14757_v13 }
 0x343   : > { %v7344_v44 = vunpack.c.l.b16 %v13658_v41  ;;  %v7345_v47 = vunpack.c.l.b16 %v13659_v19  ;;  %v6534_v34 = vmax.f32 %v6532_v10, %v6533_v9  ;;  %v6860_v25 = vrot.slane %v6859_v63, 4  ;;  %14374 = vmatpush3.bf16.msra.mxu0 %v14757_v13 }
 0x344   : > { %v13660_v33 = vpack.c.bf16 %v6858_v50, %v6858_v50  ;;  %v6866_v21 = vsel %vm6414_vm5, %v6528_v59, -inf  ;;  %v6873_v7 = vsel %vm6414_vm5, %v6531_v24, -inf  ;;  %v5700_v3 = vmax.f32 %v5668_v36, 0.0 }
 0x345   : > { %v7405_v26 = vsel %vm7375_vm6, %v7344_v44, %v7343_v40  ;;  %v6861_v23 = vmax.f32 %v6859_v63, %v6860_v25  ;;  %v6867_v16 = vrot.slane %v6866_v21, 4  ;;  %v6874_v52 = vrot.slane %v6873_v7, 4 }
 0x346   : > { %v7346_v32 = vunpack.c.l.b16 %v13660_v33  ;;  %v7406_v4 = vsel %vm7377_vm10, %v7345_v47, %v7405_v26  ;;  %v6880_v42 = vsel %vm6414_vm5, %v6534_v34, -inf  ;;  %v6116_v54 = vcombine.high %v5700_v3, %v5700_v3 }
 0x347   : > { %v6862_v38 = vrot.slane %v6861_v23, 2  ;;  %v6868_v9 = vmax.f32 %v6866_v21, %v6867_v16  ;;  %v6875_v37 = vmax.f32 %v6873_v7, %v6874_v52  ;;  %v6881_v2 = vrot.slane %v6880_v42, 4 }
 0x348   : > { %v7407_v0 = vsel %vm7379_vm11, %v7346_v32, %v7406_v4  ;;  %v6123_v35 = vrot.slane %v5700_v3, %v17627_v28  ;;  %v6130_v17 = vrot.slane %v6116_v54, %v17627_v28  ;;  %v5666_v29 = vadd.f32 %v17925_v1, %v5627_v55  ;;  %v7493_v4 = vld [vmem:[#allocation3 + $0x2c] sm:$0x1] }
 0x349   : > { %v6863_v58 = vmax.f32 %v6861_v23, %v6862_v38  ;;  %v6869_v27 = vrot.slane %v6868_v9, 2  ;;  %v6876_v36 = vrot.slane %v6875_v37, 2  ;;  %v6882_v30 = vmax.f32 %v6880_v42, %v6881_v2 }
 0x34a   : > { %v6131_v48 = vcombine.high %v6123_v35, %v6123_v35  ;;  %v6132_v12 = vcombine.high %v6130_v17, %v6130_v17  ;;  %v6536_v14 = vsel %vm6414_vm5, %v6123_v35, -inf  ;;  %v6542_v53 = vsel %vm6414_vm5, %v6130_v17, -inf }
 0x34b   : > { %v6864_v49 = vrot.slane %v6863_v58, 1  ;;  %v6870_v57 = vmax.f32 %v6868_v9, %v6869_v27  ;;  %v6877_v15 = vmax.f32 %v6875_v37, %v6876_v36  ;;  %v6883_v61 = vrot.slane %v6882_v30, 2  ;;  %v18021_v9 = vld [vmem:[%s19389_s3] sm:$0xff]  }
 0x34c   : > { %v6539_v55 = vsel %vm6414_vm5, %v6131_v48, -inf  ;;  %v6545_v43 = vsel %vm6414_vm5, %v6132_v12, -inf  ;;  %v5698_v41 = vmax.f32 %v5666_v29, 0.0  ;;  %v5630_v19 = vadd.f32 %v14324_v22, %v17709_v46  ;;  %14343 = vmatprep.subr.bf16.mxu1 %v18021_v9 }
 0x34d   : > { %v6865_v40 = vmax.f32 %v6863_v58, %v6864_v49  ;;  %v6871_v59 = vrot.slane %v6870_v57, 1  ;;  %v6878_v50 = vrot.slane %v6877_v15, 1  ;;  %v6884_v24 = vmax.f32 %v6882_v30, %v6883_v61  ;;  %v7490_v49 = vld [vmem:[#allocation3 + $0x28] sm:$0xf] }
 0x34e   : > { %v6082_v10 = vcombine.high %v5698_v41, %v5698_v41  ;;  %v6089_v63 = vrot.slane %v5698_v41, %v17627_v28  ;;  %v5669_v44 = vadd.f32 %v17925_v1, %v5630_v19  ;;  %v5628_v47 = vadd.f32 %v5563_v39, %v17713_v5 }
 0x34f   : > { %v6872_v34 = vmax.f32 %v6870_v57, %v6871_v59  ;;  %v6879_v25 = vmax.f32 %v6877_v15, %v6878_v50  ;;  %v6885_v33 = vrot.slane %v6884_v24, 1  ;;  %v13661_v21 = vpack.c.bf16 %v6865_v40, %v6865_v40 }
 0x350   : > { %v6096_v7 = vrot.slane %v6082_v10, %v17627_v28  ;;  %v6097_v46 = vcombine.high %v6089_v63, %v6089_v63  ;;  %v6535_v3 = vsel %vm6414_vm5, %v6089_v63, -inf  ;;  %v5701_v26 = vmax.f32 %v5669_v44, 0.0 }
 0x351   : > { %v6886_v23 = vmax.f32 %v6884_v24, %v6885_v33  ;;  %v13662_v16 = vpack.c.bf16 %v6872_v34, %v6872_v34  ;;  %v13663_v52 = vpack.c.bf16 %v6879_v25, %v6879_v25  ;;  %v7347_v32 = vunpack.c.l.b16 %v13661_v21 }
 0x352   : > { %v6098_v42 = vcombine.high %v6096_v7, %v6096_v7  ;;  %v6537_v54 = vmax.f32 %v6535_v3, %v6536_v14  ;;  %v6538_v5 = vsel %vm6414_vm5, %v6097_v46, -inf  ;;  %v6541_v38 = vsel %vm6414_vm5, %v6096_v7, -inf }
 0x353   : > { %v7348_v37 = vunpack.c.l.b16 %v13662_v16  ;;  %v7349_v2 = vunpack.c.l.b16 %v13663_v52  ;;  %v7408_v22 = vsel %vm7381_vm12, %v7347_v32, %v7407_v0  ;;  %v13693_v35 = vpack.c.bf16 %v6886_v23, %v6886_v23 }
 0x354   : > { %v6540_v17 = vmax.f32 %v6538_v5, %v6539_v55  ;;  %v6543_v29 = vmax.f32 %v6541_v38, %v6542_v53  ;;  %v6544_v58 = vsel %vm6414_vm5, %v6098_v42, -inf  ;;  %v6887_v27 = vsel %vm6414_vm5, %v6537_v54, -inf  ;;  %v14327_v55 = vpop.f32.mrf.mxu0 }
 0x355   : > { %v7409_v36 = vsel %vm7383_vm14, %v7348_v37, %v7408_v22  ;;  %v7494_v30 = vsel %vm17801_vm2, %v13693_v35, %v7493_v4  ;;  %v6546_v48 = vmax.f32 %v6544_v58, %v6545_v43  ;;  %v6888_v12 = vrot.slane %v6887_v27, 4 }
 0x356   : > { %v7410_v14 = vsel %vm7385_vm15, %v7349_v2, %v7409_v36  ;;  %7495 = vst [vmem:[#allocation3 + $0x2c] sm:$0x1] %v7494_v30  ;;  %v6894_v0 = vsel %vm6414_vm5, %v6540_v17, -inf  ;;  %v6901_v53 = vsel %vm6414_vm5, %v6543_v29, -inf  ;;  %v6133_v57 = vcombine.high %v5701_v26, %v5701_v26  ;;  %v5576_v3 = vpop.f32.mrf.mxu0 }
 0x357   : > { %v7437_v15 = vpack.c.b16 %v7410_v14, %v7410_v14  ;;  %v6889_v61 = vmax.f32 %v6887_v27, %v6888_v12  ;;  %v6895_v39 = vrot.slane %v6894_v0, 4  ;;  %v6902_v13 = vrot.slane %v6901_v53, 4 }
 0x358   : > { %v6908_v41 = vsel %vm6414_vm5, %v6546_v48, -inf  ;;  %v6140_v19 = vrot.slane %v5701_v26, %v17627_v28  ;;  %v6147_v43 = vrot.slane %v6133_v57, %v17627_v28  ;;  %v5667_v40 = vadd.f32 %v17925_v1, %v5628_v47 }
 0x359   : > { %v7491_v59 = vsel %vm17816_vm1, %v7437_v15, %v7490_v49  ;;  %v6890_v50 = vrot.slane %v6889_v61, 2  ;;  %v6896_v24 = vmax.f32 %v6894_v0, %v6895_v39  ;;  %v6903_v10 = vmax.f32 %v6901_v53, %v6902_v13 }
 0x35a   : > { %7492 = vst [vmem:[#allocation3 + $0x28] sm:$0xf] %v7491_v59  ;;  %v6909_v63 = vrot.slane %v6908_v41, 4  ;;  %v6148_v44 = vcombine.high %v6140_v19, %v6140_v19  ;;  %v6149_v34 = vcombine.high %v6147_v43, %v6147_v43  ;;  %v6548_v25 = vsel %vm6414_vm5, %v6140_v19, -inf }
 0x35b   : > { %v6891_v33 = vmax.f32 %v6889_v61, %v6890_v50  ;;  %v6897_v21 = vrot.slane %v6896_v24, 2  ;;  %v6904_v7 = vrot.slane %v6903_v10, 2  ;;  %v6554_v46 = vsel %vm6414_vm5, %v6147_v43, -inf  ;;  %v18056_v50 = vld [vmem:[%s19389_s3 + $0x30] sm:$0xff]  }
 0x35c   : > { %v6910_v26 = vmax.f32 %v6908_v41, %v6909_v63  ;;  %v6551_v47 = vsel %vm6414_vm5, %v6148_v44, -inf  ;;  %v6557_v23 = vsel %vm6414_vm5, %v6149_v34, -inf  ;;  %v5699_v16 = vmax.f32 %v5667_v40, 0.0  ;;  %14393 = vmatprep.subr.bf16.mxu0 %v18056_v50 }
 0x35d   : > { %v6892_v52 = vrot.slane %v6891_v33, 1  ;;  %v6898_v32 = vmax.f32 %v6896_v24, %v6897_v21  ;;  %v6905_v4 = vmax.f32 %v6903_v10, %v6904_v7  ;;  %v5633_v42 = vadd.f32 %v14327_v55, %v17717_v62 }
 0x35e   : > { %v6911_v54 = vrot.slane %v6910_v26, 2  ;;  %v6099_v5 = vcombine.high %v5699_v16, %v5699_v16  ;;  %v6106_v38 = vrot.slane %v5699_v16, %v17627_v28  ;;  %v5631_v37 = vadd.f32 %v5576_v3, %v17722_v31 }
 0x35f   : > { %v6893_v2 = vmax.f32 %v6891_v33, %v6892_v52  ;;  %v6899_v22 = vrot.slane %v6898_v32, 1  ;;  %v6906_v35 = vrot.slane %v6905_v4, 1  ;;  %v5672_v17 = vadd.f32 %v17925_v1, %v5633_v42 }
 0x360   : > { %v6912_v29 = vmax.f32 %v6910_v26, %v6911_v54  ;;  %v6113_v58 = vrot.slane %v6099_v5, %v17627_v28  ;;  %v6114_v27 = vcombine.high %v6106_v38, %v6106_v38  ;;  %v6547_v36 = vsel %vm6414_vm5, %v6106_v38, -inf }
 0x361   : > { %v6900_v30 = vmax.f32 %v6898_v32, %v6899_v22  ;;  %v6907_v48 = vmax.f32 %v6905_v4, %v6906_v35  ;;  %v13665_v62 = vpack.c.bf16 %v6893_v2, %v6893_v2  ;;  %v6549_v12 = vmax.f32 %v6547_v36, %v6548_v25  ;;  %v14328_v32 = vpop.f32.mrf.mxu0 }
 0x362   : > { %v6913_v14 = vrot.slane %v6912_v29, 1  ;;  %v6115_v49 = vcombine.high %v6113_v58, %v6113_v58  ;;  %v6550_v0 = vsel %vm6414_vm5, %v6114_v27, -inf  ;;  %v6553_v31 = vsel %vm6414_vm5, %v6113_v58, -inf }
 0x363   : > { %v13666_v53 = vpack.c.bf16 %v6900_v30, %v6900_v30  ;;  %v13667_v57 = vpack.c.bf16 %v6907_v48, %v6907_v48  ;;  %v7351_v15 = vunpack.c.l.b16 %v13665_v62  ;;  %v6552_v61 = vmax.f32 %v6550_v0, %v6551_v47 }
 0x364   : > { %v6914_v39 = vmax.f32 %v6912_v29, %v6913_v14  ;;  %v6555_v13 = vmax.f32 %v6553_v31, %v6554_v46  ;;  %v6556_v55 = vsel %vm6414_vm5, %v6115_v49, -inf  ;;  %v6915_v41 = vsel %vm6414_vm5, %v6549_v12, -inf  ;;  %v5579_v12 = vpop.f32.mrf.mxu0 }
 0x365   : > { %v7352_v19 = vunpack.c.l.b16 %v13666_v53  ;;  %v7353_v43 = vunpack.c.l.b16 %v13667_v57  ;;  %v6558_v40 = vmax.f32 %v6556_v55, %v6557_v23  ;;  %v6916_v59 = vrot.slane %v6915_v41, 4 }
 0x366   : > { %v13668_v24 = vpack.c.bf16 %v6914_v39, %v6914_v39  ;;  %v6922_v10 = vsel %vm6414_vm5, %v6552_v61, -inf  ;;  %v6929_v63 = vsel %vm6414_vm5, %v6555_v13, -inf  ;;  %v5704_v44 = vmax.f32 %v5672_v17, 0.0 }
 0x367   : > { %v7411_v34 = vsel %vm7375_vm6, %v7352_v19, %v7351_v15  ;;  %v6917_v25 = vmax.f32 %v6915_v41, %v6916_v59  ;;  %v6923_v33 = vrot.slane %v6922_v10, 4  ;;  %v6930_v21 = vrot.slane %v6929_v63, 4 }
 0x368   : > { %v7354_v7 = vunpack.c.l.b16 %v13668_v24  ;;  %v7412_v46 = vsel %vm7377_vm10, %v7353_v43, %v7411_v34  ;;  %v6936_v3 = vsel %vm6414_vm5, %v6558_v40, -inf  ;;  %v6184_v26 = vcombine.high %v5704_v44, %v5704_v44 }
 0x369   : > { %v6918_v47 = vrot.slane %v6917_v25, 2  ;;  %v6924_v23 = vmax.f32 %v6922_v10, %v6923_v33  ;;  %v6931_v16 = vmax.f32 %v6929_v63, %v6930_v21  ;;  %v6937_v52 = vrot.slane %v6936_v3, 4  ;;  %v7499_v33 = vld [vmem:[#allocation3 + $0x34] sm:$0x1] }
 0x36a   : > { %v7413_v4 = vsel %vm7379_vm11, %v7354_v7, %v7412_v46  ;;  %v6191_v42 = vrot.slane %v5704_v44, %v17627_v28  ;;  %v6198_v54 = vrot.slane %v6184_v26, %v17627_v28  ;;  %v5670_v5 = vadd.f32 %v17925_v1, %v5631_v37 }
 0x36b   : > { %v6919_v38 = vmax.f32 %v6917_v25, %v6918_v47  ;;  %v6925_v2 = vrot.slane %v6924_v23, 2  ;;  %v6932_v22 = vrot.slane %v6931_v16, 2  ;;  %v6938_v35 = vmax.f32 %v6936_v3, %v6937_v52 }
 0x36c   : > { %v6199_v17 = vcombine.high %v6191_v42, %v6191_v42  ;;  %v6200_v29 = vcombine.high %v6198_v54, %v6198_v54  ;;  %v6560_v58 = vsel %vm6414_vm5, %v6191_v42, -inf  ;;  %v6566_v27 = vsel %vm6414_vm5, %v6198_v54, -inf }
 0x36d   : > { %v6920_v36 = vrot.slane %v6919_v38, 1  ;;  %v6926_v30 = vmax.f32 %v6924_v23, %v6925_v2  ;;  %v6933_v48 = vmax.f32 %v6931_v16, %v6932_v22  ;;  %v6939_v62 = vrot.slane %v6938_v35, 2 }
 0x36e   : > { %v6563_v14 = vsel %vm6414_vm5, %v6199_v17, -inf  ;;  %v6569_v49 = vsel %vm6414_vm5, %v6200_v29, -inf  ;;  %v5702_v37 = vmax.f32 %v5670_v5, 0.0  ;;  %v5634_v0 = vadd.f32 %v14328_v32, %v17725_v60 }
 0x36f   : > { %v6921_v31 = vmax.f32 %v6919_v38, %v6920_v36  ;;  %v6927_v53 = vrot.slane %v6926_v30, 1  ;;  %v6934_v57 = vrot.slane %v6933_v48, 1  ;;  %v6940_v15 = vmax.f32 %v6938_v35, %v6939_v62  ;;  %v7496_v35 = vld [vmem:[#allocation3 + $0x30] sm:$0xf] }
 0x370   : > { %v6150_v61 = vcombine.high %v5702_v37, %v5702_v37  ;;  %v6157_v39 = vrot.slane %v5702_v37, %v17627_v28  ;;  %v5673_v13 = vadd.f32 %v17925_v1, %v5634_v0  ;;  %v5632_v55 = vadd.f32 %v5579_v12, %v17728_v11 }
 0x371   : > { %v6928_v41 = vmax.f32 %v6926_v30, %v6927_v53  ;;  %v6935_v19 = vmax.f32 %v6933_v48, %v6934_v57  ;;  %v6941_v43 = vrot.slane %v6940_v15, 1  ;;  %v13669_v40 = vpack.c.bf16 %v6921_v31, %v6921_v31  ;;  %v14331_v48 = vpop.f32.mrf.mxu0 }
 0x372   : > { %v6164_v59 = vrot.slane %v6150_v61, %v17627_v28  ;;  %v6165_v24 = vcombine.high %v6157_v39, %v6157_v39  ;;  %v6559_v60 = vsel %vm6414_vm5, %v6157_v39, -inf  ;;  %v5705_v10 = vmax.f32 %v5673_v13, 0.0 }
 0x373   : > { %v6942_v63 = vmax.f32 %v6940_v15, %v6941_v43  ;;  %v13670_v44 = vpack.c.bf16 %v6928_v41, %v6928_v41  ;;  %v13671_v34 = vpack.c.bf16 %v6935_v19, %v6935_v19  ;;  %v7355_v25 = vunpack.c.l.b16 %v13669_v40  ;;  %v5592_v40 = vpop.f32.mrf.mxu0 }
 0x374   : > { %v6166_v21 = vcombine.high %v6164_v59, %v6164_v59  ;;  %v6561_v7 = vmax.f32 %v6559_v60, %v6560_v58  ;;  %v6562_v46 = vsel %vm6414_vm5, %v6165_v24, -inf  ;;  %v6565_v11 = vsel %vm6414_vm5, %v6164_v59, -inf }
 0x375   : > { %v7356_v3 = vunpack.c.l.b16 %v13670_v44  ;;  %v7357_v26 = vunpack.c.l.b16 %v13671_v34  ;;  %v7414_v47 = vsel %vm7381_vm12, %v7355_v25, %v7413_v4  ;;  %v13694_v23 = vpack.c.bf16 %v6942_v63, %v6942_v63 }
 0x376   : > { %v6564_v16 = vmax.f32 %v6562_v46, %v6563_v14  ;;  %v6567_v52 = vmax.f32 %v6565_v11, %v6566_v27  ;;  %v6568_v32 = vsel %vm6414_vm5, %v6166_v21, -inf  ;;  %v6943_v42 = vsel %vm6414_vm5, %v6561_v7, -inf }
 0x377   : > { %v7415_v54 = vsel %vm7383_vm14, %v7356_v3, %v7414_v47  ;;  %v7500_v5 = vsel %vm17801_vm2, %v13694_v23, %v7499_v33  ;;  %v6570_v38 = vmax.f32 %v6568_v32, %v6569_v49  ;;  %v6944_v2 = vrot.slane %v6943_v42, 4 }
 0x378   : > { %v7416_v22 = vsel %vm7385_vm15, %v7357_v26, %v7415_v54  ;;  %7501 = vst [vmem:[#allocation3 + $0x34] sm:$0x1] %v7500_v5  ;;  %v6950_v4 = vsel %vm6414_vm5, %v6564_v16, -inf  ;;  %v6957_v17 = vsel %vm6414_vm5, %v6567_v52, -inf  ;;  %v6201_v29 = vcombine.high %v5705_v10, %v5705_v10 }
 0x379   : > { %v7439_v58 = vpack.c.b16 %v7416_v22, %v7416_v22  ;;  %v6945_v27 = vmax.f32 %v6943_v42, %v6944_v2  ;;  %v6951_v36 = vrot.slane %v6950_v4, 4  ;;  %v6958_v30 = vrot.slane %v6957_v17, 4 }
 0x37a   : > { %v6964_v62 = vsel %vm6414_vm5, %v6570_v38, -inf  ;;  %v6208_v12 = vrot.slane %v5705_v10, %v17627_v28  ;;  %v6215_v14 = vrot.slane %v6201_v29, %v17627_v28  ;;  %v5671_v49 = vadd.f32 %v17925_v1, %v5632_v55 }
 0x37b   : > { %v7497_v37 = vsel %vm17816_vm1, %v7439_v58, %v7496_v35  ;;  %v6946_v0 = vrot.slane %v6945_v27, 2  ;;  %v6952_v31 = vmax.f32 %v6950_v4, %v6951_v36  ;;  %v6959_v53 = vmax.f32 %v6957_v17, %v6958_v30 }
 0x37c   : > { %7498 = vst [vmem:[#allocation3 + $0x30] sm:$0xf] %v7497_v37  ;;  %v6965_v57 = vrot.slane %v6964_v62, 4  ;;  %v6216_v15 = vcombine.high %v6208_v12, %v6208_v12  ;;  %v6217_v61 = vcombine.high %v6215_v14, %v6215_v14  ;;  %v6572_v39 = vsel %vm6414_vm5, %v6208_v12, -inf }
 0x37d   : > { %v6947_v13 = vmax.f32 %v6945_v27, %v6946_v0  ;;  %v6953_v41 = vrot.slane %v6952_v31, 2  ;;  %v6960_v19 = vrot.slane %v6959_v53, 2  ;;  %v6578_v43 = vsel %vm6414_vm5, %v6215_v14, -inf }
 0x37e   : > { %v6966_v59 = vmax.f32 %v6964_v62, %v6965_v57  ;;  %v6575_v55 = vsel %vm6414_vm5, %v6216_v15, -inf  ;;  %v6581_v24 = vsel %vm6414_vm5, %v6217_v61, -inf  ;;  %v5703_v60 = vmax.f32 %v5671_v49, 0.0 }
 0x37f   : > { %v6948_v10 = vrot.slane %v6947_v13, 1  ;;  %v6954_v63 = vmax.f32 %v6952_v31, %v6953_v41  ;;  %v6961_v44 = vmax.f32 %v6959_v53, %v6960_v19  ;;  %v5637_v34 = vadd.f32 %v14331_v48, %v17730_v45 }
 0x380   : > { %v6967_v25 = vrot.slane %v6966_v59, 2  ;;  %v6167_v33 = vcombine.high %v5703_v60, %v5703_v60  ;;  %v6174_v21 = vrot.slane %v5703_v60, %v17627_v28  ;;  %v5635_v7 = vadd.f32 %v5592_v40, %v17734_v20  ;;  %v18117_v60 = vld [vmem:[#allocation6] ss:$0 sm:$0xff] }
 0x381   : > { %v6949_v46 = vmax.f32 %v6947_v13, %v6948_v10  ;;  %v6955_v11 = vrot.slane %v6954_v63, 1  ;;  %v6962_v3 = vrot.slane %v6961_v44, 1  ;;  %v5676_v26 = vadd.f32 %v17925_v1, %v5637_v34 }
 0x382   : > { %v6968_v47 = vmax.f32 %v6966_v59, %v6967_v25  ;;  %v6181_v23 = vrot.slane %v6167_v33, %v17627_v28  ;;  %v6182_v16 = vcombine.high %v6174_v21, %v6174_v21  ;;  %v6571_v52 = vsel %vm6414_vm5, %v6174_v21, -inf  ;;  %v14332_v33 = vpop.f32.mrf.mxu0 }
 0x383   : > { %v6956_v32 = vmax.f32 %v6954_v63, %v6955_v11  ;;  %v6963_v42 = vmax.f32 %v6961_v44, %v6962_v3  ;;  %v13673_v45 = vpack.c.bf16 %v6949_v46, %v6949_v46  ;;  %v6573_v54 = vmax.f32 %v6571_v52, %v6572_v39  ;;  %v18122_v52 = vld [vmem:[#allocation3] sm:$0xf] }
 0x384   : > { %v6969_v5 = vrot.slane %v6968_v47, 1  ;;  %v6183_v38 = vcombine.high %v6181_v23, %v6181_v23  ;;  %v6574_v2 = vsel %vm6414_vm5, %v6182_v16, -inf  ;;  %v6577_v20 = vsel %vm6414_vm5, %v6181_v23, -inf }
 0x385   : > { %v13674_v22 = vpack.c.bf16 %v6956_v32, %v6956_v32  ;;  %v13675_v35 = vpack.c.bf16 %v6963_v42, %v6963_v42  ;;  %v7359_v4 = vunpack.c.l.b16 %v13673_v45  ;;  %v6576_v1 = vmax.f32 %v6574_v2, %v6575_v55 }
 0x386   : > { %v6970_v17 = vmax.f32 %v6968_v47, %v6969_v5  ;;  %v6579_v29 = vmax.f32 %v6577_v20, %v6578_v43  ;;  %v6580_v58 = vsel %vm6414_vm5, %v6183_v38, -inf  ;;  %v6971_v27 = vsel %vm6414_vm5, %v6573_v54, -inf }
 0x387   : > { %v7360_v36 = vunpack.c.l.b16 %v13674_v22  ;;  %v7361_v30 = vunpack.c.l.b16 %v13675_v35  ;;  %v6582_v48 = vmax.f32 %v6580_v58, %v6581_v24  ;;  %v6972_v62 = vrot.slane %v6971_v27, 4 }
 0x388   : > { %v13676_v12 = vpack.c.bf16 %v6970_v17, %v6970_v17  ;;  %v6978_v14 = vsel %vm6414_vm5, %v6576_v1, -inf  ;;  %v6985_v49 = vsel %vm6414_vm5, %v6579_v29, -inf  ;;  %v5708_v37 = vmax.f32 %v5676_v26, 0.0 }
 0x389   : > { %v7417_v0 = vsel %vm7375_vm6, %v7360_v36, %v7359_v4  ;;  %v6973_v31 = vmax.f32 %v6971_v27, %v6972_v62  ;;  %v6979_v53 = vrot.slane %v6978_v14, 4  ;;  %v6986_v57 = vrot.slane %v6985_v49, 4 }
 0x38a   : > { %v7362_v15 = vunpack.c.l.b16 %v13676_v12  ;;  %v7418_v61 = vsel %vm7377_vm10, %v7361_v30, %v7417_v0  ;;  %v6992_v39 = vsel %vm6414_vm5, %v6582_v48, -inf  ;;  %v6252_v13 = vcombine.high %v5708_v37, %v5708_v37 }
 0x38b   : > { %v6974_v41 = vrot.slane %v6973_v31, 2  ;;  %v6980_v19 = vmax.f32 %v6978_v14, %v6979_v53  ;;  %v6987_v43 = vmax.f32 %v6985_v49, %v6986_v57  ;;  %v6993_v40 = vrot.slane %v6992_v39, 4  ;;  %v7505_v49 = vld [vmem:[#allocation3 + $0x3c] sm:$0x1] }
 0x38c   : > { %v7419_v59 = vsel %vm7379_vm11, %v7362_v15, %v7418_v61  ;;  %v6259_v55 = vrot.slane %v5708_v37, %v17627_v28  ;;  %v6266_v24 = vrot.slane %v6252_v13, %v17627_v28  ;;  %v5674_v10 = vadd.f32 %v18117_v60, %v5635_v7 }
 0x38d   : > { %v6975_v63 = vmax.f32 %v6973_v31, %v6974_v41  ;;  %v6981_v44 = vrot.slane %v6980_v19, 2  ;;  %v6988_v34 = vrot.slane %v6987_v43, 2  ;;  %v6994_v25 = vmax.f32 %v6992_v39, %v6993_v40 }
 0x38e   : > { %v6267_v21 = vcombine.high %v6259_v55, %v6259_v55  ;;  %v6268_v46 = vcombine.high %v6266_v24, %v6266_v24  ;;  %v6584_v11 = vsel %vm6414_vm5, %v6259_v55, -inf  ;;  %v6590_v3 = vsel %vm6414_vm5, %v6266_v24, -inf }
 0x38f   : > { %v6976_v26 = vrot.slane %v6975_v63, 1  ;;  %v6982_v47 = vmax.f32 %v6980_v19, %v6981_v44  ;;  %v6989_v23 = vmax.f32 %v6987_v43, %v6988_v34  ;;  %v6995_v16 = vrot.slane %v6994_v25, 2  ;;  %v7502_v44 = vld [vmem:[#allocation3 + $0x38] sm:$0xf] }
 0x390   : > { %v6587_v32 = vsel %vm6414_vm5, %v6267_v21, -inf  ;;  %v6593_v7 = vsel %vm6414_vm5, %v6268_v46, -inf  ;;  %v5706_v42 = vmax.f32 %v5674_v10, 0.0  ;;  %v5638_v45 = vadd.f32 %v14332_v33, %v17736_v8 }
 0x391   : > { %v6977_v54 = vmax.f32 %v6975_v63, %v6976_v26  ;;  %v6983_v5 = vrot.slane %v6982_v47, 1  ;;  %v6990_v38 = vrot.slane %v6989_v23, 1  ;;  %v6996_v2 = vmax.f32 %v6994_v25, %v6995_v16 }
 0x392   : > { %v6218_v20 = vcombine.high %v5706_v42, %v5706_v42  ;;  %v6225_v22 = vrot.slane %v5706_v42, %v17627_v28  ;;  %v5677_v35 = vadd.f32 %v18117_v60, %v5638_v45  ;;  %v7533_v4 = vshrl.u32 %v18122_v52, 16 }
 0x393   : > { %v6984_v1 = vmax.f32 %v6982_v47, %v6983_v5  ;;  %v6991_v17 = vmax.f32 %v6989_v23, %v6990_v38  ;;  %v6997_v29 = vrot.slane %v6996_v2, 1  ;;  %v13677_v58 = vpack.c.bf16 %v6977_v54, %v6977_v54 }
 0x394   : > { %v6232_v27 = vrot.slane %v6218_v20, %v17627_v28  ;;  %v6233_v36 = vcombine.high %v6225_v22, %v6225_v22  ;;  %v6583_v8 = vsel %vm6414_vm5, %v6225_v22, -inf  ;;  %v5709_v30 = vmax.f32 %v5677_v35, 0.0 }
 0x395   : > { %v6998_v48 = vmax.f32 %v6996_v2, %v6997_v29  ;;  %v13678_v62 = vpack.c.bf16 %v6984_v1, %v6984_v1  ;;  %v13679_v12 = vpack.c.bf16 %v6991_v17, %v6991_v17  ;;  %v7363_v14 = vunpack.c.l.b16 %v13677_v58  ;;  %v18162_v58 = vld [vmem:[#allocation3 + $0x4] sm:$0x1] }
 0x396   : > { %v6234_v37 = vcombine.high %v6232_v27, %v6232_v27  ;;  %v6585_v0 = vmax.f32 %v6583_v8, %v6584_v11  ;;  %v6586_v31 = vsel %vm6414_vm5, %v6233_v36, -inf  ;;  %v6589_v53 = vsel %vm6414_vm5, %v6232_v27, -inf }
 0x397   : > { %v7364_v57 = vunpack.c.l.b16 %v13678_v62  ;;  %v7365_v15 = vunpack.c.l.b16 %v13679_v12  ;;  %v7420_v61 = vsel %vm7381_vm12, %v7363_v14, %v7419_v59  ;;  %v13695_v39 = vpack.c.bf16 %v6998_v48, %v6998_v48  ;;  %v18166_v12 = vld [vmem:[#allocation3 + $0xc] sm:$0x1] }
 0x398   : > { %v6588_v13 = vmax.f32 %v6586_v31, %v6587_v32  ;;  %v6591_v41 = vmax.f32 %v6589_v53, %v6590_v3  ;;  %v6592_v19 = vsel %vm6414_vm5, %v6234_v37, -inf  ;;  %v6999_v43 = vsel %vm6414_vm5, %v6585_v0, -inf }
 0x399   : > { %v7421_v40 = vsel %vm7383_vm14, %v7364_v57, %v7420_v61  ;;  %v7506_v55 = vsel %vm17801_vm2, %v13695_v39, %v7505_v49  ;;  %v6594_v24 = vmax.f32 %v6592_v19, %v6593_v7  ;;  %v7000_v10 = vrot.slane %v6999_v43, 4 }
 0x39a   : > { %v7422_v63 = vsel %vm7385_vm15, %v7365_v15, %v7421_v40  ;;  %7507 = vst [vmem:[#allocation3 + $0x3c] sm:$0x1] %v7506_v55  ;;  %v7006_v59 = vsel %vm6414_vm5, %v6588_v13, -inf  ;;  %v7013_v34 = vsel %vm6414_vm5, %v6591_v41, -inf  ;;  %v6269_v25 = vcombine.high %v5709_v30, %v5709_v30  ;;  %v5595_v55 = vpop.f32.mrf.mxu0 }
 0x39b   : > { %v7441_v33 = vpack.c.b16 %v7422_v63, %v7422_v63  ;;  %v7001_v21 = vmax.f32 %v6999_v43, %v7000_v10  ;;  %v7007_v46 = vrot.slane %v7006_v59, 4  ;;  %v7014_v11 = vrot.slane %v7013_v34, 4 }
 0x39c   : > { %v7020_v3 = vsel %vm6414_vm5, %v6594_v24, -inf  ;;  %v6276_v26 = vrot.slane %v5709_v30, %v17627_v28  ;;  %v6283_v47 = vrot.slane %v6269_v25, %v17627_v28  ;;  %v7535_v23 = vrot.slane %v7533_v4, 4  ;;  %v18154_v4 = vld [vmem:[#allocation3 + $0x8] sm:$0xf] }
 0x39d   : > { %v7503_v16 = vsel %vm17816_vm1, %v7441_v33, %v7502_v44  ;;  %v7002_v32 = vrot.slane %v7001_v21, 2  ;;  %v7008_v7 = vmax.f32 %v7006_v59, %v7007_v46  ;;  %v7015_v42 = vmax.f32 %v7013_v34, %v7014_v11  ;;  %v8130_v24 = vld [vmem:[#allocation3 + $0x8] sm:$0xf] }
 0x39e   : > { %7504 = vst [vmem:[#allocation3 + $0x38] sm:$0xf] %v7503_v16  ;;  %v7021_v45 = vrot.slane %v7020_v3, 4  ;;  %v6284_v54 = vcombine.high %v6276_v26, %v6276_v26  ;;  %v6285_v5 = vcombine.high %v6283_v47, %v6283_v47  ;;  %v18149_v38 = vsel %vm6414_vm5, %v6276_v26, -inf }
 0x39f   : > { %v7003_v2 = vmax.f32 %v7001_v21, %v7002_v32  ;;  %v7009_v20 = vrot.slane %v7008_v7, 2  ;;  %v7016_v22 = vrot.slane %v7015_v42, 2  ;;  %v18152_v35 = vsel %vm6414_vm5, %v6283_v47, -inf  ;;  %v18171_v21 = vld [vmem:[#allocation3 + $0xc] sm:$0x1] }
 0x3a0   : > { %v7022_v1 = vmax.f32 %v7020_v3, %v7021_v45  ;;  %v18157_v17 = vsel %vm6414_vm5, %v6284_v54, -inf  ;;  %v18160_v29 = vsel %vm6414_vm5, %v6285_v5, -inf  ;;  %v7536_v27 = vshll.u32 %v18122_v52, 16  ;;  %v8132_v5 = vld [vmem:[#allocation3 + $0x10] sm:$0xf] }
 0x3a1   : > { %v7004_v36 = vrot.slane %v7003_v2, 1  ;;  %v7010_v8 = vmax.f32 %v7008_v7, %v7009_v20  ;;  %v7017_v30 = vmax.f32 %v7015_v42, %v7016_v22  ;;  %v7542_v48 = vshll.u32 %v18162_v58, 16 }
 0x3a2   : > { %v7023_v62 = vrot.slane %v7022_v1, 2  ;;  %v7538_v14 = vrot.slane %v7536_v27, 5  ;;  %v7547_v49 = vshrl.u32 %v18154_v4, 16  ;;  %v7550_v37 = vshll.u32 %v18154_v4, 16 }
 0x3a3   : > { %v7005_v0 = vmax.f32 %v7003_v2, %v7004_v36  ;;  %v7011_v31 = vrot.slane %v7010_v8, 1  ;;  %v7018_v53 = vrot.slane %v7017_v30, 1  ;;  %v7544_v57 = vrot.slane %v7542_v48, 5  ;;  %v18179_v2 = vld [vmem:[#allocation3 + $0x14] sm:$0x1] }
 0x3a4   : > { %v7024_v15 = vmax.f32 %v7022_v1, %v7023_v62  ;;  %v7539_v61 = vor.u32 %v7538_v14, %v7535_v23  ;;  %v7549_v39 = vrot.slane %v7547_v49, 4  ;;  %v7552_v13 = vrot.slane %v7550_v37, 5  ;;  %v18183_v36 = vld [vmem:[#allocation3 + $0x10] sm:$0xf] }
 0x3a5   : > { %v7012_v41 = vmax.f32 %v7010_v8, %v7011_v31  ;;  %v7019_v19 = vmax.f32 %v7017_v30, %v7018_v53  ;;  %v13681_v43 = vpack.c.bf16 %v7005_v0, %v7005_v0  ;;  %v7556_v40 = vshll.u32 %v18166_v12, 16 }
 0x3a6   : > { %v7025_v10 = vrot.slane %v7024_v15, 1  ;;  %v7540_v63 = vrot.slane %v7539_v61, 4  ;;  %v7553_v44 = vor.u32 %v7552_v13, %v7549_v39  ;;  %v5636_v47 = vadd.f32 %v5595_v55, %v17738_v18 }
 0x3a7   : > { %v13682_v59 = vpack.c.bf16 %v7012_v41, %v7012_v41  ;;  %v13683_v34 = vpack.c.bf16 %v7019_v19, %v7019_v19  ;;  %v7367_v25 = vunpack.c.l.b16 %v13681_v43  ;;  %v7558_v33 = vrot.slane %v7556_v40, 5  ;;  %v18193_v41 = vld [vmem:[#allocation3 + $0x14] sm:$0x1] }
 0x3a8   : > { %v7026_v46 = vmax.f32 %v7024_v15, %v7025_v10  ;;  %v7545_v3 = vsel %vm15554_vm13, %v7540_v63, %v7544_v57  ;;  %v7554_v26 = vrot.slane %v7553_v44, 4  ;;  %v8147_v32 = vshrl.u32 %v8130_v24, 16 }
 0x3a9   : > { %v7368_v23 = vunpack.c.l.b16 %v13682_v59  ;;  %v7369_v16 = vunpack.c.l.b16 %v13683_v34  ;;  %v8150_v7 = vshll.u32 %v8130_v24, 16  ;;  %v5675_v54 = vadd.f32 %v18117_v60, %v5636_v47 }
 0x3aa   : > { %v13684_v42 = vpack.c.bf16 %v7026_v46, %v7026_v46  ;;  %v7559_v45 = vsel %vm15554_vm13, %v7554_v26, %v7558_v33  ;;  %v8156_v20 = vshll.u32 %v18171_v21, 16  ;;  %v8149_v27 = vrot.slane %v8147_v32, 4 }
 0x3ab   : > { %v7423_v22 = vsel %vm7375_vm6, %v7368_v23, %v7367_v25  ;;  %v13194_v1 = vcombine.low %v7545_v3, %v7559_v45  ;;  %v8152_v18 = vrot.slane %v8150_v7, 5  ;;  %v5707_v48 = vmax.f32 %v5675_v54, 0.0 }
 0x3ac   : > { %v7370_v8 = vunpack.c.l.b16 %v13684_v42  ;;  %v7424_v30 = vsel %vm7377_vm10, %v7369_v16, %v7423_v22  ;;  %v8158_v62 = vrot.slane %v8156_v20, 5  ;;  %v8161_v14 = vshrl.u32 %v8132_v5, 16  ;;  %v18208_v16 = vld [vmem:[#allocation3 + $0x18] sm:$0xf] }
 0x3ad   : > { %14335 = vmatprep.mubr.msk.bf16.mxu1 %vm7665_vm9, %v13194_v1  ;;  %v8153_v60 = vor.u32 %v8152_v18, %v8149_v27  ;;  %v8164_v49 = vshll.u32 %v8132_v5, 16  ;;  %v8170_v37 = vshll.u32 %v18179_v2, 16  ;;  %v6235_v0 = vcombine.high %v5707_v48, %v5707_v48  ;;  %v18215_v1 = vld [vmem:[#allocation3 + $0x1c] sm:$0x1] }
 0x3ae   : > { %v6242_v31 = vrot.slane %v5707_v48, %v17627_v28  ;;  %v18190_v53 = vsel %vm7379_vm11, %v7370_v8, %v7424_v30  ;;  %v7561_v57 = vshrl.u32 %v18183_v36, 16  ;;  %v8163_v61 = vrot.slane %v8161_v14, 4  ;;  %v8134_v14 = vld [vmem:[#allocation3 + $0x18] sm:$0xf] }
 0x3af   : > { %v8154_v15 = vrot.slane %v8153_v60, 4  ;;  %v8166_v39 = vrot.slane %v8164_v49, 5  ;;  %v8172_v13 = vrot.slane %v8170_v37, 5  ;;  %v6249_v19 = vrot.slane %v6235_v0, %v17627_v28 }
 0x3b0   : > { %v6250_v43 = vcombine.high %v6242_v31, %v6242_v31  ;;  %v6595_v40 = vsel %vm6414_vm5, %v6242_v31, -inf  ;;  %v7563_v55 = vrot.slane %v7561_v57, 4  ;;  %v7564_v44 = vshll.u32 %v18183_v36, 16 }
 0x3b1   : > { %v6597_v24 = vmax.f32 %v6595_v40, %v18149_v38  ;;  %v8159_v10 = vsel %vm15554_vm13, %v8154_v15, %v8158_v62  ;;  %v8167_v63 = vor.u32 %v8166_v39, %v8163_v61  ;;  %v6251_v59 = vcombine.high %v6249_v19, %v6249_v19 }
 0x3b2   : > { %v6598_v34 = vsel %vm6414_vm5, %v6250_v43, -inf  ;;  %v6601_v25 = vsel %vm6414_vm5, %v6249_v19, -inf  ;;  %v7570_v33 = vshll.u32 %v18193_v41, 16  ;;  %v7566_v32 = vrot.slane %v7564_v44, 5  ;;  %v8136_v44 = vld [vmem:[#allocation3 + $0x20] sm:$0xf] }
 0x3b3   : > { %v6600_v46 = vmax.f32 %v6598_v34, %v18157_v17  ;;  %v6603_v3 = vmax.f32 %v6601_v25, %v18152_v35  ;;  %v7027_v26 = vsel %vm6414_vm5, %v6597_v24, -inf  ;;  %v8168_v38 = vrot.slane %v8167_v63, 4  ;;  %v18224_v63 = vld [vmem:[#allocation3 + $0x1c] sm:$0x1] }
 0x3b4   : > { %v6604_v47 = vsel %vm6414_vm5, %v6251_v59, -inf  ;;  %v7028_v23 = vrot.slane %v7027_v26, 4  ;;  %v7572_v7 = vrot.slane %v7570_v33, 5  ;;  %v7567_v18 = vor.u32 %v7566_v32, %v7563_v55 }
 0x3b5   : > { %v6606_v42 = vmax.f32 %v6604_v47, %v18160_v29  ;;  %v7034_v45 = vsel %vm6414_vm5, %v6600_v46, -inf  ;;  %v7041_v54 = vsel %vm6414_vm5, %v6603_v3, -inf  ;;  %v8173_v17 = vsel %vm15554_vm13, %v8168_v38, %v8172_v13 }
 0x3b6   : > { %v7029_v35 = vmax.f32 %v7027_v26, %v7028_v23  ;;  %v7035_v5 = vrot.slane %v7034_v45, 4  ;;  %v7042_v20 = vrot.slane %v7041_v54, 4  ;;  %v13244_v22 = vcombine.low %v8159_v10, %v8173_v17 }
 0x3b7   : > { %v7048_v27 = vsel %vm6414_vm5, %v6606_v42, -inf  ;;  %v7575_v8 = vshrl.u32 %v18208_v16, 16  ;;  %v7578_v29 = vshll.u32 %v18208_v16, 16  ;;  %v7568_v49 = vrot.slane %v7567_v18, 4 }
 0x3b8   : > { %v7030_v30 = vrot.slane %v7029_v35, 2  ;;  %v7036_v48 = vmax.f32 %v7034_v45, %v7035_v5  ;;  %v7043_v62 = vmax.f32 %v7041_v54, %v7042_v20  ;;  %v7049_v60 = vrot.slane %v7048_v27, 4  ;;  %14375 = vmatprep.mubr.msk.bf16.mxu0 %vm7665_vm9, %v13244_v22  ;;  %v18231_v5 = vld [vmem:[#allocation3 + $0x20] sm:$0xf] }
 0x3b9   : > { %v7577_v37 = vrot.slane %v7575_v8, 4  ;;  %v7580_v0 = vrot.slane %v7578_v29, 5  ;;  %v7584_v31 = vshll.u32 %v18215_v1, 16  ;;  %v7573_v13 = vsel %vm15554_vm13, %v7568_v49, %v7572_v7  ;;  %v18236_v8 = vld [vmem:[%s19389_s3 + $0x10] sm:$0xff]  }
 0x3ba   : > { %v7031_v57 = vmax.f32 %v7029_v35, %v7030_v30  ;;  %v7037_v15 = vrot.slane %v7036_v48, 2  ;;  %v7044_v61 = vrot.slane %v7043_v62, 2  ;;  %v7050_v39 = vmax.f32 %v7048_v27, %v7049_v60  ;;  %v18229_v35 = vld [vmem:[#allocation3 + $0x24] sm:$0x1] }
 0x3bb   : > { %v7581_v19 = vor.u32 %v7580_v0, %v7577_v37  ;;  %v8175_v43 = vshrl.u32 %v8134_v14, 16  ;;  %v7586_v34 = vrot.slane %v7584_v31, 5  ;;  %v8178_v33 = vshll.u32 %v8134_v14, 16  ;;  %v18238_v60 = vld [vmem:[#allocation3 + $0x24] sm:$0x1] }
 0x3bc   : > { %v7032_v40 = vrot.slane %v7031_v57, 1  ;;  %v7038_v55 = vmax.f32 %v7036_v48, %v7037_v15  ;;  %v7045_v24 = vmax.f32 %v7043_v62, %v7044_v61  ;;  %v7051_v10 = vrot.slane %v7050_v39, 2  ;;  %v7511_v14 = vld [vmem:[#allocation3 + $0x44] sm:$0x1] }
 0x3bd   : > { %v7582_v59 = vrot.slane %v7581_v19, 4  ;;  %v8177_v25 = vrot.slane %v8175_v43, 4  ;;  %v8180_v23 = vrot.slane %v8178_v33, 5  ;;  %v8184_v32 = vshll.u32 %v18224_v63, 16 }
 0x3be   : > { %v7033_v46 = vmax.f32 %v7031_v57, %v7032_v40  ;;  %v7039_v3 = vrot.slane %v7038_v55, 1  ;;  %v7046_v26 = vrot.slane %v7045_v24, 1  ;;  %v7052_v38 = vmax.f32 %v7050_v39, %v7051_v10 }
 0x3bf   : > { %v7587_v47 = vsel %vm15554_vm13, %v7582_v59, %v7586_v34  ;;  %v8189_v7 = vshrl.u32 %v8136_v44, 16  ;;  %v8181_v22 = vor.u32 %v8180_v23, %v8177_v25  ;;  %v8192_v18 = vshll.u32 %v8136_v44, 16  ;;  %v8138_v34 = vld [vmem:[#allocation3 + $0x28] sm:$0xf]  ;;  %v7508_v25 = vld [vmem:[#allocation3 + $0x40] sm:$0xf] }
 0x3c0   : > { %v7040_v42 = vmax.f32 %v7038_v55, %v7039_v3  ;;  %v7047_v45 = vmax.f32 %v7045_v24, %v7046_v26  ;;  %v7053_v54 = vrot.slane %v7052_v38, 1  ;;  %v13685_v17 = vpack.c.bf16 %v7033_v46, %v7033_v46  ;;  %v18248_v55 = vld [vmem:[#allocation3 + $0x2c] sm:$0x1] }
 0x3c1   : > { %v13195_v20 = vcombine.low %v7573_v13, %v7587_v47  ;;  %v8191_v27 = vrot.slane %v8189_v7, 4  ;;  %v8182_v49 = vrot.slane %v8181_v22, 4  ;;  %v8194_v37 = vrot.slane %v8192_v18, 5  ;;  %v18245_v13 = vld [vmem:[#allocation3 + $0x28] sm:$0xf] }
 0x3c2   : > { %v7054_v29 = vmax.f32 %v7052_v38, %v7053_v54  ;;  %v13686_v30 = vpack.c.bf16 %v7040_v42, %v7040_v42  ;;  %v13687_v48 = vpack.c.bf16 %v7047_v45, %v7047_v45  ;;  %v7371_v62 = vunpack.c.l.b16 %v13685_v17  ;;  %v8140_v42 = vld [vmem:[#allocation3 + $0x30] sm:$0xf]  ;;  %v18266_v22 = vld [vmem:[#allocation3 + $0x2c] sm:$0x1] }
 0x3c3   : > { %14336 = vmatmul.mubr.msk.bf16.vlgmr.msra.gmra.mxu1 %vm7665_vm9, %v13195_v20  ;;  %v8198_v0 = vshll.u32 %v18229_v35, 16  ;;  %v7589_v31 = vshrl.u32 %v18231_v5, 16  ;;  %v8186_v19 = vrot.slane %v8184_v32, 5  ;;  %v8195_v43 = vor.u32 %v8194_v37, %v8191_v27  ;;  %v18268_v27 = vld [vmem:[#allocation3 + $0x30] sm:$0xf]  ;;  %v18273_v18 = vld [vmem:[%s19389_s3 + $0x40] sm:$0xff]  }
 0x3c4   : > { %v7372_v57 = vunpack.c.l.b16 %v13686_v30  ;;  %v7373_v15 = vunpack.c.l.b16 %v13687_v48  ;;  %v7426_v61 = vsel %vm7381_vm12, %v7371_v62, %v18190_v53  ;;  %v13696_v39 = vpack.c.bf16 %v7054_v29, %v7054_v29  ;;  %14344 = vmatpush3.bf16.msra.mxu1 %v18021_v9  ;;  %v18275_v48 = vld [vmem:[#allocation3 + $0x34] sm:$0x1]  ;;  %vm9830_vm12 = vmor %vm1613_vm0, %vm7375_vm6 }
 0x3c5   : > { %v8200_v40 = vrot.slane %v8198_v0, 5  ;;  %v7591_v24 = vrot.slane %v7589_v31, 4  ;;  %14353 = vmatprep.subr.bf16.mxu1 %v18236_v8  ;;  %v7592_v53 = vshll.u32 %v18231_v5, 16  ;;  %v7598_v59 = vshll.u32 %v18238_v60, 16 }
 0x3c6   : > { %v7427_v10 = vsel %vm7383_vm14, %v7372_v57, %v7426_v61  ;;  %v7512_v44 = vsel %vm17801_vm2, %v13696_v39, %v7511_v14  ;;  %v8196_v33 = vrot.slane %v8195_v43, 4  ;;  %v7603_v46 = vshrl.u32 %v18245_v13, 16  ;;  %v18279_v61 = vld [vmem:[#allocation3 + $0x38] sm:$0xf] }
 0x3c7   : > { %v7428_v9 = vsel %vm7385_vm15, %v7373_v15, %v7427_v10  ;;  %7513 = vst [vmem:[#allocation3 + $0x44] sm:$0x1] %v7512_v44  ;;  %v7606_v3 = vshll.u32 %v18245_v13, 16  ;;  %v8187_v38 = vsel %vm15554_vm13, %v8182_v49, %v8186_v19  ;;  %v7594_v6 = vrot.slane %v7592_v53, 5  ;;  %v18289_v53 = vld [vmem:[#allocation3 + $0x34] sm:$0x1] }
 0x3c8   : > { %v7443_v26 = vpack.c.b16 %v7428_v9, %v7428_v9  ;;  %v7612_v47 = vshll.u32 %v18248_v55, 16  ;;  %v8201_v23 = vsel %vm15554_vm13, %v8196_v33, %v8200_v40  ;;  %v7605_v32 = vrot.slane %v7603_v46, 4 }
 0x3c9   : > { %v7608_v7 = vrot.slane %v7606_v3, 5  ;;  %v8203_v45 = vshrl.u32 %v8138_v34, 16  ;;  %v13245_v17 = vcombine.low %v8187_v38, %v8201_v23  ;;  %v7595_v20 = vor.u32 %v7594_v6, %v7591_v24  ;;  %v8142_v6 = vld [vmem:[#allocation3 + $0x38] sm:$0xf] }
 0x3ca   : > { %v7509_v54 = vsel %vm17816_vm1, %v7443_v26, %v7508_v25  ;;  %v7600_v29 = vrot.slane %v7598_v59, 5  ;;  %v8206_v14 = vshll.u32 %v8138_v34, 16  ;;  %v7614_v49 = vrot.slane %v7612_v47, 5  ;;  %v18292_v25 = vld [vmem:[#allocation3 + $0x3c] sm:$0x1] }
 0x3cb   : > { %7510 = vst [vmem:[#allocation3 + $0x40] sm:$0xf] %v7509_v54  ;;  %v7609_v30 = vor.u32 %v7608_v7, %v7605_v32  ;;  %v8205_v62 = vrot.slane %v8203_v45, 4  ;;  %14376 = vmatmul.mubr.msk.bf16.vlgmr.msra.gmra.mxu0 %vm7665_vm9, %v13245_v17  ;;  %v7596_v51 = vrot.slane %v7595_v20, 4  ;;  %v8217_v37 = vshrl.u32 %v8140_v42, 16 }
 0x3cc   : > { %v8220_v0 = vshll.u32 %v8140_v42, 16  ;;  %v8208_v57 = vrot.slane %v8206_v14, 5  ;;  %v8212_v15 = vshll.u32 %v18266_v22, 16  ;;  %v7617_v39 = vshrl.u32 %v18268_v27, 16  ;;  %14394 = vmatpush3.bf16.msra.mxu0 %v18056_v50 }
 0x3cd   : > { %v7610_v31 = vrot.slane %v7609_v30, 4  ;;  %v7601_v19 = vsel %vm15554_vm13, %v7596_v51, %v7600_v29  ;;  %v8219_v43 = vrot.slane %v8217_v37, 4  ;;  %v8226_v24 = vshll.u32 %v18275_v48, 16  ;;  %14413 = vmatprep.subr.bf16.mxu0 %v18273_v18  ;;  %v18303_v30 = vld [vmem:[#allocation3 + $0x3c] sm:$0x1] }
 0x3ce   : > { %v8222_v40 = vrot.slane %v8220_v0, 5  ;;  %v8209_v44 = vor.u32 %v8208_v57, %v8205_v62  ;;  %v7619_v59 = vrot.slane %v7617_v39, 4  ;;  %v7620_v34 = vshll.u32 %v18268_v27, 16  ;;  %v18305_v0 = vld [vmem:[#allocation3 + $0x44] sm:$0x1] }
 0x3cf   : > { %v7615_v10 = vsel %vm15554_vm13, %v7610_v31, %v7614_v49  ;;  %v7631_v33 = vshrl.u32 %v18279_v61, 16  ;;  %v8214_v3 = vrot.slane %v8212_v15, 5  ;;  %v7634_v38 = vshll.u32 %v18279_v61, 16 }
 0x3d0   : > { %v13196_v9 = vcombine.low %v7601_v19, %v7615_v10  ;;  %v8223_v50 = vor.u32 %v8222_v40, %v8219_v43  ;;  %v8210_v46 = vrot.slane %v8209_v44, 4  ;;  %v7622_v26 = vrot.slane %v7620_v34, 5  ;;  %v7846_v19 = vld [vmem:[#allocation3] sm:$0xe] }
 0x3d1   : > { %v8228_v23 = vrot.slane %v8226_v24, 5  ;;  %v7626_v32 = vshll.u32 %v18289_v53, 16  ;;  %v7633_v7 = vrot.slane %v7631_v33, 4  ;;  %v7636_v45 = vrot.slane %v7634_v38, 5 }
 0x3d2   : > { %14339 = vmatprep.mubr.msk.bf16.mxu1 %vm7665_vm9, %v13196_v9  ;;  %v8224_v47 = vrot.slane %v8223_v50, 4  ;;  %v7623_v42 = vor.u32 %v7622_v26, %v7619_v59  ;;  %v7640_v54 = vshll.u32 %v18292_v25, 16  ;;  %v8144_v17 = vld [vmem:[#allocation3 + $0x40] sm:$0xf]  ;;  %v8215_v20 = vsel %vm15554_vm13, %v8210_v46, %v8214_v3  ;;  %v7847_v50 = vld [vmem:[#allocation3 + $0x8] sm:$0xe] }
 0x3d3   : > { %v8231_v62 = vshrl.u32 %v8142_v6, 16  ;;  %v8234_v14 = vshll.u32 %v8142_v6, 16  ;;  %v7637_v37 = vor.u32 %v7636_v45, %v7633_v7  ;;  %v8245_v15 = vshrl.u32 %v8144_v17, 16 }
 0x3d4   : > { %v8229_v29 = vsel %vm15554_vm13, %v8224_v47, %v8228_v23  ;;  %v7624_v49 = vrot.slane %v7623_v42, 4  ;;  %v8248_v39 = vshll.u32 %v8144_v17, 16  ;;  %v7628_v43 = vrot.slane %v7626_v32, 5 }
 0x3d5   : > { %v13246_v51 = vcombine.low %v8215_v20, %v8229_v29  ;;  %v8233_v31 = vrot.slane %v8231_v62, 4  ;;  %v8236_v57 = vrot.slane %v8234_v14, 5  ;;  %v7638_v40 = vrot.slane %v7637_v37, 4  ;;  %v14763_v62 = vld [vmem:[#allocation3 + $0x10] ss:$8 sps:$4 sm:$0xff]  }
 0x3d6   : > { %v7642_v24 = vrot.slane %v7640_v54, 5  ;;  %v8240_v10 = vshll.u32 %v18303_v30, 16  ;;  %v8247_v59 = vrot.slane %v8245_v15, 4  ;;  %v8250_v34 = vrot.slane %v8248_v39, 5  ;;  %v8364_v37 = vld [vmem:[#allocation3 + $0x8] sm:$0xe] }
 0x3d7   : > { %14379 = vmatprep.mubr.msk.bf16.mxu0 %vm7665_vm9, %v13246_v51  ;;  %v8237_v44 = vor.u32 %v8236_v57, %v8233_v31  ;;  %v8254_v9 = vshll.u32 %v18305_v0, 16  ;;  %v7629_v33 = vsel %vm15554_vm13, %v7624_v49, %v7628_v43  ;;  %v13212_v3 = vrot.slane %v7846_v19, 9  ;;  %v18335_v51 = vld [vmem:[%s19389_s3 + $0x18] sm:$0xff]   ;;  %v18340_v31 = vld [vmem:[#allocation3 + $0x10] sm:$0xe] }
 0x3d8   : > { %v7643_v46 = vsel %vm15554_vm13, %v7638_v40, %v7642_v24  ;;  %v8251_v6 = vor.u32 %v8250_v34, %v8247_v59  ;;  %v7872_v47 = vrot.slane %v18162_v58, 5  ;;  %v13203_v23 = vcombine.low %v18122_v52, %v18154_v4  ;;  %v7849_v57 = vld [vmem:[#allocation3 + $0x18] sm:$0xe]  ;;  %v8883_v15 = vld [vmem:[#allocation3 + $0x10] sm:$0xe] }
 0x3d9   : > { %v13197_v26 = vcombine.low %v7629_v33, %v7643_v46  ;;  %v8238_v38 = vrot.slane %v8237_v44, 4  ;;  %v13213_v32 = vrot.slane %v7847_v50, 9  ;;  %v7876_v7 = vrot.slane %v18166_v12, 5  ;;  %v8884_v39 = vld [vmem:[#allocation3 + $0x18] sm:$0xe] }
 0x3da   : > { %v8242_v42 = vrot.slane %v8240_v10, 5  ;;  %v8252_v45 = vrot.slane %v8251_v6, 4  ;;  %v8256_v54 = vrot.slane %v8254_v9, 5  ;;  %v7873_v20 = vsel %vm15899_vm3, %v13212_v3, %v7872_v47  ;;  %v8365_v19 = vld [vmem:[#allocation3 + $0x10] sm:$0xe] }
 0x3db   : > { %14340 = vmatmul.mubr.msk.bf16.gmra.mxu1 %vm7665_vm9, %v13197_v26  ;;  %v7877_v29 = vsel %vm15899_vm3, %v13213_v32, %v7876_v7  ;;  %v13204_v14 = vcombine.low %v18183_v36, %v18208_v16  ;;  %v13205_v49 = vcombine.low %v18231_v5, %v18245_v13  ;;  %v7851_v36 = vld [vmem:[#allocation3 + $0x28] sm:$0xe]  ;;  %v18344_v16 = vld [vmem:[#allocation3 + $0x14] sm:$0x1]  ;;  %v18347_v5 = vld [vmem:[#allocation3 + $0x1c] sm:$0x1]  ;;  %v13206_v40 = vcombine.low %v18268_v27, %v18279_v61 }
 0x3dc   : > { %14345 = vmatprep.mubr.msk.bf16.mxu1 %vm7665_vm9, %v13203_v23  ;;  %v8243_v58 = vsel %vm15554_vm13, %v8238_v38, %v8242_v42  ;;  %v8257_v52 = vsel %vm15554_vm13, %v8252_v45, %v8256_v54  ;;  %v13222_v4 = vcombine.low %v7873_v20, %v7877_v29  ;;  %v14766_v43 = vld [vmem:[#allocation3 + $0x20] ss:$8 sps:$4 sm:$0xff]   ;;  %v8366_v13 = vld [vmem:[#allocation3 + $0x18] sm:$0xe]  ;;  %v13214_v24 = vrot.slane %v18340_v31, 9 }
 0x3dd   : > { %v13247_v12 = vcombine.low %v8243_v58, %v8257_v52  ;;  %v13215_v10 = vrot.slane %v7849_v57, 9  ;;  %v8367_v44 = vld [vmem:[#allocation3 + $0x20] sm:$0xe]  ;;  %v14767_v59 = vld [vmem:[#allocation3 + $0x30] ss:$8 sps:$4 sm:$0xff]   ;;  %v7884_v34 = vrot.slane %v18215_v1, 5 }
 0x3de   : > { %v13217_v9 = vrot.slane %v7851_v36, 9  ;;  %v13295_v50 = vrot.slane %v8884_v39, 9  ;;  %v13253_v33 = vrot.slane %v8364_v37, 9  ;;  %v13294_v46 = vrot.slane %v8883_v15, 9  ;;  %v8368_v61 = vld [vmem:[#allocation3 + $0x28] sm:$0xe] }
 0x3df   : > { %14380 = vmatmul.mubr.msk.bf16.gmra.mxu0 %vm7665_vm9, %v13247_v12  ;;  %v8390_v3 = vrot.slane %v18171_v21, 5  ;;  %v13254_v26 = vrot.slane %v8365_v19, 9  ;;  %v8394_v27 = vrot.slane %v18179_v2, 5  ;;  %v8913_v38 = vrot.slane %v18347_v5, 5  ;;  %v8369_v47 = vld [vmem:[#allocation3 + $0x30] sm:$0xe] }
 0x3e0   : > { %14395 = vmatprep.mubr.msk.bf16.mxu0 %vm7665_vm9, %v14763_v62  ;;  %v13255_v1 = vrot.slane %v8366_v13, 9  ;;  %v8398_v6 = vrot.slane %v18224_v63, 5  ;;  %v7850_v23 = vld [vmem:[#allocation3 + $0x20] sm:$0xe]  ;;  %v13256_v32 = vrot.slane %v8367_v44, 9  ;;  %v8402_v7 = vrot.slane %v18229_v35, 5 }
 0x3e1   : > { %v18364_v21 = vsel %vm15899_vm3, %v13253_v33, %v8390_v3  ;;  %v18368_v2 = vsel %vm15899_vm3, %v13254_v26, %v8394_v27  ;;  %v13257_v45 = vrot.slane %v8368_v61, 9  ;;  %v8885_v54 = vld [vmem:[#allocation3 + $0x20] sm:$0xe]  ;;  %v8886_v20 = vld [vmem:[#allocation3 + $0x28] sm:$0xe]  ;;  %v8406_v29 = vrot.slane %v18266_v22, 5 }
 0x3e2   : > { %v13263_v63 = vcombine.low %v18364_v21, %v18368_v2  ;;  %v18378_v42 = vsel %vm15899_vm3, %v13255_v1, %v8398_v6  ;;  %v18383_v35 = vsel %vm15899_vm3, %v13256_v32, %v8402_v7  ;;  %v13258_v58 = vrot.slane %v8369_v47, 9  ;;  %v14769_v31 = vld [vmem:[#allocation3 + $0x40] ss:$8 sps:$4 sm:$0xff]   ;;  %v18395_v22 = vld [vmem:[#allocation3 + $0x2c] sm:$0x1] }
 0x3e3   : > { %14346 = vmatmul.mubr.msk.bf16.vlgmr.msra.gmra.mxu1 %vm7665_vm9, %v13204_v14  ;;  %v8410_v52 = vrot.slane %v18275_v48, 5  ;;  %v13216_v12 = vrot.slane %v7850_v23, 9  ;;  %v7888_v62 = vrot.slane %v18238_v60, 5  ;;  %v7892_v14 = vrot.slane %v18248_v55, 5  ;;  %v8887_v15 = vld [vmem:[#allocation3 + $0x30] sm:$0xe] }
 0x3e4   : > { %14354 = vmatpush3.bf16.msra.mxu1 %v18236_v8  ;;  %14349 = vmatprep.mubr.msk.bf16.mxu1 %vm7665_vm9, %v13205_v49  ;;  %v7880_v8 = vrot.slane %v18193_v41, 5  ;;  %v8909_v41 = vrot.slane %v18344_v16, 5  ;;  %v8888_v49 = vld [vmem:[#allocation3 + $0x38] sm:$0xe]  ;;  %v7885_v37 = vsel %vm15899_vm3, %v13215_v10, %v7884_v34  ;;  %v18399_v48 = vsel %vm15899_vm3, %v13257_v45, %v8406_v29  ;;  %v18414_v10 = vld [vmem:[#allocation3 + $0x24] sm:$0x1] }
 0x3e5   : > { %14363 = vmatprep.subr.bf16.mxu1 %v18335_v51  ;;  %v18403_v60 = vsel %vm15899_vm3, %v13258_v58, %v8410_v52  ;;  %v7893_v55 = vsel %vm15899_vm3, %v13217_v9, %v7892_v14  ;;  %v7853_v39 = vld [vmem:[#allocation3 + $0x38] sm:$0xe]  ;;  %v13297_v19 = vrot.slane %v8886_v20, 9  ;;  %v13299_v44 = vrot.slane %v8888_v49, 9  ;;  %v8890_v1 = vld [vmem:[#allocation3 + $0x48] sm:$0xe] }
 0x3e6   : > { %v8910_v57 = vsel %vm15899_vm3, %v13294_v46, %v8909_v41  ;;  %v13265_v13 = vcombine.low %v18399_v48, %v18403_v60  ;;  %v7889_v9 = vsel %vm15899_vm3, %v13216_v12, %v7888_v62  ;;  %v13296_v33 = vrot.slane %v8885_v54, 9  ;;  %v8889_v7 = vld [vmem:[#allocation3 + $0x40] sm:$0xe]  ;;  %v14771_v49 = vld [vmem:[#allocation3 + $0x8] ss:$8 sps:$4 sm:$0xff]  }
 0x3e7   : > { %14396 = vmatmul.mubr.msk.bf16.vlgmr.msra.gmra.mxu0 %vm7665_vm9, %v14766_v43  ;;  %v18407_v43 = vld [vmem:[#allocation3 + $0x3c] sm:$0x1]  ;;  %v8921_v46 = vrot.slane %v18395_v22, 5  ;;  %v13219_v3 = vrot.slane %v7853_v39, 9  ;;  %v13298_v26 = vrot.slane %v8887_v15, 9  ;;  %v8917_v61 = vrot.slane %v18414_v10, 5 }
 0x3e8   : > { %14399 = vmatprep.mubr.msk.bf16.mxu0 %vm7665_vm9, %v14767_v59  ;;  %14414 = vmatpush3.bf16.msra.mxu0 %v18273_v18  ;;  %v8914_v18 = vsel %vm15899_vm3, %v13295_v50, %v8913_v38  ;;  %v14772_v59 = vld [vmem:[%s19389_s3 + $0x28] sm:$0xff]   ;;  %v8929_v27 = vrot.slane %v18407_v43, 5  ;;  %v18430_v38 = vld [vmem:[#allocation3 + $0x4c] sm:$0x1]  ;;  %v7900_v47 = vrot.slane %v18292_v25, 5  ;;  %v7896_v45 = vrot.slane %v18289_v53, 5 }
 0x3e9   : > { %v13304_v36 = vcombine.low %v8910_v57, %v8914_v18  ;;  %v7852_v50 = vld [vmem:[#allocation3 + $0x30] sm:$0xe]  ;;  %v8922_v41 = vsel %vm15899_vm3, %v13297_v19, %v8921_v46  ;;  %v8918_v18 = vsel %vm15899_vm3, %v13296_v33, %v8917_v61  ;;  %v18445_v25 = vld [vmem:[#allocation3 + $0x44] sm:$0x1]  ;;  %v13300_v58 = vrot.slane %v8889_v7, 9 }
 0x3ea   : > { %v13218_v6 = vrot.slane %v7852_v50, 9  ;;  %v8930_v32 = vsel %vm15899_vm3, %v13299_v44, %v8929_v27  ;;  %v13305_v54 = vcombine.low %v8918_v18, %v8922_v41  ;;  %v13301_v52 = vrot.slane %v8890_v1, 9  ;;  %v14773_v15 = vld [vmem:[#allocation3 + $0x18] ss:$8 sps:$4 sm:$0xff]   ;;  %v8649_v19 = vld [vmem:[#allocation3 + $0x10] sm:$0xf] }
 0x3eb   : > { %14350 = vmatmul.mubr.msk.bf16.gmra.mxu1 %vm7665_vm9, %v13206_v40  ;;  %v7881_v40 = vsel %vm15899_vm3, %v13214_v24, %v7880_v8  ;;  %v18423_v24 = vld [vmem:[#allocation3 + $0x34] sm:$0x1]  ;;  %v13224_v8 = vcombine.low %v7889_v9, %v7893_v55  ;;  %v8937_v12 = vrot.slane %v18430_v38, 5  ;;  %v8933_v14 = vrot.slane %v18445_v25, 5  ;;  %v14776_v55 = vld [vmem:[%s19389_s3 + $0x38] sm:$0xff]  }
 0x3ec   : > { %14355 = vmatprep.mubr.msk.bf16.mxu1 %vm7665_vm9, %v13222_v4  ;;  %v13264_v4 = vcombine.low %v18378_v42, %v18383_v35  ;;  %v13223_v34 = vcombine.low %v7881_v40, %v7885_v37  ;;  %v8925_v23 = vrot.slane %v18423_v24, 5  ;;  %v7897_v62 = vsel %vm15899_vm3, %v13218_v6, %v7896_v45  ;;  %v8651_v39 = vld [vmem:[#allocation3 + $0x18] sm:$0xf]  ;;  %v8653_v6 = vld [vmem:[#allocation3 + $0x20] sm:$0xf] }
 0x3ed   : > { %v8934_v37 = vsel %vm15899_vm3, %v13300_v58, %v8933_v14  ;;  %v8680_v40 = vshrl.u32 %v8651_v39, 16  ;;  %v8683_v44 = vshll.u32 %v8651_v39, 16  ;;  %v8669_v9 = vshll.u32 %v8649_v19, 16  ;;  %v14775_v50 = vld [vmem:[#allocation3 + $0x38] ss:$8 sps:$4 sm:$0xff]  }
 0x3ee   : > { %v8926_v20 = vsel %vm15899_vm3, %v13298_v26, %v8925_v23  ;;  %v8371_v26 = vld [vmem:[#allocation3 + $0x40] sm:$0xe]  ;;  %v8659_v41 = vld [vmem:[#allocation3 + $0x38] sm:$0xf]  ;;  %v8418_v18 = vrot.slane %v18305_v0, 5  ;;  %v8689_v21 = vshll.u32 %v18347_v5, 16 }
 0x3ef   : > { %14400 = vmatmul.mubr.msk.bf16.gmra.mxu0 %vm7665_vm9, %v14769_v31  ;;  %v13306_v29 = vcombine.low %v8926_v20, %v8930_v32  ;;  %v8938_v31 = vsel %vm15899_vm3, %v13301_v52, %v8937_v12  ;;  %v8682_v33 = vrot.slane %v8680_v40, 4  ;;  %v8685_v46 = vrot.slane %v8683_v44, 5  ;;  %v8657_v45 = vld [vmem:[#allocation3 + $0x30] sm:$0xf]  ;;  %v8663_v14 = vld [vmem:[#allocation3 + $0x48] sm:$0xf] }
 0x3f0   : > { %14415 = vmatprep.mubr.msk.bf16.mxu0 %vm7665_vm9, %v13304_v36  ;;  %v13307_v57 = vcombine.low %v8934_v37, %v8938_v31  ;;  %v14774_v36 = vld [vmem:[#allocation3 + $0x28] ss:$8 sps:$4 sm:$0xff]   ;;  %v8671_v27 = vrot.slane %v8669_v9, 5  ;;  %v8414_v32 = vrot.slane %v18303_v30, 5  ;;  %v13260_v7 = vrot.slane %v8371_v26, 9 }
 0x3f1   : > { %v8686_v1 = vor.u32 %v8685_v46, %v8682_v33  ;;  %v8736_v2 = vshrl.u32 %v8659_v41, 16  ;;  %v8694_v20 = vshrl.u32 %v8653_v6, 16  ;;  %v8661_v37 = vld [vmem:[#allocation3 + $0x40] sm:$0xf]  ;;  %v8764_v40 = vshrl.u32 %v8663_v14, 16 }
 0x3f2   : > { %v8419_v0 = vsel %vm15899_vm3, %v13260_v7, %v8418_v18  ;;  %v8750_v39 = vshrl.u32 %v8661_v37, 16  ;;  %v8767_v44 = vshll.u32 %v8663_v14, 16  ;;  %v8717_v9 = vshll.u32 %v18395_v22, 16 }
 0x3f3   : > { %14356 = vmatmul.mubr.msk.bf16.vlgmr.msra.gmra.mxu1 %vm7665_vm9, %v13223_v34  ;;  %v8666_v34 = vshrl.u32 %v8649_v19, 16  ;;  %v8687_v52 = vrot.slane %v8686_v1, 4  ;;  %v8738_v5 = vrot.slane %v8736_v2, 4  ;;  %v8753_v19 = vshll.u32 %v8661_v37, 16 }
 0x3f4   : > { %14364 = vmatpush3.bf16.msra.mxu1 %v18335_v51  ;;  %14359 = vmatprep.mubr.msk.bf16.mxu1 %vm7665_vm9, %v13224_v8  ;;  %v7901_v51 = vsel %vm15899_vm3, %v13219_v3, %v7900_v47  ;;  %v8655_v8 = vld [vmem:[#allocation3 + $0x28] sm:$0xf]  ;;  %v8370_v3 = vld [vmem:[#allocation3 + $0x38] sm:$0xe]  ;;  %v8773_v7 = vshll.u32 %v18430_v38, 16  ;;  %vm593_vm2 = vcmask 256000  }
 0x3f5   : > { %14383 = vmatprep.subr.bf16.mxu1 %v14772_v59  ;;  %v13225_v53 = vcombine.low %v7897_v62, %v7901_v51  ;;  %v8708_v61 = vshrl.u32 %v8655_v8, 16  ;;  %v8711_v47 = vshll.u32 %v8655_v8, 16  ;;  %v13259_v23 = vrot.slane %v8370_v3, 9  ;;  %vm18680_vm5 = vmand %vm593_vm2, %vm9507_vm4 }
 0x3f6   : > { %v8675_v51 = vshll.u32 %v18344_v16, 16  ;;  %v8722_v62 = vshrl.u32 %v8657_v45, 16  ;;  %v8691_v16 = vrot.slane %v8689_v21, 5  ;;  %v8745_v8 = vshll.u32 %v18407_v43, 16 }
 0x3f7   : > { %14416 = vmatmul.mubr.msk.bf16.vlgmr.msra.gmra.mxu0 %vm7665_vm9, %v13305_v54  ;;  %v8710_v58 = vrot.slane %v8708_v61, 4  ;;  %v8713_v12 = vrot.slane %v8711_v47, 5  ;;  %v8415_v30 = vsel %vm15899_vm3, %v13259_v23, %v8414_v32  ;;  %v8752_v3 = vrot.slane %v8750_v39, 4 }
 0x3f8   : > { %14419 = vmatprep.mubr.msk.bf16.mxu0 %vm7665_vm9, %v13306_v29  ;;  %v8697_v29 = vshll.u32 %v8653_v6, 16  ;;  %v8692_v42 = vsel %vm15554_vm13, %v8687_v52, %v8691_v16  ;;  %v8724_v17 = vrot.slane %v8722_v62, 4  ;;  %v8755_v26 = vrot.slane %v8753_v19, 5 }
 0x3f9   : > { %v8714_v35 = vor.u32 %v8713_v12, %v8710_v58  ;;  %v8731_v61 = vshll.u32 %v18423_v24, 16  ;;  %v8747_v47 = vrot.slane %v8745_v8, 5  ;;  %v19598_v12 = vmov 0  }
 0x3fa   : > { %v8756_v43 = vor.u32 %v8755_v26, %v8752_v3  ;;  %594 = vst.msk [vmem:[#allocation4] sm:$0x7] %vm593_vm2, %v19598_v12  ;;  %596 = vst.msk [vmem:[#allocation4 + $0x8] sm:$0x7] %vm593_vm2, %v19598_v12  ;;  %vm9244_vm3 = vcmask 254976   ;;  %vm9666_vm4 = vcmask 261120  }
 0x3fb   : > { %14360 = vmatmul.mubr.msk.bf16.gmra.mxu1 %vm7665_vm9, %v13225_v53  ;;  %v8725_v53 = vshll.u32 %v8657_v45, 16  ;;  %v8715_v33 = vrot.slane %v8714_v35, 4  ;;  %v8733_v18 = vrot.slane %v8731_v61, 5  ;;  %595 = vst.msk [vmem:[#allocation4 + $0x4] sm:$0x7] %vm593_vm2, %v19598_v12 }
 0x3fc   : > { %14365 = vmatprep.mubr.msk.bf16.mxu1 %vm7665_vm9, %v14771_v49  ;;  %597 = vst.msk [vmem:[#allocation4 + $0xc] sm:$0x7] %vm593_vm2, %v19598_v12  ;;  %598 = vst.msk [vmem:[#allocation4 + $0x10] sm:$0x7] %vm593_vm2, %v19598_v12  ;;  %vm9569_vm15 = vsmask.f32 1280 }
 0x3fd   : > { %599 = vst.msk [vmem:[#allocation4 + $0x14] sm:$0x7] %vm593_vm2, %v19598_v12  ;;  %vm9570_vm1 = vsmask.f32 3336 }
 0x3ff   : > { %14420 = vmatmul.mubr.msk.bf16.gmra.mxu0 %vm7665_vm9, %v13307_v57  ;;  %v8677_v57 = vrot.slane %v8675_v51, 5  ;;  %v8759_v51 = vshll.u32 %v18445_v25, 16 }
 0x401   : > { %v8761_v38 = vrot.slane %v8759_v51, 5 }
 0x403   : > { %14366 = vmatmul.mubr.msk.bf16.vlgmr.msra.gmra.mxu1 %vm7665_vm9, %v14773_v15  ;;  %v8696_v15 = vrot.slane %v8694_v20, 4 }
 0x404   : > { %14384 = vmatpush3.bf16.msra.mxu1 %v14772_v59  ;;  %14369 = vmatprep.mubr.msk.bf16.mxu1 %vm7665_vm9, %v14774_v36  ;;  %v8668_v59 = vrot.slane %v8666_v34, 4  ;;  %v8699_v36 = vrot.slane %v8697_v29, 5  ;;  %v8775_v29 = vrot.slane %v8773_v7, 5 }
 0x405   : > { %14403 = vmatprep.subr.bf16.mxu1 %v14776_v55 }
 0x406   : > { %v8672_v54 = vor.u32 %v8671_v27, %v8668_v59  ;;  %v8700_v60 = vor.u32 %v8699_v36, %v8696_v15  ;;  %v8766_v59 = vrot.slane %v8764_v40, 4  ;;  %v8769_v27 = vrot.slane %v8767_v44, 5 }
 0x408   : > { %v8673_v31 = vrot.slane %v8672_v54, 4  ;;  %v8701_v1 = vrot.slane %v8700_v60, 4  ;;  %v8770_v32 = vor.u32 %v8769_v27, %v8766_v59  ;;  %v8757_v54 = vrot.slane %v8756_v43, 4  ;;  %v14777_v59 = vld [vmem:[%s19391_s5 + $0x18] sm:$0xff]   ;;  %v14778_v27 = vld [vmem:[%s19391_s5 + $0x28] sm:$0xff]  }
 0x40a   : > { %v8678_v48 = vsel %vm15554_vm13, %v8673_v31, %v8677_v57  ;;  %v8771_v20 = vrot.slane %v8770_v32, 4  ;;  %v8762_v58 = vsel %vm15554_vm13, %v8757_v54, %v8761_v38 }
 0x40b   : > { %14370 = vmatmul.mubr.msk.bf16.gmra.mxu1 %vm7665_vm9, %v14775_v50  ;;  %v13285_v50 = vcombine.low %v8678_v48, %v8692_v42 }
 0x40c   : > { %14385 = vmatprep.mubr.msk.bf16.mxu1 %vm7665_vm9, %v13263_v63  ;;  %v8739_v63 = vshll.u32 %v8659_v41, 16  ;;  %v8776_v52 = vsel %vm15554_vm13, %v8771_v20, %v8775_v29 }
 0x40d   : > { %v13288_v25 = vcombine.low %v8762_v58, %v8776_v52 }
 0x40e   : > { %v8741_v49 = vrot.slane %v8739_v63, 5 }
 0x410   : > { %v8742_v34 = vor.u32 %v8741_v49, %v8738_v5 }
 0x412   : > { %v8743_v41 = vrot.slane %v8742_v34, 4 }
 0x413   : > { %14386 = vmatmul.mubr.msk.bf16.vlgmr.msra.gmra.mxu1 %vm7665_vm9, %v13264_v4  ;;  %v8727_v4 = vrot.slane %v8725_v53, 5 }
 0x414   : > { %14404 = vmatpush3.bf16.msra.mxu1 %v14776_v55  ;;  %14389 = vmatprep.mubr.msk.bf16.mxu1 %vm7665_vm9, %v13265_v13  ;;  %v13266_v55 = vcombine.low %v8415_v30, %v8419_v0  ;;  %v8703_v13 = vshll.u32 %v18414_v10, 16  ;;  %v8719_v10 = vrot.slane %v8717_v9, 5  ;;  %v8748_v45 = vsel %vm15554_vm13, %v8743_v41, %v8747_v47 }
 0x415   : > { %v8728_v46 = vor.u32 %v8727_v4, %v8724_v17  ;;  %v15180_v41 = vmov 0.0  }
 0x416   : > { %v8705_v6 = vrot.slane %v8703_v13, 5  ;;  %v8720_v23 = vsel %vm15554_vm13, %v8715_v33, %v8719_v10  ;;  %14423 = vmatprep.subr.bf16.mxu1 %v15180_v41  ;;  %14439 = vmatprep.subr.bf16.mxu0 %v15180_v41 }
 0x417   : > { %v8729_v22 = vrot.slane %v8728_v46, 4  ;;  %14440 = vmatpush3.bf16.msra.mxu0 %v14778_v27 }
 0x418   : > { %v8706_v24 = vsel %vm15554_vm13, %v8701_v1, %v8705_v6  ;;  %v14779_v6 = vld [vmem:[%s19391_s5 + $0x10] sm:$0xff]   ;;  %14441 = vmatprep.subr.bf16.mxu0 %v15180_v41 }
 0x419   : > { %v13286_v21 = vcombine.low %v8706_v24, %v8720_v23  ;;  %v8734_v2 = vsel %vm15554_vm13, %v8729_v22, %v8733_v18  ;;  %v14780_v22 = vld [vmem:[%s19391_s5 + $0x20] sm:$0xff]   ;;  %vm15181_vm13 = vmmov 0  }
 0x41a   : > { %v13287_v63 = vcombine.low %v8734_v2, %v8748_v45  ;;  %14443 = vmatprep.mubr.msk.bf16.mxu0 %vm15181_vm13, %v15180_v41 }
 0x41b   : > { %14390 = vmatmul.mubr.msk.bf16.gmra.mxu1 %vm7665_vm9, %v13266_v55  ;;  %14442 = vmatpush3.bf16.msra.mxu0 %v14780_v22 }
 0x41c   : > { %14405 = vmatprep.mubr.msk.bf16.mxu1 %vm7665_vm9, %v13285_v50  ;;  %14455 = vmatprep.subr.bf16.mxu0 %v15180_v41 }
 0x423   : > { %14406 = vmatmul.mubr.msk.bf16.vlgmr.msra.gmra.mxu1 %vm7665_vm9, %v13286_v21 }
 0x424   : > { %14409 = vmatprep.mubr.msk.bf16.mxu1 %vm7665_vm9, %v13287_v63  ;;  %14424 = vmatpush3.bf16.msra.mxu1 %v14777_v59 }
 0x425   : > { %14425 = vmatprep.subr.bf16.mxu1 %v15180_v41 }
 0x428   : > { %14426 = vmatpush3.bf16.msra.mxu1 %v14779_v6 }
 0x429   : > { %14431 = vmatprep.subr.bf16.mxu1 %v15180_v41 }
 0x42b   : > { %14410 = vmatmul.mubr.msk.bf16.gmra.mxu1 %vm7665_vm9, %v13288_v25  ;;  %vm9572_vm9 = vsmask.f32 5392 }
 0x42c   : > { %14427 = vmatprep.mubr.msk.bf16.mxu1 %vm15181_vm13, %v15180_v41 }
 0x483   : > { %v18525_v11 = vpop.f32.mrf.mxu1 }
 0x485   : > { %v18527_v62 = vpop.f32.mrf.mxu1 }
 0x487   : > { %v18529_v53 = vpop.f32.mrf.mxu1 }
 0x489   : > { %v18531_v30 = vpop.f32.mrf.mxu1 }
 0x48b   : > { %v18533_v5 = vpop.f32.mrf.mxu0 }
 0x48d   : > { %v18537_v31 = vpop.f32.mrf.mxu0 }
 0x48f   : > { %v18543_v36 = vpop.f32.mrf.mxu0 }
 0x491   : > { %v18547_v17 = vpop.f32.mrf.mxu0 }
 0x49b   : > { %v14341_v14 = vpop.f32.mrf.mxu1 }
 0x49d   : > { %v7728_v0 = vpop.f32.mrf.mxu1 }
 0x49f   : > { %v14342_v16 = vpop.f32.mrf.mxu1  ;;  %v18549_v19 = vpop.f32.mrf.mxu0 }
 0x4a1   : > { %v7731_v49 = vpop.f32.mrf.mxu1  ;;  %v18551_v48 = vpop.f32.mrf.mxu0 }
 0x4a3   : > { %v18535_v37 = vpop.f32.mrf.mxu1  ;;  %v18553_v50 = vpop.f32.mrf.mxu0 }
 0x4a4   : > { %v7824_v25 = vadd.f32 %v18535_v37, %v18525_v11 }
 0x4a5   : > { %v18539_v57 = vpop.f32.mrf.mxu1  ;;  %v18555_v8 = vpop.f32.mrf.mxu0 }
 0x4a7   : > { %v18541_v15 = vpop.f32.mrf.mxu1  ;;  %v18567_v1 = vpop.f32.mrf.mxu0 }
 0x4a9   : > { %v18545_v42 = vpop.f32.mrf.mxu1  ;;  %v8610_v32 = vpop.f32.mrf.mxu0 }
 0x4ab   : > { %v14351_v35 = vpop.f32.mrf.mxu1  ;;  %v14398_v24 = vpop.f32.mrf.mxu0 }
 0x4ac   : > { %v7840_v4 = vadd.f32 %v14351_v35, %v14341_v14 }
 0x4ad   : > { %v7831_v39 = vpop.f32.mrf.mxu1  ;;  %v8613_v2 = vpop.f32.mrf.mxu0 }
 0x4ae   : > { %v7832_v40 = vadd.f32 %v7831_v39, %v7728_v0  ;;  %v7816_v0 = vadd.f32 %v18539_v57, %v18527_v62 }
 0x4af   : > { %v14352_v44 = vpop.f32.mrf.mxu1  ;;  %v18589_v20 = vpop.f32.mrf.mxu0 }
 0x4b0   : > { %v7843_v55 = vadd.f32 %v14352_v44, %v14342_v16 }
 0x4b1   : > { %v7834_v34 = vpop.f32.mrf.mxu1  ;;  %v18591_v58 = vpop.f32.mrf.mxu0 }
 0x4b2   : > { %v7835_v60 = vadd.f32 %v7834_v34, %v7731_v49 }
 0x4b3   : > { %v14357_v13 = vpop.f32.mrf.mxu1  ;;  %v18597_v49 = vpop.f32.mrf.mxu0 }
 0x4b4   : > { %v8002_v16 = vadd.f32 %v14357_v13, %v7824_v25 }
 0x4b5   : > { %v7969_v9 = vpop.f32.mrf.mxu1 }
 0x4b6   : > { %v8000_v39 = vadd.f32 %v7969_v9, %v7816_v0 }
 0x4b7   : > { %v14358_v33 = vpop.f32.mrf.mxu1 }
 0x4b9   : > { %v7972_v46 = vpop.f32.mrf.mxu1 }
 0x4bb   : > { %v14361_v3 = vpop.f32.mrf.mxu1 }
 0x4bc   : > { %v18557_v26 = vadd.f32 %v14361_v3, %v7840_v4  ;;  %v7827_v4 = vadd.f32 %v18541_v15, %v18529_v53 }
 0x4bd   : > { %v7985_v61 = vpop.f32.mrf.mxu1 }
 0x4be   : > { %v18569_v10 = vadd.f32 %v7985_v61, %v7832_v40  ;;  %v8003_v34 = vadd.f32 %v14358_v33, %v7827_v4 }
 0x4bf   : > { %v14362_v47 = vpop.f32.mrf.mxu1 }
 0x4c0   : > { %v18579_v23 = vadd.f32 %v14362_v47, %v7843_v55  ;;  %v7819_v55 = vadd.f32 %v18545_v42, %v18531_v30 }
 0x4c1   : > { %v7988_v43 = vpop.f32.mrf.mxu1 }
 0x4c2   : > { %v18585_v7 = vadd.f32 %v7988_v43, %v7835_v60  ;;  %v18603_v60 = vpop.f32.mrf.mxu0  ;;  %v8001_v3 = vadd.f32 %v7972_v46, %v7819_v55 }
 0x4c3   : > { %v14367_v18 = vpop.f32.mrf.mxu1 }
 0x4c4   : > { %v8124_v40 = vadd.f32 %v14367_v18, %v8002_v16  ;;  %v14417_v59 = vpop.f32.mrf.mxu0 }
 0x4c5   : > { %v8091_v45 = vpop.f32.mrf.mxu1 }
 0x4c6   : > { %v8122_v11 = vadd.f32 %v8091_v45, %v8000_v39  ;;  %v8358_v57 = vadd.f32 %v18533_v5, %v8124_v40  ;;  %v9006_v6 = vpop.f32.mrf.mxu0 }
 0x4c7   : > { %v14368_v51 = vpop.f32.mrf.mxu1 }
 0x4c8   : > { %v8125_v62 = vadd.f32 %v14368_v51, %v8003_v34  ;;  %v8356_v53 = vadd.f32 %v18537_v31, %v8122_v11  ;;  %v18616_v51 = vld [vmem:[#allocation9] ss:$0 sm:$0xff] }
 0x4c9   : > { %v8094_v21 = vpop.f32.mrf.mxu1 }
 0x4ca   : > { %v8123_v27 = vadd.f32 %v8094_v21, %v8001_v3  ;;  %v8359_v30 = vadd.f32 %v18543_v36, %v8125_v62  ;;  %v14418_v36 = vpop.f32.mrf.mxu0 }
 0x4cb   : > { %v14371_v63 = vpop.f32.mrf.mxu1 }
 0x4cc   : > { %v8128_v42 = vadd.f32 %v14371_v63, %v18557_v26  ;;  %v8357_v22 = vadd.f32 %v18547_v17, %v8123_v27  ;;  %v9009_v39 = vpop.f32.mrf.mxu0 }
 0x4cd   : > { %v8107_v54 = vpop.f32.mrf.mxu1 }
 0x4ce   : > { %v8362_v31 = vadd.f32 %v18549_v19, %v8128_v42  ;;  %v8126_v25 = vadd.f32 %v8107_v54, %v18569_v10  ;;  %v14421_v62 = vpop.f32.mrf.mxu0 }
 0x4cf   : > { %v14372_v29 = vpop.f32.mrf.mxu1 }
 0x4d0   : > { %v8360_v10 = vadd.f32 %v18551_v48, %v8126_v25 }
 0x4d1   : > { %v8110_v38 = vpop.f32.mrf.mxu1 }
 0x4d2   : > { %v8127_v19 = vadd.f32 %v8110_v38, %v18585_v7 }
 0x4d3   : > { %v14387_v52 = vpop.f32.mrf.mxu1 }
 0x4d4   : > { %v8520_v61 = vadd.f32 %v14387_v52, %v8358_v57 }
 0x4d5   : > { %v8487_v14 = vpop.f32.mrf.mxu1 }
 0x4d6   : > { %v8518_v9 = vadd.f32 %v8487_v14, %v8356_v53  ;;  %v8643_v5 = vadd.f32 %v18567_v1, %v8520_v61  ;;  %v8129_v14 = vadd.f32 %v14372_v29, %v18579_v23 }
 0x4d7   : > { %v14388_v35 = vpop.f32.mrf.mxu1 }
 0x4d8   : > { %v8521_v46 = vadd.f32 %v14388_v35, %v8359_v30  ;;  %v8641_v45 = vadd.f32 %v8610_v32, %v8518_v9  ;;  %v18625_v23 = vadd.f32 %v18553_v50, %v8129_v14 }
 0x4d9   : > { %v8490_v44 = vpop.f32.mrf.mxu1 }
 0x4da   : > { %v8519_v43 = vadd.f32 %v8490_v44, %v8357_v22  ;;  %v8644_v63 = vadd.f32 %v14398_v24, %v8521_v46 }
 0x4db   : > { %v14391_v37 = vpop.f32.mrf.mxu1 }
 0x4dc   : > { %v8524_v17 = vadd.f32 %v14391_v37, %v8362_v31  ;;  %v8642_v32 = vadd.f32 %v8613_v2, %v8519_v43  ;;  %v18633_v37 = vadd.f32 %v18555_v8, %v8127_v19 }
 0x4dd   : > { %v8503_v13 = vpop.f32.mrf.mxu1 }
 0x4de   : > { %v8647_v54 = vadd.f32 %v18589_v20, %v8524_v17  ;;  %v18630_v11 = vadd.f32 %v8503_v13, %v8360_v10 }
 0x4df   : > { %v18607_v15 = vpop.f32.mrf.mxu1 }
 0x4e1   : > { %v18611_v33 = vpop.f32.mrf.mxu1 }
 0x4e3   : > { %v14407_v47 = vpop.f32.mrf.mxu1 }
 0x4e4   : > { %v8877_v18 = vadd.f32 %v14407_v47, %v8643_v5 }
 0x4e5   : > { %v8844_v21 = vpop.f32.mrf.mxu1 }
 0x4e6   : > { %v9039_v52 = vadd.f32 %v14417_v59, %v8877_v18  ;;  %v8875_v26 = vadd.f32 %v8844_v21, %v8641_v45 }
 0x4e7   : > { %v14408_v0 = vpop.f32.mrf.mxu1 }
 0x4e8   : > { %v9054_v1 = vadd.f32 %v18616_v51, %v9039_v52  ;;  %v9037_v16 = vadd.f32 %v9006_v6, %v8875_v26  ;;  %v8878_v35 = vadd.f32 %v14408_v0, %v8644_v63 }
 0x4e9   : > { %v8847_v4 = vpop.f32.mrf.mxu1 }
 0x4ea   : > { %v9062_v40 = vmax.f32 %v9054_v1, 0.0  ;;  %v9052_v44 = vadd.f32 %v18616_v51, %v9037_v16  ;;  %v9040_v55 = vadd.f32 %v14418_v36, %v8878_v35  ;;  %v8876_v24 = vadd.f32 %v8847_v4, %v8642_v32 }
 0x4eb   : > { %v14411_v29 = vpop.f32.mrf.mxu1 }
 0x4ec   : > { %v9110_v34 = vcombine.high %v9062_v40, %v9062_v40  ;;  %v9117_v2 = vrot.slane %v9062_v40, %v17627_v28  ;;  %v9060_v7 = vmax.f32 %v9052_v44, 0.0  ;;  %v9055_v38 = vadd.f32 %v18616_v51, %v9040_v55 }
 0x4ed   : > { %v9038_v3 = vadd.f32 %v9009_v39, %v8876_v24  ;;  %v8881_v48 = vadd.f32 %v14411_v29, %v8647_v54 }
 0x4ee   : > { %v9124_v50 = vrot.slane %v9110_v34, %v17627_v28  ;;  %v9125_v57 = vcombine.high %v9117_v2, %v9117_v2  ;;  %v9257_v20 = vsel %vm9244_vm3, %v9117_v2, -inf  ;;  %v9076_v59 = vcombine.high %v9060_v7, %v9060_v7 }
 0x4ef   : > { %v9083_v27 = vrot.slane %v9060_v7, %v17627_v28  ;;  %v9063_v61 = vmax.f32 %v9055_v38, 0.0  ;;  %v9053_v53 = vadd.f32 %v18616_v51, %v9038_v3  ;;  %v9043_v9 = vadd.f32 %v14421_v62, %v8881_v48 }
 0x4f0   : > { %v9126_v13 = vcombine.high %v9124_v50, %v9124_v50  ;;  %v9260_v30 = vsel %vm9244_vm3, %v9125_v57, -inf  ;;  %v9263_v8 = vsel %vm9244_vm3, %v9124_v50, -inf  ;;  %v9090_v42 = vrot.slane %v9076_v59, %v17627_v28 }
 0x4f1   : > { %v9091_v6 = vcombine.high %v9083_v27, %v9083_v27  ;;  %v9245_v46 = vsel %vm9244_vm3, %v9083_v27, -inf  ;;  %v9127_v22 = vcombine.high %v9063_v61, %v9063_v61  ;;  %v9134_v5 = vrot.slane %v9063_v61, %v17627_v28 }
 0x4f2   : > { %v9266_v47 = vsel %vm9244_vm3, %v9126_v13, -inf  ;;  %v9092_v43 = vcombine.high %v9090_v42, %v9090_v42  ;;  %v9251_v18 = vsel %vm9244_vm3, %v9090_v42, -inf  ;;  %v9061_v45 = vmax.f32 %v9053_v53, 0.0 }
 0x4f3   : > { %v9248_v31 = vsel %vm9244_vm3, %v9091_v6, -inf  ;;  %v9141_v21 = vrot.slane %v9127_v22, %v17627_v28  ;;  %v9142_v36 = vcombine.high %v9134_v5, %v9134_v5  ;;  %v9258_v52 = vsel %vm9244_vm3, %v9134_v5, -inf }
 0x4f4   : > { %v9254_v26 = vsel %vm9244_vm3, %v9092_v43, -inf  ;;  %v9259_v63 = vmax.f32 %v9257_v20, %v9258_v52  ;;  %v9093_v25 = vcombine.high %v9061_v45, %v9061_v45  ;;  %v9100_v14 = vrot.slane %v9061_v45, %v17627_v28 }
 0x4f5   : > { %v9143_v17 = vcombine.high %v9141_v21, %v9141_v21  ;;  %v9261_v0 = vsel %vm9244_vm3, %v9142_v36, -inf  ;;  %v9264_v1 = vsel %vm9244_vm3, %v9141_v21, -inf  ;;  %v18654_v16 = vadd.f32 %v18616_v51, %v9043_v9 }
 0x4f6   : > { %v9262_v35 = vmax.f32 %v9260_v30, %v9261_v0  ;;  %v9265_v32 = vmax.f32 %v9263_v8, %v9264_v1  ;;  %v9321_v19 = vsel %vm9244_vm3, %v9259_v63, -inf  ;;  %v9107_v4 = vrot.slane %v9093_v25, %v17627_v28 }
 0x4f7   : > { %v9267_v39 = vsel %vm9244_vm3, %v9143_v17, -inf  ;;  %v9322_v40 = vrot.slane %v9321_v19, 4  ;;  %v9108_v44 = vcombine.high %v9100_v14, %v9100_v14  ;;  %v9246_v55 = vsel %vm9244_vm3, %v9100_v14, -inf }
 0x4f8   : > { %v9268_v24 = vmax.f32 %v9266_v47, %v9267_v39  ;;  %v9328_v10 = vsel %vm9244_vm3, %v9262_v35, -inf  ;;  %v9335_v54 = vsel %vm9244_vm3, %v9265_v32, -inf  ;;  %v9109_v29 = vcombine.high %v9107_v4, %v9107_v4 }
 0x4f9   : > { %v9323_v34 = vmax.f32 %v9321_v19, %v9322_v40  ;;  %v9329_v2 = vrot.slane %v9328_v10, 4  ;;  %v9336_v7 = vrot.slane %v9335_v54, 4  ;;  %v9247_v38 = vmax.f32 %v9245_v46, %v9246_v55 }
 0x4fa   : > { %v9342_v3 = vsel %vm9244_vm3, %v9268_v24, -inf  ;;  %v9249_v48 = vsel %vm9244_vm3, %v9108_v44, -inf  ;;  %v9252_v62 = vsel %vm9244_vm3, %v9107_v4, -inf  ;;  %v9255_v50 = vsel %vm9244_vm3, %v9109_v29, -inf }
 0x4fb   : > { %v9324_v57 = vrot.slane %v9323_v34, 2  ;;  %v9330_v20 = vmax.f32 %v9328_v10, %v9329_v2  ;;  %v9337_v59 = vmax.f32 %v9335_v54, %v9336_v7  ;;  %v9343_v27 = vrot.slane %v9342_v3, 4  ;;  %v8860_v7 = vpop.f32.mrf.mxu1 }
 0x4fc   : > { %v9250_v61 = vmax.f32 %v9248_v31, %v9249_v48  ;;  %v9253_v53 = vmax.f32 %v9251_v18, %v9252_v62  ;;  %v9256_v9 = vmax.f32 %v9254_v26, %v9255_v50  ;;  %v9293_v13 = vsel %vm9244_vm3, %v9247_v38, -inf }
 0x4fd   : > { %v9325_v30 = vmax.f32 %v9323_v34, %v9324_v57  ;;  %v9331_v8 = vrot.slane %v9330_v20, 2  ;;  %v9338_v42 = vrot.slane %v9337_v59, 2  ;;  %v9344_v6 = vmax.f32 %v9342_v3, %v9343_v27 }
 0x4fe   : > { %v9294_v46 = vrot.slane %v9293_v13, 4  ;;  %v9300_v22 = vsel %vm9244_vm3, %v9250_v61, -inf  ;;  %v9307_v5 = vsel %vm9244_vm3, %v9253_v53, -inf  ;;  %v9314_v47 = vsel %vm9244_vm3, %v9256_v9, -inf }
 0x4ff   : > { %v9326_v43 = vrot.slane %v9325_v30, 1  ;;  %v9332_v45 = vmax.f32 %v9330_v20, %v9331_v8  ;;  %v9339_v21 = vmax.f32 %v9337_v59, %v9338_v42  ;;  %v9345_v36 = vrot.slane %v9344_v6, 2 }
 0x500   : > { %v9295_v18 = vmax.f32 %v9293_v13, %v9294_v46  ;;  %v9301_v31 = vrot.slane %v9300_v22, 4  ;;  %v9308_v52 = vrot.slane %v9307_v5, 4  ;;  %v9315_v26 = vrot.slane %v9314_v47, 4  ;;  %v9022_v13 = vpop.f32.mrf.mxu0  ;;  %v14412_v46 = vpop.f32.mrf.mxu1 }
 0x501   : > { %v9327_v63 = vmax.f32 %v9325_v30, %v9326_v43  ;;  %v9333_v25 = vrot.slane %v9332_v45, 1  ;;  %v9340_v14 = vrot.slane %v9339_v21, 1  ;;  %v9346_v17 = vmax.f32 %v9344_v6, %v9345_v36 }
 0x502   : > { %v9296_v0 = vrot.slane %v9295_v18, 2  ;;  %v9302_v1 = vmax.f32 %v9300_v22, %v9301_v31  ;;  %v9309_v35 = vmax.f32 %v9307_v5, %v9308_v52  ;;  %v9316_v32 = vmax.f32 %v9314_v47, %v9315_v26  ;;  %v14422_v52 = vpop.f32.mrf.mxu0 }
 0x503   : > { %v9334_v19 = vmax.f32 %v9332_v45, %v9333_v25  ;;  %v9341_v4 = vmax.f32 %v9339_v21, %v9340_v14  ;;  %v9347_v39 = vrot.slane %v9346_v17, 1  ;;  %v13701_v40 = vpack.c.bf16 %v9327_v63, %v9327_v63 }
 0x504   : > { %v9297_v44 = vmax.f32 %v9295_v18, %v9296_v0  ;;  %v9303_v55 = vrot.slane %v9302_v1, 2  ;;  %v9310_v24 = vrot.slane %v9309_v35, 2  ;;  %v9317_v10 = vrot.slane %v9316_v32, 2 }
 0x505   : > { %v9348_v54 = vmax.f32 %v9346_v17, %v9347_v39  ;;  %v13702_v29 = vpack.c.bf16 %v9334_v19, %v9334_v19  ;;  %v13703_v34 = vpack.c.bf16 %v9341_v4, %v9341_v4  ;;  %v9473_v2 = vunpack.c.l.b16 %v13701_v40  ;;  %v8863_v17 = vpop.f32.mrf.mxu1  ;;  %v9025_v40 = vpop.f32.mrf.mxu0 }
 0x506   : > { %v9298_v38 = vrot.slane %v9297_v44, 1  ;;  %v9304_v3 = vmax.f32 %v9302_v1, %v9303_v55  ;;  %v9311_v48 = vmax.f32 %v9309_v35, %v9310_v24  ;;  %v9318_v62 = vmax.f32 %v9316_v32, %v9317_v10  ;;  %v9509_v24 = vld [vmem:[#allocation4 + $0x4] sm:$0x7] }
 0x507   : > { %v13704_v50 = vpack.c.bf16 %v9348_v54, %v9348_v54  ;;  %v9474_v57 = vunpack.c.l.b16 %v13702_v29  ;;  %v9475_v20 = vunpack.c.l.b16 %v13703_v34  ;;  %v9066_v59 = vmax.f32 %v18654_v16, 0.0 }
 0x508   : > { %v9299_v27 = vmax.f32 %v9297_v44, %v9298_v38  ;;  %v9305_v61 = vrot.slane %v9304_v3, 1  ;;  %v9312_v53 = vrot.slane %v9311_v48, 1  ;;  %v9319_v9 = vrot.slane %v9318_v62, 1 }
 0x509   : > { %v8525_v30 = vadd.f32 %v18607_v15, %v18625_v23  ;;  %v8523_v8 = vadd.f32 %v18611_v33, %v18633_v37  ;;  %v9476_v42 = vunpack.c.l.b16 %v13704_v50  ;;  %v9488_v6 = vsel %vm7375_vm6, %v9474_v57, %v9473_v2  ;;  %v9512_v15 = vld [vmem:[#allocation4 + $0x8] sm:$0x7] }
 0x50a   : > { %v9489_v22 = vsel %vm7377_vm10, %v9475_v20, %v9488_v6  ;;  %v9306_v5 = vmax.f32 %v9304_v3, %v9305_v61  ;;  %v9313_v47 = vmax.f32 %v9311_v48, %v9312_v53  ;;  %v9320_v16 = vmax.f32 %v9318_v62, %v9319_v9 }
 0x50b   : > { %v9490_v43 = vsel %vm7379_vm11, %v9476_v42, %v9489_v22  ;;  %v13697_v23 = vpack.c.bf16 %v9299_v27, %v9299_v27  ;;  %v9178_v33 = vcombine.high %v9066_v59, %v9066_v59  ;;  %v8645_v37 = vadd.f32 %v18591_v58, %v18630_v11 }
 0x50c   : > { %v9498_v21 = vpack.c.b16 %v9490_v43, %v9490_v43  ;;  %v13698_v36 = vpack.c.bf16 %v9306_v5, %v9306_v5  ;;  %v13699_v18 = vpack.c.bf16 %v9313_v47, %v9313_v47  ;;  %v13700_v31 = vpack.c.bf16 %v9320_v16, %v9320_v16 }
 0x50d   : > { %v9469_v26 = vunpack.c.l.b16 %v13697_v23  ;;  %v9185_v63 = vrot.slane %v9066_v59, %v17627_v28  ;;  %v8648_v25 = vadd.f32 %v18597_v49, %v8525_v30  ;;  %v8646_v14 = vadd.f32 %v18603_v60, %v8523_v8 }
 0x50e   : > { %v9513_v0 = vsel %vm18680_vm5, %v9498_v21, %v9512_v15  ;;  %v9470_v1 = vunpack.c.l.b16 %v13698_v36  ;;  %v9471_v35 = vunpack.c.l.b16 %v13699_v18  ;;  %v9472_v32 = vunpack.c.l.b16 %v13700_v31 }
 0x50f   : > { %9514 = vst [vmem:[#allocation4 + $0x8] sm:$0x7] %v9513_v0  ;;  %v8879_v58 = vadd.f32 %v8860_v7, %v8645_v37  ;;  %v8882_v11 = vadd.f32 %v14412_v46, %v8648_v25  ;;  %v9192_v4 = vrot.slane %v9178_v33, %v17627_v28  ;;  %v8880_v39 = vadd.f32 %v8863_v17, %v8646_v14 }
 0x510   : > { %v9485_v19 = vsel %vm7375_vm6, %v9470_v1, %v9469_v26  ;;  %v9193_v10 = vcombine.high %v9185_v63, %v9185_v63  ;;  %v9281_v50 = vsel %vm9244_vm3, %v9185_v63, -inf }
 0x511   : > { %v9486_v49 = vsel %vm7377_vm10, %v9471_v35, %v9485_v19  ;;  %v9041_v44 = vadd.f32 %v9022_v13, %v8879_v58  ;;  %v9044_v60 = vadd.f32 %v14422_v52, %v8882_v11  ;;  %v9042_v54 = vadd.f32 %v9025_v40, %v8880_v39 }
 0x512   : > { %v9487_v55 = vsel %vm7379_vm11, %v9472_v32, %v9486_v49  ;;  %v9194_v7 = vcombine.high %v9192_v4, %v9192_v4  ;;  %v9284_v57 = vsel %vm9244_vm3, %v9193_v10, -inf  ;;  %v9287_v9 = vsel %vm9244_vm3, %v9192_v4, -inf }
 0x513   : > { %v9497_v29 = vpack.c.b16 %v9487_v55, %v9487_v55  ;;  %v9056_v34 = vadd.f32 %v18616_v51, %v9041_v44  ;;  %v9059_v2 = vadd.f32 %v18616_v51, %v9044_v60  ;;  %v9057_v38 = vadd.f32 %v18616_v51, %v9042_v54 }
 0x514   : > { %v9290_v51 = vsel %vm9244_vm3, %v9194_v7, -inf }
 0x515   : > { %v9510_v3 = vsel %vm18680_vm5, %v9497_v29, %v9509_v24  ;;  %v9064_v48 = vmax.f32 %v9056_v34, 0.0  ;;  %v9067_v62 = vmax.f32 %v9059_v2, 0.0  ;;  %v9065_v20 = vmax.f32 %v9057_v38, 0.0 }
 0x516   : > { %9511 = vst [vmem:[#allocation4 + $0x4] sm:$0x7] %v9510_v3 }
 0x517   : > { %v9144_v59 = vcombine.high %v9064_v48, %v9064_v48  ;;  %v9151_v27 = vrot.slane %v9064_v48, %v17627_v28  ;;  %v9195_v61 = vcombine.high %v9067_v62, %v9067_v62  ;;  %v9202_v53 = vrot.slane %v9067_v62, %v17627_v28 }
 0x518   : > { %v9161_v13 = vcombine.high %v9065_v20, %v9065_v20  ;;  %v9168_v30 = vrot.slane %v9065_v20, %v17627_v28 }
 0x519   : > { %v9158_v8 = vrot.slane %v9144_v59, %v17627_v28  ;;  %v9159_v42 = vcombine.high %v9151_v27, %v9151_v27  ;;  %v9269_v6 = vsel %vm9244_vm3, %v9151_v27, -inf  ;;  %v9209_v46 = vrot.slane %v9195_v61, %v17627_v28 }
 0x51a   : > { %v9210_v22 = vcombine.high %v9202_v53, %v9202_v53  ;;  %v9282_v5 = vsel %vm9244_vm3, %v9202_v53, -inf  ;;  %v9175_v47 = vrot.slane %v9161_v13, %v17627_v28  ;;  %v9176_v16 = vcombine.high %v9168_v30, %v9168_v30 }
 0x51b   : > { %v9160_v43 = vcombine.high %v9158_v8, %v9158_v8  ;;  %v9272_v15 = vsel %vm9244_vm3, %v9159_v42, -inf  ;;  %v9275_v23 = vsel %vm9244_vm3, %v9158_v8, -inf  ;;  %v9211_v33 = vcombine.high %v9209_v46, %v9209_v46 }
 0x51c   : > { %v9283_v37 = vmax.f32 %v9281_v50, %v9282_v5  ;;  %v9285_v21 = vsel %vm9244_vm3, %v9210_v22, -inf  ;;  %v9288_v36 = vsel %vm9244_vm3, %v9209_v46, -inf  ;;  %v9177_v18 = vcombine.high %v9175_v47, %v9175_v47 }
 0x51d   : > { %v9278_v31 = vsel %vm9244_vm3, %v9160_v43, -inf  ;;  %v9286_v52 = vmax.f32 %v9284_v57, %v9285_v21  ;;  %v9289_v26 = vmax.f32 %v9287_v9, %v9288_v36  ;;  %v9291_v63 = vsel %vm9244_vm3, %v9211_v33, -inf }
 0x51e   : > { %v9292_v25 = vmax.f32 %v9290_v51, %v9291_v63  ;;  %v9377_v14 = vsel %vm9244_vm3, %v9283_v37, -inf  ;;  %v9270_v17 = vsel %vm9244_vm3, %v9168_v30, -inf  ;;  %v9273_v0 = vsel %vm9244_vm3, %v9176_v16, -inf }
 0x51f   : > { %v9378_v1 = vrot.slane %v9377_v14, 4  ;;  %v9384_v35 = vsel %vm9244_vm3, %v9286_v52, -inf  ;;  %v9391_v32 = vsel %vm9244_vm3, %v9289_v26, -inf  ;;  %v9271_v58 = vmax.f32 %v9269_v6, %v9270_v17 }
 0x520   : > { %v9385_v11 = vrot.slane %v9384_v35, 4  ;;  %v9392_v19 = vrot.slane %v9391_v32, 4  ;;  %v9398_v4 = vsel %vm9244_vm3, %v9292_v25, -inf  ;;  %v9274_v39 = vmax.f32 %v9272_v15, %v9273_v0 }
 0x521   : > { %v9379_v40 = vmax.f32 %v9377_v14, %v9378_v1  ;;  %v9399_v49 = vrot.slane %v9398_v4, 4  ;;  %v9276_v44 = vsel %vm9244_vm3, %v9175_v47, -inf  ;;  %v9279_v60 = vsel %vm9244_vm3, %v9177_v18, -inf }
 0x522   : > { %v9386_v55 = vmax.f32 %v9384_v35, %v9385_v11  ;;  %v9393_v24 = vmax.f32 %v9391_v32, %v9392_v19  ;;  %v9277_v10 = vmax.f32 %v9275_v23, %v9276_v44  ;;  %v9280_v54 = vmax.f32 %v9278_v31, %v9279_v60 }
 0x523   : > { %v9380_v29 = vrot.slane %v9379_v40, 2  ;;  %v9400_v34 = vmax.f32 %v9398_v4, %v9399_v49  ;;  %v9349_v2 = vsel %vm9244_vm3, %v9271_v58, -inf  ;;  %v9356_v7 = vsel %vm9244_vm3, %v9274_v39, -inf }
 0x524   : > { %v9387_v38 = vrot.slane %v9386_v55, 2  ;;  %v9394_v3 = vrot.slane %v9393_v24, 2  ;;  %v9350_v48 = vrot.slane %v9349_v2, 4  ;;  %v9357_v62 = vrot.slane %v9356_v7, 4 }
 0x525   : > { %v9381_v50 = vmax.f32 %v9379_v40, %v9380_v29  ;;  %v9401_v57 = vrot.slane %v9400_v34, 2  ;;  %v9363_v20 = vsel %vm9244_vm3, %v9277_v10, -inf  ;;  %v9370_v59 = vsel %vm9244_vm3, %v9280_v54, -inf  ;;  %v9518_v29 = vld [vmem:[#allocation4 + $0x10] sm:$0x7] }
 0x526   : > { %v9388_v27 = vmax.f32 %v9386_v55, %v9387_v38  ;;  %v9395_v61 = vmax.f32 %v9393_v24, %v9394_v3  ;;  %v9351_v53 = vmax.f32 %v9349_v2, %v9350_v48  ;;  %v9358_v9 = vmax.f32 %v9356_v7, %v9357_v62  ;;  %v13330_v10 = vld.sshfl [vmem:[#allocation4] sm:$0x13 pattern:$0x76325410] }
 0x527   : > { %v9382_v51 = vrot.slane %v9381_v50, 1  ;;  %v9402_v13 = vmax.f32 %v9400_v34, %v9401_v57  ;;  %v9364_v30 = vrot.slane %v9363_v20, 4  ;;  %v9371_v8 = vrot.slane %v9370_v59, 4 }
 0x528   : > { %v9389_v42 = vrot.slane %v9388_v27, 1  ;;  %v9396_v6 = vrot.slane %v9395_v61, 1  ;;  %v9352_v46 = vrot.slane %v9351_v53, 2  ;;  %v9359_v22 = vrot.slane %v9358_v9, 2 }
 0x529   : > { %v9383_v5 = vmax.f32 %v9381_v50, %v9382_v51  ;;  %v9403_v47 = vrot.slane %v9402_v13, 1  ;;  %v9365_v16 = vmax.f32 %v9363_v20, %v9364_v30  ;;  %v9372_v43 = vmax.f32 %v9370_v59, %v9371_v8  ;;  %v13344_v62 = vld.sshfl [vmem:[#allocation4] sm:$0x12 pattern:$0x76325410] }
 0x52a   : > { %v9390_v15 = vmax.f32 %v9388_v27, %v9389_v42  ;;  %v9397_v23 = vmax.f32 %v9395_v61, %v9396_v6  ;;  %v9353_v33 = vmax.f32 %v9351_v53, %v9352_v46  ;;  %v9360_v37 = vmax.f32 %v9358_v9, %v9359_v22  ;;  %v13331_v27 = vld.sshfl [vmem:[#allocation4 + $0x4] sm:$0x13 pattern:$0x76325410]  ;;  %v9515_v8 = vld [vmem:[#allocation4 + $0xc] sm:$0x7] }
 0x52b   : > { %v9404_v21 = vmax.f32 %v9402_v13, %v9403_v47  ;;  %v13709_v36 = vpack.c.bf16 %v9383_v5, %v9383_v5  ;;  %v9366_v18 = vrot.slane %v9365_v16, 2  ;;  %v9373_v31 = vrot.slane %v9372_v43, 2  ;;  %v13345_v53 = vld.sshfl [vmem:[#allocation4 + $0x4] sm:$0x12 pattern:$0x76325410] }
 0x52c   : > { %v13710_v52 = vpack.c.bf16 %v9390_v15, %v9390_v15  ;;  %v13711_v26 = vpack.c.bf16 %v9397_v23, %v9397_v23  ;;  %v9354_v63 = vrot.slane %v9353_v33, 1  ;;  %v9361_v25 = vrot.slane %v9360_v37, 1  ;;  %v13332_v47 = vld.sshfl [vmem:[#allocation4 + $0x8] sm:$0x13 pattern:$0x76325410] }
 0x52d   : > { %v13712_v14 = vpack.c.bf16 %v9404_v21, %v9404_v21  ;;  %v9481_v17 = vunpack.c.l.b16 %v13709_v36  ;;  %v9367_v0 = vmax.f32 %v9365_v16, %v9366_v18  ;;  %v9374_v1 = vmax.f32 %v9372_v43, %v9373_v31  ;;  %v13346_v23 = vld.sshfl [vmem:[#allocation4 + $0x8] sm:$0x12 pattern:$0x76325410] }
 0x52e   : > { %v9482_v35 = vunpack.c.l.b16 %v13710_v52  ;;  %v9483_v32 = vunpack.c.l.b16 %v13711_v26  ;;  %v9355_v58 = vmax.f32 %v9353_v33, %v9354_v63  ;;  %v9362_v11 = vmax.f32 %v9360_v37, %v9361_v25 }
 0x52f   : > { %v9484_v19 = vunpack.c.l.b16 %v13712_v14  ;;  %v9368_v4 = vrot.slane %v9367_v0, 1  ;;  %v9375_v39 = vrot.slane %v9374_v1, 1  ;;  %v9577_v50 = vshrl.u32 %v13330_v10, 16 }
 0x530   : > { %v9494_v40 = vsel %vm7375_vm6, %v9482_v35, %v9481_v17  ;;  %v13705_v49 = vpack.c.bf16 %v9355_v58, %v9355_v58  ;;  %v13706_v44 = vpack.c.bf16 %v9362_v11, %v9362_v11  ;;  %v9580_v61 = vshll.u32 %v13330_v10, 16 }
 0x531   : > { %v9495_v60 = vsel %vm7377_vm10, %v9483_v32, %v9494_v40  ;;  %v9369_v55 = vmax.f32 %v9367_v0, %v9368_v4  ;;  %v9376_v24 = vmax.f32 %v9374_v1, %v9375_v39  ;;  %v9803_v51 = vcombine.high %v13344_v62, %v13344_v62 }
 0x532   : > { %v9496_v54 = vsel %vm7379_vm11, %v9484_v19, %v9495_v60  ;;  %v9477_v34 = vunpack.c.l.b16 %v13705_v49  ;;  %v9478_v2 = vunpack.c.l.b16 %v13706_v44  ;;  %v9544_v13 = vcombine.high %v13330_v10, %v13330_v10 }
 0x533   : > { %v9500_v7 = vpack.c.b16 %v9496_v54, %v9496_v54  ;;  %v13707_v38 = vpack.c.bf16 %v9369_v55, %v9369_v55  ;;  %v13708_v3 = vpack.c.bf16 %v9376_v24, %v9376_v24  ;;  %v13348_v42 = vrot.slane %v13344_v62, 9 }
 0x534   : > { %v9491_v48 = vsel %vm7375_vm6, %v9478_v2, %v9477_v34  ;;  %v9591_v6 = vshrl.u32 %v13331_v27, 16  ;;  %v9594_v46 = vshll.u32 %v13331_v27, 16  ;;  %v9811_v5 = vcombine.high %v13345_v53, %v13345_v53 }
 0x535   : > { %v9519_v57 = vsel %vm18680_vm5, %v9500_v7, %v9518_v29  ;;  %v9479_v20 = vunpack.c.l.b16 %v13707_v38  ;;  %v9480_v59 = vunpack.c.l.b16 %v13708_v3  ;;  %v9579_v16 = vrot.slane %v9577_v50, 6 }
 0x536   : > { %9520 = vst [vmem:[#allocation4 + $0x10] sm:$0x7] %v9519_v57  ;;  %v9582_v43 = vrot.slane %v9580_v61, 7  ;;  %v9837_v33 = vrot.slane %v9803_v51, 7  ;;  %v9586_v37 = vshll.u32 %v9544_v13, 16  ;;  %v9593_v21 = vrot.slane %v9591_v6, 6 }
 0x537   : > { %v9492_v9 = vsel %vm7377_vm10, %v9479_v20, %v9491_v48  ;;  %vm9832_vm10 = vmor %vm9830_vm12, %vm7379_vm11  ;;  %v9596_v36 = vrot.slane %v9594_v46, 7  ;;  %v9605_v18 = vshrl.u32 %v13332_v47, 16  ;;  %v9608_v31 = vshll.u32 %v13332_v47, 16 }
 0x538   : > { %v9493_v30 = vsel %vm7379_vm11, %v9480_v59, %v9492_v9  ;;  %v9841_v52 = vrot.slane %v9811_v5, 7  ;;  %v9583_v26 = vor.u32 %v9582_v43, %v9579_v16  ;;  %vm18744_vm0 = vmor %vm9832_vm10, %vm7383_vm14  ;;  %v9819_v14 = vcombine.high %v13346_v23, %v13346_v23 }
 0x539   : > { %v9499_v22 = vpack.c.b16 %v9493_v30, %v9493_v30  ;;  %v9552_v17 = vcombine.high %v13331_v27, %v13331_v27  ;;  %v9838_v1 = vsel %vm18744_vm0, %v13348_v42, %v9837_v33  ;;  %v13349_v35 = vrot.slane %v13345_v53, 9  ;;  %vm9571_vm14 = vmor %vm9569_vm15, %vm9570_vm1 }
 0x53a   : > { %vm9574_vm11 = vsmask.f32 7448  ;;  %v9588_v32 = vrot.slane %v9586_v37, 7  ;;  %v9597_v58 = vor.u32 %v9596_v36, %v9593_v21  ;;  %v9607_v11 = vrot.slane %v9605_v18, 6  ;;  %vm9573_vm2 = vmor %vm9571_vm14, %vm9572_vm9  ;;  %v14781_v21 = vld [vmem:[%s19391_s5 + $0x48] sm:$0xff]  }
 0x53b   : > { %v9516_v15 = vsel %vm18680_vm5, %v9499_v22, %v9515_v8  ;;  %v9610_v19 = vrot.slane %v9608_v31, 7  ;;  %v18752_v4 = vsel %vm18744_vm0, %v13349_v35, %v9841_v52  ;;  %v9584_v39 = vrot.slane %v9583_v26, 2  ;;  %vm18759_vm3 = vmor %vm9573_vm2, %vm9574_vm11  ;;  %v13413_v35 = vld.sshfl [vmem:[#allocation4 + $0x14] sm:$0x12 pattern:$0x76325410] }
 0x53c   : > { %9517 = vst [vmem:[#allocation4 + $0xc] sm:$0x7] %v9516_v15  ;;  %v13350_v44 = vrot.slane %v13346_v23, 9  ;;  %v9845_v60 = vrot.slane %v9819_v14, 7  ;;  %v9560_v55 = vcombine.high %v13332_v47, %v13332_v47  ;;  %v9600_v24 = vshll.u32 %v9552_v17, 16 }
 0x53d   : > { %v13369_v63 = vld.sshfl [vmem:[#allocation4 + $0x10] sm:$0x13 pattern:$0x76325410]  ;;  %v9856_v34 = vcombine.low %v9838_v1, %v18752_v4  ;;  %v9598_v7 = vrot.slane %v9597_v58, 2  ;;  %v9611_v38 = vor.u32 %v9610_v19, %v9607_v11  ;;  %v9589_v42 = vsel %vm18759_vm3, %v9584_v39, %v9588_v32  ;;  %v14783_v1 = vld [vmem:[%s19391_s5 + $0x40] sm:$0xff]  }
 0x53e   : > { %v10102_v45 = vshrl.u32 %v13369_v63, 16  ;;  %v10105_v0 = vshll.u32 %v13369_v63, 16  ;;  %v10058_v54 = vcombine.high %v13369_v63, %v13369_v63  ;;  %v9602_v59 = vrot.slane %v9600_v24, 7  ;;  %v14782_v32 = vld [vmem:[%s19391_s5 + $0x8] sm:$0xff]   ;;  %v14784_v24 = vld [vmem:[%s19391_s5] sm:$0xff]  }
 0x53f   : > { %v9614_v27 = vshll.u32 %v9560_v55, 16  ;;  %v18765_v30 = vsel %vm18744_vm0, %v13350_v44, %v9845_v60  ;;  %v9612_v6 = vrot.slane %v9611_v38, 2  ;;  %v9864_v16 = vrot.slane %v9856_v34, %v17627_v28  ;;  %v13412_v11 = vld.sshfl [vmem:[#allocation4 + $0x10] sm:$0x12 pattern:$0x76325410] }
 0x540   : > { %v10104_v40 = vrot.slane %v10102_v45, 6  ;;  %v10107_v49 = vrot.slane %v10105_v0, 7  ;;  %v10111_v13 = vshll.u32 %v10058_v54, 16  ;;  %v9603_v22 = vsel %vm18759_vm3, %v9598_v7, %v9602_v59 }
 0x541   : > { %v9616_v43 = vrot.slane %v9614_v27, 7  ;;  %v9637_v36 = vcombine.low %v9589_v42, %v9603_v22  ;;  %v14932_v44 = vld.sshfl [vmem:[#allocation4] sm:$0xf pattern:$0x76325410]  ;;  %v10627_v60 = vcombine.high %v13412_v11, %v13412_v11  ;;  %v10635_v55 = vcombine.high %v13413_v35, %v13413_v35 }
 0x542   : > { %v10108_v50 = vor.u32 %v10107_v49, %v10104_v40  ;;  %v10113_v37 = vrot.slane %v10111_v13, 7  ;;  %v14785_v49 = vld [vmem:[%s19391_s5 + $0x68] sm:$0xff]   ;;  %v14934_v34 = vld.sshfl [vmem:[#allocation4 + $0x10] sm:$0xf pattern:$0x76325410] }
 0x543   : > { %v13347_v10 = vld.sshfl [vmem:[#allocation4 + $0xc] sm:$0x12 pattern:$0x76325410]  ;;  %v9617_v31 = vsel %vm18759_vm3, %v9612_v6, %v9616_v43  ;;  %v9645_v45 = vrot.slane %v9637_v36, %v17627_v28  ;;  %v10646_v7 = vrot.slane %v10627_v60, 7  ;;  %v13417_v38 = vrot.slane %v13413_v35, 9 }
 0x544   : > { %v9827_v29 = vcombine.high %v13347_v10, %v13347_v10  ;;  %v13333_v2 = vld.sshfl [vmem:[#allocation4 + $0xc] sm:$0x13 pattern:$0x76325410]  ;;  %v13351_v57 = vrot.slane %v13347_v10, 9  ;;  %v10109_v47 = vrot.slane %v10108_v50, 2  ;;  %v10120_v17 = vcombine.low %v9603_v22, %v9617_v31 }
 0x545   : > { %v9568_v3 = vcombine.high %v13333_v2, %v13333_v2  ;;  %v9619_v48 = vshrl.u32 %v13333_v2, 16  ;;  %v9622_v62 = vshll.u32 %v13333_v2, 16  ;;  %v14931_v39 = vld.sshfl [vmem:[#allocation4 + $0x8] sm:$0xf pattern:$0x76325410] }
 0x546   : > { %v9849_v20 = vrot.slane %v9827_v29, 7  ;;  %v18791_v26 = vsel %vm18759_vm3, %v10109_v47, %v10113_v37  ;;  %v10128_v40 = vrot.slane %v10120_v17, %v17627_v28  ;;  %v14933_v54 = vld.sshfl [vmem:[#allocation4 + $0x8] sm:$0xf pattern:$0x76325410]  ;;  %v14789_v2 = vld [vmem:[%s19391_s5 + $0x60] sm:$0xff]  }
 0x547   : > { %v9621_v53 = vrot.slane %v9619_v48, 6  ;;  %v9624_v9 = vrot.slane %v9622_v62, 7  ;;  %v9628_v51 = vshll.u32 %v9568_v3, 16  ;;  %v10650_v3 = vrot.slane %v10635_v55, 7  ;;  %v14788_v48 = vld [vmem:[%s19391_s5 + $0x38] sm:$0xff]   ;;  %v14793_v27 = vld [vmem:[%s19391_s5 + $0x88] sm:$0xff]  }
 0x548   : > { %v18769_v8 = vsel %vm18744_vm0, %v13351_v57, %v9849_v20  ;;  %v13402_v29 = vld.sshfl [vmem:[#allocation4 + $0x14] sm:$0x13 pattern:$0x76325410]  ;;  %v9731_v57 = vcombine.low %v14932_v44, %v14931_v39  ;;  %v13416_v59 = vrot.slane %v13412_v11, 9  ;;  %v14790_v13 = vld [vmem:[%s19391_s5 + $0x30] sm:$0xff]   ;;  %v10361_v42 = vcombine.low %v14933_v54, %v14934_v34 }
 0x549   : > { %v9857_v46 = vcombine.low %v18765_v30, %v18769_v8  ;;  %v9625_v5 = vor.u32 %v9624_v9, %v9621_v53  ;;  %v9630_v33 = vrot.slane %v9628_v51, 7  ;;  %v10503_v62 = vshrl.u32 %v13402_v29, 16  ;;  %v14935_v20 = vld.sshfl [vmem:[#allocation4 + $0xc] sm:$0xf pattern:$0x76325410] }
 0x54a   : > { %v10506_v50 = vshll.u32 %v13402_v29, 16  ;;  %v14936_v53 = vld.sshfl [vmem:[#allocation4 + $0x4] sm:$0xf pattern:$0x76325410]  ;;  %v10647_v9 = vsel %vm18744_vm0, %v13416_v59, %v10646_v7  ;;  %v10651_v51 = vsel %vm18744_vm0, %v13417_v38, %v10650_v3  ;;  %v10459_v6 = vcombine.high %v13402_v29, %v13402_v29  ;;  %v14796_v47 = vld [vmem:[%s19391_s5 + $0x58] sm:$0xff]  }
 0x54b   : > { %v18779_v15 = vrot.slane %v9857_v46, %v17627_v28  ;;  %v9626_v23 = vrot.slane %v9625_v5, 2  ;;  %v10505_v46 = vrot.slane %v10503_v62, 6  ;;  %v10658_v25 = vcombine.low %v10647_v9, %v10651_v51  ;;  %v14797_v5 = vld [vmem:[%s19391_s5 + $0x80] sm:$0xff]   ;;  %v14798_v36 = vld [vmem:[%s19391_s5 + $0x50] sm:$0xff]  }
 0x54c   : > { %v10508_v22 = vrot.slane %v10506_v50, 7  ;;  %v10512_v43 = vshll.u32 %v10459_v6, 16  ;;  %v14800_v17 = vld [vmem:[%s19391_s5 + $0x70] sm:$0xff]   ;;  %vm600_vm5 = vcmask 517120   ;;  %v14806_v11 = vld [vmem:[%s19393_s7] sm:$0xff]  }
 0x54d   : > { %v9872_v18 = vcombine.low %v9864_v16, %v18779_v15  ;;  %v9631_v52 = vsel %vm18759_vm3, %v9626_v23, %v9630_v33  ;;  %v9960_v23 = vcombine.low %v14936_v53, %v14935_v20  ;;  %v10257_v33 = vcombine.low %v18769_v8, %v10647_v9  ;;  %602 = vst.msk [vmem:[#allocation5 + $0x2] sm:$0x3] %vm600_vm5, %v19598_v12  ;;  %v14805_v35 = vld [vmem:[%s19393_s7 + $0x30] sm:$0xff]  }
 0x54e   : > { %v9638_v63 = vcombine.low %v9617_v31, %v9631_v52  ;;  %v10121_v14 = vcombine.low %v9631_v52, %v18791_v26  ;;  %v10509_v16 = vor.u32 %v10508_v22, %v10505_v46  ;;  %v10672_v37 = vrot.slane %v10658_v25, %v17627_v28  ;;  %601 = vst.msk [vmem:[#allocation5] sm:$0x3] %vm600_vm5, %v19598_v12 }
 0x54f   : > { %14444 = vmatmul.mubr.msk.bf16.vlgmr.msra.gmra.mxu0 %vm9666_vm4, %v9872_v18  ;;  %v10514_v8 = vrot.slane %v10512_v43, 7  ;;  %v10271_v52 = vrot.slane %v10257_v33, %v17627_v28  ;;  %603 = vst.msk [vmem:[#allocation5 + $0x4] sm:$0x3] %vm600_vm5, %v19598_v12  ;;  %604 = vst.msk [vmem:[#allocation5 + $0x6] sm:$0x3] %vm600_vm5, %v19598_v12 }
 0x550   : > { %14456 = vmatpush3.bf16.msra.mxu0 %v14781_v21  ;;  %v18797_v0 = vrot.slane %v9638_v63, %v17627_v28  ;;  %14459 = vmatprep.mubr.msk.bf16.mxu0 %vm15181_vm13, %v15180_v41  ;;  %v10135_v58 = vrot.slane %v10121_v14, %v17627_v28  ;;  %v10256_v21 = vcombine.low %v18752_v4, %v18765_v30  ;;  %v10510_v31 = vrot.slane %v10509_v16, 2  ;;  %v14799_v30 = vld [vmem:[%s19391_s5 + $0x78] sm:$0xff]  }
 0x551   : > { %14457 = vmatprep.subr.bf16.mxu0 %v15180_v41  ;;  %v10673_v18 = vcombine.low %v18779_v15, %v10672_v37  ;;  %vm10959_vm12 = vsmask.f32 1284  ;;  %vm10961_vm1 = vsmask.f32 2312  ;;  %vm10963_vm9 = vsmask.f32 3340 }
 0x552   : > { %v9653_v19 = vcombine.low %v9645_v45, %v18797_v0  ;;  %v10136_v10 = vcombine.low %v10128_v40, %v10135_v58  ;;  %v10264_v4 = vrot.slane %v10256_v21, %v17627_v28  ;;  %v10515_v15 = vsel %vm18759_vm3, %v10510_v31, %v10514_v8  ;;  %v14807_v58 = vld [vmem:[%s19393_s7 + $0x28] sm:$0xff]   ;;  %vm10960_vm15 = vmor %vm637_vm7, %vm10959_vm12 }
 0x553   : > { %v10522_v14 = vcombine.low %v18791_v26, %v10515_v15  ;;  %v14801_v26 = vld [vmem:[%s19393_s7 + $0x18] sm:$0xff]   ;;  %vm10962_vm10 = vmor %vm10960_vm15, %vm10961_vm1  ;;  %vm10921_vm0 = vsmask.f32 1282  ;;  %vm10966_vm2 = vsmask.f32 5396  ;;  %vm11038_vm12 = vcmask 523264  }
 0x554   : > { %14428 = vmatmul.mubr.msk.bf16.vlgmr.msra.gmra.mxu1 %vm9666_vm4, %v9653_v19  ;;  %14458 = vmatpush3.bf16.msra.mxu0 %v14783_v1  ;;  %v10272_v63 = vcombine.low %v10264_v4, %v10271_v52  ;;  %v14802_v1 = vld [vmem:[%s19393_s7 + $0x10] sm:$0xff]   ;;  %v14809_v19 = vld [vmem:[%s19393_s7 + $0x20] sm:$0xff]   ;;  %vm10964_vm11 = vmor %vm10962_vm10, %vm10963_vm9  ;;  %vm12627_vm9 = vcmask 73728  }
 0x555   : > { %14432 = vmatpush3.bf16.msra.mxu1 %v14782_v32  ;;  %14471 = vmatprep.subr.bf16.mxu0 %v15180_v41  ;;  %v10536_v61 = vrot.slane %v10522_v14, %v17627_v28  ;;  %v14804_v32 = vld [vmem:[%s19393_s7 + $0x8] sm:$0xff]   ;;  %vm18964_vm7 = vmand %vm600_vm5, %vm10921_vm0 }
 0x556   : > { %14433 = vmatprep.subr.bf16.mxu1 %v15180_v41  ;;  %14435 = vmatprep.mubr.msk.bf16.mxu1 %vm15181_vm13, %v15180_v41  ;;  %vm10965_vm14 = vmor %vm10964_vm11, %vm638_vm8  ;;  %vm10970_vm8 = vsmask.f32 7452 }
 0x557   : > { %14460 = vmatmul.mubr.msk.bf16.vlgmr.msra.gmra.mxu0 %vm9666_vm4, %v10136_v10  ;;  %v10537_v45 = vcombine.low %v18797_v0, %v10536_v61  ;;  %v14803_v0 = vld [vmem:[%s19393_s7 + $0x38] sm:$0xff]   ;;  %vm10967_vm3 = vmor %vm10965_vm14, %vm10966_vm2 }
 0x558   : > { %14472 = vmatpush3.bf16.msra.mxu0 %v14785_v49  ;;  %14475 = vmatprep.mubr.msk.bf16.mxu0 %vm15181_vm13, %v15180_v41 }
 0x559   : > { %14434 = vmatpush3.bf16.msra.mxu1 %v14784_v24  ;;  %14473 = vmatprep.subr.bf16.mxu0 %v15180_v41 }
 0x55a   : > { %14447 = vmatprep.subr.bf16.mxu1 %v15180_v41 }
 0x55c   : > { %14436 = vmatmul.mubr.msk.bf16.vlgmr.msra.gmra.mxu1 %vm9666_vm4, %v9731_v57  ;;  %14474 = vmatpush3.bf16.msra.mxu0 %v14789_v2 }
 0x55d   : > { %14448 = vmatpush3.bf16.msra.mxu1 %v14788_v48  ;;  %14487 = vmatprep.subr.bf16.mxu0 %v15180_v41 }
 0x55e   : > { %14449 = vmatprep.subr.bf16.mxu1 %v15180_v41  ;;  %14451 = vmatprep.mubr.msk.bf16.mxu1 %vm15181_vm13, %v15180_v41 }
 0x55f   : > { %14476 = vmatmul.mubr.msk.bf16.vlgmr.msra.gmra.mxu0 %vm9666_vm4, %v10361_v42 }
 0x560   : > { %14488 = vmatpush3.bf16.msra.mxu0 %v14793_v27  ;;  %14491 = vmatprep.mubr.msk.bf16.mxu0 %vm15181_vm13, %v15180_v41 }
 0x561   : > { %14450 = vmatpush3.bf16.msra.mxu1 %v14790_v13  ;;  %14489 = vmatprep.subr.bf16.mxu0 %v15180_v41 }
 0x562   : > { %14463 = vmatprep.subr.bf16.mxu1 %v15180_v41 }
 0x564   : > { %14452 = vmatmul.mubr.msk.bf16.vlgmr.msra.gmra.mxu1 %vm9666_vm4, %v9960_v23  ;;  %14490 = vmatpush3.bf16.msra.mxu0 %v14797_v5 }
 0x565   : > { %14464 = vmatpush3.bf16.msra.mxu1 %v14796_v47  ;;  %14467 = vmatprep.mubr.msk.bf16.mxu1 %vm15181_vm13, %v15180_v41 }
 0x566   : > { %14465 = vmatprep.subr.bf16.mxu1 %v15180_v41  ;;  %14507 = vmatprep.subr.bf16.mxu0 %v15180_v41 }
 0x567   : > { %14492 = vmatmul.mubr.msk.bf16.vlgmr.msra.gmra.mxu0 %vm9666_vm4, %v10673_v18 }
 0x568   : > { %14515 = vmatprep.mubr.msk.bf16.mxu0 %vm15181_vm13, %v15180_v41  ;;  %14508 = vmatpush3.bf16.msra.mxu0 %v14801_v26 }
 0x569   : > { %14466 = vmatpush3.bf16.msra.mxu1 %v14798_v36  ;;  %14509 = vmatprep.subr.bf16.mxu0 %v15180_v41 }
 0x56a   : > { %14479 = vmatprep.subr.bf16.mxu1 %v15180_v41 }
 0x56c   : > { %14468 = vmatmul.mubr.msk.bf16.vlgmr.msra.gmra.mxu1 %vm9666_vm4, %v10272_v63  ;;  %14510 = vmatpush3.bf16.msra.mxu0 %v14802_v1 }
 0x56d   : > { %14480 = vmatpush3.bf16.msra.mxu1 %v14799_v30  ;;  %14483 = vmatprep.mubr.msk.bf16.mxu1 %vm15181_vm13, %v15180_v41  ;;  %v13425_v30 = vld [vmem:[#allocation11] ss:$0 sm:$0xff] }
 0x56e   : > { %14481 = vmatprep.subr.bf16.mxu1 %v15180_v41  ;;  %14511 = vmatprep.subr.bf16.mxu0 %v15180_v41 }
 0x570   : > { %14512 = vmatpush3.bf16.msra.mxu0 %v14804_v32 }
 0x571   : > { %14482 = vmatpush3.bf16.msra.mxu1 %v14800_v17  ;;  %14513 = vmatprep.subr.bf16.mxu0 %v15180_v41 }
 0x572   : > { %14495 = vmatprep.subr.bf16.mxu1 %v15180_v41 }
 0x574   : > { %14484 = vmatmul.mubr.msk.bf16.vlgmr.msra.gmra.mxu1 %vm9666_vm4, %v10537_v45  ;;  %14514 = vmatpush3.bf16.msra.mxu0 %v14806_v11  ;;  %vm10968_vm4 = vsmask.f32 6424 }
 0x575   : > { %14503 = vmatprep.mubr.msk.bf16.mxu1 %vm15181_vm13, %v15180_v41  ;;  %14496 = vmatpush3.bf16.msra.mxu1 %v14803_v0 }
 0x576   : > { %14497 = vmatprep.subr.bf16.mxu1 %v15180_v41  ;;  %14531 = vmatprep.subr.bf16.mxu0 %v15180_v41 }
 0x579   : > { %14498 = vmatpush3.bf16.msra.mxu1 %v14805_v35 }
 0x57a   : > { %14499 = vmatprep.subr.bf16.mxu1 %v15180_v41 }
 0x57d   : > { %14500 = vmatpush3.bf16.msra.mxu1 %v14807_v58 }
 0x57e   : > { %14501 = vmatprep.subr.bf16.mxu1 %v15180_v41 }
 0x581   : > { %14502 = vmatpush3.bf16.msra.mxu1 %v14809_v19 }
 0x582   : > { %14519 = vmatprep.subr.bf16.mxu1 %v15180_v41 }
 0x60f   : > { %v9922_v39 = vpop.f32.mrf.mxu0 }
 0x611   : > { %v14445_v40 = vpop.f32.mrf.mxu0 }
 0x613   : > { %v9925_v49 = vpop.f32.mrf.mxu0 }
 0x614   : > { %v9704_v44 = vpop.f32.mrf.mxu1 }
 0x615   : > { %v14446_v60 = vpop.f32.mrf.mxu0 }
 0x616   : > { %v14429_v55 = vpop.f32.mrf.mxu1 }
 0x617   : > { %v10186_v24 = vpop.f32.mrf.mxu0 }
 0x618   : > { %v9707_v10 = vpop.f32.mrf.mxu1 }
 0x619   : > { %v14461_v54 = vpop.f32.mrf.mxu0 }
 0x61a   : > { %v14430_v29 = vpop.f32.mrf.mxu1 }
 0x61b   : > { %v10189_v34 = vpop.f32.mrf.mxu0 }
 0x61c   : > { %v9781_v2 = vpop.f32.mrf.mxu1 }
 0x61d   : > { %v14462_v7 = vpop.f32.mrf.mxu0  ;;  %v9782_v57 = vadd.f32 %v9781_v2, %v9704_v44 }
 0x61e   : > { %v14437_v38 = vpop.f32.mrf.mxu1 }
 0x61f   : > { %v10411_v3 = vpop.f32.mrf.mxu0  ;;  %v9929_v51 = vadd.f32 %v9922_v39, %v9782_v57 }
 0x620   : > { %v9784_v48 = vpop.f32.mrf.mxu1 }
 0x621   : > { %v14477_v62 = vpop.f32.mrf.mxu0  ;;  %v9785_v9 = vadd.f32 %v9784_v48, %v9707_v10 }
 0x622   : > { %v14438_v50 = vpop.f32.mrf.mxu1 }
 0x623   : > { %v10414_v20 = vpop.f32.mrf.mxu0  ;;  %v9930_v25 = vadd.f32 %v9925_v49, %v9785_v9 }
 0x624   : > { %v10010_v59 = vpop.f32.mrf.mxu1 }
 0x625   : > { %v14478_v27 = vpop.f32.mrf.mxu0  ;;  %v10017_v6 = vadd.f32 %v10010_v59, %v9929_v51 }
 0x626   : > { %v14453_v53 = vpop.f32.mrf.mxu1 }
 0x627   : > { %v10723_v13 = vpop.f32.mrf.mxu0  ;;  %v10193_v43 = vadd.f32 %v10186_v24, %v10017_v6 }
 0x628   : > { %v10013_v42 = vpop.f32.mrf.mxu1 }
 0x629   : > { %v14493_v46 = vpop.f32.mrf.mxu0  ;;  %v10018_v16 = vadd.f32 %v10013_v42, %v9930_v25 }
 0x62a   : > { %v14454_v22 = vpop.f32.mrf.mxu1 }
 0x62b   : > { %v10726_v5 = vpop.f32.mrf.mxu0  ;;  %v10194_v36 = vadd.f32 %v10189_v34, %v10018_v16 }
 0x62c   : > { %v10322_v47 = vpop.f32.mrf.mxu1 }
 0x62d   : > { %v14494_v23 = vpop.f32.mrf.mxu0  ;;  %v10329_v37 = vadd.f32 %v10322_v47, %v10193_v43 }
 0x62e   : > { %v14469_v33 = vpop.f32.mrf.mxu1 }
 0x62f   : > { %v10418_v8 = vadd.f32 %v10411_v3, %v10329_v37 }
 0x630   : > { %v10325_v21 = vpop.f32.mrf.mxu1 }
 0x631   : > { %v10330_v31 = vadd.f32 %v10325_v21, %v10194_v36 }
 0x632   : > { %v14470_v18 = vpop.f32.mrf.mxu1 }
 0x633   : > { %v10419_v14 = vadd.f32 %v10414_v20, %v10330_v31 }
 0x634   : > { %v10587_v52 = vpop.f32.mrf.mxu1 }
 0x635   : > { %v10594_v4 = vadd.f32 %v10587_v52, %v10418_v8 }
 0x636   : > { %v14485_v15 = vpop.f32.mrf.mxu1 }
 0x637   : > { %v10730_v63 = vadd.f32 %v10723_v13, %v10594_v4 }
 0x638   : > { %v10590_v17 = vpop.f32.mrf.mxu1 }
 0x639   : > { %v10739_v61 = vadd.f32 %v13425_v30, %v10730_v63  ;;  %v10595_v45 = vadd.f32 %v10590_v17, %v10419_v14 }
 0x63a   : > { %v14486_v26 = vpop.f32.mrf.mxu1 }
 0x63b   : > { %v10741_v0 = vmax.f32 %v10739_v61, 0.0  ;;  %v10731_v1 = vadd.f32 %v10726_v5, %v10595_v45 }
 0x63d   : > { %v10745_v35 = vcombine.high %v10741_v0, %v10741_v0  ;;  %v10752_v32 = vrot.slane %v10741_v0, %v17627_v28  ;;  %v10740_v58 = vadd.f32 %v13425_v30, %v10731_v1 }
 0x63f   : > { %v10759_v11 = vrot.slane %v10745_v35, %v17627_v28  ;;  %v10760_v19 = vcombine.high %v10752_v32, %v10752_v32  ;;  %v10742_v39 = vmax.f32 %v10740_v58, 0.0  ;;  %v10787_v49 = vsel %vm600_vm5, %v10752_v32, -inf }
 0x641   : > { %v10761_v40 = vcombine.high %v10759_v11, %v10759_v11  ;;  %v10788_v44 = vsel %vm600_vm5, %v10759_v11, -inf  ;;  %v10762_v60 = vcombine.high %v10742_v39, %v10742_v39  ;;  %v10769_v24 = vrot.slane %v10742_v39, %v17627_v28 }
 0x642   : > { %v10789_v55 = vmax.f32 %v10787_v49, %v10788_v44  ;;  %v10790_v10 = vsel %vm600_vm5, %v10760_v19, -inf }
 0x643   : > { %v10791_v54 = vsel %vm600_vm5, %v10761_v40, -inf  ;;  %v10776_v29 = vrot.slane %v10762_v60, %v17627_v28  ;;  %v10777_v7 = vcombine.high %v10769_v24, %v10769_v24  ;;  %v10793_v48 = vsel %vm600_vm5, %v10769_v24, -inf }
 0x644   : > { %v10792_v34 = vmax.f32 %v10790_v10, %v10791_v54  ;;  %v10799_v2 = vsel %vm600_vm5, %v10789_v55, -inf  ;;  %v10923_v54 = vld [vmem:[#allocation5 + $0x2] sm:$0x3]  ;;  %v14821_v10 = vld [vmem:[%s19393_s7 + $0x90] sm:$0xff]  }
 0x645   : > { %v10800_v38 = vrot.slane %v10799_v2, 4  ;;  %v10778_v3 = vcombine.high %v10776_v29, %v10776_v29  ;;  %v10794_v62 = vsel %vm600_vm5, %v10776_v29, -inf  ;;  %v10796_v27 = vsel %vm600_vm5, %v10777_v7, -inf }
 0x646   : > { %v10806_v50 = vsel %vm600_vm5, %v10792_v34, -inf  ;;  %v10795_v57 = vmax.f32 %v10793_v48, %v10794_v62 }
 0x647   : > { %v10801_v20 = vmax.f32 %v10799_v2, %v10800_v38  ;;  %v10807_v59 = vrot.slane %v10806_v50, 4  ;;  %v10797_v53 = vsel %vm600_vm5, %v10778_v3, -inf  ;;  %v15182_v38 = vmov 1966171168  }
 0x648   : > { %v10798_v9 = vmax.f32 %v10796_v27, %v10797_v53  ;;  %v10813_v51 = vsel %vm600_vm5, %v10795_v57, -inf  ;;  %v11001_v3 = vunpack.c.l.s4 %v15182_v38  ;;  %v10926_v57 = vld [vmem:[#allocation5 + $0x4] sm:$0x3]  ;;  %v14823_v38 = vld [vmem:[%s19393_s7 + $0x88] sm:$0xff]  }
 0x649   : > { %v10802_v13 = vrot.slane %v10801_v20, 2  ;;  %v10808_v42 = vmax.f32 %v10806_v50, %v10807_v59  ;;  %v10814_v6 = vrot.slane %v10813_v51, 4  ;;  %v13426_v50 = vld.sshfl [vmem:[#allocation5] sm:$0x11 pattern:$0x75316420] }
 0x64a   : > { %v10820_v46 = vsel %vm600_vm5, %v10798_v9, -inf  ;;  %v11002_v59 = vunpack.c.0.s8 %v11001_v3  ;;  %v10950_v27 = vcombine.high %v13426_v50, %v13426_v50  ;;  %v10929_v9 = vld [vmem:[#allocation5] sm:$0x1] }
 0x64b   : > { %v10803_v22 = vmax.f32 %v10801_v20, %v10802_v13  ;;  %v10809_v25 = vrot.slane %v10808_v42, 2  ;;  %v10815_v5 = vmax.f32 %v10813_v51, %v10814_v6  ;;  %v10821_v47 = vrot.slane %v10820_v46, 4 }
 0x64c   : > { %v18977_v51 = vsub.s32 %v11002_v59, %v17613_v56  ;;  %v10973_v13 = vshrl.u32 %v13426_v50, 16  ;;  %v14824_v50 = vld [vmem:[%s19393_s7 + $0xf8] sm:$0xff]  }
 0x64d   : > { %v10804_v16 = vrot.slane %v10803_v22, 1  ;;  %v10810_v43 = vmax.f32 %v10808_v42, %v10809_v25  ;;  %v10816_v23 = vrot.slane %v10815_v5, 2  ;;  %v10822_v33 = vmax.f32 %v10820_v46, %v10821_v47 }
 0x64e   : > { %v10978_v42 = vshll.u32 %v10950_v27, 16 }
 0x64f   : > { %v10805_v37 = vmax.f32 %v10803_v22, %v10804_v16  ;;  %v10811_v21 = vrot.slane %v10810_v43, 1  ;;  %v10817_v36 = vmax.f32 %v10815_v5, %v10816_v23  ;;  %v10823_v18 = vrot.slane %v10822_v33, 2 }
 0x651   : > { %v10812_v31 = vmax.f32 %v10810_v43, %v10811_v21  ;;  %v10827_v8 = vpack.c.bf16 %v10805_v37, %v10805_v37  ;;  %v10818_v52 = vrot.slane %v10817_v36, 1  ;;  %v10824_v4 = vmax.f32 %v10822_v33, %v10823_v18  ;;  %v14808_v33 = vld [vmem:[%s19393_s7 + $0x78] sm:$0xff]   ;;  %v14810_v18 = vld [vmem:[%s19393_s7 + $0x70] sm:$0xff]  }
 0x653   : > { %v10828_v30 = vpack.c.bf16 %v10812_v31, %v10812_v31  ;;  %v10841_v15 = vrot.slane %v10827_v8, %v17627_v28  ;;  %v10819_v63 = vmax.f32 %v10817_v36, %v10818_v52  ;;  %v10825_v14 = vrot.slane %v10824_v4, 1  ;;  %v14811_v8 = vld [vmem:[%s19393_s7 + $0x58] sm:$0xff]  }
 0x655   : > { %v10848_v17 = vrot.slane %v10828_v30, %v17627_v28  ;;  %v10869_v61 = vrot.slane %v10841_v15, %v17627_v28  ;;  %v10826_v45 = vmax.f32 %v10824_v4, %v10825_v14  ;;  %v10829_v26 = vpack.c.bf16 %v10819_v63, %v10819_v63  ;;  %v14812_v30 = vld [vmem:[%s19393_s7 + $0x68] sm:$0xff]   ;;  %v14813_v63 = vld [vmem:[%s19393_s7 + $0x50] sm:$0xff]  }
 0x657   : > { %v10876_v0 = vrot.slane %v10848_v17, %v17627_v28  ;;  %v10891_v1 = vunpack.c.l.b16 %v10869_v61  ;;  %v10830_v35 = vpack.c.bf16 %v10826_v45, %v10826_v45  ;;  %v10855_v32 = vrot.slane %v10829_v26, %v17627_v28  ;;  %v13448_v17 = vld.sshfl [vmem:[#allocation5] sm:$0x10 pattern:$0x75316420]  ;;  %v14815_v26 = vld [vmem:[%s19393_s7 + $0x48] sm:$0xff]  }
 0x658   : > { %v14814_v45 = vld [vmem:[%s19393_s7 + $0x60] sm:$0xff]  }
 0x659   : > { %v10892_v58 = vunpack.c.l.b16 %v10876_v0  ;;  %v10862_v11 = vrot.slane %v10830_v35, %v17627_v28  ;;  %v10883_v19 = vrot.slane %v10855_v32, %v17627_v28  ;;  %v10895_v39 = vrot.slane %v10891_v1, 7  ;;  %v14816_v35 = vld [vmem:[%s19393_s7 + $0xb8] sm:$0xff]  }
 0x65b   : > { %v10896_v40 = vrot.slane %v10892_v58, 6  ;;  %v10890_v49 = vrot.slane %v10862_v11, %v17627_v28  ;;  %v10893_v44 = vunpack.c.l.b16 %v10883_v19  ;;  %v14817_v11 = vld [vmem:[%s19393_s7 + $0x40] sm:$0xff]  }
 0x65d   : > { %v10897_v60 = vsel %vm7375_vm6, %v10896_v40, %v10895_v39  ;;  %v10894_v55 = vunpack.c.l.b16 %v10890_v49  ;;  %v10898_v29 = vrot.slane %v10893_v44, 7  ;;  %v14818_v40 = vld [vmem:[%s19393_s7 + $0xb0] sm:$0xff]   ;;  %v14819_v49 = vld [vmem:[%s19393_s7 + $0x98] sm:$0xff]  }
 0x65e   : > { %v10901_v24 = vpack.c.b16 %v10897_v60, %v10897_v60 }
 0x65f   : > { %v10899_v34 = vrot.slane %v10894_v55, 6 }
 0x660   : > { %v10909_v2 = vrot.slane %v10901_v24, %v17627_v28  ;;  %v14820_v24 = vld [vmem:[%s19393_s7 + $0xa8] sm:$0xff]  }
 0x661   : > { %v10900_v7 = vsel %vm7375_vm6, %v10899_v34, %v10898_v29  ;;  %vm10969_vm6 = vmor %vm10967_vm3, %vm10968_vm4 }
 0x662   : > { %v10924_v48 = vsel %vm18964_vm7, %v10909_v2, %v10923_v54  ;;  %v10902_v62 = vpack.c.b16 %v10900_v7, %v10900_v7  ;;  %vm18979_vm5 = vmor %vm10969_vm6, %vm10970_vm8  ;;  %v13524_v2 = vld.sshfl [vmem:[#allocation5 + $0x6] sm:$0x11 pattern:$0x75316420] }
 0x663   : > { %10925 = vst [vmem:[#allocation5 + $0x2] sm:$0x3] %v10924_v48  ;;  %v10980_v16 = vsel %vm18979_vm5, %v10973_v13, %v10978_v42  ;;  %v14822_v7 = vld [vmem:[%s19393_s7 + $0xa0] sm:$0xff]   ;;  %v11743_v27 = vshrl.u32 %v13524_v2, 16  ;;  %v14827_v13 = vld [vmem:[%s19393_s7 + $0xd8] sm:$0xff]  }
 0x664   : > { %v10916_v20 = vrot.slane %v10902_v62, %v17627_v28  ;;  %v11732_v62 = vcombine.high %v13524_v2, %v13524_v2  ;;  %v14878_v2 = vld [vmem:[%s19395_s9 + $0x2c] ss:$16 sps:$4 sm:$0xff]  }
 0x666   : > { %v10927_v53 = vsel %vm18964_vm7, %v10916_v20, %v10926_v57  ;;  %v14825_v20 = vld [vmem:[%s19393_s7 + $0x80] sm:$0xff]  }
 0x667   : > { %10928 = vst [vmem:[#allocation5 + $0x4] sm:$0x3] %v10927_v53  ;;  %v11748_v53 = vshll.u32 %v11732_v62, 16  ;;  %v14879_v62 = vld [vmem:[%s19395_s9] ss:$16 sps:$4 sm:$0xff]  }
 0x66a   : > { %v10930_v6 = vld [vmem:[#allocation5 + $0x2] sm:$0x1]  ;;  %v13449_v61 = vld.sshfl [vmem:[#allocation5 + $0x2] sm:$0x10 pattern:$0x75316420] }
 0x66b   : > { %v13427_v46 = vld.sshfl [vmem:[#allocation5 + $0x2] sm:$0x11 pattern:$0x75316420]  ;;  %v11084_v25 = vcombine.low %v10929_v9, %v10930_v6  ;;  %v13458_v1 = vcombine.high %v13448_v17, %v13449_v61  ;;  %v14826_v9 = vld [vmem:[%s19393_s7 + $0xf0] sm:$0xff]   ;;  %v11750_v6 = vsel %vm18979_vm5, %v11743_v27, %v11748_v53 }
 0x66c   : > { %v10958_v5 = vcombine.high %v13427_v46, %v13427_v46  ;;  %v10982_v43 = vshrl.u32 %v13427_v46, 16  ;;  %v11278_v15 = vld [vmem:[#allocation5 + $0x2] sm:$0x1]  ;;  %v14828_v46 = vld [vmem:[%s19393_s7 + $0xe8] sm:$0xff]  }
 0x66d   : > { %v11091_v47 = vrot.slane %v11084_v25, %v18977_v51  ;;  %v11202_v19 = vrot.slane %v13458_v1, %v18977_v51  ;;  %v14829_v25 = vld [vmem:[%s19393_s7 + $0xd0] sm:$0xff]  }
 0x66e   : > { %v10987_v23 = vshll.u32 %v10958_v5, 16  ;;  %v11279_v4 = vld [vmem:[#allocation5 + $0x4] sm:$0x1]  ;;  %v14837_v17 = vld [vmem:[%s19395_s9 + $0xe0] ss:$16 sps:$4 sm:$0xff]  }
 0x66f   : > { %v11098_v37 = vrot.slane %v11091_v47, %v18977_v51  ;;  %v11291_v14 = vcombine.low %v11278_v15, %v11279_v4  ;;  %v13478_v32 = vld.sshfl [vmem:[#allocation5 + $0x4] sm:$0x11 pattern:$0x75316420]  ;;  %v11209_v44 = vrot.slane %v11202_v19, %v18977_v51  ;;  %v11618_v47 = vld [vmem:[#allocation5 + $0x6] sm:$0x1] }
 0x670   : > { %v18992_v21 = vsel %vm18979_vm5, %v10982_v43, %v10987_v23  ;;  %v11393_v39 = vcombine.high %v13478_v32, %v13478_v32  ;;  %v19049_v60 = vld.sshfl [vmem:[#allocation5 + $0x4] sm:$0x10 pattern:$0x75316420]  ;;  %v11404_v29 = vshrl.u32 %v13478_v32, 16  ;;  %v14831_v43 = vld [vmem:[%s19393_s7 + $0xc8] sm:$0xff]  }
 0x671   : > { %v10999_v36 = vcombine.low %v10980_v16, %v18992_v21  ;;  %14516 = vmatmul.mubr.msk.bf16.vlgmr.msra.gmra.mxu0 %vm11038_vm12, %v11098_v37  ;;  %v11298_v0 = vrot.slane %v11291_v14, %v18977_v51  ;;  %v13504_v54 = vcombine.high %v13449_v61, %v19049_v60  ;;  %v11617_v22 = vld [vmem:[#allocation5 + $0x4] sm:$0x1]  ;;  %v14835_v4 = vld [vmem:[%s19393_s7 + $0x108] sm:$0xff]   ;;  %v14849_v32 = vld [vmem:[%s19395_s9 + $0xa0] ss:$16 sps:$4 sm:$0xff]  }
 0x672   : > { %14532 = vmatpush3.bf16.msra.mxu0 %v14808_v33  ;;  %14539 = vmatprep.mubr.msk.bf16.mxu0 %vm15181_vm13, %v15180_v41  ;;  %v11409_v55 = vshll.u32 %v11393_v39, 16  ;;  %v14830_v16 = vld [vmem:[%s19393_s7 + $0xe0] sm:$0xff]   ;;  %v11630_v33 = vcombine.low %v11617_v22, %v11618_v47  ;;  %v14860_v19 = vld [vmem:[%s19395_s9 + $0x8c] ss:$16 sps:$4 sm:$0xff]  }
 0x673   : > { %v11006_v31 = vrot.slane %v10999_v36, %v18977_v51  ;;  %14533 = vmatprep.subr.bf16.mxu0 %v15180_v41  ;;  %v11305_v58 = vrot.slane %v11298_v0, %v18977_v51  ;;  %v11540_v3 = vrot.slane %v13504_v54, %v18977_v51  ;;  %v14836_v15 = vld [vmem:[%s19393_s7 + $0x100] sm:$0xff]   ;;  %v14848_v0 = vld [vmem:[%s19395_s9 + $0xcc] ss:$16 sps:$4 sm:$0xff]  }
 0x674   : > { %v11411_v34 = vsel %vm18979_vm5, %v11404_v29, %v11409_v55  ;;  %v11637_v36 = vrot.slane %v11630_v33, %v18977_v51  ;;  %v14839_v61 = vld [vmem:[%s19395_s9 + $0xe4] ss:$16 sps:$4 sm:$0xff]   ;;  %v14855_v39 = vld [vmem:[%s19395_s9 + $0x80] ss:$16 sps:$4 sm:$0xff]   ;;  %v14864_v55 = vld [vmem:[%s19395_s9 + $0x68] ss:$16 sps:$4 sm:$0xff]  }
 0x675   : > { %v11013_v52 = vrot.slane %v11006_v31, %v18977_v51  ;;  %v11421_v48 = vcombine.low %v18992_v21, %v11411_v34  ;;  %v11547_v57 = vrot.slane %v11540_v3, %v18977_v51  ;;  %v11760_v5 = vcombine.low %v11411_v34, %v11750_v6  ;;  %v14832_v21 = vld [vmem:[%s19393_s7 + $0xc0] sm:$0xff]   ;;  %v14870_v29 = vld [vmem:[%s19395_s9 + $0x48] ss:$16 sps:$4 sm:$0xff]  }
 0x676   : > { %14534 = vmatpush3.bf16.msra.mxu0 %v14810_v18  ;;  %v14833_v18 = vld [vmem:[%s19393_s7 + $0x118] sm:$0xff]   ;;  %v11644_v31 = vrot.slane %v11637_v36, %v18977_v51  ;;  %v14851_v1 = vld [vmem:[%s19395_s9 + $0xa4] ss:$16 sps:$4 sm:$0xff]   ;;  %v14867_v54 = vld [vmem:[%s19395_s9 + $0x40] ss:$16 sps:$4 sm:$0xff]  }
 0x677   : > { %14504 = vmatmul.mubr.msk.bf16.vlgmr.msra.gmra.mxu1 %vm11038_vm12, %v11013_v52  ;;  %14535 = vmatprep.subr.bf16.mxu0 %v15180_v41  ;;  %v11428_v59 = vrot.slane %v11421_v48, %v18977_v51  ;;  %v11767_v23 = vrot.slane %v11760_v5, %v18977_v51  ;;  %v13541_v52 = vld.sshfl [vmem:[#allocation5 + $0x6] sm:$0x10 pattern:$0x75316420]  ;;  %v14884_v48 = vld [vmem:[%s19395_s9 + $0xc] ss:$16 sps:$4 sm:$0xff]  }
 0x678   : > { %14520 = vmatpush3.bf16.msra.mxu1 %v14811_v8  ;;  %14527 = vmatprep.mubr.msk.bf16.mxu1 %vm15181_vm13, %v15180_v41  ;;  %v14834_v8 = vld [vmem:[%s19393_s7 + $0x110] sm:$0xff]  }
 0x679   : > { %14521 = vmatprep.subr.bf16.mxu1 %v15180_v41  ;;  %v11435_v42 = vrot.slane %v11428_v59, %v18977_v51  ;;  %v11774_v37 = vrot.slane %v11767_v23, %v18977_v51  ;;  %v14875_v34 = vld [vmem:[%s19395_s9 + $0x24] ss:$16 sps:$4 sm:$0xff]  }
 0x67a   : > { %14536 = vmatpush3.bf16.msra.mxu0 %v14812_v30  ;;  %v13550_v30 = vcombine.high %v19049_v60, %v13541_v52  ;;  %v14861_v60 = vld [vmem:[%s19395_s9 + $0x60] ss:$16 sps:$4 sm:$0xff]   ;;  %v14881_v3 = vld [vmem:[%s19395_s9 + $0x4] ss:$16 sps:$4 sm:$0xff]  }
 0x67b   : > { %14537 = vmatprep.subr.bf16.mxu0 %v15180_v41 }
 0x67c   : > { %14522 = vmatpush3.bf16.msra.mxu1 %v14813_v63  ;;  %v11879_v63 = vrot.slane %v13550_v30, %v18977_v51 }
 0x67d   : > { %14523 = vmatprep.subr.bf16.mxu1 %v15180_v41 }
 0x67e   : > { %14538 = vmatpush3.bf16.msra.mxu0 %v14814_v45  ;;  %v11886_v14 = vrot.slane %v11879_v63, %v18977_v51  ;;  %v14842_v51 = vld [vmem:[%s19395_s9 + $0xec] ss:$16 sps:$4 sm:$0xff]   ;;  %v14845_v45 = vld [vmem:[%s19395_s9 + $0xc4] ss:$16 sps:$4 sm:$0xff]  }
 0x67f   : > { %14555 = vmatprep.subr.bf16.mxu0 %v15180_v41 }
 0x680   : > { %14524 = vmatpush3.bf16.msra.mxu1 %v14815_v26  ;;  %v14846_v26 = vld [vmem:[%s19395_s9 + $0xc8] ss:$16 sps:$4 sm:$0xff]  }
 0x681   : > { %14525 = vmatprep.subr.bf16.mxu1 %v15180_v41  ;;  %14540 = vmatmul.mubr.msk.bf16.vlgmr.msra.gmra.mxu0 %vm11038_vm12, %v11305_v58  ;;  %v14852_v58 = vld [vmem:[%s19395_s9 + $0xa8] ss:$16 sps:$4 sm:$0xff]  }
 0x682   : > { %14556 = vmatpush3.bf16.msra.mxu0 %v14816_v35  ;;  %14563 = vmatprep.mubr.msk.bf16.mxu0 %vm15181_vm13, %v15180_v41  ;;  %v14854_v35 = vld [vmem:[%s19395_s9 + $0xac] ss:$16 sps:$4 sm:$0xff]  }
 0x683   : > { %14557 = vmatprep.subr.bf16.mxu0 %v15180_v41 }
 0x684   : > { %14526 = vmatpush3.bf16.msra.mxu1 %v14817_v11  ;;  %v14857_v11 = vld [vmem:[%s19395_s9 + $0x84] ss:$16 sps:$4 sm:$0xff]  }
 0x685   : > { %14543 = vmatprep.subr.bf16.mxu1 %v15180_v41 }
 0x686   : > { %14558 = vmatpush3.bf16.msra.mxu0 %v14818_v40  ;;  %v14858_v40 = vld [vmem:[%s19395_s9 + $0x88] ss:$16 sps:$4 sm:$0xff]  }
 0x687   : > { %14528 = vmatmul.mubr.msk.bf16.vlgmr.msra.gmra.mxu1 %vm11038_vm12, %v11209_v44  ;;  %14559 = vmatprep.subr.bf16.mxu0 %v15180_v41  ;;  %v14866_v44 = vld [vmem:[%s19395_s9 + $0x6c] ss:$16 sps:$4 sm:$0xff]  }
 0x688   : > { %14544 = vmatpush3.bf16.msra.mxu1 %v14819_v49  ;;  %14551 = vmatprep.mubr.msk.bf16.mxu1 %vm15181_vm13, %v15180_v41  ;;  %v14863_v49 = vld [vmem:[%s19395_s9 + $0x64] ss:$16 sps:$4 sm:$0xff]  }
 0x689   : > { %14545 = vmatprep.subr.bf16.mxu1 %v15180_v41 }
 0x68a   : > { %14560 = vmatpush3.bf16.msra.mxu0 %v14820_v24  ;;  %v14869_v24 = vld [vmem:[%s19395_s9 + $0x44] ss:$16 sps:$4 sm:$0xff]  }
 0x68b   : > { %14561 = vmatprep.subr.bf16.mxu0 %v15180_v41 }
 0x68c   : > { %14546 = vmatpush3.bf16.msra.mxu1 %v14821_v10  ;;  %v14872_v10 = vld [vmem:[%s19395_s9 + $0x4c] ss:$16 sps:$4 sm:$0xff]  }
 0x68d   : > { %14547 = vmatprep.subr.bf16.mxu1 %v15180_v41 }
 0x68e   : > { %14562 = vmatpush3.bf16.msra.mxu0 %v14822_v7  ;;  %v14873_v7 = vld [vmem:[%s19395_s9 + $0x20] ss:$16 sps:$4 sm:$0xff]  }
 0x68f   : > { %14579 = vmatprep.subr.bf16.mxu0 %v15180_v41 }
 0x690   : > { %14548 = vmatpush3.bf16.msra.mxu1 %v14823_v38  ;;  %v14876_v38 = vld [vmem:[%s19395_s9 + $0x28] ss:$16 sps:$4 sm:$0xff]  }
 0x691   : > { %14549 = vmatprep.subr.bf16.mxu1 %v15180_v41  ;;  %14564 = vmatmul.mubr.msk.bf16.vlgmr.msra.gmra.mxu0 %vm11038_vm12, %v11547_v57  ;;  %v14885_v57 = vld [vmem:[%s19397_s11 + $0x78] sm:$0xff]  }
 0x692   : > { %14580 = vmatpush3.bf16.msra.mxu0 %v14824_v50  ;;  %14587 = vmatprep.mubr.msk.bf16.mxu0 %vm15181_vm13, %v15180_v41  ;;  %v14882_v50 = vld [vmem:[%s19395_s9 + $0x8] ss:$16 sps:$4 sm:$0xff]  }
 0x693   : > { %14581 = vmatprep.subr.bf16.mxu0 %v15180_v41 }
 0x694   : > { %14550 = vmatpush3.bf16.msra.mxu1 %v14825_v20  ;;  %v14886_v20 = vld [vmem:[%s19397_s11 + $0xf8] sm:$0xff]  }
 0x695   : > { %14567 = vmatprep.subr.bf16.mxu1 %v15180_v41 }
 0x696   : > { %14582 = vmatpush3.bf16.msra.mxu0 %v14826_v9 }
 0x697   : > { %14552 = vmatmul.mubr.msk.bf16.vlgmr.msra.gmra.mxu1 %vm11038_vm12, %v11435_v42  ;;  %14583 = vmatprep.subr.bf16.mxu0 %v15180_v41 }
 0x698   : > { %14568 = vmatpush3.bf16.msra.mxu1 %v14827_v13  ;;  %14575 = vmatprep.mubr.msk.bf16.mxu1 %vm15181_vm13, %v15180_v41 }
 0x699   : > { %14569 = vmatprep.subr.bf16.mxu1 %v15180_v41 }
 0x69a   : > { %14584 = vmatpush3.bf16.msra.mxu0 %v14828_v46 }
 0x69b   : > { %14585 = vmatprep.subr.bf16.mxu0 %v15180_v41 }
 0x69c   : > { %14570 = vmatpush3.bf16.msra.mxu1 %v14829_v25 }
 0x69d   : > { %14571 = vmatprep.subr.bf16.mxu1 %v15180_v41 }
 0x69e   : > { %14586 = vmatpush3.bf16.msra.mxu0 %v14830_v16 }
 0x69f   : > { %12200 = vmatprep.subr.bf16.mxu0 %v14839_v61 }
 0x6a0   : > { %14572 = vmatpush3.bf16.msra.mxu1 %v14831_v43 }
 0x6a1   : > { %14573 = vmatprep.subr.bf16.mxu1 %v15180_v41  ;;  %14588 = vmatmul.mubr.msk.bf16.vlgmr.msra.gmra.mxu0 %vm11038_vm12, %v11774_v37 }
 0x6a2   : > { %12232 = vmatprep.mubr.bf16.mxu0 %v19598_v12  ;;  %12201 = vmatpush1.bf16.msra.mxu0 %v14837_v17 }
 0x6a3   : > { %12202 = vmatprep.subr.bf16.mxu0 %v14845_v45 }
 0x6a4   : > { %14574 = vmatpush3.bf16.msra.mxu1 %v14832_v21 }
 0x6a5   : > { %14591 = vmatprep.subr.bf16.mxu1 %v15180_v41 }
 0x6a7   : > { %14576 = vmatmul.mubr.msk.bf16.vlgmr.msra.gmra.mxu1 %vm11038_vm12, %v11644_v31 }
 0x6a8   : > { %14592 = vmatpush3.bf16.msra.mxu1 %v14833_v18  ;;  %14599 = vmatprep.mubr.msk.bf16.mxu1 %vm15181_vm13, %v15180_v41  ;;  %vm19609_vm13 = vcmask 1041408  }
 0x6a9   : > { %14593 = vmatprep.subr.bf16.mxu1 %v15180_v41  ;;  %vm19610_vm15 = vmmov %vm19609_vm13 }
 0x6aa   : > { %vm19611_vm1 = vmmov %vm19609_vm13 }
 0x6ac   : > { %14594 = vmatpush3.bf16.msra.mxu1 %v14834_v8 }
 0x6ad   : > { %14595 = vmatprep.subr.bf16.mxu1 %v15180_v41 }
 0x6b0   : > { %14596 = vmatpush3.bf16.msra.mxu1 %v14835_v4 }
 0x6b1   : > { %14597 = vmatprep.subr.bf16.mxu1 %v15180_v41  ;;  %v14840_v41 = vld [vmem:[%s19395_s9 + $0xe8] ss:$16 sps:$4 sm:$0xff]  }
 0x6b4   : > { %14598 = vmatpush3.bf16.msra.mxu1 %v14836_v15 }
 0x6b5   : > { %12241 = vmatprep.subr.bf16.mxu1 %v14842_v51 }
 0x6b7   : > { %14600 = vmatmul.mubr.msk.bf16.vlgmr.msra.gmra.mxu1 %vm11038_vm12, %v11886_v14 }
 0x6b8   : > { %12273 = vmatprep.mubr.bf16.mxu1 %v19598_v12  ;;  %12242 = vmatpush1.bf16.msra.mxu1 %v14840_v41  ;;  %v14843_v12 = vld [vmem:[%s19395_s9 + $0xc0] ss:$16 sps:$4 sm:$0xff]  }
 0x6b9   : > { %12243 = vmatprep.subr.bf16.mxu1 %v14848_v0  ;;  %12203 = vmatpush1.bf16.msra.mxu0 %v14843_v12 }
 0x6ba   : > { %12204 = vmatprep.subr.bf16.mxu0 %v14851_v1 }
 0x6bc   : > { %12244 = vmatpush1.bf16.msra.mxu1 %v14846_v26 }
 0x6bd   : > { %12245 = vmatprep.subr.bf16.mxu1 %v14854_v35  ;;  %12205 = vmatpush1.bf16.msra.mxu0 %v14849_v32 }
 0x6be   : > { %12206 = vmatprep.subr.bf16.mxu0 %v14857_v11  ;;  %v13556_v11 = vld [vmem:[#allocation12] ss:$0 sm:$0xff] }
 0x6c0   : > { %12246 = vmatpush1.bf16.msra.mxu1 %v14852_v58 }
 0x6c1   : > { %12247 = vmatprep.subr.bf16.mxu1 %v14860_v19  ;;  %12207 = vmatpush1.bf16.msra.mxu0 %v14855_v39 }
 0x6c2   : > { %12208 = vmatprep.subr.bf16.mxu0 %v14863_v49 }
 0x6c4   : > { %12248 = vmatpush1.bf16.msra.mxu1 %v14858_v40 }
 0x6c5   : > { %12249 = vmatprep.subr.bf16.mxu1 %v14866_v44  ;;  %12209 = vmatpush1.bf16.msra.mxu0 %v14861_v60 }
 0x6c6   : > { %12210 = vmatprep.subr.bf16.mxu0 %v14869_v24 }
 0x6c8   : > { %12250 = vmatpush1.bf16.msra.mxu1 %v14864_v55 }
 0x6c9   : > { %12251 = vmatprep.subr.bf16.mxu1 %v14872_v10  ;;  %12211 = vmatpush1.bf16.msra.mxu0 %v14867_v54 }
 0x6ca   : > { %12212 = vmatprep.subr.bf16.mxu0 %v14875_v34 }
 0x6cc   : > { %12252 = vmatpush1.bf16.msra.mxu1 %v14870_v29 }
 0x6cd   : > { %12253 = vmatprep.subr.bf16.mxu1 %v14878_v2  ;;  %12213 = vmatpush1.bf16.msra.mxu0 %v14873_v7 }
 0x6ce   : > { %12214 = vmatprep.subr.bf16.mxu0 %v14881_v3 }
 0x6d0   : > { %12254 = vmatpush1.bf16.msra.mxu1 %v14876_v38 }
 0x6d1   : > { %12255 = vmatprep.subr.bf16.mxu1 %v14884_v48  ;;  %12215 = vmatpush1.bf16.msra.mxu0 %v14879_v62 }
 0x6d2   : > { %13983 = vmatprep.subr.bf16.mxu0 %v14885_v57 }
 0x6d4   : > { %12256 = vmatpush1.bf16.msra.mxu1 %v14882_v50  ;;  %v14887_v50 = vld [vmem:[%s19397_s11 + $0x38] sm:$0xff]  }
 0x6d5   : > { %14005 = vmatprep.subr.bf16.mxu1 %v14886_v20  ;;  %v14889_v20 = vld [vmem:[%s19397_s11 + $0x70] sm:$0xff]  }
 0x731   : > { %v11160_v59 = vpop.f32.mrf.mxu0 }
 0x733   : > { %v14517_v27 = vpop.f32.mrf.mxu0 }
 0x734   : > { %v14891_v27 = vld [vmem:[%s19397_s11 + $0x30] sm:$0xff]  }
 0x735   : > { %v11163_v53 = vpop.f32.mrf.mxu0 }
 0x736   : > { %v14892_v53 = vld [vmem:[%s19397_s11 + $0xb0] sm:$0xff]  }
 0x737   : > { %v11076_v9 = vpop.f32.mrf.mxu1  ;;  %v14518_v13 = vpop.f32.mrf.mxu0 }
 0x738   : > { %v11161_v15 = vadd.f32 %v11160_v59, %v11076_v9  ;;  %v14890_v59 = vld [vmem:[%s19397_s11 + $0xf0] sm:$0xff]   ;;  %v14893_v9 = vld [vmem:[%s19397_s11 + $0x68] sm:$0xff]  }
 0x739   : > { %v14505_v42 = vpop.f32.mrf.mxu1  ;;  %v14894_v13 = vld [vmem:[%s19397_s11 + $0xe8] sm:$0xff]  }
 0x73a   : > { %v14895_v42 = vld [vmem:[%s19397_s11 + $0x28] sm:$0xff]  }
 0x73b   : > { %v11079_v6 = vpop.f32.mrf.mxu1 }
 0x73c   : > { %v14896_v6 = vld [vmem:[%s19397_s11 + $0xa8] sm:$0xff]  }
 0x73d   : > { %v14506_v46 = vpop.f32.mrf.mxu1 }
 0x73e   : > { %v14897_v46 = vld [vmem:[%s19397_s11 + $0x60] sm:$0xff]  }
 0x741   : > { %v11367_v25 = vpop.f32.mrf.mxu0 }
 0x743   : > { %v14541_v5 = vpop.f32.mrf.mxu0 }
 0x744   : > { %v14899_v5 = vld [vmem:[%s19397_s11 + $0x20] sm:$0xff]  }
 0x745   : > { %v11370_v22 = vpop.f32.mrf.mxu0 }
 0x746   : > { %v14900_v22 = vld [vmem:[%s19397_s11 + $0xa0] sm:$0xff]  }
 0x747   : > { %v11271_v47 = vpop.f32.mrf.mxu1  ;;  %v14542_v16 = vpop.f32.mrf.mxu0 }
 0x748   : > { %v11277_v14 = vadd.f32 %v11271_v47, %v11161_v15  ;;  %v14901_v47 = vld [vmem:[%s19397_s11 + $0x58] sm:$0xff]   ;;  %v14915_v15 = vld [vmem:[%s19397_s11] sm:$0xff]  }
 0x749   : > { %v14529_v43 = vpop.f32.mrf.mxu1  ;;  %v14902_v16 = vld [vmem:[%s19397_s11 + $0xd8] sm:$0xff]  }
 0x74a   : > { %v11373_v12 = vadd.f32 %v11367_v25, %v11277_v14  ;;  %v14898_v25 = vld [vmem:[%s19397_s11 + $0xe0] sm:$0xff]   ;;  %v14903_v43 = vld [vmem:[%s19397_s11 + $0x18] sm:$0xff]   ;;  %v12182_v14 = vsub.s32 0, %v17613_v56 }
 0x74b   : > { %v11274_v23 = vpop.f32.mrf.mxu1 }
 0x74c   : > { %v14904_v23 = vld [vmem:[%s19397_s11 + $0x98] sm:$0xff]  }
 0x74d   : > { %v14530_v33 = vpop.f32.mrf.mxu1 }
 0x74e   : > { %v14905_v33 = vld [vmem:[%s19397_s11 + $0x50] sm:$0xff]  }
 0x751   : > { %v11609_v37 = vpop.f32.mrf.mxu0 }
 0x753   : > { %v14565_v21 = vpop.f32.mrf.mxu0 }
 0x754   : > { %v14907_v21 = vld [vmem:[%s19397_s11 + $0x10] sm:$0xff]  }
 0x755   : > { %v11612_v36 = vpop.f32.mrf.mxu0 }
 0x756   : > { %v14908_v36 = vld [vmem:[%s19397_s11 + $0x90] sm:$0xff]  }
 0x757   : > { %v11497_v18 = vpop.f32.mrf.mxu1  ;;  %v14566_v31 = vpop.f32.mrf.mxu0 }
 0x758   : > { %v11503_v26 = vadd.f32 %v11497_v18, %v11373_v12  ;;  %v14909_v18 = vld [vmem:[%s19397_s11 + $0x48] sm:$0xff]  }
 0x759   : > { %v14553_v8 = vpop.f32.mrf.mxu1  ;;  %v14910_v31 = vld [vmem:[%s19397_s11 + $0xc8] sm:$0xff]  }
 0x75a   : > { %v11615_v1 = vadd.f32 %v11609_v37, %v11503_v26  ;;  %v14906_v37 = vld [vmem:[%s19397_s11 + $0xd0] sm:$0xff]   ;;  %v14911_v8 = vld [vmem:[%s19397_s11 + $0x8] sm:$0xff]  }
 0x75b   : > { %v11500_v52 = vpop.f32.mrf.mxu1 }
 0x75c   : > { %v14912_v52 = vld [vmem:[%s19397_s11 + $0x88] sm:$0xff]  }
 0x75d   : > { %v14554_v4 = vpop.f32.mrf.mxu1 }
 0x75e   : > { %v14913_v4 = vld [vmem:[%s19397_s11 + $0x40] sm:$0xff]  }
 0x761   : > { %v11836_v30 = vpop.f32.mrf.mxu0 }
 0x763   : > { %v14589_v63 = vpop.f32.mrf.mxu0 }
 0x764   : > { %v14916_v63 = vld [vmem:[%s19397_s11 + $0x80] sm:$0xff]  }
 0x765   : > { %v11839_v17 = vpop.f32.mrf.mxu0 }
 0x766   : > { %v12190_v17 = vsub.s32 2, %v17613_v56 }
 0x767   : > { %v11706_v61 = vpop.f32.mrf.mxu1  ;;  %v14590_v41 = vpop.f32.mrf.mxu0 }
 0x768   : > { %v11712_v35 = vadd.f32 %v11706_v61, %v11615_v1  ;;  %v12018_v61 = vld [vmem:[#allocation14] sm:$0xf]  ;;  %v12186_v41 = vsub.s32 1, %v17613_v56 }
 0x769   : > { %v14577_v51 = vpop.f32.mrf.mxu1  ;;  %v12183_v12 = vrot.slane %v12018_v61, %v12182_v14 }
 0x76a   : > { %v11842_v32 = vadd.f32 %v11836_v30, %v11712_v35  ;;  %v14914_v30 = vld [vmem:[%s19397_s11 + $0xc0] sm:$0xff]   ;;  %v12194_v51 = vsub.s32 3, %v17613_v56  ;;  %v12187_v26 = vrot.slane %v12018_v61, %v12186_v41 }
 0x76b   : > { %v11709_v45 = vpop.f32.mrf.mxu1 }
 0x76c   : > { %v12191_v45 = vrot.slane %v12018_v61, %v12190_v17 }
 0x76d   : > { %v14578_v0 = vpop.f32.mrf.mxu1 }
 0x76e   : > { %v12195_v0 = vrot.slane %v12018_v61, %v12194_v51 }
 0x777   : > { %v11948_v58 = vpop.f32.mrf.mxu1 }
 0x778   : > { %v11954_v19 = vadd.f32 %v11948_v58, %v11842_v32 }
 0x779   : > { %v14601_v39 = vpop.f32.mrf.mxu1 }
 0x77a   : > { %v11962_v40 = vadd.f32 %v13556_v11, %v11954_v19 }
 0x77b   : > { %v11951_v49 = vpop.f32.mrf.mxu1 }
 0x77c   : > { %v11963_v44 = vmax.f32 %v11962_v40, 0.0 }
 0x77d   : > { %v14602_v60 = vpop.f32.mrf.mxu1 }
 0x77e   : > { %v11971_v55 = vrot.slane %v11963_v44, %v17627_v28  ;;  %v14888_v28 = vld [vmem:[%s19397_s11 + $0xb8] sm:$0xff]  }
 0x780   : > { %v11972_v24 = vcombine.high %v11971_v55, %v11971_v55  ;;  %v11975_v10 = vsel %vm19609_vm13, %v11971_v55, -inf }
 0x782   : > { %v11976_v54 = vsel %vm19610_vm15, %v11972_v24, -inf }
 0x783   : > { %v11977_v29 = vmax.f32 %v11975_v10, %v11976_v54 }
 0x785   : > { %v11978_v34 = vsel %vm19611_vm1, %v11977_v29, -inf }
 0x786   : > { %v11979_v2 = vrot.slane %v11978_v34, 4 }
 0x788   : > { %v11980_v7 = vmax.f32 %v11978_v34, %v11979_v2 }
 0x78a   : > { %v11981_v38 = vrot.slane %v11980_v7, 2 }
 0x78c   : > { %v11982_v3 = vmax.f32 %v11980_v7, %v11981_v38 }
 0x78e   : > { %v11983_v48 = vrot.slane %v11982_v3, 1 }
 0x790   : > { %v11984_v62 = vmax.f32 %v11982_v3, %v11983_v48  ;;  %v12354_v48 = vld [vmem:[#allocation15] sm:$0x1] }
 0x792   : > { %v11985_v57 = vpack.c.bf16 %v11984_v62, %v11984_v62 }
 0x794   : > { %12233 = vmatmul.mubr.bf16.vlgmr.msra.gmra.mxu0 %v11985_v57  ;;  %12274 = vmatmul.mubr.bf16.vlgmr.msra.gmra.mxu1 %v11985_v57 }
 0x795   : > { %13984 = vmatpush3.bf16.msra.mxu0 %v14887_v50  ;;  %14006 = vmatpush3.bf16.msra.mxu1 %v14888_v28 }
 0x796   : > { %13985 = vmatprep.subr.bf16.mxu0 %v14889_v20  ;;  %14007 = vmatprep.subr.bf16.mxu1 %v14890_v59 }
 0x799   : > { %13986 = vmatpush3.bf16.msra.mxu0 %v14891_v27  ;;  %14008 = vmatpush3.bf16.msra.mxu1 %v14892_v53 }
 0x79a   : > { %13987 = vmatprep.subr.bf16.mxu0 %v14893_v9  ;;  %14009 = vmatprep.subr.bf16.mxu1 %v14894_v13 }
 0x79d   : > { %13988 = vmatpush3.bf16.msra.mxu0 %v14895_v42  ;;  %14010 = vmatpush3.bf16.msra.mxu1 %v14896_v6 }
 0x79e   : > { %13989 = vmatprep.subr.bf16.mxu0 %v14897_v46  ;;  %14011 = vmatprep.subr.bf16.mxu1 %v14898_v25 }
 0x7a1   : > { %13990 = vmatpush3.bf16.msra.mxu0 %v14899_v5  ;;  %14012 = vmatpush3.bf16.msra.mxu1 %v14900_v22 }
 0x7a2   : > { %13991 = vmatprep.subr.bf16.mxu0 %v14901_v47  ;;  %14013 = vmatprep.subr.bf16.mxu1 %v14902_v16 }
 0x7a5   : > { %13992 = vmatpush3.bf16.msra.mxu0 %v14903_v43  ;;  %14014 = vmatpush3.bf16.msra.mxu1 %v14904_v23 }
 0x7a6   : > { %13993 = vmatprep.subr.bf16.mxu0 %v14905_v33  ;;  %14015 = vmatprep.subr.bf16.mxu1 %v14906_v37 }
 0x7a9   : > { %13994 = vmatpush3.bf16.msra.mxu0 %v14907_v21  ;;  %14016 = vmatpush3.bf16.msra.mxu1 %v14908_v36 }
 0x7aa   : > { %13995 = vmatprep.subr.bf16.mxu0 %v14909_v18  ;;  %14017 = vmatprep.subr.bf16.mxu1 %v14910_v31 }
 0x7ad   : > { %13996 = vmatpush3.bf16.msra.mxu0 %v14911_v8  ;;  %14018 = vmatpush3.bf16.msra.mxu1 %v14912_v52 }
 0x7ae   : > { %13997 = vmatprep.subr.bf16.mxu0 %v14913_v4  ;;  %14019 = vmatprep.subr.bf16.mxu1 %v14914_v30 }
 0x7b1   : > { %13998 = vmatpush3.bf16.msra.mxu0 %v14915_v15  ;;  %14020 = vmatpush3.bf16.msra.mxu1 %v14916_v63 }
 0x854   : > { %v12234_v1 = vpop.f32.mrf.mxu0  ;;  %v12275_v35 = vpop.f32.mrf.mxu1 }
 0x855   : > { %v12235_v32 = vadd.f32 %v12234_v1, %v12183_v12  ;;  %v12276_v58 = vadd.f32 %v12275_v35, %v12191_v45 }
 0x856   : > { %v12236_v11 = vpop.f32.mrf.mxu0  ;;  %v12277_v19 = vpop.f32.mrf.mxu1 }
 0x857   : > { %v12237_v39 = vadd.f32 %v12236_v11, %v12187_v26  ;;  %v12278_v40 = vadd.f32 %v12277_v19, %v12195_v0  ;;  %v12282_v49 = vmax.f32 %v12235_v32, 0.0  ;;  %v12284_v44 = vmax.f32 %v12276_v58, 0.0 }
 0x858   : > { %v12238_v60 = vpop.f32.mrf.mxu0  ;;  %v12279_v55 = vpop.f32.mrf.mxu1 }
 0x859   : > { %v12283_v24 = vmax.f32 %v12237_v39, 0.0  ;;  %v12285_v10 = vmax.f32 %v12278_v40, 0.0  ;;  %v12286_v2 = vpack.c.bf16 %v12282_v49, %v12282_v49  ;;  %v12288_v7 = vpack.c.bf16 %v12284_v44, %v12284_v44 }
 0x85a   : > { %v12239_v56 = vpop.f32.mrf.mxu0  ;;  %v12280_v54 = vpop.f32.mrf.mxu1 }
 0x85b   : > { %v12287_v29 = vpack.c.bf16 %v12283_v24, %v12283_v24  ;;  %v12289_v34 = vpack.c.bf16 %v12285_v10, %v12285_v10 }
 0x85d   : > { %12579 = vmatprep.mubr.bf16.mxu0 %v12287_v29  ;;  %12619 = vmatprep.mubr.bf16.mxu1 %v12289_v34 }
 0x85e   : > { %12580 = vmatmul.mubr.bf16.vlgmr.msra.gmra.mxu0 %v12286_v2  ;;  %12620 = vmatmul.mubr.bf16.vlgmr.msra.gmra.mxu1 %v12288_v7 }
 0x91e   : > { %v13999_v38 = vpop.f32.mrf.mxu0  ;;  %v14021_v3 = vpop.f32.mrf.mxu1 }
 0x920   : > { %v14000_v62 = vpop.f32.mrf.mxu0  ;;  %v14022_v50 = vpop.f32.mrf.mxu1 }
 0x921   : > { %v14001_v28 = vadd.f32 %v14000_v62, %v13999_v38  ;;  %v14023_v27 = vadd.f32 %v14022_v50, %v14021_v3 }
 0x922   : > { %v14002_v57 = vpop.f32.mrf.mxu0  ;;  %v14024_v20 = vpop.f32.mrf.mxu1 }
 0x923   : > { %v12582_v59 = vadd.f32 %v14001_v28, %v12354_v48 }
 0x924   : > { %v14003_v53 = vpop.f32.mrf.mxu0  ;;  %v14025_v9 = vpop.f32.mrf.mxu1 }
 0x925   : > { %v12622_v13 = vadd.f32 %v14023_v27, %v12582_v59 }
 0x927   : > { %12628 = vst.msk [vmem:[%s508_s22] sm:$0x1] %vm12627_vm9, %v12622_v13 }
 0x928   : > { %15106 = shalt.err (!%p15103_p4)
}
 0x929   : > { %s15107_s30 = scalar_lea.hbm %s12640_s27, 16  ;;  %s15111_s4 = scalar_lea.hbm %s19399_s13, 32 }
 0x92a   : > { %p15108_p7 = scmp.ne.s32.totalorder %s12640_s27, %s15107_s30  ;;  %p15112_p11 = scmp.lt.s32.totalorder %s12640_s27, %s19399_s13 }
 0x92b   : > { %p15113_p0 = scmp.lt.s32.totalorder %s15111_s4, %s15107_s30 }
 0x92c   : > { %p15109_p8 = pnand %p15108_p7, %p19612_p9 }
 0x92d   : > { %p15114_p1 = por %p15113_p0, %p15112_p11 }
 0x92e   : > { %p15110_p12 = pneg %p15109_p8 }
 0x930   : > { %p15115_p2 = pnand %p15114_p1, %p15110_p12 }
 0x932   : > { %15118 = shalt.err (!%p15115_p2)
}
 0x933   : > { %14627 = dma.vmem_to_hbm [thread:$0]  (%p19612_p9), %s12643_s24, 16, %s12640_s27, %s12630_s14  }
 0x934 PF: > { %s19613_s21 = sld [smem:[#allocation26_spill]]  ;;  %p14664_p3 = scmp.ge.s32.totalorder %s15169_s28, 2 }
 0x935   : > { %s12654_s16 = sand.u32 1, %s15157_s25  }
 0x936   : > { %s12655_s29 = scalar_lea.sflag [#allocation8], %s12654_s16 }
 0x93a   : > { %p19614_p5 = scmp.ne.s32.totalorder %s19613_s21, 0 }
 0x93c   : > { %p14649_p6 = pnand %p14664_p3, %p19614_p5 }
 0x93e   : > { %p14650_p10 = pneg %p14649_p6 }
 0x940   : > { %15152 = dma.done.wait (%p14650_p10), %s12655_s29, 16  }
 0x941   : > { %15154 = vsyncadd (%p14650_p10), %s12655_s29, 4294967280  ;;  %s19615_s28 = sld [smem:[#allocation24_spill]]  ;;  %s19618_s25 = smov %s15161_s26 }
 0x942   : > { %s19616_s17 = sld [smem:[#allocation23_spill]] }
 0x943   : > { %s19617_s27 = sld [smem:[#allocation25_spill]] }
 0x947   : > { %p27_p13 = scmp.ge.s32.totalorder %s19615_s28, 4  }
 0x948   : > { %s19619_s26 = smov %s19616_s17 }
 0x949   :  { %29 = sbr.rel (!%p27_p13) target bundleno = 9 (0x9), region = 172 }
 0x94e   :  { %12659 = vsyncpa [#allocation7], 1 }
 0x94f   :  { %12661 = vsyncpa [#allocation7 + $0x1], 1 }
 0x950   :  { %12662 = vsyncpa [#allocation10], 1 }
 0x951   :  { %12663 = vsyncpa [#allocation13], 1 }
 0x952   :  { %12664 = vsyncpa [#allocation16], 1 }
 0x953   :  { %12665 = vsyncpa [#allocation8], 1 }
 0x954   :  { %12667 = vsyncpa [#allocation8 + $0x1], 1 }

</bundles_post_ra>
